<compile_context>
chip_gen: v7x
topology: tpu7x:2x2x1
jax: 0.10.0
libtpu: 0.0.40
codegen_flags: <defaults>
</compile_context>

<pallas_src>
import functools

import jax
import jax.numpy as jnp
from jax import lax
from jax.experimental import pallas as pl
from jax.experimental.pallas import tpu as pltpu


def _round_up(x, m):
    return ((x + m - 1) // m) * m


def _pick_tile_h(h):
    # ~8-row bands keep the f32 accumulator around the recommended 128-256
    # rows for typical widths and give the pipeline (and both v7x TensorCores)
    # several parallel grid steps per batch element.  Tunable per generation.
    for t in (8, 16, 4, 2):
        if h % t == 0:
            return t
    return h


# ----------------------------------------------------------------------------
# Pallas kernel: 3x3 conv on one (batch, row-band) tile, bias, optional ReLU.
# ----------------------------------------------------------------------------
def _conv3x3_kernel(x_ref, w_ref, b_ref, o_ref, acc_ref, *,
                    tile_h, out_w, apply_relu):
    # x_ref  : (1, 1, tile_h + 3, wp, Cin)  bf16 padded row band (incl. halo)
    # w_ref  : (3, 3, Cin, Cout)            bf16 HWIO weights
    # b_ref  : (1, Cout)                    f32 bias
    # o_ref  : (1, tile_h, out_w, Cout)     layer output tile
    # acc_ref: (tile_h * wp, Cout)          f32 VMEM scratch accumulator
    wp = x_ref.shape[-2]              # out_w + 2, rounded up to a multiple of 16
    cin = x_ref.shape[-1]
    cout = w_ref.shape[-1]
    m = tile_h * wp

    for dy in range(3):
        # One contiguous (tile_h + 1)-row slab per dy, flattened over
        # (rows, width).  wp is 16-aligned so this reshape is tile-aligned
        # (cheap); no per-tap strided slices or reshapes.
        slab = x_ref[0, 0, dy:dy + tile_h + 1, :, :].reshape(
            (tile_h + 1) * wp, cin)
        for dx in range(3):
            # The dx tap is a static offset into the width-flattened slab.
            # Entries that wrap into the next row only land in the padded
            # columns (>= out_w) of the accumulator, which are discarded below.
            shifted = slab[dx:dx + m, :]
            contrib = jnp.dot(shifted, w_ref[dy, dx],
                              preferred_element_type=jnp.float32)
            if dy == 0 and dx == 0:
                acc_ref[...] = contrib
            else:
                acc_ref[...] += contrib

    out = acc_ref[...] + b_ref[0, :]          # f32 bias add
    if apply_relu:
        out = jnp.maximum(out, 0.0)
    out = out.reshape(tile_h, wp, cout)[:, :out_w, :]
    o_ref[...] = out[None].astype(o_ref.dtype)


def conv3x3(x_nhwc, w_hwio, bias, *, relu, out_dtype, tile_h=None):
    """3x3 conv, stride 1, padding 1 (NHWC activations, HWIO weights)."""
    n, h, w, cin = x_nhwc.shape
    cout = w_hwio.shape[-1]
    th = _pick_tile_h(h) if tile_h is None else tile_h
    nb = h // th
    wp = _round_up(w + 2, 16)         # conv halo + sublane/packing alignment

    xb = x_nhwc.astype(jnp.bfloat16)  # bf16 feeds the MXU, halves HBM traffic
    wb = w_hwio.astype(jnp.bfloat16)
    b2 = bias.astype(jnp.float32).reshape(1, cout)

    # Zero padding: 1 halo row on top, 2 rows at the bottom (1 halo + 1 extra
    # so the in-kernel flattened dx shifts stay in bounds), 1 halo column on
    # the left and (wp - w - 1) on the right (halo + alignment).  Overlapping
    # row bands of height th + 3 are materialized so plain Blocked BlockSpecs
    # suffice for the halo.
    x_pad = jnp.pad(xb, ((0, 0), (1, 2), (1, wp - w - 1), (0, 0)))
    x_bands = jnp.stack(
        [x_pad[:, b * th:b * th + th + 3, :, :] for b in range(nb)], axis=1)
    # x_bands: (n, nb, th + 3, wp, cin)

    kernel = functools.partial(_conv3x3_kernel, tile_h=th, out_w=w,
                               apply_relu=relu)
    return pl.pallas_call(
        kernel,
        out_shape=jax.ShapeDtypeStruct((n, h, w, cout), out_dtype),
        grid_spec=pltpu.PrefetchScalarGridSpec(
            num_scalar_prefetch=0,
            grid=(n, nb),
            in_specs=[
                pl.BlockSpec((1, 1, th + 3, wp, cin),
                             lambda i, j: (i, j, 0, 0, 0)),
                pl.BlockSpec((3, 3, cin, cout), lambda i, j: (0, 0, 0, 0)),
                pl.BlockSpec((1, cout), lambda i, j: (0, 0)),
            ],
            out_specs=pl.BlockSpec((1, th, w, cout),
                                   lambda i, j: (i, j, 0, 0)),
            scratch_shapes=[pltpu.VMEM((th * wp, cout), jnp.float32)],
        ),
        compiler_params=pltpu.CompilerParams(
            dimension_semantics=("parallel", "parallel")),
    )(x_bands, wb, b2)


# ----------------------------------------------------------------------------
# Parameter init (kaiming_normal_ mode='fan_out' nonlinearity='relu', bias=0)
# ----------------------------------------------------------------------------
def init_params(key, num_features_in, num_anchors=9, feature_size=256):
    channels = [
        (num_features_in, feature_size),
        (feature_size, feature_size),
        (feature_size, feature_size),
        (feature_size, feature_size),
        (feature_size, num_anchors * 4),
    ]
    params = []
    for cin, cout in channels:
        key, sub = jax.random.split(key)
        fan_out = cout * 3 * 3
        std = (2.0 / fan_out) ** 0.5
        # HWIO layout (3, 3, Cin, Cout)
        w = std * jax.random.normal(sub, (3, 3, cin, cout), dtype=jnp.float32)
        b = jnp.zeros((cout,), dtype=jnp.float32)
        params.append((w, b))
    return params


# ----------------------------------------------------------------------------
# Forward pass (matches PyTorch RegressionModel.forward)
# ----------------------------------------------------------------------------
def regression_model_forward(x_nchw, params):
    x = jnp.transpose(x_nchw, (0, 2, 3, 1))            # NCHW -> NHWC
    # conv1..conv4 (+ ReLU), bf16 activations between layers.
    for w, b in params[:-1]:
        x = conv3x3(x, w, b, relu=True, out_dtype=jnp.bfloat16)

    # Output layer: zero-pad the 36 (= num_anchors * 4) output channels to a
    # multiple of 128 so stores / the MXU N dim stay lane-dense, then slice.
    w_out, b_out = params[-1]
    cout = w_out.shape[-1]
    cout_p = _round_up(cout, 128)
    w_out = jnp.pad(w_out, ((0, 0), (0, 0), (0, 0), (0, cout_p - cout)))
    b_out = jnp.pad(b_out, ((0, cout_p - cout),))
    x = conv3x3(x, w_out, b_out, relu=False, out_dtype=jnp.float32)
    x = x[..., :cout]

    # (N, H, W, A*4): channel c = a*4 + k, so a plain row-major reshape
    # reproduces PyTorch's view/permute/contiguous/reshape to (N, H*W*A, 4).
    n, h, w_, c = x.shape
    return x.reshape(n, h * w_ * (c // 4), 4)


def reference_forward(x_nchw, params):
    """Pure-XLA reference at matching (bf16 x bf16 -> f32) precision."""
    x = jnp.transpose(x_nchw, (0, 2, 3, 1))
    last = len(params) - 1
    for i, (w, b) in enumerate(params):
        y = lax.conv_general_dilated(
            x.astype(jnp.bfloat16), w.astype(jnp.bfloat16),
            window_strides=(1, 1), padding=((1, 1), (1, 1)),
            dimension_numbers=("NHWC", "HWIO", "NHWC"),
            preferred_element_type=jnp.float32)
        y = y + b.astype(jnp.float32)
        if i < last:
            y = jnp.maximum(y, 0.0).astype(jnp.bfloat16)
        x = y
    n, h, w_, c = x.shape
    return x.reshape(n, h * w_ * (c // 4), 4)


if __name__ == "__main__":
    # Small, module-consistent shapes (feature_size shrunk from 256 for speed).
    n, c_in, h, w = 2, 4, 16, 16
    num_anchors = 9
    feature_size = 32

    key = jax.random.PRNGKey(0)
    k_x, k_p = jax.random.split(key)
    x = jax.random.normal(k_x, (n, c_in, h, w), dtype=jnp.float32)
    params = init_params(k_p, c_in, num_anchors=num_anchors,
                         feature_size=feature_size)

    out = jax.block_until_ready(jax.jit(regression_model_forward)(x, params))

    expected_shape = (n, h * w * num_anchors, 4)
    assert out.shape == expected_shape, (out.shape, expected_shape)

    # Numerical check against an XLA conv reference at the same precision.
    ref = jax.block_until_ready(jax.jit(reference_forward)(x, params))
    assert bool(jnp.allclose(out, ref, rtol=2e-2, atol=2e-2)), (
        "max abs err", float(jnp.max(jnp.abs(out - ref))))

    print("KERNEL_OK")
</pallas_src>

<mosaic_0001>
module attributes {stable_mosaic.version = 11 : i64} {
  func.func @_conv3x3_kernel(%arg0: i32, %arg1: i32, %arg2: memref<1x1x11x32x4xbf16, #tpu.memory_space<vmem>>, %arg3: memref<3x3x4x32xbf16, #tpu.memory_space<vmem>>, %arg4: memref<1x32xf32, #tpu.memory_space<vmem>>, %arg5: memref<1x8x16x32xbf16, #tpu.memory_space<vmem>>, %arg6: memref<256x32xf32, #tpu.memory_space<vmem>>) attributes {dimension_semantics = [#tpu.dimension_semantics<parallel>, #tpu.dimension_semantics<parallel>], iteration_bounds = array<i64: 2, 2>, scalar_prefetch = 0 : i64, scratch_operands = 1 : i64, tpu.core_type = #tpu.core_type<tc>, window_params = [{transform_indices = @transform_0, window_bounds = array<i64: 1, 1, 11, 32, 4>}, {pipeline_mode = #tpu.pipeline_mode<synchronous>, transform_indices = @transform_1, window_bounds = array<i64: 3, 3, 4, 32>}, {pipeline_mode = #tpu.pipeline_mode<synchronous>, transform_indices = @transform_2, window_bounds = array<i64: 1, 32>}, {transform_indices = @transform_3, window_bounds = array<i64: 1, 8, 16, 32>}]} {
    %c0 = arith.constant 0 : index
    %c0_0 = arith.constant 0 : index
    %c0_1 = arith.constant 0 : index
    %c0_2 = arith.constant 0 : index
    %c0_3 = arith.constant 0 : index
    %0 = vector.load %arg2[%c0, %c0_0, %c0_1, %c0_2, %c0_3] : memref<1x1x11x32x4xbf16, #tpu.memory_space<vmem>>, vector<1x1x9x32x4xbf16>
    %1 = vector.shape_cast %0 : vector<1x1x9x32x4xbf16> to vector<9x32x4xbf16>
    %2 = vector.shape_cast %1 : vector<9x32x4xbf16> to vector<288x4xbf16>
    %3 = vector.extract_strided_slice %2 {offsets = [0, 0], sizes = [256, 4], strides = [1, 1]} : vector<288x4xbf16> to vector<256x4xbf16>
    %c0_4 = arith.constant 0 : index
    %c0_5 = arith.constant 0 : index
    %c0_6 = arith.constant 0 : index
    %c0_7 = arith.constant 0 : index
    %4 = vector.load %arg3[%c0_4, %c0_5, %c0_6, %c0_7] : memref<3x3x4x32xbf16, #tpu.memory_space<vmem>>, vector<1x1x4x32xbf16>
    %5 = vector.shape_cast %4 : vector<1x1x4x32xbf16> to vector<4x32xbf16>
    %cst = arith.constant dense<0.000000e+00> : vector<256x32xf32>
    %6 = tpu.matmul %3, %5, %cst {dimension_numbers = #tpu.dot_dimension_numbers<[1], [0], [0], [1], [0, 0, 1, 1], [], []>} : vector<256x4xbf16>, vector<4x32xbf16>, vector<256x32xf32> -> vector<256x32xf32>
    %c0_8 = arith.constant 0 : index
    %c0_9 = arith.constant 0 : index
    %7 = vector.load %arg6[%c0_8, %c0_9] : memref<256x32xf32, #tpu.memory_space<vmem>>, vector<256x32xf32>
    tpu.vector_store %arg6[%c0_8, %c0_9], %6 {strides = array<i32>} : memref<256x32xf32, #tpu.memory_space<vmem>>, vector<256x32xf32>,
    %8 = vector.extract_strided_slice %2 {offsets = [1, 0], sizes = [256, 4], strides = [1, 1]} : vector<288x4xbf16> to vector<256x4xbf16>
    %c0_10 = arith.constant 0 : index
    %c1 = arith.constant 1 : index
    %c0_11 = arith.constant 0 : index
    %c0_12 = arith.constant 0 : index
    %9 = vector.load %arg3[%c0_10, %c1, %c0_11, %c0_12] : memref<3x3x4x32xbf16, #tpu.memory_space<vmem>>, vector<1x1x4x32xbf16>
    %10 = vector.shape_cast %9 : vector<1x1x4x32xbf16> to vector<4x32xbf16>
    %cst_13 = arith.constant dense<0.000000e+00> : vector<256x32xf32>
    %11 = tpu.matmul %8, %10, %cst_13 {dimension_numbers = #tpu.dot_dimension_numbers<[1], [0], [0], [1], [0, 0, 1, 1], [], []>} : vector<256x4xbf16>, vector<4x32xbf16>, vector<256x32xf32> -> vector<256x32xf32>
    %c0_14 = arith.constant 0 : index
    %c0_15 = arith.constant 0 : index
    %12 = vector.load %arg6[%c0_14, %c0_15] : memref<256x32xf32, #tpu.memory_space<vmem>>, vector<256x32xf32>
    %13 = arith.addf %12, %11 : vector<256x32xf32>
    %c0_16 = arith.constant 0 : index
    %c0_17 = arith.constant 0 : index
    %14 = vector.load %arg6[%c0_16, %c0_17] : memref<256x32xf32, #tpu.memory_space<vmem>>, vector<256x32xf32>
    tpu.vector_store %arg6[%c0_16, %c0_17], %13 {strides = array<i32>} : memref<256x32xf32, #tpu.memory_space<vmem>>, vector<256x32xf32>,
    %15 = vector.extract_strided_slice %2 {offsets = [2, 0], sizes = [256, 4], strides = [1, 1]} : vector<288x4xbf16> to vector<256x4xbf16>
    %c0_18 = arith.constant 0 : index
    %c2 = arith.constant 2 : index
    %c0_19 = arith.constant 0 : index
    %c0_20 = arith.constant 0 : index
    %16 = vector.load %arg3[%c0_18, %c2, %c0_19, %c0_20] : memref<3x3x4x32xbf16, #tpu.memory_space<vmem>>, vector<1x1x4x32xbf16>
    %17 = vector.shape_cast %16 : vector<1x1x4x32xbf16> to vector<4x32xbf16>
    %cst_21 = arith.constant dense<0.000000e+00> : vector<256x32xf32>
    %18 = tpu.matmul %15, %17, %cst_21 {dimension_numbers = #tpu.dot_dimension_numbers<[1], [0], [0], [1], [0, 0, 1, 1], [], []>} : vector<256x4xbf16>, vector<4x32xbf16>, vector<256x32xf32> -> vector<256x32xf32>
    %c0_22 = arith.constant 0 : index
    %c0_23 = arith.constant 0 : index
    %19 = vector.load %arg6[%c0_22, %c0_23] : memref<256x32xf32, #tpu.memory_space<vmem>>, vector<256x32xf32>
    %20 = arith.addf %19, %18 : vector<256x32xf32>
    %c0_24 = arith.constant 0 : index
    %c0_25 = arith.constant 0 : index
    %21 = vector.load %arg6[%c0_24, %c0_25] : memref<256x32xf32, #tpu.memory_space<vmem>>, vector<256x32xf32>
    tpu.vector_store %arg6[%c0_24, %c0_25], %20 {strides = array<i32>} : memref<256x32xf32, #tpu.memory_space<vmem>>, vector<256x32xf32>,
    %c0_26 = arith.constant 0 : index
    %c0_27 = arith.constant 0 : index
    %c1_28 = arith.constant 1 : index
    %c0_29 = arith.constant 0 : index
    %c0_30 = arith.constant 0 : index
    %22 = vector.load %arg2[%c0_26, %c0_27, %c1_28, %c0_29, %c0_30] : memref<1x1x11x32x4xbf16, #tpu.memory_space<vmem>>, vector<1x1x9x32x4xbf16>
    %23 = vector.shape_cast %22 : vector<1x1x9x32x4xbf16> to vector<9x32x4xbf16>
    %24 = vector.shape_cast %23 : vector<9x32x4xbf16> to vector<288x4xbf16>
    %25 = vector.extract_strided_slice %24 {offsets = [0, 0], sizes = [256, 4], strides = [1, 1]} : vector<288x4xbf16> to vector<256x4xbf16>
    %c1_31 = arith.constant 1 : index
    %c0_32 = arith.constant 0 : index
    %c0_33 = arith.constant 0 : index
    %c0_34 = arith.constant 0 : index
    %26 = vector.load %arg3[%c1_31, %c0_32, %c0_33, %c0_34] : memref<3x3x4x32xbf16, #tpu.memory_space<vmem>>, vector<1x1x4x32xbf16>
    %27 = vector.shape_cast %26 : vector<1x1x4x32xbf16> to vector<4x32xbf16>
    %cst_35 = arith.constant dense<0.000000e+00> : vector<256x32xf32>
    %28 = tpu.matmul %25, %27, %cst_35 {dimension_numbers = #tpu.dot_dimension_numbers<[1], [0], [0], [1], [0, 0, 1, 1], [], []>} : vector<256x4xbf16>, vector<4x32xbf16>, vector<256x32xf32> -> vector<256x32xf32>
    %c0_36 = arith.constant 0 : index
    %c0_37 = arith.constant 0 : index
    %29 = vector.load %arg6[%c0_36, %c0_37] : memref<256x32xf32, #tpu.memory_space<vmem>>, vector<256x32xf32>
    %30 = arith.addf %29, %28 : vector<256x32xf32>
    %c0_38 = arith.constant 0 : index
    %c0_39 = arith.constant 0 : index
    %31 = vector.load %arg6[%c0_38, %c0_39] : memref<256x32xf32, #tpu.memory_space<vmem>>, vector<256x32xf32>
    tpu.vector_store %arg6[%c0_38, %c0_39], %30 {strides = array<i32>} : memref<256x32xf32, #tpu.memory_space<vmem>>, vector<256x32xf32>,
    %32 = vector.extract_strided_slice %24 {offsets = [1, 0], sizes = [256, 4], strides = [1, 1]} : vector<288x4xbf16> to vector<256x4xbf16>
    %c1_40 = arith.constant 1 : index
    %c1_41 = arith.constant 1 : index
    %c0_42 = arith.constant 0 : index
    %c0_43 = arith.constant 0 : index
    %33 = vector.load %arg3[%c1_40, %c1_41, %c0_42, %c0_43] : memref<3x3x4x32xbf16, #tpu.memory_space<vmem>>, vector<1x1x4x32xbf16>
    %34 = vector.shape_cast %33 : vector<1x1x4x32xbf16> to vector<4x32xbf16>
    %cst_44 = arith.constant dense<0.000000e+00> : vector<256x32xf32>
    %35 = tpu.matmul %32, %34, %cst_44 {dimension_numbers = #tpu.dot_dimension_numbers<[1], [0], [0], [1], [0, 0, 1, 1], [], []>} : vector<256x4xbf16>, vector<4x32xbf16>, vector<256x32xf32> -> vector<256x32xf32>
    %c0_45 = arith.constant 0 : index
    %c0_46 = arith.constant 0 : index
    %36 = vector.load %arg6[%c0_45, %c0_46] : memref<256x32xf32, #tpu.memory_space<vmem>>, vector<256x32xf32>
    %37 = arith.addf %36, %35 : vector<256x32xf32>
    %c0_47 = arith.constant 0 : index
    %c0_48 = arith.constant 0 : index
    %38 = vector.load %arg6[%c0_47, %c0_48] : memref<256x32xf32, #tpu.memory_space<vmem>>, vector<256x32xf32>
    tpu.vector_store %arg6[%c0_47, %c0_48], %37 {strides = array<i32>} : memref<256x32xf32, #tpu.memory_space<vmem>>, vector<256x32xf32>,
    %39 = vector.extract_strided_slice %24 {offsets = [2, 0], sizes = [256, 4], strides = [1, 1]} : vector<288x4xbf16> to vector<256x4xbf16>
    %c1_49 = arith.constant 1 : index
    %c2_50 = arith.constant 2 : index
    %c0_51 = arith.constant 0 : index
    %c0_52 = arith.constant 0 : index
    %40 = vector.load %arg3[%c1_49, %c2_50, %c0_51, %c0_52] : memref<3x3x4x32xbf16, #tpu.memory_space<vmem>>, vector<1x1x4x32xbf16>
    %41 = vector.shape_cast %40 : vector<1x1x4x32xbf16> to vector<4x32xbf16>
    %cst_53 = arith.constant dense<0.000000e+00> : vector<256x32xf32>
    %42 = tpu.matmul %39, %41, %cst_53 {dimension_numbers = #tpu.dot_dimension_numbers<[1], [0], [0], [1], [0, 0, 1, 1], [], []>} : vector<256x4xbf16>, vector<4x32xbf16>, vector<256x32xf32> -> vector<256x32xf32>
    %c0_54 = arith.constant 0 : index
    %c0_55 = arith.constant 0 : index
    %43 = vector.load %arg6[%c0_54, %c0_55] : memref<256x32xf32, #tpu.memory_space<vmem>>, vector<256x32xf32>
    %44 = arith.addf %43, %42 : vector<256x32xf32>
    %c0_56 = arith.constant 0 : index
    %c0_57 = arith.constant 0 : index
    %45 = vector.load %arg6[%c0_56, %c0_57] : memref<256x32xf32, #tpu.memory_space<vmem>>, vector<256x32xf32>
    tpu.vector_store %arg6[%c0_56, %c0_57], %44 {strides = array<i32>} : memref<256x32xf32, #tpu.memory_space<vmem>>, vector<256x32xf32>,
    %c0_58 = arith.constant 0 : index
    %c0_59 = arith.constant 0 : index
    %c2_60 = arith.constant 2 : index
    %c0_61 = arith.constant 0 : index
    %c0_62 = arith.constant 0 : index
    %46 = vector.load %arg2[%c0_58, %c0_59, %c2_60, %c0_61, %c0_62] : memref<1x1x11x32x4xbf16, #tpu.memory_space<vmem>>, vector<1x1x9x32x4xbf16>
    %47 = vector.shape_cast %46 : vector<1x1x9x32x4xbf16> to vector<9x32x4xbf16>
    %48 = vector.shape_cast %47 : vector<9x32x4xbf16> to vector<288x4xbf16>
    %49 = vector.extract_strided_slice %48 {offsets = [0, 0], sizes = [256, 4], strides = [1, 1]} : vector<288x4xbf16> to vector<256x4xbf16>
    %c2_63 = arith.constant 2 : index
    %c0_64 = arith.constant 0 : index
    %c0_65 = arith.constant 0 : index
    %c0_66 = arith.constant 0 : index
    %50 = vector.load %arg3[%c2_63, %c0_64, %c0_65, %c0_66] : memref<3x3x4x32xbf16, #tpu.memory_space<vmem>>, vector<1x1x4x32xbf16>
    %51 = vector.shape_cast %50 : vector<1x1x4x32xbf16> to vector<4x32xbf16>
    %cst_67 = arith.constant dense<0.000000e+00> : vector<256x32xf32>
    %52 = tpu.matmul %49, %51, %cst_67 {dimension_numbers = #tpu.dot_dimension_numbers<[1], [0], [0], [1], [0, 0, 1, 1], [], []>} : vector<256x4xbf16>, vector<4x32xbf16>, vector<256x32xf32> -> vector<256x32xf32>
    %c0_68 = arith.constant 0 : index
    %c0_69 = arith.constant 0 : index
    %53 = vector.load %arg6[%c0_68, %c0_69] : memref<256x32xf32, #tpu.memory_space<vmem>>, vector<256x32xf32>
    %54 = arith.addf %53, %52 : vector<256x32xf32>
    %c0_70 = arith.constant 0 : index
    %c0_71 = arith.constant 0 : index
    %55 = vector.load %arg6[%c0_70, %c0_71] : memref<256x32xf32, #tpu.memory_space<vmem>>, vector<256x32xf32>
    tpu.vector_store %arg6[%c0_70, %c0_71], %54 {strides = array<i32>} : memref<256x32xf32, #tpu.memory_space<vmem>>, vector<256x32xf32>,
    %56 = vector.extract_strided_slice %48 {offsets = [1, 0], sizes = [256, 4], strides = [1, 1]} : vector<288x4xbf16> to vector<256x4xbf16>
    %c2_72 = arith.constant 2 : index
    %c1_73 = arith.constant 1 : index
    %c0_74 = arith.constant 0 : index
    %c0_75 = arith.constant 0 : index
    %57 = vector.load %arg3[%c2_72, %c1_73, %c0_74, %c0_75] : memref<3x3x4x32xbf16, #tpu.memory_space<vmem>>, vector<1x1x4x32xbf16>
    %58 = vector.shape_cast %57 : vector<1x1x4x32xbf16> to vector<4x32xbf16>
    %cst_76 = arith.constant dense<0.000000e+00> : vector<256x32xf32>
    %59 = tpu.matmul %56, %58, %cst_76 {dimension_numbers = #tpu.dot_dimension_numbers<[1], [0], [0], [1], [0, 0, 1, 1], [], []>} : vector<256x4xbf16>, vector<4x32xbf16>, vector<256x32xf32> -> vector<256x32xf32>
    %c0_77 = arith.constant 0 : index
    %c0_78 = arith.constant 0 : index
    %60 = vector.load %arg6[%c0_77, %c0_78] : memref<256x32xf32, #tpu.memory_space<vmem>>, vector<256x32xf32>
    %61 = arith.addf %60, %59 : vector<256x32xf32>
    %c0_79 = arith.constant 0 : index
    %c0_80 = arith.constant 0 : index
    %62 = vector.load %arg6[%c0_79, %c0_80] : memref<256x32xf32, #tpu.memory_space<vmem>>, vector<256x32xf32>
    tpu.vector_store %arg6[%c0_79, %c0_80], %61 {strides = array<i32>} : memref<256x32xf32, #tpu.memory_space<vmem>>, vector<256x32xf32>,
    %63 = vector.extract_strided_slice %48 {offsets = [2, 0], sizes = [256, 4], strides = [1, 1]} : vector<288x4xbf16> to vector<256x4xbf16>
    %c2_81 = arith.constant 2 : index
    %c2_82 = arith.constant 2 : index
    %c0_83 = arith.constant 0 : index
    %c0_84 = arith.constant 0 : index
    %64 = vector.load %arg3[%c2_81, %c2_82, %c0_83, %c0_84] : memref<3x3x4x32xbf16, #tpu.memory_space<vmem>>, vector<1x1x4x32xbf16>
    %65 = vector.shape_cast %64 : vector<1x1x4x32xbf16> to vector<4x32xbf16>
    %cst_85 = arith.constant dense<0.000000e+00> : vector<256x32xf32>
    %66 = tpu.matmul %63, %65, %cst_85 {dimension_numbers = #tpu.dot_dimension_numbers<[1], [0], [0], [1], [0, 0, 1, 1], [], []>} : vector<256x4xbf16>, vector<4x32xbf16>, vector<256x32xf32> -> vector<256x32xf32>
    %c0_86 = arith.constant 0 : index
    %c0_87 = arith.constant 0 : index
    %67 = vector.load %arg6[%c0_86, %c0_87] : memref<256x32xf32, #tpu.memory_space<vmem>>, vector<256x32xf32>
    %68 = arith.addf %67, %66 : vector<256x32xf32>
    %c0_88 = arith.constant 0 : index
    %c0_89 = arith.constant 0 : index
    %69 = vector.load %arg6[%c0_88, %c0_89] : memref<256x32xf32, #tpu.memory_space<vmem>>, vector<256x32xf32>
    tpu.vector_store %arg6[%c0_88, %c0_89], %68 {strides = array<i32>} : memref<256x32xf32, #tpu.memory_space<vmem>>, vector<256x32xf32>,
    %c0_90 = arith.constant 0 : index
    %c0_91 = arith.constant 0 : index
    %70 = vector.load %arg6[%c0_90, %c0_91] : memref<256x32xf32, #tpu.memory_space<vmem>>, vector<256x32xf32>
    %c0_92 = arith.constant 0 : index
    %c0_93 = arith.constant 0 : index
    %71 = vector.load %arg4[%c0_92, %c0_93] : memref<1x32xf32, #tpu.memory_space<vmem>>, vector<1x32xf32>
    %72 = vector.shape_cast %71 : vector<1x32xf32> to vector<32xf32>
    %73 = vector.shape_cast %72 : vector<32xf32> to vector<1x32xf32>
    %74 = vector.broadcast %73 : vector<1x32xf32> to vector<256x32xf32>
    %75 = arith.addf %70, %74 : vector<256x32xf32>
    %cst_94 = arith.constant 0.000000e+00 : f32
    %76 = vector.broadcast %cst_94 : f32 to vector<256x32xf32>
    %77 = arith.maximumf %75, %76 : vector<256x32xf32>
    %78 = vector.shape_cast %77 : vector<256x32xf32> to vector<8x32x32xf32>
    %79 = vector.extract_strided_slice %78 {offsets = [0, 0, 0], sizes = [8, 16, 32], strides = [1, 1, 1]} : vector<8x32x32xf32> to vector<8x16x32xf32>
    %80 = vector.shape_cast %79 : vector<8x16x32xf32> to vector<1x8x16x32xf32>
    %81 = arith.truncf %80 : vector<1x8x16x32xf32> to vector<1x8x16x32xbf16>
    %c0_95 = arith.constant 0 : index
    %c0_96 = arith.constant 0 : index
    %c0_97 = arith.constant 0 : index
    %c0_98 = arith.constant 0 : index
    %82 = vector.load %arg5[%c0_95, %c0_96, %c0_97, %c0_98] : memref<1x8x16x32xbf16, #tpu.memory_space<vmem>>, vector<1x8x16x32xbf16>
    tpu.vector_store %arg5[%c0_95, %c0_96, %c0_97, %c0_98], %81 {strides = array<i32>} : memref<1x8x16x32xbf16, #tpu.memory_space<vmem>>, vector<1x8x16x32xbf16>,
    return
  }
  func.func @transform_0(%arg0: i32, %arg1: i32) -> (i32, i32, i32, i32, i32) {
    %c0_i32 = arith.constant 0 : i32
    %c0_i32_0 = arith.constant 0 : i32
    %c0_i32_1 = arith.constant 0 : i32
    %c0_i32_2 = arith.constant 0 : i32
    return %arg0, %arg1, %c0_i32, %c0_i32_0, %c0_i32_1 : i32, i32, i32, i32, i32
  }
  func.func @transform_1(%arg0: i32, %arg1: i32) -> (i32, i32, i32, i32) {
    %c0_i32 = arith.constant 0 : i32
    %c0_i32_0 = arith.constant 0 : i32
    %c0_i32_1 = arith.constant 0 : i32
    %c0_i32_2 = arith.constant 0 : i32
    %c0_i32_3 = arith.constant 0 : i32
    return %c0_i32, %c0_i32_0, %c0_i32_1, %c0_i32_2 : i32, i32, i32, i32
  }
  func.func @transform_2(%arg0: i32, %arg1: i32) -> (i32, i32) {
    %c0_i32 = arith.constant 0 : i32
    %c0_i32_0 = arith.constant 0 : i32
    %c0_i32_1 = arith.constant 0 : i32
    return %c0_i32, %c0_i32_0 : i32, i32
  }
  func.func @transform_3(%arg0: i32, %arg1: i32) -> (i32, i32, i32, i32) {
    %c0_i32 = arith.constant 0 : i32
    %c0_i32_0 = arith.constant 0 : i32
    %c0_i32_1 = arith.constant 0 : i32
    return %arg0, %arg1, %c0_i32, %c0_i32_0 : i32, i32, i32, i32
  }
}

module attributes {stable_mosaic.version = 11 : i64} {
  func.func @_conv3x3_kernel(%arg0: i32, %arg1: i32, %arg2: memref<1x1x11x32x32xbf16, #tpu.memory_space<vmem>>, %arg3: memref<3x3x32x32xbf16, #tpu.memory_space<vmem>>, %arg4: memref<1x32xf32, #tpu.memory_space<vmem>>, %arg5: memref<1x8x16x32xbf16, #tpu.memory_space<vmem>>, %arg6: memref<256x32xf32, #tpu.memory_space<vmem>>) attributes {dimension_semantics = [#tpu.dimension_semantics<parallel>, #tpu.dimension_semantics<parallel>], iteration_bounds = array<i64: 2, 2>, scalar_prefetch = 0 : i64, scratch_operands = 1 : i64, tpu.core_type = #tpu.core_type<tc>, window_params = [{transform_indices = @transform_0, window_bounds = array<i64: 1, 1, 11, 32, 32>}, {pipeline_mode = #tpu.pipeline_mode<synchronous>, transform_indices = @transform_1, window_bounds = array<i64: 3, 3, 32, 32>}, {pipeline_mode = #tpu.pipeline_mode<synchronous>, transform_indices = @transform_2, window_bounds = array<i64: 1, 32>}, {transform_indices = @transform_3, window_bounds = array<i64: 1, 8, 16, 32>}]} {
    %c0 = arith.constant 0 : index
    %c0_0 = arith.constant 0 : index
    %c0_1 = arith.constant 0 : index
    %c0_2 = arith.constant 0 : index
    %c0_3 = arith.constant 0 : index
    %0 = vector.load %arg2[%c0, %c0_0, %c0_1, %c0_2, %c0_3] : memref<1x1x11x32x32xbf16, #tpu.memory_space<vmem>>, vector<1x1x9x32x32xbf16>
    %1 = vector.shape_cast %0 : vector<1x1x9x32x32xbf16> to vector<9x32x32xbf16>
    %2 = vector.shape_cast %1 : vector<9x32x32xbf16> to vector<288x32xbf16>
    %3 = vector.extract_strided_slice %2 {offsets = [0, 0], sizes = [256, 32], strides = [1, 1]} : vector<288x32xbf16> to vector<256x32xbf16>
    %c0_4 = arith.constant 0 : index
    %c0_5 = arith.constant 0 : index
    %c0_6 = arith.constant 0 : index
    %c0_7 = arith.constant 0 : index
    %4 = vector.load %arg3[%c0_4, %c0_5, %c0_6, %c0_7] : memref<3x3x32x32xbf16, #tpu.memory_space<vmem>>, vector<1x1x32x32xbf16>
    %5 = vector.shape_cast %4 : vector<1x1x32x32xbf16> to vector<32x32xbf16>
    %cst = arith.constant dense<0.000000e+00> : vector<256x32xf32>
    %6 = tpu.matmul %3, %5, %cst {dimension_numbers = #tpu.dot_dimension_numbers<[1], [0], [0], [1], [0, 0, 1, 1], [], []>} : vector<256x32xbf16>, vector<32x32xbf16>, vector<256x32xf32> -> vector<256x32xf32>
    %c0_8 = arith.constant 0 : index
    %c0_9 = arith.constant 0 : index
    %7 = vector.load %arg6[%c0_8, %c0_9] : memref<256x32xf32, #tpu.memory_space<vmem>>, vector<256x32xf32>
    tpu.vector_store %arg6[%c0_8, %c0_9], %6 {strides = array<i32>} : memref<256x32xf32, #tpu.memory_space<vmem>>, vector<256x32xf32>,
    %8 = vector.extract_strided_slice %2 {offsets = [1, 0], sizes = [256, 32], strides = [1, 1]} : vector<288x32xbf16> to vector<256x32xbf16>
    %c0_10 = arith.constant 0 : index
    %c1 = arith.constant 1 : index
    %c0_11 = arith.constant 0 : index
    %c0_12 = arith.constant 0 : index
    %9 = vector.load %arg3[%c0_10, %c1, %c0_11, %c0_12] : memref<3x3x32x32xbf16, #tpu.memory_space<vmem>>, vector<1x1x32x32xbf16>
    %10 = vector.shape_cast %9 : vector<1x1x32x32xbf16> to vector<32x32xbf16>
    %cst_13 = arith.constant dense<0.000000e+00> : vector<256x32xf32>
    %11 = tpu.matmul %8, %10, %cst_13 {dimension_numbers = #tpu.dot_dimension_numbers<[1], [0], [0], [1], [0, 0, 1, 1], [], []>} : vector<256x32xbf16>, vector<32x32xbf16>, vector<256x32xf32> -> vector<256x32xf32>
    %c0_14 = arith.constant 0 : index
    %c0_15 = arith.constant 0 : index
    %12 = vector.load %arg6[%c0_14, %c0_15] : memref<256x32xf32, #tpu.memory_space<vmem>>, vector<256x32xf32>
    %13 = arith.addf %12, %11 : vector<256x32xf32>
    %c0_16 = arith.constant 0 : index
    %c0_17 = arith.constant 0 : index
    %14 = vector.load %arg6[%c0_16, %c0_17] : memref<256x32xf32, #tpu.memory_space<vmem>>, vector<256x32xf32>
    tpu.vector_store %arg6[%c0_16, %c0_17], %13 {strides = array<i32>} : memref<256x32xf32, #tpu.memory_space<vmem>>, vector<256x32xf32>,
    %15 = vector.extract_strided_slice %2 {offsets = [2, 0], sizes = [256, 32], strides = [1, 1]} : vector<288x32xbf16> to vector<256x32xbf16>
    %c0_18 = arith.constant 0 : index
    %c2 = arith.constant 2 : index
    %c0_19 = arith.constant 0 : index
    %c0_20 = arith.constant 0 : index
    %16 = vector.load %arg3[%c0_18, %c2, %c0_19, %c0_20] : memref<3x3x32x32xbf16, #tpu.memory_space<vmem>>, vector<1x1x32x32xbf16>
    %17 = vector.shape_cast %16 : vector<1x1x32x32xbf16> to vector<32x32xbf16>
    %cst_21 = arith.constant dense<0.000000e+00> : vector<256x32xf32>
    %18 = tpu.matmul %15, %17, %cst_21 {dimension_numbers = #tpu.dot_dimension_numbers<[1], [0], [0], [1], [0, 0, 1, 1], [], []>} : vector<256x32xbf16>, vector<32x32xbf16>, vector<256x32xf32> -> vector<256x32xf32>
    %c0_22 = arith.constant 0 : index
    %c0_23 = arith.constant 0 : index
    %19 = vector.load %arg6[%c0_22, %c0_23] : memref<256x32xf32, #tpu.memory_space<vmem>>, vector<256x32xf32>
    %20 = arith.addf %19, %18 : vector<256x32xf32>
    %c0_24 = arith.constant 0 : index
    %c0_25 = arith.constant 0 : index
    %21 = vector.load %arg6[%c0_24, %c0_25] : memref<256x32xf32, #tpu.memory_space<vmem>>, vector<256x32xf32>
    tpu.vector_store %arg6[%c0_24, %c0_25], %20 {strides = array<i32>} : memref<256x32xf32, #tpu.memory_space<vmem>>, vector<256x32xf32>,
    %c0_26 = arith.constant 0 : index
    %c0_27 = arith.constant 0 : index
    %c1_28 = arith.constant 1 : index
    %c0_29 = arith.constant 0 : index
    %c0_30 = arith.constant 0 : index
    %22 = vector.load %arg2[%c0_26, %c0_27, %c1_28, %c0_29, %c0_30] : memref<1x1x11x32x32xbf16, #tpu.memory_space<vmem>>, vector<1x1x9x32x32xbf16>
    %23 = vector.shape_cast %22 : vector<1x1x9x32x32xbf16> to vector<9x32x32xbf16>
    %24 = vector.shape_cast %23 : vector<9x32x32xbf16> to vector<288x32xbf16>
    %25 = vector.extract_strided_slice %24 {offsets = [0, 0], sizes = [256, 32], strides = [1, 1]} : vector<288x32xbf16> to vector<256x32xbf16>
    %c1_31 = arith.constant 1 : index
    %c0_32 = arith.constant 0 : index
    %c0_33 = arith.constant 0 : index
    %c0_34 = arith.constant 0 : index
    %26 = vector.load %arg3[%c1_31, %c0_32, %c0_33, %c0_34] : memref<3x3x32x32xbf16, #tpu.memory_space<vmem>>, vector<1x1x32x32xbf16>
    %27 = vector.shape_cast %26 : vector<1x1x32x32xbf16> to vector<32x32xbf16>
    %cst_35 = arith.constant dense<0.000000e+00> : vector<256x32xf32>
    %28 = tpu.matmul %25, %27, %cst_35 {dimension_numbers = #tpu.dot_dimension_numbers<[1], [0], [0], [1], [0, 0, 1, 1], [], []>} : vector<256x32xbf16>, vector<32x32xbf16>, vector<256x32xf32> -> vector<256x32xf32>
    %c0_36 = arith.constant 0 : index
    %c0_37 = arith.constant 0 : index
    %29 = vector.load %arg6[%c0_36, %c0_37] : memref<256x32xf32, #tpu.memory_space<vmem>>, vector<256x32xf32>
    %30 = arith.addf %29, %28 : vector<256x32xf32>
    %c0_38 = arith.constant 0 : index
    %c0_39 = arith.constant 0 : index
    %31 = vector.load %arg6[%c0_38, %c0_39] : memref<256x32xf32, #tpu.memory_space<vmem>>, vector<256x32xf32>
    tpu.vector_store %arg6[%c0_38, %c0_39], %30 {strides = array<i32>} : memref<256x32xf32, #tpu.memory_space<vmem>>, vector<256x32xf32>,
    %32 = vector.extract_strided_slice %24 {offsets = [1, 0], sizes = [256, 32], strides = [1, 1]} : vector<288x32xbf16> to vector<256x32xbf16>
    %c1_40 = arith.constant 1 : index
    %c1_41 = arith.constant 1 : index
    %c0_42 = arith.constant 0 : index
    %c0_43 = arith.constant 0 : index
    %33 = vector.load %arg3[%c1_40, %c1_41, %c0_42, %c0_43] : memref<3x3x32x32xbf16, #tpu.memory_space<vmem>>, vector<1x1x32x32xbf16>
    %34 = vector.shape_cast %33 : vector<1x1x32x32xbf16> to vector<32x32xbf16>
    %cst_44 = arith.constant dense<0.000000e+00> : vector<256x32xf32>
    %35 = tpu.matmul %32, %34, %cst_44 {dimension_numbers = #tpu.dot_dimension_numbers<[1], [0], [0], [1], [0, 0, 1, 1], [], []>} : vector<256x32xbf16>, vector<32x32xbf16>, vector<256x32xf32> -> vector<256x32xf32>
    %c0_45 = arith.constant 0 : index
    %c0_46 = arith.constant 0 : index
    %36 = vector.load %arg6[%c0_45, %c0_46] : memref<256x32xf32, #tpu.memory_space<vmem>>, vector<256x32xf32>
    %37 = arith.addf %36, %35 : vector<256x32xf32>
    %c0_47 = arith.constant 0 : index
    %c0_48 = arith.constant 0 : index
    %38 = vector.load %arg6[%c0_47, %c0_48] : memref<256x32xf32, #tpu.memory_space<vmem>>, vector<256x32xf32>
    tpu.vector_store %arg6[%c0_47, %c0_48], %37 {strides = array<i32>} : memref<256x32xf32, #tpu.memory_space<vmem>>, vector<256x32xf32>,
    %39 = vector.extract_strided_slice %24 {offsets = [2, 0], sizes = [256, 32], strides = [1, 1]} : vector<288x32xbf16> to vector<256x32xbf16>
    %c1_49 = arith.constant 1 : index
    %c2_50 = arith.constant 2 : index
    %c0_51 = arith.constant 0 : index
    %c0_52 = arith.constant 0 : index
    %40 = vector.load %arg3[%c1_49, %c2_50, %c0_51, %c0_52] : memref<3x3x32x32xbf16, #tpu.memory_space<vmem>>, vector<1x1x32x32xbf16>
    %41 = vector.shape_cast %40 : vector<1x1x32x32xbf16> to vector<32x32xbf16>
    %cst_53 = arith.constant dense<0.000000e+00> : vector<256x32xf32>
    %42 = tpu.matmul %39, %41, %cst_53 {dimension_numbers = #tpu.dot_dimension_numbers<[1], [0], [0], [1], [0, 0, 1, 1], [], []>} : vector<256x32xbf16>, vector<32x32xbf16>, vector<256x32xf32> -> vector<256x32xf32>
    %c0_54 = arith.constant 0 : index
    %c0_55 = arith.constant 0 : index
    %43 = vector.load %arg6[%c0_54, %c0_55] : memref<256x32xf32, #tpu.memory_space<vmem>>, vector<256x32xf32>
    %44 = arith.addf %43, %42 : vector<256x32xf32>
    %c0_56 = arith.constant 0 : index
    %c0_57 = arith.constant 0 : index
    %45 = vector.load %arg6[%c0_56, %c0_57] : memref<256x32xf32, #tpu.memory_space<vmem>>, vector<256x32xf32>
    tpu.vector_store %arg6[%c0_56, %c0_57], %44 {strides = array<i32>} : memref<256x32xf32, #tpu.memory_space<vmem>>, vector<256x32xf32>,
    %c0_58 = arith.constant 0 : index
    %c0_59 = arith.constant 0 : index
    %c2_60 = arith.constant 2 : index
    %c0_61 = arith.constant 0 : index
    %c0_62 = arith.constant 0 : index
    %46 = vector.load %arg2[%c0_58, %c0_59, %c2_60, %c0_61, %c0_62] : memref<1x1x11x32x32xbf16, #tpu.memory_space<vmem>>, vector<1x1x9x32x32xbf16>
    %47 = vector.shape_cast %46 : vector<1x1x9x32x32xbf16> to vector<9x32x32xbf16>
    %48 = vector.shape_cast %47 : vector<9x32x32xbf16> to vector<288x32xbf16>
    %49 = vector.extract_strided_slice %48 {offsets = [0, 0], sizes = [256, 32], strides = [1, 1]} : vector<288x32xbf16> to vector<256x32xbf16>
    %c2_63 = arith.constant 2 : index
    %c0_64 = arith.constant 0 : index
    %c0_65 = arith.constant 0 : index
    %c0_66 = arith.constant 0 : index
    %50 = vector.load %arg3[%c2_63, %c0_64, %c0_65, %c0_66] : memref<3x3x32x32xbf16, #tpu.memory_space<vmem>>, vector<1x1x32x32xbf16>
    %51 = vector.shape_cast %50 : vector<1x1x32x32xbf16> to vector<32x32xbf16>
    %cst_67 = arith.constant dense<0.000000e+00> : vector<256x32xf32>
    %52 = tpu.matmul %49, %51, %cst_67 {dimension_numbers = #tpu.dot_dimension_numbers<[1], [0], [0], [1], [0, 0, 1, 1], [], []>} : vector<256x32xbf16>, vector<32x32xbf16>, vector<256x32xf32> -> vector<256x32xf32>
    %c0_68 = arith.constant 0 : index
    %c0_69 = arith.constant 0 : index
    %53 = vector.load %arg6[%c0_68, %c0_69] : memref<256x32xf32, #tpu.memory_space<vmem>>, vector<256x32xf32>
    %54 = arith.addf %53, %52 : vector<256x32xf32>
    %c0_70 = arith.constant 0 : index
    %c0_71 = arith.constant 0 : index
    %55 = vector.load %arg6[%c0_70, %c0_71] : memref<256x32xf32, #tpu.memory_space<vmem>>, vector<256x32xf32>
    tpu.vector_store %arg6[%c0_70, %c0_71], %54 {strides = array<i32>} : memref<256x32xf32, #tpu.memory_space<vmem>>, vector<256x32xf32>,
    %56 = vector.extract_strided_slice %48 {offsets = [1, 0], sizes = [256, 32], strides = [1, 1]} : vector<288x32xbf16> to vector<256x32xbf16>
    %c2_72 = arith.constant 2 : index
    %c1_73 = arith.constant 1 : index
    %c0_74 = arith.constant 0 : index
    %c0_75 = arith.constant 0 : index
    %57 = vector.load %arg3[%c2_72, %c1_73, %c0_74, %c0_75] : memref<3x3x32x32xbf16, #tpu.memory_space<vmem>>, vector<1x1x32x32xbf16>
    %58 = vector.shape_cast %57 : vector<1x1x32x32xbf16> to vector<32x32xbf16>
    %cst_76 = arith.constant dense<0.000000e+00> : vector<256x32xf32>
    %59 = tpu.matmul %56, %58, %cst_76 {dimension_numbers = #tpu.dot_dimension_numbers<[1], [0], [0], [1], [0, 0, 1, 1], [], []>} : vector<256x32xbf16>, vector<32x32xbf16>, vector<256x32xf32> -> vector<256x32xf32>
    %c0_77 = arith.constant 0 : index
    %c0_78 = arith.constant 0 : index
    %60 = vector.load %arg6[%c0_77, %c0_78] : memref<256x32xf32, #tpu.memory_space<vmem>>, vector<256x32xf32>
    %61 = arith.addf %60, %59 : vector<256x32xf32>
    %c0_79 = arith.constant 0 : index
    %c0_80 = arith.constant 0 : index
    %62 = vector.load %arg6[%c0_79, %c0_80] : memref<256x32xf32, #tpu.memory_space<vmem>>, vector<256x32xf32>
    tpu.vector_store %arg6[%c0_79, %c0_80], %61 {strides = array<i32>} : memref<256x32xf32, #tpu.memory_space<vmem>>, vector<256x32xf32>,
    %63 = vector.extract_strided_slice %48 {offsets = [2, 0], sizes = [256, 32], strides = [1, 1]} : vector<288x32xbf16> to vector<256x32xbf16>
    %c2_81 = arith.constant 2 : index
    %c2_82 = arith.constant 2 : index
    %c0_83 = arith.constant 0 : index
    %c0_84 = arith.constant 0 : index
    %64 = vector.load %arg3[%c2_81, %c2_82, %c0_83, %c0_84] : memref<3x3x32x32xbf16, #tpu.memory_space<vmem>>, vector<1x1x32x32xbf16>
    %65 = vector.shape_cast %64 : vector<1x1x32x32xbf16> to vector<32x32xbf16>
    %cst_85 = arith.constant dense<0.000000e+00> : vector<256x32xf32>
    %66 = tpu.matmul %63, %65, %cst_85 {dimension_numbers = #tpu.dot_dimension_numbers<[1], [0], [0], [1], [0, 0, 1, 1], [], []>} : vector<256x32xbf16>, vector<32x32xbf16>, vector<256x32xf32> -> vector<256x32xf32>
    %c0_86 = arith.constant 0 : index
    %c0_87 = arith.constant 0 : index
    %67 = vector.load %arg6[%c0_86, %c0_87] : memref<256x32xf32, #tpu.memory_space<vmem>>, vector<256x32xf32>
    %68 = arith.addf %67, %66 : vector<256x32xf32>
    %c0_88 = arith.constant 0 : index
    %c0_89 = arith.constant 0 : index
    %69 = vector.load %arg6[%c0_88, %c0_89] : memref<256x32xf32, #tpu.memory_space<vmem>>, vector<256x32xf32>
    tpu.vector_store %arg6[%c0_88, %c0_89], %68 {strides = array<i32>} : memref<256x32xf32, #tpu.memory_space<vmem>>, vector<256x32xf32>,
    %c0_90 = arith.constant 0 : index
    %c0_91 = arith.constant 0 : index
    %70 = vector.load %arg6[%c0_90, %c0_91] : memref<256x32xf32, #tpu.memory_space<vmem>>, vector<256x32xf32>
    %c0_92 = arith.constant 0 : index
    %c0_93 = arith.constant 0 : index
    %71 = vector.load %arg4[%c0_92, %c0_93] : memref<1x32xf32, #tpu.memory_space<vmem>>, vector<1x32xf32>
    %72 = vector.shape_cast %71 : vector<1x32xf32> to vector<32xf32>
    %73 = vector.shape_cast %72 : vector<32xf32> to vector<1x32xf32>
    %74 = vector.broadcast %73 : vector<1x32xf32> to vector<256x32xf32>
    %75 = arith.addf %70, %74 : vector<256x32xf32>
    %cst_94 = arith.constant 0.000000e+00 : f32
    %76 = vector.broadcast %cst_94 : f32 to vector<256x32xf32>
    %77 = arith.maximumf %75, %76 : vector<256x32xf32>
    %78 = vector.shape_cast %77 : vector<256x32xf32> to vector<8x32x32xf32>
    %79 = vector.extract_strided_slice %78 {offsets = [0, 0, 0], sizes = [8, 16, 32], strides = [1, 1, 1]} : vector<8x32x32xf32> to vector<8x16x32xf32>
    %80 = vector.shape_cast %79 : vector<8x16x32xf32> to vector<1x8x16x32xf32>
    %81 = arith.truncf %80 : vector<1x8x16x32xf32> to vector<1x8x16x32xbf16>
    %c0_95 = arith.constant 0 : index
    %c0_96 = arith.constant 0 : index
    %c0_97 = arith.constant 0 : index
    %c0_98 = arith.constant 0 : index
    %82 = vector.load %arg5[%c0_95, %c0_96, %c0_97, %c0_98] : memref<1x8x16x32xbf16, #tpu.memory_space<vmem>>, vector<1x8x16x32xbf16>
    tpu.vector_store %arg5[%c0_95, %c0_96, %c0_97, %c0_98], %81 {strides = array<i32>} : memref<1x8x16x32xbf16, #tpu.memory_space<vmem>>, vector<1x8x16x32xbf16>,
    return
  }
  func.func @transform_0(%arg0: i32, %arg1: i32) -> (i32, i32, i32, i32, i32) {
    %c0_i32 = arith.constant 0 : i32
    %c0_i32_0 = arith.constant 0 : i32
    %c0_i32_1 = arith.constant 0 : i32
    %c0_i32_2 = arith.constant 0 : i32
    return %arg0, %arg1, %c0_i32, %c0_i32_0, %c0_i32_1 : i32, i32, i32, i32, i32
  }
  func.func @transform_1(%arg0: i32, %arg1: i32) -> (i32, i32, i32, i32) {
    %c0_i32 = arith.constant 0 : i32
    %c0_i32_0 = arith.constant 0 : i32
    %c0_i32_1 = arith.constant 0 : i32
    %c0_i32_2 = arith.constant 0 : i32
    %c0_i32_3 = arith.constant 0 : i32
    return %c0_i32, %c0_i32_0, %c0_i32_1, %c0_i32_2 : i32, i32, i32, i32
  }
  func.func @transform_2(%arg0: i32, %arg1: i32) -> (i32, i32) {
    %c0_i32 = arith.constant 0 : i32
    %c0_i32_0 = arith.constant 0 : i32
    %c0_i32_1 = arith.constant 0 : i32
    return %c0_i32, %c0_i32_0 : i32, i32
  }
  func.func @transform_3(%arg0: i32, %arg1: i32) -> (i32, i32, i32, i32) {
    %c0_i32 = arith.constant 0 : i32
    %c0_i32_0 = arith.constant 0 : i32
    %c0_i32_1 = arith.constant 0 : i32
    return %arg0, %arg1, %c0_i32, %c0_i32_0 : i32, i32, i32, i32
  }
}

module attributes {stable_mosaic.version = 11 : i64} {
  func.func @_conv3x3_kernel(%arg0: i32, %arg1: i32, %arg2: memref<1x1x11x32x32xbf16, #tpu.memory_space<vmem>>, %arg3: memref<3x3x32x128xbf16, #tpu.memory_space<vmem>>, %arg4: memref<1x128xf32, #tpu.memory_space<vmem>>, %arg5: memref<1x8x16x128xf32, #tpu.memory_space<vmem>>, %arg6: memref<256x128xf32, #tpu.memory_space<vmem>>) attributes {dimension_semantics = [#tpu.dimension_semantics<parallel>, #tpu.dimension_semantics<parallel>], iteration_bounds = array<i64: 2, 2>, scalar_prefetch = 0 : i64, scratch_operands = 1 : i64, tpu.core_type = #tpu.core_type<tc>, window_params = [{transform_indices = @transform_0, window_bounds = array<i64: 1, 1, 11, 32, 32>}, {pipeline_mode = #tpu.pipeline_mode<synchronous>, transform_indices = @transform_1, window_bounds = array<i64: 3, 3, 32, 128>}, {pipeline_mode = #tpu.pipeline_mode<synchronous>, transform_indices = @transform_2, window_bounds = array<i64: 1, 128>}, {transform_indices = @transform_3, window_bounds = array<i64: 1, 8, 16, 128>}]} {
    %c0 = arith.constant 0 : index
    %c0_0 = arith.constant 0 : index
    %c0_1 = arith.constant 0 : index
    %c0_2 = arith.constant 0 : index
    %c0_3 = arith.constant 0 : index
    %0 = vector.load %arg2[%c0, %c0_0, %c0_1, %c0_2, %c0_3] : memref<1x1x11x32x32xbf16, #tpu.memory_space<vmem>>, vector<1x1x9x32x32xbf16>
    %1 = vector.shape_cast %0 : vector<1x1x9x32x32xbf16> to vector<9x32x32xbf16>
    %2 = vector.shape_cast %1 : vector<9x32x32xbf16> to vector<288x32xbf16>
    %3 = vector.extract_strided_slice %2 {offsets = [0, 0], sizes = [256, 32], strides = [1, 1]} : vector<288x32xbf16> to vector<256x32xbf16>
    %c0_4 = arith.constant 0 : index
    %c0_5 = arith.constant 0 : index
    %c0_6 = arith.constant 0 : index
    %c0_7 = arith.constant 0 : index
    %4 = vector.load %arg3[%c0_4, %c0_5, %c0_6, %c0_7] : memref<3x3x32x128xbf16, #tpu.memory_space<vmem>>, vector<1x1x32x128xbf16>
    %5 = vector.shape_cast %4 : vector<1x1x32x128xbf16> to vector<32x128xbf16>
    %cst = arith.constant dense<0.000000e+00> : vector<256x128xf32>
    %6 = tpu.matmul %3, %5, %cst {dimension_numbers = #tpu.dot_dimension_numbers<[1], [0], [0], [1], [0, 0, 1, 1], [], []>} : vector<256x32xbf16>, vector<32x128xbf16>, vector<256x128xf32> -> vector<256x128xf32>
    %c0_8 = arith.constant 0 : index
    %c0_9 = arith.constant 0 : index
    %7 = vector.load %arg6[%c0_8, %c0_9] : memref<256x128xf32, #tpu.memory_space<vmem>>, vector<256x128xf32>
    tpu.vector_store %arg6[%c0_8, %c0_9], %6 {strides = array<i32>} : memref<256x128xf32, #tpu.memory_space<vmem>>, vector<256x128xf32>,
    %8 = vector.extract_strided_slice %2 {offsets = [1, 0], sizes = [256, 32], strides = [1, 1]} : vector<288x32xbf16> to vector<256x32xbf16>
    %c0_10 = arith.constant 0 : index
    %c1 = arith.constant 1 : index
    %c0_11 = arith.constant 0 : index
    %c0_12 = arith.constant 0 : index
    %9 = vector.load %arg3[%c0_10, %c1, %c0_11, %c0_12] : memref<3x3x32x128xbf16, #tpu.memory_space<vmem>>, vector<1x1x32x128xbf16>
    %10 = vector.shape_cast %9 : vector<1x1x32x128xbf16> to vector<32x128xbf16>
    %cst_13 = arith.constant dense<0.000000e+00> : vector<256x128xf32>
    %11 = tpu.matmul %8, %10, %cst_13 {dimension_numbers = #tpu.dot_dimension_numbers<[1], [0], [0], [1], [0, 0, 1, 1], [], []>} : vector<256x32xbf16>, vector<32x128xbf16>, vector<256x128xf32> -> vector<256x128xf32>
    %c0_14 = arith.constant 0 : index
    %c0_15 = arith.constant 0 : index
    %12 = vector.load %arg6[%c0_14, %c0_15] : memref<256x128xf32, #tpu.memory_space<vmem>>, vector<256x128xf32>
    %13 = arith.addf %12, %11 : vector<256x128xf32>
    %c0_16 = arith.constant 0 : index
    %c0_17 = arith.constant 0 : index
    %14 = vector.load %arg6[%c0_16, %c0_17] : memref<256x128xf32, #tpu.memory_space<vmem>>, vector<256x128xf32>
    tpu.vector_store %arg6[%c0_16, %c0_17], %13 {strides = array<i32>} : memref<256x128xf32, #tpu.memory_space<vmem>>, vector<256x128xf32>,
    %15 = vector.extract_strided_slice %2 {offsets = [2, 0], sizes = [256, 32], strides = [1, 1]} : vector<288x32xbf16> to vector<256x32xbf16>
    %c0_18 = arith.constant 0 : index
    %c2 = arith.constant 2 : index
    %c0_19 = arith.constant 0 : index
    %c0_20 = arith.constant 0 : index
    %16 = vector.load %arg3[%c0_18, %c2, %c0_19, %c0_20] : memref<3x3x32x128xbf16, #tpu.memory_space<vmem>>, vector<1x1x32x128xbf16>
    %17 = vector.shape_cast %16 : vector<1x1x32x128xbf16> to vector<32x128xbf16>
    %cst_21 = arith.constant dense<0.000000e+00> : vector<256x128xf32>
    %18 = tpu.matmul %15, %17, %cst_21 {dimension_numbers = #tpu.dot_dimension_numbers<[1], [0], [0], [1], [0, 0, 1, 1], [], []>} : vector<256x32xbf16>, vector<32x128xbf16>, vector<256x128xf32> -> vector<256x128xf32>
    %c0_22 = arith.constant 0 : index
    %c0_23 = arith.constant 0 : index
    %19 = vector.load %arg6[%c0_22, %c0_23] : memref<256x128xf32, #tpu.memory_space<vmem>>, vector<256x128xf32>
    %20 = arith.addf %19, %18 : vector<256x128xf32>
    %c0_24 = arith.constant 0 : index
    %c0_25 = arith.constant 0 : index
    %21 = vector.load %arg6[%c0_24, %c0_25] : memref<256x128xf32, #tpu.memory_space<vmem>>, vector<256x128xf32>
    tpu.vector_store %arg6[%c0_24, %c0_25], %20 {strides = array<i32>} : memref<256x128xf32, #tpu.memory_space<vmem>>, vector<256x128xf32>,
    %c0_26 = arith.constant 0 : index
    %c0_27 = arith.constant 0 : index
    %c1_28 = arith.constant 1 : index
    %c0_29 = arith.constant 0 : index
    %c0_30 = arith.constant 0 : index
    %22 = vector.load %arg2[%c0_26, %c0_27, %c1_28, %c0_29, %c0_30] : memref<1x1x11x32x32xbf16, #tpu.memory_space<vmem>>, vector<1x1x9x32x32xbf16>
    %23 = vector.shape_cast %22 : vector<1x1x9x32x32xbf16> to vector<9x32x32xbf16>
    %24 = vector.shape_cast %23 : vector<9x32x32xbf16> to vector<288x32xbf16>
    %25 = vector.extract_strided_slice %24 {offsets = [0, 0], sizes = [256, 32], strides = [1, 1]} : vector<288x32xbf16> to vector<256x32xbf16>
    %c1_31 = arith.constant 1 : index
    %c0_32 = arith.constant 0 : index
    %c0_33 = arith.constant 0 : index
    %c0_34 = arith.constant 0 : index
    %26 = vector.load %arg3[%c1_31, %c0_32, %c0_33, %c0_34] : memref<3x3x32x128xbf16, #tpu.memory_space<vmem>>, vector<1x1x32x128xbf16>
    %27 = vector.shape_cast %26 : vector<1x1x32x128xbf16> to vector<32x128xbf16>
    %cst_35 = arith.constant dense<0.000000e+00> : vector<256x128xf32>
    %28 = tpu.matmul %25, %27, %cst_35 {dimension_numbers = #tpu.dot_dimension_numbers<[1], [0], [0], [1], [0, 0, 1, 1], [], []>} : vector<256x32xbf16>, vector<32x128xbf16>, vector<256x128xf32> -> vector<256x128xf32>
    %c0_36 = arith.constant 0 : index
    %c0_37 = arith.constant 0 : index
    %29 = vector.load %arg6[%c0_36, %c0_37] : memref<256x128xf32, #tpu.memory_space<vmem>>, vector<256x128xf32>
    %30 = arith.addf %29, %28 : vector<256x128xf32>
    %c0_38 = arith.constant 0 : index
    %c0_39 = arith.constant 0 : index
    %31 = vector.load %arg6[%c0_38, %c0_39] : memref<256x128xf32, #tpu.memory_space<vmem>>, vector<256x128xf32>
    tpu.vector_store %arg6[%c0_38, %c0_39], %30 {strides = array<i32>} : memref<256x128xf32, #tpu.memory_space<vmem>>, vector<256x128xf32>,
    %32 = vector.extract_strided_slice %24 {offsets = [1, 0], sizes = [256, 32], strides = [1, 1]} : vector<288x32xbf16> to vector<256x32xbf16>
    %c1_40 = arith.constant 1 : index
    %c1_41 = arith.constant 1 : index
    %c0_42 = arith.constant 0 : index
    %c0_43 = arith.constant 0 : index
    %33 = vector.load %arg3[%c1_40, %c1_41, %c0_42, %c0_43] : memref<3x3x32x128xbf16, #tpu.memory_space<vmem>>, vector<1x1x32x128xbf16>
    %34 = vector.shape_cast %33 : vector<1x1x32x128xbf16> to vector<32x128xbf16>
    %cst_44 = arith.constant dense<0.000000e+00> : vector<256x128xf32>
    %35 = tpu.matmul %32, %34, %cst_44 {dimension_numbers = #tpu.dot_dimension_numbers<[1], [0], [0], [1], [0, 0, 1, 1], [], []>} : vector<256x32xbf16>, vector<32x128xbf16>, vector<256x128xf32> -> vector<256x128xf32>
    %c0_45 = arith.constant 0 : index
    %c0_46 = arith.constant 0 : index
    %36 = vector.load %arg6[%c0_45, %c0_46] : memref<256x128xf32, #tpu.memory_space<vmem>>, vector<256x128xf32>
    %37 = arith.addf %36, %35 : vector<256x128xf32>
    %c0_47 = arith.constant 0 : index
    %c0_48 = arith.constant 0 : index
    %38 = vector.load %arg6[%c0_47, %c0_48] : memref<256x128xf32, #tpu.memory_space<vmem>>, vector<256x128xf32>
    tpu.vector_store %arg6[%c0_47, %c0_48], %37 {strides = array<i32>} : memref<256x128xf32, #tpu.memory_space<vmem>>, vector<256x128xf32>,
    %39 = vector.extract_strided_slice %24 {offsets = [2, 0], sizes = [256, 32], strides = [1, 1]} : vector<288x32xbf16> to vector<256x32xbf16>
    %c1_49 = arith.constant 1 : index
    %c2_50 = arith.constant 2 : index
    %c0_51 = arith.constant 0 : index
    %c0_52 = arith.constant 0 : index
    %40 = vector.load %arg3[%c1_49, %c2_50, %c0_51, %c0_52] : memref<3x3x32x128xbf16, #tpu.memory_space<vmem>>, vector<1x1x32x128xbf16>
    %41 = vector.shape_cast %40 : vector<1x1x32x128xbf16> to vector<32x128xbf16>
    %cst_53 = arith.constant dense<0.000000e+00> : vector<256x128xf32>
    %42 = tpu.matmul %39, %41, %cst_53 {dimension_numbers = #tpu.dot_dimension_numbers<[1], [0], [0], [1], [0, 0, 1, 1], [], []>} : vector<256x32xbf16>, vector<32x128xbf16>, vector<256x128xf32> -> vector<256x128xf32>
    %c0_54 = arith.constant 0 : index
    %c0_55 = arith.constant 0 : index
    %43 = vector.load %arg6[%c0_54, %c0_55] : memref<256x128xf32, #tpu.memory_space<vmem>>, vector<256x128xf32>
    %44 = arith.addf %43, %42 : vector<256x128xf32>
    %c0_56 = arith.constant 0 : index
    %c0_57 = arith.constant 0 : index
    %45 = vector.load %arg6[%c0_56, %c0_57] : memref<256x128xf32, #tpu.memory_space<vmem>>, vector<256x128xf32>
    tpu.vector_store %arg6[%c0_56, %c0_57], %44 {strides = array<i32>} : memref<256x128xf32, #tpu.memory_space<vmem>>, vector<256x128xf32>,
    %c0_58 = arith.constant 0 : index
    %c0_59 = arith.constant 0 : index
    %c2_60 = arith.constant 2 : index
    %c0_61 = arith.constant 0 : index
    %c0_62 = arith.constant 0 : index
    %46 = vector.load %arg2[%c0_58, %c0_59, %c2_60, %c0_61, %c0_62] : memref<1x1x11x32x32xbf16, #tpu.memory_space<vmem>>, vector<1x1x9x32x32xbf16>
    %47 = vector.shape_cast %46 : vector<1x1x9x32x32xbf16> to vector<9x32x32xbf16>
    %48 = vector.shape_cast %47 : vector<9x32x32xbf16> to vector<288x32xbf16>
    %49 = vector.extract_strided_slice %48 {offsets = [0, 0], sizes = [256, 32], strides = [1, 1]} : vector<288x32xbf16> to vector<256x32xbf16>
    %c2_63 = arith.constant 2 : index
    %c0_64 = arith.constant 0 : index
    %c0_65 = arith.constant 0 : index
    %c0_66 = arith.constant 0 : index
    %50 = vector.load %arg3[%c2_63, %c0_64, %c0_65, %c0_66] : memref<3x3x32x128xbf16, #tpu.memory_space<vmem>>, vector<1x1x32x128xbf16>
    %51 = vector.shape_cast %50 : vector<1x1x32x128xbf16> to vector<32x128xbf16>
    %cst_67 = arith.constant dense<0.000000e+00> : vector<256x128xf32>
    %52 = tpu.matmul %49, %51, %cst_67 {dimension_numbers = #tpu.dot_dimension_numbers<[1], [0], [0], [1], [0, 0, 1, 1], [], []>} : vector<256x32xbf16>, vector<32x128xbf16>, vector<256x128xf32> -> vector<256x128xf32>
    %c0_68 = arith.constant 0 : index
    %c0_69 = arith.constant 0 : index
    %53 = vector.load %arg6[%c0_68, %c0_69] : memref<256x128xf32, #tpu.memory_space<vmem>>, vector<256x128xf32>
    %54 = arith.addf %53, %52 : vector<256x128xf32>
    %c0_70 = arith.constant 0 : index
    %c0_71 = arith.constant 0 : index
    %55 = vector.load %arg6[%c0_70, %c0_71] : memref<256x128xf32, #tpu.memory_space<vmem>>, vector<256x128xf32>
    tpu.vector_store %arg6[%c0_70, %c0_71], %54 {strides = array<i32>} : memref<256x128xf32, #tpu.memory_space<vmem>>, vector<256x128xf32>,
    %56 = vector.extract_strided_slice %48 {offsets = [1, 0], sizes = [256, 32], strides = [1, 1]} : vector<288x32xbf16> to vector<256x32xbf16>
    %c2_72 = arith.constant 2 : index
    %c1_73 = arith.constant 1 : index
    %c0_74 = arith.constant 0 : index
    %c0_75 = arith.constant 0 : index
    %57 = vector.load %arg3[%c2_72, %c1_73, %c0_74, %c0_75] : memref<3x3x32x128xbf16, #tpu.memory_space<vmem>>, vector<1x1x32x128xbf16>
    %58 = vector.shape_cast %57 : vector<1x1x32x128xbf16> to vector<32x128xbf16>
    %cst_76 = arith.constant dense<0.000000e+00> : vector<256x128xf32>
    %59 = tpu.matmul %56, %58, %cst_76 {dimension_numbers = #tpu.dot_dimension_numbers<[1], [0], [0], [1], [0, 0, 1, 1], [], []>} : vector<256x32xbf16>, vector<32x128xbf16>, vector<256x128xf32> -> vector<256x128xf32>
    %c0_77 = arith.constant 0 : index
    %c0_78 = arith.constant 0 : index
    %60 = vector.load %arg6[%c0_77, %c0_78] : memref<256x128xf32, #tpu.memory_space<vmem>>, vector<256x128xf32>
    %61 = arith.addf %60, %59 : vector<256x128xf32>
    %c0_79 = arith.constant 0 : index
    %c0_80 = arith.constant 0 : index
    %62 = vector.load %arg6[%c0_79, %c0_80] : memref<256x128xf32, #tpu.memory_space<vmem>>, vector<256x128xf32>
    tpu.vector_store %arg6[%c0_79, %c0_80], %61 {strides = array<i32>} : memref<256x128xf32, #tpu.memory_space<vmem>>, vector<256x128xf32>,
    %63 = vector.extract_strided_slice %48 {offsets = [2, 0], sizes = [256, 32], strides = [1, 1]} : vector<288x32xbf16> to vector<256x32xbf16>
    %c2_81 = arith.constant 2 : index
    %c2_82 = arith.constant 2 : index
    %c0_83 = arith.constant 0 : index
    %c0_84 = arith.constant 0 : index
    %64 = vector.load %arg3[%c2_81, %c2_82, %c0_83, %c0_84] : memref<3x3x32x128xbf16, #tpu.memory_space<vmem>>, vector<1x1x32x128xbf16>
    %65 = vector.shape_cast %64 : vector<1x1x32x128xbf16> to vector<32x128xbf16>
    %cst_85 = arith.constant dense<0.000000e+00> : vector<256x128xf32>
    %66 = tpu.matmul %63, %65, %cst_85 {dimension_numbers = #tpu.dot_dimension_numbers<[1], [0], [0], [1], [0, 0, 1, 1], [], []>} : vector<256x32xbf16>, vector<32x128xbf16>, vector<256x128xf32> -> vector<256x128xf32>
    %c0_86 = arith.constant 0 : index
    %c0_87 = arith.constant 0 : index
    %67 = vector.load %arg6[%c0_86, %c0_87] : memref<256x128xf32, #tpu.memory_space<vmem>>, vector<256x128xf32>
    %68 = arith.addf %67, %66 : vector<256x128xf32>
    %c0_88 = arith.constant 0 : index
    %c0_89 = arith.constant 0 : index
    %69 = vector.load %arg6[%c0_88, %c0_89] : memref<256x128xf32, #tpu.memory_space<vmem>>, vector<256x128xf32>
    tpu.vector_store %arg6[%c0_88, %c0_89], %68 {strides = array<i32>} : memref<256x128xf32, #tpu.memory_space<vmem>>, vector<256x128xf32>,
    %c0_90 = arith.constant 0 : index
    %c0_91 = arith.constant 0 : index
    %70 = vector.load %arg6[%c0_90, %c0_91] : memref<256x128xf32, #tpu.memory_space<vmem>>, vector<256x128xf32>
    %c0_92 = arith.constant 0 : index
    %c0_93 = arith.constant 0 : index
    %71 = vector.load %arg4[%c0_92, %c0_93] : memref<1x128xf32, #tpu.memory_space<vmem>>, vector<1x128xf32>
    %72 = vector.shape_cast %71 : vector<1x128xf32> to vector<128xf32>
    %73 = vector.shape_cast %72 : vector<128xf32> to vector<1x128xf32>
    %74 = vector.broadcast %73 : vector<1x128xf32> to vector<256x128xf32>
    %75 = arith.addf %70, %74 : vector<256x128xf32>
    %76 = vector.shape_cast %75 : vector<256x128xf32> to vector<8x32x128xf32>
    %77 = vector.extract_strided_slice %76 {offsets = [0, 0, 0], sizes = [8, 16, 128], strides = [1, 1, 1]} : vector<8x32x128xf32> to vector<8x16x128xf32>
    %78 = vector.shape_cast %77 : vector<8x16x128xf32> to vector<1x8x16x128xf32>
    %c0_94 = arith.constant 0 : index
    %c0_95 = arith.constant 0 : index
    %c0_96 = arith.constant 0 : index
    %c0_97 = arith.constant 0 : index
    %79 = vector.load %arg5[%c0_94, %c0_95, %c0_96, %c0_97] : memref<1x8x16x128xf32, #tpu.memory_space<vmem>>, vector<1x8x16x128xf32>
    tpu.vector_store %arg5[%c0_94, %c0_95, %c0_96, %c0_97], %78 {strides = array<i32>} : memref<1x8x16x128xf32, #tpu.memory_space<vmem>>, vector<1x8x16x128xf32>,
    return
  }
  func.func @transform_0(%arg0: i32, %arg1: i32) -> (i32, i32, i32, i32, i32) {
    %c0_i32 = arith.constant 0 : i32
    %c0_i32_0 = arith.constant 0 : i32
    %c0_i32_1 = arith.constant 0 : i32
    %c0_i32_2 = arith.constant 0 : i32
    return %arg0, %arg1, %c0_i32, %c0_i32_0, %c0_i32_1 : i32, i32, i32, i32, i32
  }
  func.func @transform_1(%arg0: i32, %arg1: i32) -> (i32, i32, i32, i32) {
    %c0_i32 = arith.constant 0 : i32
    %c0_i32_0 = arith.constant 0 : i32
    %c0_i32_1 = arith.constant 0 : i32
    %c0_i32_2 = arith.constant 0 : i32
    %c0_i32_3 = arith.constant 0 : i32
    return %c0_i32, %c0_i32_0, %c0_i32_1, %c0_i32_2 : i32, i32, i32, i32
  }
  func.func @transform_2(%arg0: i32, %arg1: i32) -> (i32, i32) {
    %c0_i32 = arith.constant 0 : i32
    %c0_i32_0 = arith.constant 0 : i32
    %c0_i32_1 = arith.constant 0 : i32
    return %c0_i32, %c0_i32_0 : i32, i32
  }
  func.func @transform_3(%arg0: i32, %arg1: i32) -> (i32, i32, i32, i32) {
    %c0_i32 = arith.constant 0 : i32
    %c0_i32_0 = arith.constant 0 : i32
    %c0_i32_1 = arith.constant 0 : i32
    return %arg0, %arg1, %c0_i32, %c0_i32_0 : i32, i32, i32, i32
  }
}

</mosaic_0001>

<bundles_post_ra>
// kernel: regression_model_forward.5
= control target key start
LH: loop header
LB: loop body
LE: loop exit
PB: predicated region body
PF: predicated region fallthrough
CT: control target
= control target key end

     0   :  { %s4911_s12 = smov 0   ;;  %s4913_s13 = smov 0   ;;  %s6005_s0 = inlined_call_operand.vmem [shape: bf16[2,2,11,32,4], index: 0, kind: input, shape index: {}]   ;;  %s6006_s1 = inlined_call_operand.vmem [shape: bf16[3,3,4,32], index: 1, kind: input, shape index: {}]   ;;  %s6007_s2 = inlined_call_operand.vmem [shape: f32[1,32], index: 2, kind: input, shape index: {}]   ;;  %s6008_s3 = inlined_call_operand.vmem [shape: bf16[2,16,16,32], index: 3, kind: output, shape index: {}]  }
   0x1   :  { %s4915_s14 = smov 0   ;;  %s4917_s15 = smov 0  }
   0x2   :  { %s4919_s16 = smov 0  }
   0x3 LB: > { %s22_s17 = sadd.s32 1, %s4881_s14  ;;  %s25_s18 = sadd.s32 1, %s4885_s15  ;;  %s4889_s16 = sphi %s4919_s16, %s13_s16   ;;  %s4885_s15 = sphi %s4917_s15, %s6013_s15   ;;  %s4881_s14 = sphi %s4915_s14, %s6012_s14   ;;  %s4877_s13 = sphi %s4913_s13, %s6011_s13   ;;  %s4873_s12 = sphi %s4911_s12, %s6010_s12  }
   0x4   : > { %p23_p0 = scmp.ge.s32.totalorder %s22_s17, 2  ;;  %p3977_p1 = scmp.ge.s32.totalorder %s4889_s16, 1 }
   0x5   : > { %p157_p2 = scmp.lt.s32.totalorder %s4889_s16, 5 }
   0x6   : > { %s6015_s17 = smov (%p23_p0, %s22_s17), 0  ;;  %s6017_s18 = smov (!%p23_p0, %s25_s18), %s4885_s15 }
   0x7   : > { %p158_p3 = pnand %p3977_p1, %p157_p2  ;;  %p27_p4 = scmp.ge.s32.totalorder %s6017_s18, 2 }
   0x8   : > { %v244_v0 = vld [vmem:[%s6006_s1] sm:$0x3] (!%p158_p3)  ;;  %vm374_vm0 = vcmask (!%p158_p3), 1041408   ;;  %p190_p5 = scmp.lt.s32.totalorder (!%p158_p3), %s4877_s13, 1  ;;  %p192_p6 = scmp.lt.s32.totalorder (!%p158_p3), %s4873_s12, 1  ;;  %vm325_vm1 = vcmask (!%p158_p3), 31744  }
   0x9   : > { %s6019_s18 = smov (%p27_p4, %s6017_s18), 0  ;;  %161 = sbr.rel (%p158_p3) target bundleno = 550 (0x226), region = 32 }
   0xa   : > { %4749 = vmatprep.subr.msk.bf16.mxu1 (!%p158_p3), %vm374_vm0, %v244_v0  ;;  %v376_v1 = vsel (!%p158_p3), %vm374_vm0, %v244_v0, 0  ;;  %v4015_v2 = vld [vmem:[%s6006_s1 + $0x2] sm:$0x3] (!%p158_p3)  ;;  %4748 = vmatprep.subr.msk.bf16.mxu0 (!%p158_p3), %vm374_vm0, %v244_v0  ;;  %v4033_v3 = vld [vmem:[%s6006_s1 + $0x4] sm:$0x3] (!%p158_p3)  ;;  %vm1004_vm3 = vcmask (!%p158_p3), 1046528  }
   0xb   : > { %4747 = vmatpush3.bf16.msra.mxu1 (!%p158_p3), %v376_v1  ;;  %4441 = vmatpush3.bf16.msra.mxu0 (!%p158_p3), %v376_v1  ;;  %v4973_v5 = vld [vmem:[%s6006_s1 + $0x6] sm:$0x3] (!%p158_p3)  ;;  %v743_v7 = vsel (!%p158_p3), %vm374_vm0, %v4015_v2, 0  ;;  %v4985_v9 = vld [vmem:[%s6006_s1 + $0x8] sm:$0x3] (!%p158_p3)  ;;  %v1087_v11 = vsel (!%p158_p3), %vm374_vm0, %v4033_v3, 0 }
   0xc   : > { %4750 = vmatprep.subr.msk.bf16.mxu1 (!%p158_p3), %vm374_vm0, %v4015_v2  ;;  %4751 = vmatprep.subr.msk.bf16.mxu0 (!%p158_p3), %vm374_vm0, %v4033_v3  ;;  %vm577_vm2 = vsmask.f32 (!%p158_p3), 7424  ;;  %v1511_v47 = vsel (!%p158_p3), %vm374_vm0, %v4973_v5, 0  ;;  %v5078_v52 = vld [vmem:[%s6006_s1 + $0xa] sm:$0x3] (!%p158_p3)  ;;  %v1940_v54 = vsel (!%p158_p3), %vm374_vm0, %v4985_v9, 0 }
   0xd   : > { %v5088_v57 = vld [vmem:[%s6006_s1 + $0xc] sm:$0x3] (!%p158_p3)  ;;  %vm539_vm4 = vcmask (!%p158_p3), 261120   ;;  %vm3857_vm5 = vcmask (!%p158_p3), 257024  }
  0x10   : > { %s6021_s13 = smov (!%p190_p5, %s4877_s13), 1 }
  0x11   : > { %s193_s25 = scalar_select %p192_p6, %s4873_s12, 1 }
  0x12   : > { %s4759_s26 = smul.u32 88, %s6021_s13 }
  0x13   : > { %s4758_s27 = smul.u32 44, %s193_s25  ;;  %s3979_s25 = sshll.u32 %s4873_s12, 3 }
  0x14   : > { %p5859_p7 = scmp.lt.s32.totalorder %s3979_s25, 15 }
  0x15   : > { %s196_s28 = sadd.s32 %s4759_s26, %s4758_s27  ;;  %s3981_s27 = sshll.u32 %s6021_s13, 5 }
  0x16   : > { %s3978_s29 = sshll.u32 %s196_s28, 2  ;;  %s6023_s25 = smov (!%p5859_p7, %s3979_s25), 15 }
  0x17   : > { %s4965_s5 = scalar_lea.vmem %s6005_s0, %s3978_s29  ;;  %s3980_s12 = sshll.u32 %s6023_s25, 1 }
  0x18   : > { %v4968_v4 = vld [vmem:[%s4965_s5 + $0x40] sm:$0xff]   ;;  %v4976_v6 = vld [vmem:[%s4965_s5 + $0x48] sm:$0xff]   ;;  %v4995_v12 = vld [vmem:[%s4965_s5 + $0x50] sm:$0xff]   ;;  %s5877_s28 = sadd.s32 %s3981_s27, %s3980_s12 }
  0x19   : > { %4458 = vmatprep.mubr.msk.bf16.mxu1 %vm325_vm1, %v4968_v4  ;;  %v4802_v8 = vld [vmem:[%s4965_s5] sm:$0xff]   ;;  %v4990_v10 = vld [vmem:[%s4965_s5 + $0x8] sm:$0xff]   ;;  %v4806_v13 = vld [vmem:[%s4965_s5 + $0x10] sm:$0xff]   ;;  %s3982_s13 = sshll.u32 %s5877_s28, 2 }
  0x1a   : > { %4459 = vmatmul.mubr.msk.bf16.vlgmr.msra.gmra.mrb[0].mxu1 %vm325_vm1, %v4976_v6  ;;  %4442 = vmatprep.mubr.msk.bf16.mxu0 %vm325_vm1, %v4802_v8  ;;  %v5005_v14 = vld [vmem:[%s4965_s5 + $0x58] sm:$0xff]   ;;  %v5011_v15 = vld [vmem:[%s4965_s5 + $0x60] sm:$0xff]   ;;  %v580_v18 = vshll.u32 %v4802_v8, 16  ;;  %v5028_v19 = vld [vmem:[%s4965_s5 + $0x68] sm:$0xff]   ;;  %v578_v22 = vshrl.u32 %v4802_v8, 16  ;;  %v584_v24 = vshll.u32 %v4990_v10, 16  ;;  %s5898_s6 = scalar_lea.vmem %s6008_s3, %s3982_s13 }
  0x1b   : > { %4475 = vmatpush3.bf16.msra.mxu1 %v743_v7  ;;  %4443 = vmatmul.mubr.msk.bf16.vlgmr.msra.gmra.mrb[0].mxu0 %vm325_vm1, %v4990_v10  ;;  %v5014_v16 = vld [vmem:[%s4965_s5 + $0x18] sm:$0xff]   ;;  %v5017_v17 = vld [vmem:[%s4965_s5 + $0x20] sm:$0xff]   ;;  %v5031_v20 = vld [vmem:[%s4965_s5 + $0x70] sm:$0xff]   ;;  %v591_v29 = vshll.u32 %v4806_v13, 16  ;;  %v1005_v30 = vrot.slane %v4802_v8, 1  ;;  %v1006_v31 = vrot.slane %v4990_v10, 1 }
  0x1c   : > { %4752 = vmatprep.subr.msk.bf16.mxu1 %vm374_vm0, %v4973_v5  ;;  %4462 = vmatprep.mubr.msk.bf16.mxu1 %vm325_vm1, %v4995_v12  ;;  %v5034_v21 = vld [vmem:[%s4965_s5 + $0x28] sm:$0xff]   ;;  %v582_v23 = vrot.slane %v580_v18, 1  ;;  %v5038_v25 = vld [vmem:[%s4965_s5 + $0x30] sm:$0xff]   ;;  %v586_v27 = vrot.slane %v584_v24, 1  ;;  %v5049_v28 = vld [vmem:[%s4965_s5 + $0x78] sm:$0xff]   ;;  %v588_v32 = vshrl.u32 %v4990_v10, 16 }
  0x1d   : > { %4509 = vmatpush3.bf16.msra.mxu0 %v1087_v11  ;;  %4446 = vmatprep.mubr.msk.bf16.mxu0 %vm325_vm1, %v4806_v13  ;;  %v595_v33 = vshrl.u32 %v4806_v13, 16  ;;  %v5054_v34 = vld [vmem:[%s4965_s5 + $0x38] sm:$0xff]   ;;  %v598_v36 = vshll.u32 %v5014_v16, 16  ;;  %v593_v37 = vrot.slane %v591_v29, 1  ;;  %v1007_v38 = vsel %vm1004_vm3, %v1005_v30, %v1006_v31 }
  0x1e   : > { %4753 = vmatprep.subr.msk.bf16.mxu0 %vm374_vm0, %v4985_v9  ;;  %v583_v26 = vor.u32 %v582_v23, %v578_v22  ;;  %v590_v39 = vor.u32 %v588_v32, %v586_v27  ;;  %v1008_v42 = vrot.slane %v4806_v13, 1  ;;  %v605_v43 = vshll.u32 %v5017_v17, 16 }
  0x1f   : > { %v597_v40 = vor.u32 %v595_v33, %v593_v37  ;;  %v600_v41 = vrot.slane %v598_v36, 1  ;;  %v1010_v44 = vrot.slane %v5014_v16, 1  ;;  %v602_v46 = vshrl.u32 %v5014_v16, 16  ;;  %v5126_v33 = vld [vmem:[%s4965_s5 + $0x10] sm:$0xff]  }
  0x20   : > { %v587_v35 = vsel %vm577_vm2, %v583_v26, %v586_v27  ;;  %v594_v45 = vsel %vm577_vm2, %v590_v39, %v593_v37  ;;  %v609_v49 = vshrl.u32 %v5017_v17, 16  ;;  %v612_v50 = vshll.u32 %v5034_v21, 16 }
  0x21   : > { %v601_v48 = vsel %vm577_vm2, %v597_v40, %v600_v41  ;;  %v1009_v51 = vsel %vm1004_vm3, %v1006_v31, %v1008_v42  ;;  %v607_v53 = vrot.slane %v605_v43, 1  ;;  %v1011_v55 = vsel %vm1004_vm3, %v1008_v42, %v1010_v44  ;;  %v5139_v42 = vld [vmem:[%s4965_s5 + $0x20] sm:$0xff]   ;;  %v5143_v43 = vld [vmem:[%s4965_s5 + $0x28] sm:$0xff]  }
  0x22   : > { %4463 = vmatmul.mubr.msk.bf16.gmra.mrb[4].mxu1 %vm325_vm1, %v5005_v14  ;;  %v604_v56 = vor.u32 %v602_v46, %v600_v41  ;;  %v614_v59 = vrot.slane %v612_v50, 1  ;;  %v1012_v60 = vrot.slane %v5017_v17, 1  ;;  %v619_v61 = vshll.u32 %v5038_v25, 16  ;;  %v5136_v41 = vld [vmem:[%s4965_s5 + $0x18] sm:$0xff]  }
  0x23   : > { %4466 = vmatprep.mubr.msk.bf16.mxu1 %vm325_vm1, %v5011_v15  ;;  %4447 = vmatmul.mubr.msk.bf16.gmra.mrb[4].mxu0 %vm325_vm1, %v5014_v16  ;;  %v611_v58 = vor.u32 %v609_v49, %v607_v53  ;;  %v1014_v62 = vrot.slane %v5034_v21, 1  ;;  %v616_v0 = vshrl.u32 %v5034_v21, 16  ;;  %v623_v2 = vshrl.u32 %v5038_v25, 16 }
  0x24   : > { %4450 = vmatprep.mubr.msk.bf16.mxu0 %vm325_vm1, %v5017_v17  ;;  %v608_v63 = vsel %vm577_vm2, %v604_v56, %v607_v53  ;;  %v626_v3 = vshll.u32 %v5054_v34, 16  ;;  %v1013_v5 = vsel %vm1004_vm3, %v1010_v44, %v1012_v60  ;;  %v621_v7 = vrot.slane %v619_v61, 1 }
  0x25   : > { %v615_v1 = vsel %vm577_vm2, %v611_v58, %v614_v59  ;;  %v1015_v8 = vsel %vm1004_vm3, %v1012_v60, %v1014_v62  ;;  %v618_v9 = vor.u32 %v616_v0, %v614_v59  ;;  %v1016_v13 = vrot.slane %v5038_v25, 1 }
  0x26   : > { %v625_v10 = vor.u32 %v623_v2, %v621_v7  ;;  %v628_v11 = vrot.slane %v626_v3, 1  ;;  %v633_v16 = vshll.u32 %v4968_v4, 16  ;;  %v1018_v17 = vrot.slane %v5054_v34, 1 }
  0x27   : > { %v622_v18 = vsel %vm577_vm2, %v618_v9, %v621_v7  ;;  %v637_v23 = vshrl.u32 %v4968_v4, 16  ;;  %v640_v24 = vshll.u32 %v4976_v6, 16  ;;  %v1017_v26 = vsel %vm1004_vm3, %v1014_v62, %v1016_v13 }
  0x28   : > { %v629_v22 = vsel %vm577_vm2, %v625_v10, %v628_v11  ;;  %v1019_v27 = vsel %vm1004_vm3, %v1016_v13, %v1018_v17  ;;  %v1020_v32 = vrot.slane %v4968_v4, 1  ;;  %v644_v37 = vshrl.u32 %v4976_v6, 16 }
  0x29   : > { %v642_v31 = vrot.slane %v640_v24, 1  ;;  %v651_v40 = vshrl.u32 %v4995_v12, 16  ;;  %v2201_v44 = vrot.slane %v5126_v33, 1  ;;  %v2202_v46 = vrot.slane %v5136_v41, 1 }
  0x2a   : > { %4467 = vmatmul.mubr.msk.bf16.gmra.mrb[8].mxu1 %vm325_vm1, %v5028_v19  ;;  %v1021_v4 = vsel %vm1004_vm3, %v1018_v17, %v1020_v32  ;;  %v2206_v50 = vrot.slane %v5143_v43, 1  ;;  %v661_v58 = vshll.u32 %v5011_v15, 16  ;;  %v1026_v59 = vrot.slane %v5005_v14, 1 }
  0x2b   : > { %4470 = vmatprep.mubr.msk.bf16.mxu1 %vm325_vm1, %v5031_v20  ;;  %4451 = vmatmul.mubr.msk.bf16.gmra.mrb[8].mxu0 %vm325_vm1, %v5034_v21  ;;  %v630_v21 = vshrl.u32 %v5054_v34, 16  ;;  %v5154_v53 = vsel %vm1004_vm3, %v2201_v44, %v2202_v46  ;;  %v658_v61 = vshrl.u32 %v5005_v14, 16  ;;  %v668_v0 = vshll.u32 %v5028_v19, 16 }
  0x2c   : > { %4454 = vmatprep.mubr.msk.bf16.mxu0 %vm325_vm1, %v5038_v25  ;;  %v635_v25 = vrot.slane %v633_v16, 1  ;;  %v1028_v7 = vrot.slane %v5011_v15, 1  ;;  %v1030_v9 = vrot.slane %v5028_v19, 1  ;;  %v679_v16 = vshrl.u32 %v5031_v20, 16 }
  0x2d   : > { %v632_v29 = vor.u32 %v630_v21, %v628_v11  ;;  %v672_v11 = vshrl.u32 %v5028_v19, 16  ;;  %v682_v17 = vshll.u32 %v5049_v28, 16 }
  0x2e   : > { %v639_v30 = vor.u32 %v637_v23, %v635_v25  ;;  %v4816_v23 = vld [vmem:[%s4965_s5 + $0x80] ss:$0 sps:$4 sm:$0xff]  }
  0x2f   : > { %v636_v36 = vsel %vm577_vm2, %v632_v29, %v635_v25  ;;  %v684_v24 = vrot.slane %v682_v17, 1  ;;  %v1034_v25 = vrot.slane %v5049_v28, 1 }
  0x30   : > { %v643_v39 = vsel %vm577_vm2, %v639_v30, %v642_v31  ;;  %v686_v30 = vshrl.u32 %v5049_v28, 16 }
  0x32   : > { %4471 = vmatmul.mubr.msk.bf16.gmra.mrb[12].mxu1 %vm325_vm1, %v5049_v28  ;;  %v5208_v28 = vld [vmem:[%s4965_s5 + $0x88] sm:$0xff]  }
  0x33   : > { %4476 = vmatprep.mubr.msk.bf16.mxu1 %vm325_vm1, %v587_v35  ;;  %4455 = vmatmul.mubr.msk.bf16.gmra.mrb[12].mxu0 %vm325_vm1, %v5054_v34  ;;  %v647_v34 = vshll.u32 %v4995_v12, 16  ;;  %v1022_v35 = vrot.slane %v4976_v6, 1 }
  0x34   : > { %4510 = vmatprep.mubr.msk.bf16.mxu0 %vm325_vm1, %v1007_v38  ;;  %v654_v38 = vshll.u32 %v5005_v14, 16  ;;  %v670_v14 = vrot.slane %v668_v0, 1 }
  0x35   : > { %v1023_v6 = vsel %vm1004_vm3, %v1020_v32, %v1022_v35 }
  0x36   : > { %v656_v49 = vrot.slane %v654_v38, 1  ;;  %v688_v38 = vor.u32 %v686_v30, %v684_v24 }
  0x38   : > { %v660_v3 = vor.u32 %v658_v61, %v656_v49 }
  0x3a   : > { %4477 = vmatmul.mubr.msk.bf16.vlgmr.msra.gmra.mrb[16].mxu1 %vm325_vm1, %v594_v45  ;;  %v649_v45 = vrot.slane %v647_v34, 1 }
  0x3b   : > { %4543 = vmatpush3.bf16.msra.mxu1 %v1511_v47  ;;  %4480 = vmatprep.mubr.msk.bf16.mxu1 %vm325_vm1, %v601_v48  ;;  %v2204_v47 = vrot.slane %v5139_v42, 1  ;;  %v646_v48 = vor.u32 %v644_v37, %v642_v31  ;;  %v690_v31 = vshll.u32 %v4816_v23, 16  ;;  %v1781_v37 = vshll.u32 %v5136_v41, 16 }
  0x3c   : > { %4511 = vmatmul.mubr.msk.bf16.vlgmr.msra.gmra.mrb[16].mxu0 %vm325_vm1, %v1009_v51  ;;  %4754 = vmatprep.subr.msk.bf16.mxu1 %vm374_vm0, %v5078_v52  ;;  %v653_v51 = vor.u32 %v651_v40, %v649_v45  ;;  %v1036_v40 = vrot.slane %v4816_v23, 1 }
  0x3d   : > { %4577 = vmatpush3.bf16.msra.mxu0 %v1940_v54  ;;  %4514 = vmatprep.mubr.msk.bf16.mxu0 %vm325_vm1, %v1011_v55  ;;  %v5157_v54 = vsel %vm1004_vm3, %v2202_v46, %v2204_v47  ;;  %v1024_v55 = vrot.slane %v4995_v12, 1  ;;  %v5164_v56 = vsel %vm1004_vm3, %v2204_v47, %v2206_v50  ;;  %v650_v60 = vsel %vm577_vm2, %v646_v48, %v649_v45 }
  0x3e   : > { %4755 = vmatprep.subr.msk.bf16.mxu0 %vm374_vm0, %v5088_v57  ;;  %v657_v62 = vsel %vm577_vm2, %v653_v51, %v656_v49  ;;  %v1783_v45 = vrot.slane %v1781_v37, 1  ;;  %v1788_v48 = vshll.u32 %v5139_v42, 16  ;;  %v1037_v49 = vsel %vm1004_vm3, %v1034_v25, %v1036_v40  ;;  %v5305_v37 = vld [vmem:[%s4965_s5 + $0x60] sm:$0xff]  }
  0x3f   : > { %v1025_v12 = vsel %vm1004_vm3, %v1022_v35, %v1024_v55  ;;  %v1027_v2 = vsel %vm1004_vm3, %v1024_v55, %v1026_v59  ;;  %v1785_v51 = vshrl.u32 %v5136_v41, 16 }
  0x40   : > { %v1790_v61 = vrot.slane %v1788_v48, 1 }
  0x42   : > { %4481 = vmatmul.mubr.msk.bf16.gmra.mrb[20].mxu1 %vm325_vm1, %v608_v63  ;;  %v665_v63 = vshrl.u32 %v5011_v15, 16  ;;  %v1031_v15 = vsel %vm1004_vm3, %v1028_v7, %v1030_v9 }
  0x43   : > { %4484 = vmatprep.mubr.msk.bf16.mxu1 %vm325_vm1, %v615_v1  ;;  %v663_v1 = vrot.slane %v661_v58, 1 }
  0x44   : > { %4515 = vmatmul.mubr.msk.bf16.gmra.mrb[20].mxu0 %vm325_vm1, %v1013_v5 }
  0x45   : > { %4518 = vmatprep.mubr.msk.bf16.mxu0 %vm325_vm1, %v1015_v8  ;;  %v667_v5 = vor.u32 %v665_v63, %v663_v1  ;;  %v675_v8 = vshll.u32 %v5031_v20, 16  ;;  %v664_v10 = vsel %vm577_vm2, %v660_v3, %v663_v1  ;;  %v1787_v63 = vor.u32 %v1785_v51, %v1783_v45  ;;  %v5237_v1 = vld [vmem:[%s4965_s5 + $0x38] sm:$0xff]  }
  0x47   : > { %v671_v13 = vsel %vm577_vm2, %v667_v5, %v670_v14  ;;  %v677_v21 = vrot.slane %v675_v8, 1  ;;  %v1799_v5 = vshrl.u32 %v5143_v43, 16 }
  0x49   : > { %v681_v19 = vor.u32 %v679_v16, %v677_v21  ;;  %v5271_v16 = vld [vmem:[%s4965_s5 + $0x48] sm:$0xff]  }
  0x4a   : > { %4485 = vmatmul.mubr.msk.bf16.gmra.mrb[24].mxu1 %vm325_vm1, %v622_v18  ;;  %v1029_v18 = vsel %vm1004_vm3, %v1026_v59, %v1028_v7  ;;  %v1792_v59 = vshrl.u32 %v5139_v42, 16  ;;  %v2707_v7 = vsel %vm374_vm0, %v5088_v57, 0  ;;  %v5265_v57 = vld [vmem:[%s4965_s5 + $0x40] sm:$0xff]   ;;  %v1823_v23 = vshll.u32 %v5271_v16, 16 }
  0x4b   : > { %4488 = vmatprep.mubr.msk.bf16.mxu1 %vm325_vm1, %v629_v22  ;;  %v674_v22 = vor.u32 %v672_v11, %v670_v14  ;;  %v685_v32 = vsel %vm577_vm2, %v681_v19, %v684_v24  ;;  %v5247_v14 = vld [vmem:[%s6006_s1 + $0xe] sm:$0x3]  ;;  %v1816_v17 = vshll.u32 %v5265_v57, 16  ;;  %v5287_v24 = vld [vmem:[%s4965_s5 + $0x50] sm:$0xff]  }
  0x4c   : > { %4519 = vmatmul.mubr.msk.bf16.gmra.mrb[24].mxu0 %vm325_vm1, %v1017_v26  ;;  %v1032_v26 = vrot.slane %v5031_v20, 1  ;;  %v1775_v20 = vshrl.u32 %v5126_v33, 16  ;;  %v1794_v0 = vor.u32 %v1792_v59, %v1790_v61  ;;  %v1830_v30 = vshll.u32 %v5287_v24, 16  ;;  %v5323_v59 = vld [vmem:[%s4965_s5 + $0x70] sm:$0xff]  }
  0x4d   : > { %4522 = vmatprep.mubr.msk.bf16.mxu0 %vm325_vm1, %v1019_v27  ;;  %v1777_v27 = vshll.u32 %v5126_v33, 16  ;;  %v678_v29 = vsel %vm577_vm2, %v674_v22, %v677_v21  ;;  %v1813_v21 = vshrl.u32 %v5237_v1, 16  ;;  %v1820_v22 = vshrl.u32 %v5265_v57, 16 }
  0x4e   : > { %v1033_v34 = vsel %vm1004_vm3, %v1030_v9, %v1032_v26  ;;  %v1035_v35 = vsel %vm1004_vm3, %v1032_v26, %v1034_v25  ;;  %v1809_v9 = vshll.u32 %v5237_v1, 16  ;;  %v1818_v19 = vrot.slane %v1816_v17, 1 }
  0x50   : > { %v1822_v25 = vor.u32 %v1820_v22, %v1818_v19 }
  0x52   : > { %4489 = vmatmul.mubr.msk.bf16.gmra.mrb[28].mxu1 %vm325_vm1, %v636_v36  ;;  %v1779_v36 = vrot.slane %v1777_v27, 1  ;;  %v1825_v27 = vrot.slane %v1823_v23, 1 }
  0x53   : > { %4492 = vmatprep.mubr.msk.bf16.mxu1 %vm325_vm1, %v643_v39  ;;  %v692_v39 = vrot.slane %v690_v31, 1 }
  0x54   : > { %4523 = vmatmul.mubr.msk.bf16.gmra.mrb[28].mxu0 %vm325_vm1, %v1021_v4  ;;  %v5212_v4 = vld [vmem:[%s4965_s5 + $0x90] ss:$0 sps:$4 sm:$0xff]   ;;  %v1780_v44 = vor.u32 %v1779_v36, %v1775_v20  ;;  %v1832_v36 = vrot.slane %v1830_v30, 1 }
  0x55   : > { %4526 = vmatprep.mubr.msk.bf16.mxu0 %vm325_vm1, %v1023_v6  ;;  %v2230_v6 = vrot.slane %v5208_v28, 1  ;;  %v693_v46 = vsel %vm577_vm2, %v688_v38, %v692_v39  ;;  %v2232_v47 = vrot.slane %v5212_v4, 1  ;;  %v1887_v30 = vshll.u32 %v5212_v4, 16 }
  0x56   : > { %v1784_v58 = vsel %vm577_vm2, %v1780_v44, %v1783_v45  ;;  %v5309_v44 = vld [vmem:[%s4965_s5 + $0x68] sm:$0xff]   ;;  %v1844_v45 = vshll.u32 %v5305_v37, 16  ;;  %v3136_v4 = vsel %vm374_vm0, %v5247_v14, 0 }
  0x57   : > { %v5223_v55 = vsel %vm1004_vm3, %v2230_v6, %v2232_v47  ;;  %v1851_v51 = vshll.u32 %v5309_v44, 16 }
  0x5a   : > { %4493 = vmatmul.mubr.msk.bf16.gmra.mrb[32].mxu1 %vm325_vm1, %v650_v60  ;;  %v1795_v60 = vshll.u32 %v5143_v43, 16 }
  0x5b   : > { %4496 = vmatprep.mubr.msk.bf16.mxu1 %vm325_vm1, %v657_v62  ;;  %v5233_v62 = vld [vmem:[%s4965_s5 + $0x30] sm:$0xff]  }
  0x5c   : > { %4527 = vmatmul.mubr.msk.bf16.gmra.mrb[32].mxu0 %vm325_vm1, %v1025_v12  ;;  %v1797_v12 = vrot.slane %v1795_v60, 1  ;;  %v1802_v3 = vshll.u32 %v5233_v62, 16  ;;  %v1806_v8 = vshrl.u32 %v5233_v62, 16 }
  0x5d   : > { %4530 = vmatprep.mubr.msk.bf16.mxu0 %vm325_vm1, %v1027_v2  ;;  %v2283_v2 = vsel %vm374_vm0, %v5078_v52, 0 }
  0x5e   : > { %v1798_v52 = vsel %vm577_vm2, %v1794_v0, %v1797_v12  ;;  %v1801_v11 = vor.u32 %v1799_v5, %v1797_v12  ;;  %v5327_v0 = vld [vmem:[%s4965_s5 + $0x78] sm:$0xff]   ;;  %v1858_v12 = vshll.u32 %v5323_v59, 16  ;;  %v1862_v5 = vshrl.u32 %v5323_v59, 16 }
  0x5f   : > { %v1869_v17 = vshrl.u32 %v5327_v0, 16 }
  0x62   : > { %4497 = vmatmul.mubr.msk.bf16.gmra.mrb[36].mxu1 %vm325_vm1, %v664_v10  ;;  %v5261_v10 = vld [vmem:[%s6006_s1 + $0x10] sm:$0x3] }
  0x63   : > { %4500 = vmatprep.mubr.msk.bf16.mxu1 %vm325_vm1, %v671_v13 }
  0x64   : > { %4531 = vmatmul.mubr.msk.bf16.gmra.mrb[36].mxu0 %vm325_vm1, %v1029_v18 }
  0x65   : > { %4534 = vmatprep.mubr.msk.bf16.mxu0 %vm325_vm1, %v1031_v15 }
  0x6a   : > { %4501 = vmatmul.mubr.msk.bf16.gmra.mrb[40].mxu1 %vm325_vm1, %v678_v29  ;;  %v5291_v29 = vld [vmem:[%s4965_s5 + $0x58] sm:$0xff]  }
  0x6b   : > { %4504 = vmatprep.mubr.msk.bf16.mxu1 %vm325_vm1, %v685_v32  ;;  %v1827_v32 = vshrl.u32 %v5271_v16, 16  ;;  %v1837_v20 = vshll.u32 %v5291_v29, 16  ;;  %v1841_v47 = vshrl.u32 %v5291_v29, 16 }
  0x6c   : > { %4535 = vmatmul.mubr.msk.bf16.gmra.mrb[40].mxu0 %vm325_vm1, %v1033_v34  ;;  %v1826_v34 = vsel %vm577_vm2, %v1822_v25, %v1825_v27 }
  0x6d   : > { %4538 = vmatprep.mubr.msk.bf16.mxu0 %vm325_vm1, %v1035_v35  ;;  %v1834_v35 = vshrl.u32 %v5287_v24, 16  ;;  %v1829_v38 = vor.u32 %v1827_v32, %v1825_v27  ;;  %v1839_v40 = vrot.slane %v1837_v20, 1  ;;  %v1883_v27 = vshrl.u32 %v5208_v28, 16  ;;  %v5368_v20 = vld [vmem:[%s4965_s5 + $0x20] sm:$0xff]  }
  0x6f   : > { %v1836_v39 = vor.u32 %v1834_v35, %v1832_v36  ;;  %v1843_v60 = vor.u32 %v1841_v47, %v1839_v40 }
  0x71   : > { %v1840_v48 = vsel %vm577_vm2, %v1836_v39, %v1839_v40  ;;  %v2208_v39 = vrot.slane %v5233_v62, 1 }
  0x72   : > { %4505 = vmatmul.mubr.msk.bf16.gmra.mrb[44].mxu1 %vm325_vm1, %v693_v46  ;;  %v1833_v46 = vsel %vm577_vm2, %v1829_v38, %v1832_v36  ;;  %v5380_v36 = vld [vmem:[%s4965_s5 + $0x28] sm:$0xff]   ;;  %v5383_v38 = vld [vmem:[%s4965_s5 + $0x30] sm:$0xff]  }
  0x73   : > { %4544 = vmatprep.mubr.msk.bf16.mxu1 %vm325_vm1, %v5126_v33  ;;  %v1791_v33 = vsel %vm577_vm2, %v1787_v63, %v1790_v61  ;;  %v1853_v63 = vrot.slane %v1851_v51, 1  ;;  %v5437_v51 = vld [vmem:[%s4965_s5 + $0x60] sm:$0xff]  }
  0x74   : > { %4539 = vmatmul.mubr.msk.bf16.gmra.mrb[44].mxu0 %vm325_vm1, %v1037_v49  ;;  %v1848_v49 = vshrl.u32 %v5305_v37, 16 }
  0x75   : > { %4578 = vmatprep.mubr.msk.bf16.mxu0 %vm325_vm1, %v1784_v58  ;;  %v1846_v58 = vrot.slane %v1844_v45, 1  ;;  %v5418_v45 = vld [vmem:[%s4965_s5 + $0x48] sm:$0xff]  }
  0x77   : > { %v1850_v61 = vor.u32 %v1848_v49, %v1846_v58  ;;  %v5434_v49 = vld [vmem:[%s4965_s5 + $0x58] sm:$0xff]  }
  0x7a   : > { %4545 = vmatmul.mubr.msk.bf16.vlgmr.msra.gmra.mrb[48].mxu1 %vm325_vm1, %v5136_v41  ;;  %v1804_v41 = vrot.slane %v1802_v3, 1  ;;  %v1855_v3 = vshrl.u32 %v5309_v44, 16 }
  0x7b   : > { %4611 = vmatpush3.bf16.msra.mxu1 %v2283_v2  ;;  %4548 = vmatprep.mubr.msk.bf16.mxu1 %vm325_vm1, %v5139_v42  ;;  %v1811_v42 = vrot.slane %v1809_v9, 1  ;;  %v1847_v2 = vsel %vm577_vm2, %v1843_v60, %v1846_v58 }
  0x7c   : > { %4579 = vmatmul.mubr.msk.bf16.vlgmr.msra.gmra.mrb[48].mxu0 %vm325_vm1, %v1791_v33  ;;  %4756 = vmatprep.subr.msk.bf16.mxu1 %vm374_vm0, %v5247_v14  ;;  %v1808_v13 = vor.u32 %v1806_v8, %v1804_v41  ;;  %v1805_v18 = vsel %vm577_vm2, %v1801_v11, %v1804_v41  ;;  %v1854_v33 = vsel %vm577_vm2, %v1850_v61, %v1853_v63  ;;  %v5341_v8 = vld [vmem:[%s4965_s5 + $0x80] sm:$0xff]   ;;  %v2210_v14 = vrot.slane %v5237_v1, 1  ;;  %v5450_v61 = vld [vmem:[%s4965_s5 + $0x68] sm:$0xff]  }
  0x7d   : > { %4645 = vmatpush3.bf16.msra.mxu0 %v2707_v7  ;;  %4582 = vmatprep.mubr.msk.bf16.mxu0 %vm325_vm1, %v1798_v52  ;;  %v1815_v26 = vor.u32 %v1813_v21, %v1811_v42  ;;  %v1865_v7 = vshll.u32 %v5327_v0, 16  ;;  %v1860_v52 = vrot.slane %v1858_v12, 1  ;;  %v1857_v9 = vor.u32 %v1855_v3, %v1853_v63  ;;  %v5453_v63 = vld [vmem:[%s4965_s5 + $0x70] sm:$0xff]   ;;  %v5466_v3 = vld [vmem:[%s4965_s5 + $0x78] sm:$0xff]  }
  0x7e   : > { %4757 = vmatprep.subr.msk.bf16.mxu0 %vm374_vm0, %v5261_v10  ;;  %v1812_v15 = vsel %vm577_vm2, %v1808_v13, %v1811_v42  ;;  %v1872_v13 = vshll.u32 %v5341_v8, 16  ;;  %v1876_v21 = vshrl.u32 %v5341_v8, 16 }
  0x7f   : > { %v1819_v31 = vsel %vm577_vm2, %v1815_v26, %v1818_v19  ;;  %v1864_v41 = vor.u32 %v1862_v5, %v1860_v52  ;;  %v1867_v11 = vrot.slane %v1865_v7, 1  ;;  %v1861_v42 = vsel %vm577_vm2, %v1857_v9, %v1860_v52  ;;  %v5484_v52 = vld [vmem:[%s4965_s5 + $0x88] sm:$0xff]  }
  0x80   : > { %v1874_v22 = vrot.slane %v1872_v13, 1  ;;  %v2971_v9 = vshrl.u32 %v5368_v20, 16 }
  0x81   : > { %v1871_v23 = vor.u32 %v1869_v17, %v1867_v11  ;;  %v2984_v17 = vshll.u32 %v5383_v38, 16 }
  0x82   : > { %4549 = vmatmul.mubr.msk.bf16.gmra.mrb[52].mxu1 %vm325_vm1, %v5143_v43  ;;  %v1878_v19 = vor.u32 %v1876_v21, %v1874_v22  ;;  %v2214_v43 = vrot.slane %v5271_v16, 1  ;;  %v3398_v21 = vrot.slane %v5380_v36, 1 }
  0x83   : > { %4552 = vmatprep.mubr.msk.bf16.mxu1 %vm325_vm1, %v5233_v62  ;;  %v1875_v25 = vsel %vm577_vm2, %v1871_v23, %v1874_v22  ;;  %v5405_v62 = vld [vmem:[%s4965_s5 + $0x40] sm:$0xff]   ;;  %v2981_v23 = vshrl.u32 %v5380_v36, 16 }
  0x84   : > { %4583 = vmatmul.mubr.msk.bf16.gmra.mrb[52].mxu0 %vm325_vm1, %v1805_v18  ;;  %v1868_v18 = vsel %vm577_vm2, %v1864_v41, %v1867_v11  ;;  %v5489_v11 = vld [vmem:[%s4965_s5 + $0x90] sm:$0xff]  }
  0x85   : > { %4586 = vmatprep.mubr.msk.bf16.mxu0 %vm325_vm1, %v1812_v15  ;;  %v1879_v15 = vshll.u32 %v5208_v28, 16 }
  0x87   : > { %v1881_v26 = vrot.slane %v1879_v15, 1 }
  0x89   : > { %v1885_v32 = vor.u32 %v1883_v27, %v1881_v26 }
  0x8a   : > { %4553 = vmatmul.mubr.msk.bf16.gmra.mrb[56].mxu1 %vm325_vm1, %v5237_v1  ;;  %v2212_v1 = vrot.slane %v5265_v57, 1 }
  0x8b   : > { %4556 = vmatprep.mubr.msk.bf16.mxu1 %vm325_vm1, %v5265_v57  ;;  %v2216_v57 = vrot.slane %v5287_v24, 1 }
  0x8c   : > { %4587 = vmatmul.mubr.msk.bf16.gmra.mrb[56].mxu0 %vm325_vm1, %v1819_v31  ;;  %v1882_v31 = vsel %vm577_vm2, %v1878_v19, %v1881_v26  ;;  %v2215_v40 = vsel %vm1004_vm3, %v2212_v1, %v2214_v43 }
  0x8d   : > { %4590 = vmatprep.mubr.msk.bf16.mxu0 %vm325_vm1, %v1826_v34  ;;  %v1889_v34 = vrot.slane %v1887_v30, 1  ;;  %v2217_v47 = vsel %vm1004_vm3, %v2214_v43, %v2216_v57  ;;  %v2988_v30 = vshrl.u32 %v5383_v38, 16 }
  0x8f   : > { %v1890_v35 = vsel %vm577_vm2, %v1885_v32, %v1889_v34 }
  0x92   : > { %4557 = vmatmul.mubr.msk.bf16.gmra.mrb[60].mxu1 %vm325_vm1, %v5271_v16  ;;  %v2218_v16 = vrot.slane %v5291_v29, 1 }
  0x93   : > { %4560 = vmatprep.mubr.msk.bf16.mxu1 %vm325_vm1, %v5287_v24  ;;  %v2220_v24 = vrot.slane %v5305_v37, 1 }
  0x94   : > { %4591 = vmatmul.mubr.msk.bf16.gmra.mrb[60].mxu0 %vm325_vm1, %v1833_v46  ;;  %v5421_v46 = vld [vmem:[%s4965_s5 + $0x50] sm:$0xff]  }
  0x95   : > { %4594 = vmatprep.mubr.msk.bf16.mxu0 %vm325_vm1, %v1840_v48  ;;  %v2219_v48 = vsel %vm1004_vm3, %v2216_v57, %v2218_v16  ;;  %v2221_v58 = vsel %vm1004_vm3, %v2218_v16, %v2220_v24 }
  0x9a   : > { %4561 = vmatmul.mubr.msk.bf16.gmra.mrb[64].mxu1 %vm325_vm1, %v5291_v29  ;;  %v2222_v29 = vrot.slane %v5309_v44, 1 }
  0x9b   : > { %4564 = vmatprep.mubr.msk.bf16.mxu1 %vm325_vm1, %v5305_v37  ;;  %v2224_v37 = vrot.slane %v5323_v59, 1 }
  0x9c   : > { %4595 = vmatmul.mubr.msk.bf16.gmra.mrb[64].mxu0 %vm325_vm1, %v1847_v2  ;;  %v2223_v60 = vsel %vm1004_vm3, %v2220_v24, %v2222_v29 }
  0x9d   : > { %4598 = vmatprep.mubr.msk.bf16.mxu0 %vm325_vm1, %v1854_v33  ;;  %v2225_v12 = vsel %vm1004_vm3, %v2222_v29, %v2224_v37  ;;  %v5469_v33 = vld [vmem:[%s4965_s5 + $0x80] sm:$0xff]  }
  0xa2   : > { %4565 = vmatmul.mubr.msk.bf16.gmra.mrb[68].mxu1 %vm325_vm1, %v5309_v44  ;;  %v2226_v44 = vrot.slane %v5327_v0, 1 }
  0xa3   : > { %4568 = vmatprep.mubr.msk.bf16.mxu1 %vm325_vm1, %v5323_v59  ;;  %v2228_v59 = vrot.slane %v5341_v8, 1 }
  0xa4   : > { %4599 = vmatmul.mubr.msk.bf16.gmra.mrb[68].mxu0 %vm325_vm1, %v1861_v42  ;;  %v2227_v2 = vsel %vm1004_vm3, %v2224_v37, %v2226_v44 }
  0xa5   : > { %4602 = vmatprep.mubr.msk.bf16.mxu0 %vm325_vm1, %v1868_v18  ;;  %v2229_v5 = vsel %vm1004_vm3, %v2226_v44, %v2228_v59  ;;  %v2231_v7 = vsel %vm1004_vm3, %v2228_v59, %v2230_v6  ;;  %v3397_v18 = vrot.slane %v5368_v20, 1  ;;  %v3404_v59 = vrot.slane %v5405_v62, 1 }
  0xaa   : > { %4569 = vmatmul.mubr.msk.bf16.gmra.mrb[72].mxu1 %vm325_vm1, %v5327_v0  ;;  %v2973_v0 = vshll.u32 %v5368_v20, 16 }
  0xab   : > { %4572 = vmatprep.mubr.msk.bf16.mxu1 %vm325_vm1, %v5341_v8  ;;  %v2977_v8 = vshll.u32 %v5380_v36, 16 }
  0xac   : > { %4603 = vmatmul.mubr.msk.bf16.gmra.mrb[72].mxu0 %vm325_vm1, %v1875_v25  ;;  %v2975_v41 = vrot.slane %v2973_v0, 1  ;;  %v5506_v25 = vld [vmem:[%s4965_s5 + $0x98] sm:$0xff]  }
  0xad   : > { %4606 = vmatprep.mubr.msk.bf16.mxu0 %vm325_vm1, %v1882_v31  ;;  %v2979_v13 = vrot.slane %v2977_v8, 1 }
  0xb2   : > { %4573 = vmatmul.mubr.msk.bf16.gmra.mrb[76].mxu1 %vm325_vm1, %v5208_v28  ;;  %v2976_v28 = vor.u32 %v2975_v41, %v2971_v9 }
  0xb3   : > { %4612 = vmatprep.mubr.msk.bf16.mxu1 %vm325_vm1, %v5154_v53  ;;  %v3479_v53 = vsel %vm374_vm0, %v5261_v10, 0  ;;  %v2211_v10 = vsel %vm1004_vm3, %v2208_v39, %v2210_v14 }
  0xb4   : > { %4607 = vmatmul.mubr.msk.bf16.gmra.mrb[76].mxu0 %vm325_vm1, %v1890_v35  ;;  %v2980_v27 = vsel %vm577_vm2, %v2976_v28, %v2979_v13  ;;  %v2986_v35 = vrot.slane %v2984_v17, 1  ;;  %v3009_v28 = vshrl.u32 %v5418_v45, 16  ;;  %v3019_v17 = vshll.u32 %v5434_v49, 16 }
  0xb5   : > { %4646 = vmatprep.mubr.msk.bf16.mxu0 %vm325_vm1, %v5368_v20  ;;  %v3399_v20 = vsel %vm1004_vm3, %v3397_v18, %v3398_v21 }
  0xba   : > { %4613 = vmatmul.mubr.msk.bf16.vlgmr.msra.gmra.mrb[80].mxu1 %vm325_vm1, %v5157_v54  ;;  %v2209_v54 = vsel %vm1004_vm3, %v2206_v50, %v2208_v39  ;;  %v2213_v50 = vsel %vm1004_vm3, %v2210_v14, %v2212_v1 }
  0xbb   : > { %4679 = vmatpush3.bf16.msra.mxu1 %v3136_v4  ;;  %4616 = vmatprep.mubr.msk.bf16.mxu1 %vm325_vm1, %v5164_v56  ;;  %v5402_v56 = vld [vmem:[%s4965_s5 + $0x38] sm:$0xff]   ;;  %v2983_v4 = vor.u32 %v2981_v23, %v2979_v13 }
  0xbc   : > { %4647 = vmatmul.mubr.msk.bf16.vlgmr.msra.gmra.mrb[80].mxu0 %vm325_vm1, %v5380_v36  ;;  %v2991_v31 = vshll.u32 %v5402_v56, 16  ;;  %v2990_v36 = vor.u32 %v2988_v30, %v2986_v35  ;;  %v3408_v30 = vrot.slane %v5421_v46, 1 }
  0xbd   : > { %4713 = vmatpush3.bf16.msra.mxu0 %v3479_v53  ;;  %4650 = vmatprep.mubr.msk.bf16.mxu0 %vm325_vm1, %v5383_v38  ;;  %v2987_v43 = vsel %vm577_vm2, %v2983_v4, %v2986_v35 }
  0xbe   : > { %v2993_v53 = vrot.slane %v2991_v31, 1 }
  0xc0   : > { %v2994_v16 = vsel %vm577_vm2, %v2990_v36, %v2993_v53  ;;  %v3023_v36 = vshrl.u32 %v5434_v49, 16 }
  0xc2   : > { %4617 = vmatmul.mubr.msk.bf16.gmra.mrb[84].mxu1 %vm325_vm1, %v2209_v54  ;;  %v2998_v54 = vshll.u32 %v5405_v62, 16 }
  0xc3   : > { %4620 = vmatprep.mubr.msk.bf16.mxu1 %vm325_vm1, %v2211_v10  ;;  %v3402_v10 = vrot.slane %v5402_v56, 1 }
  0xc4   : > { %4651 = vmatmul.mubr.msk.bf16.gmra.mrb[84].mxu0 %vm325_vm1, %v5402_v56 }
  0xc5   : > { %4654 = vmatprep.mubr.msk.bf16.mxu0 %vm325_vm1, %v5405_v62 }
  0xca   : > { %4621 = vmatmul.mubr.msk.bf16.gmra.mrb[88].mxu1 %vm325_vm1, %v2213_v50 }
  0xcb   : > { %4624 = vmatprep.mubr.msk.bf16.mxu1 %vm325_vm1, %v2215_v40  ;;  %v2995_v40 = vshrl.u32 %v5402_v56, 16 }
  0xcc   : > { %4655 = vmatmul.mubr.msk.bf16.gmra.mrb[88].mxu0 %vm325_vm1, %v5418_v45 }
  0xcd   : > { %4658 = vmatprep.mubr.msk.bf16.mxu0 %vm325_vm1, %v5421_v46  ;;  %v2997_v37 = vor.u32 %v2995_v40, %v2993_v53 }
  0xd2   : > { %4625 = vmatmul.mubr.msk.bf16.gmra.mrb[92].mxu1 %vm325_vm1, %v2217_v47  ;;  %v3002_v47 = vshrl.u32 %v5405_v62, 16 }
  0xd3   : > { %4628 = vmatprep.mubr.msk.bf16.mxu1 %vm325_vm1, %v2219_v48  ;;  %v3005_v48 = vshll.u32 %v5418_v45, 16 }
  0xd4   : > { %4659 = vmatmul.mubr.msk.bf16.gmra.mrb[92].mxu0 %vm325_vm1, %v5434_v49 }
  0xd5   : > { %4662 = vmatprep.mubr.msk.bf16.mxu0 %vm325_vm1, %v5437_v51 }
  0xda   : > { %4629 = vmatmul.mubr.msk.bf16.gmra.mrb[96].mxu1 %vm325_vm1, %v2221_v58  ;;  %v3000_v58 = vrot.slane %v2998_v54, 1 }
  0xdb   : > { %4632 = vmatprep.mubr.msk.bf16.mxu1 %vm325_vm1, %v2223_v60 }
  0xdc   : > { %4663 = vmatmul.mubr.msk.bf16.gmra.mrb[96].mxu0 %vm325_vm1, %v5450_v61  ;;  %v3004_v44 = vor.u32 %v3002_v47, %v3000_v58  ;;  %v3001_v41 = vsel %vm577_vm2, %v2997_v37, %v3000_v58  ;;  %v3412_v47 = vrot.slane %v5437_v51, 1  ;;  %v3414_v58 = vrot.slane %v5450_v61, 1 }
  0xdd   : > { %4666 = vmatprep.mubr.msk.bf16.mxu0 %vm325_vm1, %v5453_v63 }
  0xe2   : > { %4633 = vmatmul.mubr.msk.bf16.gmra.mrb[100].mxu1 %vm325_vm1, %v2225_v12  ;;  %v3007_v12 = vrot.slane %v3005_v48, 1 }
  0xe3   : > { %4636 = vmatprep.mubr.msk.bf16.mxu1 %vm325_vm1, %v2227_v2 }
  0xe4   : > { %4667 = vmatmul.mubr.msk.bf16.gmra.mrb[100].mxu0 %vm325_vm1, %v5466_v3  ;;  %v3011_v23 = vor.u32 %v3009_v28, %v3007_v12 }
  0xe5   : > { %4670 = vmatprep.mubr.msk.bf16.mxu0 %vm325_vm1, %v5469_v33 }
  0xea   : > { %4637 = vmatmul.mubr.msk.bf16.gmra.mrb[104].mxu1 %vm325_vm1, %v2229_v5  ;;  %v3012_v5 = vshll.u32 %v5421_v46, 16 }
  0xeb   : > { %4640 = vmatprep.mubr.msk.bf16.mxu1 %vm325_vm1, %v2231_v7  ;;  %v3406_v7 = vrot.slane %v5418_v45, 1 }
  0xec   : > { %4671 = vmatmul.mubr.msk.bf16.gmra.mrb[104].mxu0 %vm325_vm1, %v5484_v52 }
  0xed   : > { %v4460_v6 = vpop.f32.mrb[0].mxu1  ;;  %4674 = vmatprep.mubr.msk.bf16.mxu0 %vm325_vm1, %v5489_v11 }
  0xee   : > { %558 = vst.msk [vmem:[#allocation2 + $0x90] sm:$0xff] %vm539_vm4, %v4460_v6  ;;  %v476_v42 = vpop.f32.mrb[1].mxu1  ;;  %v4444_v22 = vpop.f32.mrb[0].mxu0  ;;  %v3008_v6 = vsel %vm577_vm2, %v3004_v44, %v3007_v12 }
  0xef   : > { %556 = vst.msk [vmem:[#allocation2 + $0x80] sm:$0xff] %vm539_vm4, %v476_v42  ;;  %v4461_v15 = vpop.f32.mrb[2].mxu1  ;;  %542 = vst.msk [vmem:[#allocation2 + $0x10] sm:$0xff] %vm539_vm4, %v4444_v22  ;;  %v412_v26 = vpop.f32.mrb[1].mxu0  ;;  %v3016_v42 = vshrl.u32 %v5421_v46, 16  ;;  %v3407_v22 = vsel %vm1004_vm3, %v3404_v59, %v3406_v7 }
  0xf0   : > { %559 = vst.msk [vmem:[#allocation2 + $0x98] sm:$0xff] %vm539_vm4, %v4461_v15  ;;  %v479_v19 = vpop.f32.mrb[3].mxu1  ;;  %540 = vst.msk [vmem:[#allocation2] sm:$0xff] %vm539_vm4, %v412_v26  ;;  %v4445_v32 = vpop.f32.mrb[2].mxu0  ;;  %v3014_v15 = vrot.slane %v3012_v5, 1  ;;  %v3021_v26 = vrot.slane %v3019_v17, 1 }
  0xf1   : > { %557 = vst.msk [vmem:[#allocation2 + $0x88] sm:$0xff] %vm539_vm4, %v479_v19  ;;  %543 = vst.msk [vmem:[#allocation2 + $0x18] sm:$0xff] %vm539_vm4, %v4445_v32  ;;  %v415_v34 = vpop.f32.mrb[3].mxu0  ;;  %v3026_v32 = vshll.u32 %v5437_v51, 16 }
  0xf2   : > { %4641 = vmatmul.mubr.msk.bf16.gmra.mrb[108].mxu1 %vm325_vm1, %v5223_v55  ;;  %541 = vst.msk [vmem:[#allocation2 + $0x8] sm:$0xff] %vm539_vm4, %v415_v34  ;;  %v3400_v55 = vrot.slane %v5383_v38, 1  ;;  %v3018_v19 = vor.u32 %v3016_v42, %v3014_v15  ;;  %v3410_v34 = vrot.slane %v5434_v49, 1  ;;  %v3415_v42 = vsel %vm1004_vm3, %v3412_v47, %v3414_v58 }
  0xf3   : > { %4680 = vmatprep.mubr.msk.bf16.mxu1 %vm325_vm1, %v2980_v27 }
  0xf4   : > { %4675 = vmatmul.mubr.msk.bf16.gmra.mrb[108].mxu0 %vm325_vm1, %v5506_v25  ;;  %v3401_v29 = vsel %vm1004_vm3, %v3398_v21, %v3400_v55  ;;  %v3403_v60 = vsel %vm1004_vm3, %v3400_v55, %v3402_v10  ;;  %v3405_v21 = vsel %vm1004_vm3, %v3402_v10, %v3404_v59  ;;  %v3030_v55 = vshrl.u32 %v5437_v51, 16 }
  0xf5   : > { %v4464_v39 = vpop.f32.mrb[4].mxu1  ;;  %4714 = vmatprep.mubr.msk.bf16.mxu0 %vm325_vm1, %v3399_v20  ;;  %v3015_v20 = vsel %vm577_vm2, %v3011_v23, %v3014_v15  ;;  %v3409_v10 = vsel %vm1004_vm3, %v3406_v7, %v3408_v30  ;;  %v3037_v59 = vshrl.u32 %v5450_v61, 16  ;;  %v3054_v23 = vshll.u32 %v5469_v33, 16 }
  0xf6   : > { %562 = vst.msk [vmem:[#allocation2 + $0xb0] sm:$0xff] %vm539_vm4, %v4464_v39  ;;  %v492_v14 = vpop.f32.mrb[5].mxu1  ;;  %v4448_v50 = vpop.f32.mrb[4].mxu0  ;;  %v3022_v39 = vsel %vm577_vm2, %v3018_v19, %v3021_v26 }
  0xf7   : > { %560 = vst.msk [vmem:[#allocation2 + $0xa0] sm:$0xff] %vm539_vm4, %v492_v14  ;;  %v4465_v1 = vpop.f32.mrb[6].mxu1  ;;  %546 = vst.msk [vmem:[#allocation2 + $0x30] sm:$0xff] %vm539_vm4, %v4448_v50  ;;  %v428_v38 = vpop.f32.mrb[5].mxu0  ;;  %v3033_v14 = vshll.u32 %v5450_v61, 16  ;;  %v3025_v50 = vor.u32 %v3023_v36, %v3021_v26 }
  0xf8   : > { %563 = vst.msk [vmem:[#allocation2 + $0xb8] sm:$0xff] %vm539_vm4, %v4465_v1  ;;  %v495_v57 = vpop.f32.mrb[7].mxu1  ;;  %544 = vst.msk [vmem:[#allocation2 + $0x20] sm:$0xff] %vm539_vm4, %v428_v38  ;;  %v4449_v24 = vpop.f32.mrb[6].mxu0  ;;  %v3028_v1 = vrot.slane %v3026_v32, 1  ;;  %v909_v44 = vld [vmem:[#allocation2 + $0x18] sm:$0xff] }
  0xf9   : > { %561 = vst.msk [vmem:[#allocation2 + $0xa8] sm:$0xff] %vm539_vm4, %v495_v57  ;;  %547 = vst.msk [vmem:[#allocation2 + $0x38] sm:$0xff] %vm539_vm4, %v4449_v24  ;;  %v431_v56 = vpop.f32.mrb[7].mxu0  ;;  %v3035_v57 = vrot.slane %v3033_v14, 1  ;;  %v907_v51 = vld [vmem:[#allocation2 + $0x8] sm:$0xff] }
  0xfa   : > { %4681 = vmatmul.mubr.msk.bf16.vlgmr.msra.gmra.mrb[112].mxu1 %vm325_vm1, %v2987_v43  ;;  %545 = vst.msk [vmem:[#allocation2 + $0x28] sm:$0xff] %vm539_vm4, %v431_v56  ;;  %v3411_v43 = vsel %vm1004_vm3, %v3408_v30, %v3410_v34  ;;  %v3032_v40 = vor.u32 %v3030_v55, %v3028_v1  ;;  %v3040_v56 = vshll.u32 %v5453_v63, 16  ;;  %v3029_v12 = vsel %vm577_vm2, %v3025_v50, %v3028_v1 }
  0xfb   : > { %4684 = vmatprep.mubr.msk.bf16.mxu1 %vm325_vm1, %v2994_v16  ;;  %v908_v16 = vld [vmem:[#allocation2 + $0x10] sm:$0xff]  ;;  %v3039_v17 = vor.u32 %v3037_v59, %v3035_v57  ;;  %v3051_v30 = vshrl.u32 %v5466_v3, 16 }
  0xfc   : > { %4715 = vmatmul.mubr.msk.bf16.vlgmr.msra.gmra.mrb[112].mxu0 %vm325_vm1, %v3401_v29  ;;  %v906_v29 = vld [vmem:[#allocation2] sm:$0xff] }
  0xfd   : > { %v4468_v2 = vpop.f32.mrb[8].mxu1  ;;  %4718 = vmatprep.mubr.msk.bf16.mxu0 %vm325_vm1, %v3403_v60 }
  0xfe   : > { %566 = vst.msk [vmem:[#allocation2 + $0xd0] sm:$0xff] %vm539_vm4, %v4468_v2  ;;  %v508_v0 = vpop.f32.mrb[9].mxu1  ;;  %v4452_v8 = vpop.f32.mrb[8].mxu0  ;;  %v912_v15 = vld [vmem:[#allocation2 + $0x30] sm:$0xff] }
  0xff   : > { %564 = vst.msk [vmem:[#allocation2 + $0xc0] sm:$0xff] %vm539_vm4, %v508_v0  ;;  %v4469_v9 = vpop.f32.mrb[10].mxu1  ;;  %550 = vst.msk [vmem:[#allocation2 + $0x50] sm:$0xff] %vm539_vm4, %v4452_v8  ;;  %v444_v62 = vpop.f32.mrb[9].mxu0  ;;  %v3047_v8 = vshll.u32 %v5466_v3, 16 }
 0x100   : > { %567 = vst.msk [vmem:[#allocation2 + $0xd8] sm:$0xff] %vm539_vm4, %v4469_v9  ;;  %v511_v13 = vpop.f32.mrb[11].mxu1  ;;  %548 = vst.msk [vmem:[#allocation2 + $0x40] sm:$0xff] %vm539_vm4, %v444_v62  ;;  %v4453_v18 = vpop.f32.mrb[10].mxu0  ;;  %v3036_v9 = vsel %vm577_vm2, %v3032_v40, %v3035_v57  ;;  %v3413_v62 = vsel %vm1004_vm3, %v3410_v34, %v3412_v47 }
 0x101   : > { %565 = vst.msk [vmem:[#allocation2 + $0xc8] sm:$0xff] %vm539_vm4, %v511_v13  ;;  %551 = vst.msk [vmem:[#allocation2 + $0x58] sm:$0xff] %vm539_vm4, %v4453_v18  ;;  %v447_v45 = vpop.f32.mrb[11].mxu0 }
 0x102   : > { %4685 = vmatmul.mubr.msk.bf16.gmra.mrb[116].mxu1 %vm325_vm1, %v3001_v41  ;;  %549 = vst.msk [vmem:[#allocation2 + $0x48] sm:$0xff] %vm539_vm4, %v447_v45  ;;  %v3044_v41 = vshrl.u32 %v5453_v63, 16 }
 0x103   : > { %4688 = vmatprep.mubr.msk.bf16.mxu1 %vm325_vm1, %v3008_v6  ;;  %v3042_v6 = vrot.slane %v3040_v56, 1 }
 0x104   : > { %4719 = vmatmul.mubr.msk.bf16.gmra.mrb[116].mxu0 %vm325_vm1, %v3405_v21  ;;  %v3049_v21 = vrot.slane %v3047_v8, 1 }
 0x105   : > { %v4472_v27 = vpop.f32.mrb[12].mxu1  ;;  %4722 = vmatprep.mubr.msk.bf16.mxu0 %vm325_vm1, %v3407_v22  ;;  %v3046_v18 = vor.u32 %v3044_v41, %v3042_v6  ;;  %v3416_v22 = vrot.slane %v5453_v63, 1  ;;  %v3061_v63 = vshll.u32 %v5484_v52, 16 }
 0x106   : > { %570 = vst.msk [vmem:[#allocation2 + $0xf0] sm:$0xff] %vm539_vm4, %v4472_v27  ;;  %v524_v31 = vpop.f32.mrb[13].mxu1  ;;  %v4456_v4 = vpop.f32.mrb[12].mxu0  ;;  %v910_v27 = vld [vmem:[#allocation2 + $0x20] sm:$0xff]  ;;  %v3053_v56 = vor.u32 %v3051_v30, %v3049_v21 }
 0x107   : > { %568 = vst.msk [vmem:[#allocation2 + $0xe0] sm:$0xff] %vm539_vm4, %v524_v31  ;;  %v4473_v35 = vpop.f32.mrb[14].mxu1  ;;  %554 = vst.msk [vmem:[#allocation2 + $0x70] sm:$0xff] %vm539_vm4, %v4456_v4  ;;  %v460_v46 = vpop.f32.mrb[13].mxu0  ;;  %v3418_v31 = vrot.slane %v5466_v3, 1  ;;  %v3043_v4 = vsel %vm577_vm2, %v3039_v17, %v3042_v6  ;;  %v3417_v57 = vsel %vm1004_vm3, %v3414_v58, %v3416_v22 }
 0x108   : > { %571 = vst.msk [vmem:[#allocation2 + $0xf8] sm:$0xff] %vm539_vm4, %v4473_v35  ;;  %v527_v53 = vpop.f32.mrb[15].mxu1  ;;  %552 = vst.msk [vmem:[#allocation2 + $0x60] sm:$0xff] %vm539_vm4, %v460_v46  ;;  %v4457_v54 = vpop.f32.mrb[14].mxu0  ;;  %v917_v8 = vld [vmem:[#allocation2 + $0x58] sm:$0xff] }
 0x109   : > { %569 = vst.msk [vmem:[#allocation2 + $0xe8] sm:$0xff] %vm539_vm4, %v527_v53  ;;  %555 = vst.msk [vmem:[#allocation2 + $0x78] sm:$0xff] %vm539_vm4, %v4457_v54  ;;  %v463_v49 = vpop.f32.mrb[15].mxu0  ;;  %v3058_v53 = vshrl.u32 %v5469_v33, 16  ;;  %v911_v54 = vld [vmem:[#allocation2 + $0x28] sm:$0xff] }
 0x10a   : > { %4689 = vmatmul.mubr.msk.bf16.gmra.mrb[120].mxu1 %vm325_vm1, %v3015_v20  ;;  %553 = vst.msk [vmem:[#allocation2 + $0x68] sm:$0xff] %vm539_vm4, %v463_v49  ;;  %v913_v20 = vld [vmem:[#allocation2 + $0x38] sm:$0xff]  ;;  %v3050_v49 = vsel %vm577_vm2, %v3046_v18, %v3049_v21  ;;  %v915_v18 = vld [vmem:[#allocation2 + $0x48] sm:$0xff] }
 0x10b   : > { %4692 = vmatprep.mubr.msk.bf16.mxu1 %vm325_vm1, %v3022_v39 }
 0x10c   : > { %4723 = vmatmul.mubr.msk.bf16.gmra.mrb[120].mxu0 %vm325_vm1, %v3409_v10 }
 0x10d   : > { %v4478_v38 = vpop.f32.mrb[16].mxu1  ;;  %4726 = vmatprep.mubr.msk.bf16.mxu0 %vm325_vm1, %v3411_v43 }
 0x10e   : > { %v940_v48 = vadd.f32 %v4478_v38, %v908_v16  ;;  %v779_v24 = vpop.f32.mrb[17].mxu1  ;;  %v3056_v38 = vrot.slane %v3054_v23, 1 }
 0x10f   : > { %v938_v60 = vadd.f32 %v906_v29, %v779_v24  ;;  %v4479_v37 = vpop.f32.mrb[18].mxu1  ;;  %v4512_v2 = vpop.f32.mrb[16].mxu0  ;;  %v3419_v24 = vsel %vm1004_vm3, %v3416_v22, %v3418_v31 }
 0x110   : > { %972 = vst.msk [vmem:[#allocation2 + $0x10] sm:$0xff] %vm539_vm4, %v940_v48  ;;  %v941_v0 = vadd.f32 %v4479_v37, %v909_v44  ;;  %v782_v5 = vpop.f32.mrb[19].mxu1  ;;  %v1123_v7 = vpop.f32.mrb[17].mxu0  ;;  %v3060_v58 = vor.u32 %v3058_v53, %v3056_v38  ;;  %v916_v44 = vld [vmem:[#allocation2 + $0x50] sm:$0xff] }
 0x111   : > { %970 = vst.msk [vmem:[#allocation2] sm:$0xff] %vm539_vm4, %v938_v60  ;;  %v939_v28 = vadd.f32 %v907_v51, %v782_v5  ;;  %v4513_v13 = vpop.f32.mrb[18].mxu0  ;;  %v3063_v60 = vrot.slane %v3061_v63, 1  ;;  %v3068_v5 = vshll.u32 %v5489_v11, 16  ;;  %v3422_v51 = vrot.slane %v5484_v52, 1 }
 0x112   : > { %973 = vst.msk [vmem:[#allocation2 + $0x18] sm:$0xff] %vm539_vm4, %v941_v0  ;;  %4693 = vmatmul.mubr.msk.bf16.gmra.mrb[124].mxu1 %vm325_vm1, %v3029_v12  ;;  %v1126_v61 = vpop.f32.mrb[19].mxu0  ;;  %v3420_v12 = vrot.slane %v5469_v33, 1  ;;  %v914_v0 = vld [vmem:[#allocation2 + $0x40] sm:$0xff] }
 0x113   : > { %971 = vst.msk [vmem:[#allocation2 + $0x8] sm:$0xff] %vm539_vm4, %v939_v28  ;;  %4696 = vmatprep.mubr.msk.bf16.mxu1 %vm325_vm1, %v3036_v9  ;;  %v3057_v28 = vsel %vm577_vm2, %v3053_v56, %v3056_v38  ;;  %v3079_v38 = vshrl.u32 %v5506_v25, 16 }
 0x114   : > { %4727 = vmatmul.mubr.msk.bf16.gmra.mrb[124].mxu0 %vm325_vm1, %v3413_v62  ;;  %v3064_v62 = vsel %vm577_vm2, %v3060_v58, %v3063_v60 }
 0x115   : > { %v4482_v45 = vpop.f32.mrb[20].mxu1  ;;  %4730 = vmatprep.mubr.msk.bf16.mxu0 %vm325_vm1, %v3415_v42 }
 0x116   : > { %v944_v19 = vadd.f32 %v4482_v45, %v912_v15  ;;  %v795_v26 = vpop.f32.mrb[21].mxu1  ;;  %v3072_v45 = vshrl.u32 %v5489_v11, 16  ;;  %v3075_v15 = vshll.u32 %v5506_v25, 16 }
 0x117   : > { %v1252_v32 = vld [vmem:[#allocation2 + $0x10] sm:$0xff]  ;;  %v942_v34 = vadd.f32 %v910_v27, %v795_v26  ;;  %v4483_v35 = vpop.f32.mrb[22].mxu1  ;;  %v4516_v36 = vpop.f32.mrb[20].mxu0  ;;  %v3421_v27 = vsel %vm1004_vm3, %v3418_v31, %v3420_v12  ;;  %v5653_v31 = vld [vmem:[%s4965_s5 + $0xa0] ss:$0 sps:$4 sm:$0xff]  }
 0x118   : > { %v1284_v46 = vadd.f32 %v4512_v2, %v1252_v32  ;;  %976 = vst.msk [vmem:[#allocation2 + $0x30] sm:$0xff] %vm539_vm4, %v944_v19  ;;  %v1250_v39 = vld [vmem:[#allocation2] sm:$0xff]  ;;  %v945_v55 = vadd.f32 %v4483_v35, %v913_v20  ;;  %v798_v14 = vpop.f32.mrb[23].mxu1  ;;  %v1139_v10 = vpop.f32.mrb[21].mxu0  ;;  %v3070_v35 = vrot.slane %v3068_v5, 1  ;;  %v3423_v20 = vsel %vm1004_vm3, %v3420_v12, %v3422_v51 }
 0x119   : > { %v1282_v1 = vadd.f32 %v1250_v39, %v1123_v7  ;;  %974 = vst.msk [vmem:[#allocation2 + $0x20] sm:$0xff] %vm539_vm4, %v942_v34  ;;  %v1253_v43 = vld [vmem:[#allocation2 + $0x18] sm:$0xff]  ;;  %v943_v50 = vadd.f32 %v911_v54, %v798_v14  ;;  %v4517_v40 = vpop.f32.mrb[22].mxu0  ;;  %v3077_v53 = vrot.slane %v3075_v15, 1  ;;  %v3424_v39 = vrot.slane %v5489_v11, 1  ;;  %v918_v54 = vld [vmem:[#allocation2 + $0x60] sm:$0xff] }
 0x11a   : > { %1316 = vst.msk [vmem:[#allocation2 + $0x10] sm:$0xff] %vm539_vm4, %v1284_v46  ;;  %v1285_v16 = vadd.f32 %v4513_v13, %v1253_v43  ;;  %977 = vst.msk [vmem:[#allocation2 + $0x38] sm:$0xff] %vm539_vm4, %v945_v55  ;;  %v1251_v47 = vld [vmem:[#allocation2 + $0x8] sm:$0xff]  ;;  %4697 = vmatmul.mubr.msk.bf16.gmra.mrb[128].mxu1 %vm325_vm1, %v3043_v4  ;;  %v1142_v48 = vpop.f32.mrb[23].mxu0  ;;  %v920_v46 = vld [vmem:[#allocation2 + $0x70] sm:$0xff] }
 0x11b   : > { %1314 = vst.msk [vmem:[#allocation2] sm:$0xff] %vm539_vm4, %v1282_v1  ;;  %v1283_v29 = vadd.f32 %v1251_v47, %v1126_v61  ;;  %975 = vst.msk [vmem:[#allocation2 + $0x28] sm:$0xff] %vm539_vm4, %v943_v50  ;;  %4700 = vmatprep.mubr.msk.bf16.mxu1 %vm325_vm1, %v3050_v49  ;;  %v3065_v61 = vshrl.u32 %v5484_v52, 16  ;;  %v921_v50 = vld [vmem:[#allocation2 + $0x78] sm:$0xff]  ;;  %v3081_v52 = vor.u32 %v3079_v38, %v3077_v53 }
 0x11c   : > { %1317 = vst.msk [vmem:[#allocation2 + $0x18] sm:$0xff] %vm539_vm4, %v1285_v16  ;;  %4731 = vmatmul.mubr.msk.bf16.gmra.mrb[128].mxu0 %vm325_vm1, %v3417_v57  ;;  %v3083_v16 = vshll.u32 %v5653_v31, 16 }
 0x11d   : > { %1315 = vst.msk [vmem:[#allocation2 + $0x8] sm:$0xff] %vm539_vm4, %v1283_v29  ;;  %v4486_v37 = vpop.f32.mrb[24].mxu1  ;;  %4734 = vmatprep.mubr.msk.bf16.mxu0 %vm325_vm1, %v3419_v24  ;;  %v3067_v3 = vor.u32 %v3065_v61, %v3063_v60  ;;  %v919_v29 = vld [vmem:[#allocation2 + $0x68] sm:$0xff]  ;;  %v922_v61 = vld [vmem:[#allocation2 + $0x80] sm:$0xff] }
 0x11e   : > { %v948_v2 = vadd.f32 %v4486_v37, %v916_v44  ;;  %v811_v59 = vpop.f32.mrb[25].mxu1 }
 0x11f   : > { %v1256_v7 = vld [vmem:[#allocation2 + $0x30] sm:$0xff]  ;;  %v946_v9 = vadd.f32 %v914_v0, %v811_v59  ;;  %v4487_v41 = vpop.f32.mrb[26].mxu1  ;;  %v4520_v13 = vpop.f32.mrb[24].mxu0 }
 0x120   : > { %v1288_v6 = vadd.f32 %v4516_v36, %v1256_v7  ;;  %980 = vst.msk [vmem:[#allocation2 + $0x50] sm:$0xff] %vm539_vm4, %v948_v2  ;;  %v1254_v33 = vld [vmem:[#allocation2 + $0x20] sm:$0xff]  ;;  %v949_v42 = vadd.f32 %v4487_v41, %v917_v8  ;;  %v814_v17 = vpop.f32.mrb[27].mxu1  ;;  %v1155_v21 = vpop.f32.mrb[25].mxu0  ;;  %v3074_v36 = vor.u32 %v3072_v45, %v3070_v35  ;;  %v3425_v2 = vsel %vm1004_vm3, %v3422_v51, %v3424_v39  ;;  %v924_v8 = vld [vmem:[#allocation2 + $0x90] sm:$0xff] }
 0x121   : > { %v1286_v22 = vadd.f32 %v1254_v33, %v1139_v10  ;;  %978 = vst.msk [vmem:[#allocation2 + $0x40] sm:$0xff] %vm539_vm4, %v946_v9  ;;  %v1257_v23 = vld [vmem:[#allocation2 + $0x38] sm:$0xff]  ;;  %v947_v19 = vadd.f32 %v915_v18, %v814_v17  ;;  %v4521_v26 = vpop.f32.mrb[26].mxu0  ;;  %v3426_v10 = vrot.slane %v5506_v25, 1  ;;  %v3085_v51 = vrot.slane %v3083_v16, 1 }
 0x122   : > { %1320 = vst.msk [vmem:[#allocation2 + $0x30] sm:$0xff] %vm539_vm4, %v1288_v6  ;;  %v1289_v30 = vadd.f32 %v4517_v40, %v1257_v23  ;;  %981 = vst.msk [vmem:[#allocation2 + $0x58] sm:$0xff] %vm539_vm4, %v949_v42  ;;  %v1255_v32 = vld [vmem:[#allocation2 + $0x28] sm:$0xff]  ;;  %4701 = vmatmul.mubr.msk.bf16.gmra.mrb[132].mxu1 %vm325_vm1, %v3057_v28  ;;  %v1158_v34 = vpop.f32.mrb[27].mxu0  ;;  %v3071_v40 = vsel %vm577_vm2, %v3067_v3, %v3070_v35  ;;  %v3078_v58 = vsel %vm577_vm2, %v3074_v36, %v3077_v53  ;;  %v925_v17 = vld [vmem:[#allocation2 + $0x98] sm:$0xff] }
 0x123   : > { %1318 = vst.msk [vmem:[#allocation2 + $0x20] sm:$0xff] %vm539_vm4, %v1286_v22  ;;  %v1287_v4 = vadd.f32 %v1255_v32, %v1142_v48  ;;  %979 = vst.msk [vmem:[#allocation2 + $0x48] sm:$0xff] %vm539_vm4, %v947_v19  ;;  %4704 = vmatprep.mubr.msk.bf16.mxu1 %vm325_vm1, %v3064_v62  ;;  %v3427_v7 = vsel %vm1004_vm3, %v3424_v39, %v3426_v10  ;;  %v3428_v28 = vrot.slane %v5653_v31, 1  ;;  %v923_v19 = vld [vmem:[#allocation2 + $0x88] sm:$0xff]  ;;  %v928_v36 = vld [vmem:[#allocation2 + $0xb0] sm:$0xff] }
 0x124   : > { %1321 = vst.msk [vmem:[#allocation2 + $0x38] sm:$0xff] %vm539_vm4, %v1289_v30  ;;  %4735 = vmatmul.mubr.msk.bf16.gmra.mrb[132].mxu0 %vm325_vm1, %v3421_v27  ;;  %v3086_v18 = vsel %vm577_vm2, %v3081_v52, %v3085_v51 }
 0x125   : > { %1319 = vst.msk [vmem:[#allocation2 + $0x28] sm:$0xff] %vm539_vm4, %v1287_v4  ;;  %v4490_v63 = vpop.f32.mrb[28].mxu1  ;;  %4738 = vmatprep.mubr.msk.bf16.mxu0 %vm325_vm1, %v3423_v20  ;;  %v3429_v35 = vsel %vm1004_vm3, %v3426_v10, %v3428_v28 }
 0x126   : > { %v952_v55 = vadd.f32 %v4490_v63, %v920_v46  ;;  %v827_v14 = vpop.f32.mrb[29].mxu1  ;;  %v926_v46 = vld [vmem:[#allocation2 + $0xa0] sm:$0xff] }
 0x127   : > { %v1260_v49 = vld [vmem:[#allocation2 + $0x50] sm:$0xff]  ;;  %v950_v1 = vadd.f32 %v918_v54, %v827_v14  ;;  %v4491_v43 = vpop.f32.mrb[30].mxu1  ;;  %v4524_v57 = vpop.f32.mrb[28].mxu0  ;;  %v929_v54 = vld [vmem:[#allocation2 + $0xb8] sm:$0xff] }
 0x128   : > { %v1292_v47 = vadd.f32 %v4520_v13, %v1260_v49  ;;  %984 = vst.msk [vmem:[#allocation2 + $0x70] sm:$0xff] %vm539_vm4, %v952_v55  ;;  %v1258_v11 = vld [vmem:[#allocation2 + $0x40] sm:$0xff]  ;;  %v953_v48 = vadd.f32 %v4491_v43, %v921_v50  ;;  %v830_v24 = vpop.f32.mrb[31].mxu1  ;;  %v1171_v56 = vpop.f32.mrb[29].mxu0 }
 0x129   : > { %v1290_v60 = vadd.f32 %v1258_v11, %v1155_v21  ;;  %982 = vst.msk [vmem:[#allocation2 + $0x60] sm:$0xff] %vm539_vm4, %v950_v1  ;;  %v1261_v37 = vld [vmem:[#allocation2 + $0x58] sm:$0xff]  ;;  %v951_v44 = vadd.f32 %v919_v29, %v830_v24  ;;  %v4525_v12 = vpop.f32.mrb[30].mxu0 }
 0x12a   : > { %1324 = vst.msk [vmem:[#allocation2 + $0x50] sm:$0xff] %vm539_vm4, %v1292_v47  ;;  %v1293_v59 = vadd.f32 %v4521_v26, %v1261_v37  ;;  %985 = vst.msk [vmem:[#allocation2 + $0x78] sm:$0xff] %vm539_vm4, %v953_v48  ;;  %v1259_v0 = vld [vmem:[#allocation2 + $0x48] sm:$0xff]  ;;  %4705 = vmatmul.mubr.msk.bf16.gmra.mrb[136].mxu1 %vm325_vm1, %v3071_v40  ;;  %v1174_v5 = vpop.f32.mrb[31].mxu0 }
 0x12b   : > { %1322 = vst.msk [vmem:[#allocation2 + $0x40] sm:$0xff] %vm539_vm4, %v1290_v60  ;;  %v1291_v9 = vadd.f32 %v1259_v0, %v1158_v34  ;;  %983 = vst.msk [vmem:[#allocation2 + $0x68] sm:$0xff] %vm539_vm4, %v951_v44  ;;  %4708 = vmatprep.mubr.msk.bf16.mxu1 %vm325_vm1, %v3078_v58  ;;  %v927_v40 = vld [vmem:[#allocation2 + $0xa8] sm:$0xff]  ;;  %v932_v60 = vld [vmem:[#allocation2 + $0xd0] sm:$0xff] }
 0x12c   : > { %1325 = vst.msk [vmem:[#allocation2 + $0x58] sm:$0xff] %vm539_vm4, %v1293_v59  ;;  %4739 = vmatmul.mubr.msk.bf16.gmra.mrb[136].mxu0 %vm325_vm1, %v3425_v2 }
 0x12d   : > { %1323 = vst.msk [vmem:[#allocation2 + $0x48] sm:$0xff] %vm539_vm4, %v1291_v9  ;;  %v4494_v41 = vpop.f32.mrb[32].mxu1  ;;  %4742 = vmatprep.mubr.msk.bf16.mxu0 %vm325_vm1, %v3427_v7 }
 0x12e   : > { %v956_v13 = vadd.f32 %v4494_v41, %v924_v8  ;;  %v843_v62 = vpop.f32.mrb[33].mxu1  ;;  %v931_v8 = vld [vmem:[#allocation2 + $0xc8] sm:$0xff] }
 0x12f   : > { %v1264_v6 = vld [vmem:[#allocation2 + $0x70] sm:$0xff]  ;;  %v954_v33 = vadd.f32 %v922_v61, %v843_v62  ;;  %v4495_v42 = vpop.f32.mrb[34].mxu1  ;;  %v4528_v21 = vpop.f32.mrb[32].mxu0 }
 0x130   : > { %v1296_v45 = vadd.f32 %v4524_v57, %v1264_v6  ;;  %988 = vst.msk [vmem:[#allocation2 + $0x90] sm:$0xff] %vm539_vm4, %v956_v13  ;;  %v1262_v15 = vld [vmem:[#allocation2 + $0x60] sm:$0xff]  ;;  %v957_v22 = vadd.f32 %v4495_v42, %v925_v17  ;;  %v846_v23 = vpop.f32.mrb[35].mxu1  ;;  %v1187_v26 = vpop.f32.mrb[33].mxu0 }
 0x131   : > { %v1294_v27 = vadd.f32 %v1262_v15, %v1171_v56  ;;  %986 = vst.msk [vmem:[#allocation2 + $0x80] sm:$0xff] %vm539_vm4, %v954_v33  ;;  %v1265_v30 = vld [vmem:[#allocation2 + $0x78] sm:$0xff]  ;;  %v955_v32 = vadd.f32 %v923_v19, %v846_v23  ;;  %v4529_v34 = vpop.f32.mrb[34].mxu0  ;;  %v934_v23 = vld [vmem:[#allocation2 + $0xe0] sm:$0xff] }
 0x132   : > { %1328 = vst.msk [vmem:[#allocation2 + $0x70] sm:$0xff] %vm539_vm4, %v1296_v45  ;;  %v1297_v20 = vadd.f32 %v4525_v12, %v1265_v30  ;;  %989 = vst.msk [vmem:[#allocation2 + $0x98] sm:$0xff] %vm539_vm4, %v957_v22  ;;  %v1263_v4 = vld [vmem:[#allocation2 + $0x68] sm:$0xff]  ;;  %4709 = vmatmul.mubr.msk.bf16.gmra.mrb[140].mxu1 %vm325_vm1, %v3086_v18  ;;  %v1190_v3 = vpop.f32.mrb[35].mxu0  ;;  %v930_v12 = vld [vmem:[#allocation2 + $0xc0] sm:$0xff] }
 0x133   : > { %1326 = vst.msk [vmem:[#allocation2 + $0x60] sm:$0xff] %vm539_vm4, %v1294_v27  ;;  %v1295_v31 = vadd.f32 %v1263_v4, %v1174_v5  ;;  %987 = vst.msk [vmem:[#allocation2 + $0x88] sm:$0xff] %vm539_vm4, %v955_v32  ;;  %v933_v5 = vld [vmem:[#allocation2 + $0xd8] sm:$0xff]  ;;  %v936_v45 = vld [vmem:[#allocation2 + $0xf0] sm:$0xff] }
 0x134   : > { %1329 = vst.msk [vmem:[#allocation2 + $0x78] sm:$0xff] %vm539_vm4, %v1297_v20  ;;  %4743 = vmatmul.mubr.msk.bf16.gmra.mrb[140].mxu0 %vm325_vm1, %v3429_v35  ;;  %v937_v30 = vld [vmem:[#allocation2 + $0xf8] sm:$0xff] }
 0x135   : > { %1327 = vst.msk [vmem:[#allocation2 + $0x68] sm:$0xff] %vm539_vm4, %v1295_v31  ;;  %v4498_v25 = vpop.f32.mrb[36].mxu1 }
 0x136   : > { %v960_v53 = vadd.f32 %v4498_v25, %v928_v36  ;;  %v859_v63 = vpop.f32.mrb[37].mxu1 }
 0x137   : > { %v1268_v39 = vld [vmem:[#allocation2 + $0x90] sm:$0xff]  ;;  %v958_v55 = vadd.f32 %v926_v46, %v859_v63  ;;  %v4499_v14 = vpop.f32.mrb[38].mxu1  ;;  %v4532_v10 = vpop.f32.mrb[36].mxu0 }
 0x138   : > { %v1300_v49 = vadd.f32 %v4528_v21, %v1268_v39  ;;  %992 = vst.msk [vmem:[#allocation2 + $0xb0] sm:$0xff] %vm539_vm4, %v960_v53  ;;  %v1266_v1 = vld [vmem:[#allocation2 + $0x80] sm:$0xff]  ;;  %v961_v43 = vadd.f32 %v4499_v14, %v929_v54  ;;  %v862_v50 = vpop.f32.mrb[39].mxu1  ;;  %v1203_v57 = vpop.f32.mrb[37].mxu0 }
 0x139   : > { %v1298_v38 = vadd.f32 %v1266_v1, %v1187_v26  ;;  %990 = vst.msk [vmem:[#allocation2 + $0xa0] sm:$0xff] %vm539_vm4, %v958_v55  ;;  %v1269_v16 = vld [vmem:[#allocation2 + $0x98] sm:$0xff]  ;;  %v959_v47 = vadd.f32 %v927_v40, %v862_v50  ;;  %v4533_v11 = vpop.f32.mrb[38].mxu0 }
 0x13a   : > { %1332 = vst.msk [vmem:[#allocation2 + $0x90] sm:$0xff] %vm539_vm4, %v1300_v49  ;;  %v1301_v48 = vadd.f32 %v4529_v34, %v1269_v16  ;;  %993 = vst.msk [vmem:[#allocation2 + $0xb8] sm:$0xff] %vm539_vm4, %v961_v43  ;;  %v1267_v24 = vld [vmem:[#allocation2 + $0x88] sm:$0xff]  ;;  %v1206_v29 = vpop.f32.mrb[39].mxu0  ;;  %v1674_v43 = vld [vmem:[#allocation2] sm:$0xff] }
 0x13b   : > { %1330 = vst.msk [vmem:[#allocation2 + $0x80] sm:$0xff] %vm539_vm4, %v1298_v38  ;;  %v1299_v56 = vadd.f32 %v1267_v24, %v1190_v3  ;;  %991 = vst.msk [vmem:[#allocation2 + $0xa8] sm:$0xff] %vm539_vm4, %v959_v47  ;;  %v935_v3 = vld [vmem:[#allocation2 + $0xe8] sm:$0xff]  ;;  %v1677_v38 = vld [vmem:[#allocation2 + $0x18] sm:$0xff] }
 0x13c   : > { %1333 = vst.msk [vmem:[#allocation2 + $0x98] sm:$0xff] %vm539_vm4, %v1301_v48 }
 0x13d   : > { %1331 = vst.msk [vmem:[#allocation2 + $0x88] sm:$0xff] %vm539_vm4, %v1299_v56  ;;  %v4502_v58 = vpop.f32.mrb[40].mxu1 }
 0x13e   : > { %v964_v37 = vadd.f32 %v4502_v58, %v932_v60  ;;  %v875_v44 = vpop.f32.mrb[41].mxu1 }
 0x13f   : > { %v1272_v2 = vld [vmem:[#allocation2 + $0xb0] sm:$0xff]  ;;  %v962_v59 = vadd.f32 %v930_v12, %v875_v44  ;;  %v4503_v0 = vpop.f32.mrb[42].mxu1  ;;  %v4536_v7 = vpop.f32.mrb[40].mxu0 }
 0x140   : > { %v1304_v9 = vadd.f32 %v4532_v10, %v1272_v2  ;;  %996 = vst.msk [vmem:[#allocation2 + $0xd0] sm:$0xff] %vm539_vm4, %v964_v37  ;;  %v1270_v52 = vld [vmem:[#allocation2 + $0xa0] sm:$0xff]  ;;  %v965_v51 = vadd.f32 %v4503_v0, %v933_v5  ;;  %v878_v41 = vpop.f32.mrb[43].mxu1  ;;  %v1219_v28 = vpop.f32.mrb[41].mxu0  ;;  %v1676_v10 = vld [vmem:[#allocation2 + $0x10] sm:$0xff] }
 0x141   : > { %v1302_v13 = vadd.f32 %v1270_v52, %v1203_v57  ;;  %994 = vst.msk [vmem:[#allocation2 + $0xc0] sm:$0xff] %vm539_vm4, %v962_v59  ;;  %v1273_v62 = vld [vmem:[#allocation2 + $0xb8] sm:$0xff]  ;;  %v963_v61 = vadd.f32 %v931_v8, %v878_v41  ;;  %v4537_v6 = vpop.f32.mrb[42].mxu0 }
 0x142   : > { %1336 = vst.msk [vmem:[#allocation2 + $0xb0] sm:$0xff] %vm539_vm4, %v1304_v9  ;;  %v1305_v33 = vadd.f32 %v4533_v11, %v1273_v62  ;;  %997 = vst.msk [vmem:[#allocation2 + $0xd8] sm:$0xff] %vm539_vm4, %v965_v51  ;;  %v1271_v42 = vld [vmem:[#allocation2 + $0xa8] sm:$0xff]  ;;  %v1222_v17 = vpop.f32.mrb[43].mxu0  ;;  %v1678_v51 = vld [vmem:[#allocation2 + $0x20] sm:$0xff] }
 0x143   : > { %1334 = vst.msk [vmem:[#allocation2 + $0xa0] sm:$0xff] %vm539_vm4, %v1302_v13  ;;  %v1303_v18 = vadd.f32 %v1271_v42, %v1206_v29  ;;  %995 = vst.msk [vmem:[#allocation2 + $0xc8] sm:$0xff] %vm539_vm4, %v963_v61  ;;  %v1675_v29 = vld [vmem:[#allocation2 + $0x8] sm:$0xff]  ;;  %v1681_v13 = vld [vmem:[#allocation2 + $0x38] sm:$0xff] }
 0x144   : > { %1337 = vst.msk [vmem:[#allocation2 + $0xb8] sm:$0xff] %vm539_vm4, %v1305_v33 }
 0x145   : > { %1335 = vst.msk [vmem:[#allocation2 + $0xa8] sm:$0xff] %vm539_vm4, %v1303_v18  ;;  %v4506_v21 = vpop.f32.mrb[44].mxu1 }
 0x146   : > { %v968_v15 = vadd.f32 %v4506_v21, %v936_v45  ;;  %v891_v22 = vpop.f32.mrb[45].mxu1 }
 0x147   : > { %v1276_v19 = vld [vmem:[#allocation2 + $0xd0] sm:$0xff]  ;;  %v966_v26 = vadd.f32 %v934_v23, %v891_v22  ;;  %v4507_v27 = vpop.f32.mrb[46].mxu1  ;;  %v4540_v32 = vpop.f32.mrb[44].mxu0 }
 0x148   : > { %v1308_v34 = vadd.f32 %v4536_v7, %v1276_v19  ;;  %1000 = vst.msk [vmem:[#allocation2 + $0xf0] sm:$0xff] %vm539_vm4, %v968_v15  ;;  %v1274_v35 = vld [vmem:[#allocation2 + $0xc0] sm:$0xff]  ;;  %v969_v20 = vadd.f32 %v4507_v27, %v937_v30  ;;  %v894_v4 = vpop.f32.mrb[47].mxu1  ;;  %v1235_v31 = vpop.f32.mrb[45].mxu0  ;;  %v1680_v7 = vld [vmem:[#allocation2 + $0x30] sm:$0xff] }
 0x149   : > { %v1306_v25 = vadd.f32 %v1274_v35, %v1219_v28  ;;  %998 = vst.msk [vmem:[#allocation2 + $0xe0] sm:$0xff] %vm539_vm4, %v966_v26  ;;  %v1277_v36 = vld [vmem:[#allocation2 + $0xd8] sm:$0xff]  ;;  %v967_v53 = vadd.f32 %v935_v3, %v894_v4  ;;  %v4541_v63 = vpop.f32.mrb[46].mxu0 }
 0x14a   : > { %1340 = vst.msk [vmem:[#allocation2 + $0xd0] sm:$0xff] %vm539_vm4, %v1308_v34  ;;  %v1309_v46 = vadd.f32 %v4537_v6, %v1277_v36  ;;  %1001 = vst.msk [vmem:[#allocation2 + $0xf8] sm:$0xff] %vm539_vm4, %v969_v20  ;;  %v1275_v39 = vld [vmem:[#allocation2 + $0xc8] sm:$0xff]  ;;  %v1238_v55 = vpop.f32.mrb[47].mxu0  ;;  %v1682_v20 = vld [vmem:[#allocation2 + $0x40] sm:$0xff] }
 0x14b   : > { %1338 = vst.msk [vmem:[#allocation2 + $0xc0] sm:$0xff] %vm539_vm4, %v1306_v25  ;;  %v1307_v14 = vadd.f32 %v1275_v39, %v1222_v17  ;;  %999 = vst.msk [vmem:[#allocation2 + $0xe8] sm:$0xff] %vm539_vm4, %v967_v53  ;;  %v1679_v17 = vld [vmem:[#allocation2 + $0x28] sm:$0xff]  ;;  %v1685_v25 = vld [vmem:[#allocation2 + $0x58] sm:$0xff] }
 0x14c   : > { %1341 = vst.msk [vmem:[#allocation2 + $0xd8] sm:$0xff] %vm539_vm4, %v1309_v46 }
 0x14d   : > { %1339 = vst.msk [vmem:[#allocation2 + $0xc8] sm:$0xff] %vm539_vm4, %v1307_v14  ;;  %v4546_v54 = vpop.f32.mrb[48].mxu1 }
 0x14e   : > { %v1708_v49 = vadd.f32 %v4546_v54, %v1676_v10  ;;  %v1547_v1 = vpop.f32.mrb[49].mxu1 }
 0x14f   : > { %v1280_v50 = vld [vmem:[#allocation2 + $0xf0] sm:$0xff]  ;;  %v1706_v40 = vadd.f32 %v1674_v43, %v1547_v1  ;;  %v4547_v57 = vpop.f32.mrb[50].mxu1  ;;  %v4580_v16 = vpop.f32.mrb[48].mxu0 }
 0x150   : > { %v1312_v47 = vadd.f32 %v4540_v32, %v1280_v50  ;;  %v1278_v11 = vld [vmem:[#allocation2 + $0xe0] sm:$0xff]  ;;  %1740 = vst.msk [vmem:[#allocation2 + $0x10] sm:$0xff] %vm539_vm4, %v1708_v49  ;;  %v1709_v48 = vadd.f32 %v4547_v57, %v1677_v38  ;;  %v1550_v24 = vpop.f32.mrb[51].mxu1  ;;  %v1976_v56 = vpop.f32.mrb[49].mxu0  ;;  %v1684_v32 = vld [vmem:[#allocation2 + $0x50] sm:$0xff] }
 0x151   : > { %v1310_v58 = vadd.f32 %v1278_v11, %v1235_v31  ;;  %v1281_v60 = vld [vmem:[#allocation2 + $0xf8] sm:$0xff]  ;;  %1738 = vst.msk [vmem:[#allocation2] sm:$0xff] %vm539_vm4, %v1706_v40  ;;  %v1707_v37 = vadd.f32 %v1675_v29, %v1550_v24  ;;  %v4581_v44 = vpop.f32.mrb[50].mxu0 }
 0x152   : > { %1344 = vst.msk [vmem:[#allocation2 + $0xf0] sm:$0xff] %vm539_vm4, %v1312_v47  ;;  %v1313_v12 = vadd.f32 %v4541_v63, %v1281_v60  ;;  %v1279_v2 = vld [vmem:[#allocation2 + $0xe8] sm:$0xff]  ;;  %1741 = vst.msk [vmem:[#allocation2 + $0x18] sm:$0xff] %vm539_vm4, %v1709_v48  ;;  %v1979_v59 = vpop.f32.mrb[51].mxu0  ;;  %v1686_v48 = vld [vmem:[#allocation2 + $0x60] sm:$0xff] }
 0x153   : > { %1342 = vst.msk [vmem:[#allocation2 + $0xe0] sm:$0xff] %vm539_vm4, %v1310_v58  ;;  %v1311_v0 = vadd.f32 %v1279_v2, %v1238_v55  ;;  %1739 = vst.msk [vmem:[#allocation2 + $0x8] sm:$0xff] %vm539_vm4, %v1707_v37  ;;  %v1683_v55 = vld [vmem:[#allocation2 + $0x48] sm:$0xff]  ;;  %v1689_v58 = vld [vmem:[#allocation2 + $0x78] sm:$0xff] }
 0x154   : > { %1345 = vst.msk [vmem:[#allocation2 + $0xf8] sm:$0xff] %vm539_vm4, %v1313_v12 }
 0x155   : > { %1343 = vst.msk [vmem:[#allocation2 + $0xe8] sm:$0xff] %vm539_vm4, %v1311_v0  ;;  %v4550_v5 = vpop.f32.mrb[52].mxu1 }
 0x156   : > { %v1712_v9 = vadd.f32 %v4550_v5, %v1680_v7  ;;  %v1563_v52 = vpop.f32.mrb[53].mxu1 }
 0x157   : > { %v2105_v41 = vld [vmem:[#allocation2 + $0x10] sm:$0xff]  ;;  %v1710_v8 = vadd.f32 %v1678_v51, %v1563_v52  ;;  %v4551_v28 = vpop.f32.mrb[54].mxu1  ;;  %v4584_v62 = vpop.f32.mrb[52].mxu0 }
 0x158   : > { %v2137_v61 = vadd.f32 %v4580_v16, %v2105_v41  ;;  %1744 = vst.msk [vmem:[#allocation2 + $0x30] sm:$0xff] %vm539_vm4, %v1712_v9  ;;  %v2103_v6 = vld [vmem:[#allocation2] sm:$0xff]  ;;  %v1713_v33 = vadd.f32 %v4551_v28, %v1681_v13  ;;  %v1566_v42 = vpop.f32.mrb[55].mxu1  ;;  %v1992_v18 = vpop.f32.mrb[53].mxu0  ;;  %v1688_v16 = vld [vmem:[#allocation2 + $0x70] sm:$0xff] }
 0x159   : > { %v2135_v21 = vadd.f32 %v2103_v6, %v1976_v56  ;;  %1742 = vst.msk [vmem:[#allocation2 + $0x20] sm:$0xff] %vm539_vm4, %v1710_v8  ;;  %v2106_v45 = vld [vmem:[#allocation2 + $0x18] sm:$0xff]  ;;  %v1711_v15 = vadd.f32 %v1679_v17, %v1566_v42  ;;  %v4585_v22 = vpop.f32.mrb[54].mxu0 }
 0x15a   : > { %2169 = vst.msk [vmem:[#allocation2 + $0x10] sm:$0xff] %vm539_vm4, %v2137_v61  ;;  %v2138_v23 = vadd.f32 %v4581_v44, %v2106_v45  ;;  %1745 = vst.msk [vmem:[#allocation2 + $0x38] sm:$0xff] %vm539_vm4, %v1713_v33  ;;  %v2104_v19 = vld [vmem:[#allocation2 + $0x8] sm:$0xff]  ;;  %v1995_v26 = vpop.f32.mrb[55].mxu0  ;;  %v1690_v33 = vld [vmem:[#allocation2 + $0x80] sm:$0xff] }
 0x15b   : > { %2167 = vst.msk [vmem:[#allocation2] sm:$0xff] %vm539_vm4, %v2135_v21  ;;  %v2136_v27 = vadd.f32 %v2104_v19, %v1979_v59  ;;  %1743 = vst.msk [vmem:[#allocation2 + $0x28] sm:$0xff] %vm539_vm4, %v1711_v15  ;;  %v1687_v59 = vld [vmem:[#allocation2 + $0x68] sm:$0xff]  ;;  %v1693_v21 = vld [vmem:[#allocation2 + $0x98] sm:$0xff] }
 0x15c   : > { %2170 = vst.msk [vmem:[#allocation2 + $0x18] sm:$0xff] %vm539_vm4, %v2138_v23 }
 0x15d   : > { %2168 = vst.msk [vmem:[#allocation2 + $0x8] sm:$0xff] %vm539_vm4, %v2136_v27  ;;  %v4554_v30 = vpop.f32.mrb[56].mxu1 }
 0x15e   : > { %v1716_v34 = vadd.f32 %v4554_v30, %v1684_v32  ;;  %v1579_v35 = vpop.f32.mrb[57].mxu1 }
 0x15f   : > { %v2109_v4 = vld [vmem:[#allocation2 + $0x30] sm:$0xff]  ;;  %v1714_v3 = vadd.f32 %v1682_v20, %v1579_v35  ;;  %v4555_v31 = vpop.f32.mrb[58].mxu1  ;;  %v4588_v36 = vpop.f32.mrb[56].mxu0 }
 0x160   : > { %v2141_v53 = vadd.f32 %v4584_v62, %v2109_v4  ;;  %1748 = vst.msk [vmem:[#allocation2 + $0x50] sm:$0xff] %vm539_vm4, %v1716_v34  ;;  %v2107_v63 = vld [vmem:[#allocation2 + $0x20] sm:$0xff]  ;;  %v1717_v46 = vadd.f32 %v4555_v31, %v1685_v25  ;;  %v1582_v39 = vpop.f32.mrb[59].mxu1  ;;  %v2008_v14 = vpop.f32.mrb[57].mxu0  ;;  %v1692_v62 = vld [vmem:[#allocation2 + $0x90] sm:$0xff] }
 0x161   : > { %v2139_v54 = vadd.f32 %v2107_v63, %v1992_v18  ;;  %1746 = vst.msk [vmem:[#allocation2 + $0x40] sm:$0xff] %vm539_vm4, %v1714_v3  ;;  %v2110_v10 = vld [vmem:[#allocation2 + $0x38] sm:$0xff]  ;;  %v1715_v49 = vadd.f32 %v1683_v55, %v1582_v39  ;;  %v4589_v1 = vpop.f32.mrb[58].mxu0 }
 0x162   : > { %2173 = vst.msk [vmem:[#allocation2 + $0x30] sm:$0xff] %vm539_vm4, %v2141_v53  ;;  %v2142_v43 = vadd.f32 %v4585_v22, %v2110_v10  ;;  %1749 = vst.msk [vmem:[#allocation2 + $0x58] sm:$0xff] %vm539_vm4, %v1717_v46  ;;  %v2108_v50 = vld [vmem:[#allocation2 + $0x28] sm:$0xff]  ;;  %v2011_v40 = vpop.f32.mrb[59].mxu0  ;;  %v1694_v46 = vld [vmem:[#allocation2 + $0xa0] sm:$0xff] }
 0x163   : > { %2171 = vst.msk [vmem:[#allocation2 + $0x20] sm:$0xff] %vm539_vm4, %v2139_v54  ;;  %v2140_v57 = vadd.f32 %v2108_v50, %v1995_v26  ;;  %1747 = vst.msk [vmem:[#allocation2 + $0x48] sm:$0xff] %vm539_vm4, %v1715_v49  ;;  %v1691_v26 = vld [vmem:[#allocation2 + $0x88] sm:$0xff]  ;;  %v1697_v54 = vld [vmem:[#allocation2 + $0xb8] sm:$0xff] }
 0x164   : > { %2174 = vst.msk [vmem:[#allocation2 + $0x38] sm:$0xff] %vm539_vm4, %v2142_v43 }
 0x165   : > { %2172 = vst.msk [vmem:[#allocation2 + $0x28] sm:$0xff] %vm539_vm4, %v2140_v57  ;;  %v4558_v38 = vpop.f32.mrb[60].mxu1 }
 0x166   : > { %v1720_v47 = vadd.f32 %v4558_v38, %v1688_v16  ;;  %v1595_v11 = vpop.f32.mrb[61].mxu1 }
 0x167   : > { %v2113_v24 = vld [vmem:[#allocation2 + $0x50] sm:$0xff]  ;;  %v1718_v29 = vadd.f32 %v1686_v48, %v1595_v11  ;;  %v4559_v56 = vpop.f32.mrb[62].mxu1  ;;  %v4592_v60 = vpop.f32.mrb[60].mxu0 }
 0x168   : > { %v2145_v37 = vadd.f32 %v4588_v36, %v2113_v24  ;;  %1752 = vst.msk [vmem:[#allocation2 + $0x70] sm:$0xff] %vm539_vm4, %v1720_v47  ;;  %v2111_v44 = vld [vmem:[#allocation2 + $0x40] sm:$0xff]  ;;  %v1721_v12 = vadd.f32 %v4559_v56, %v1689_v58  ;;  %v1598_v2 = vpop.f32.mrb[63].mxu1  ;;  %v2024_v0 = vpop.f32.mrb[61].mxu0  ;;  %v1696_v36 = vld [vmem:[#allocation2 + $0xb0] sm:$0xff] }
 0x169   : > { %v2143_v5 = vadd.f32 %v2111_v44, %v2008_v14  ;;  %1750 = vst.msk [vmem:[#allocation2 + $0x60] sm:$0xff] %vm539_vm4, %v1718_v29  ;;  %v2114_v7 = vld [vmem:[#allocation2 + $0x58] sm:$0xff]  ;;  %v1719_v9 = vadd.f32 %v1687_v59, %v1598_v2  ;;  %v4593_v52 = vpop.f32.mrb[62].mxu0 }
 0x16a   : > { %2177 = vst.msk [vmem:[#allocation2 + $0x50] sm:$0xff] %vm539_vm4, %v2145_v37  ;;  %v2146_v51 = vadd.f32 %v4589_v1, %v2114_v7  ;;  %1753 = vst.msk [vmem:[#allocation2 + $0x78] sm:$0xff] %vm539_vm4, %v1721_v12  ;;  %v2112_v41 = vld [vmem:[#allocation2 + $0x48] sm:$0xff]  ;;  %v2027_v8 = vpop.f32.mrb[63].mxu0  ;;  %v1698_v12 = vld [vmem:[#allocation2 + $0xc0] sm:$0xff] }
 0x16b   : > { %2175 = vst.msk [vmem:[#allocation2 + $0x40] sm:$0xff] %vm539_vm4, %v2143_v5  ;;  %v2144_v28 = vadd.f32 %v2112_v41, %v2011_v40  ;;  %1751 = vst.msk [vmem:[#allocation2 + $0x68] sm:$0xff] %vm539_vm4, %v1719_v9  ;;  %v1695_v40 = vld [vmem:[#allocation2 + $0xa8] sm:$0xff]  ;;  %v1701_v5 = vld [vmem:[#allocation2 + $0xd8] sm:$0xff] }
 0x16c   : > { %2178 = vst.msk [vmem:[#allocation2 + $0x58] sm:$0xff] %vm539_vm4, %v2146_v51 }
 0x16d   : > { %2176 = vst.msk [vmem:[#allocation2 + $0x48] sm:$0xff] %vm539_vm4, %v2144_v28  ;;  %v4562_v13 = vpop.f32.mrb[64].mxu1 }
 0x16e   : > { %v1724_v61 = vadd.f32 %v4562_v13, %v1692_v62  ;;  %v1611_v6 = vpop.f32.mrb[65].mxu1 }
 0x16f   : > { %v2117_v42 = vld [vmem:[#allocation2 + $0x70] sm:$0xff]  ;;  %v1722_v17 = vadd.f32 %v1690_v33, %v1611_v6  ;;  %v4563_v18 = vpop.f32.mrb[66].mxu1  ;;  %v4596_v45 = vpop.f32.mrb[64].mxu0 }
 0x170   : > { %v2149_v15 = vadd.f32 %v4592_v60, %v2117_v42  ;;  %1756 = vst.msk [vmem:[#allocation2 + $0x90] sm:$0xff] %vm539_vm4, %v1724_v61  ;;  %v2115_v22 = vld [vmem:[#allocation2 + $0x60] sm:$0xff]  ;;  %v1725_v23 = vadd.f32 %v4563_v18, %v1693_v21  ;;  %v1614_v19 = vpop.f32.mrb[67].mxu1  ;;  %v2040_v27 = vpop.f32.mrb[65].mxu0  ;;  %v1700_v60 = vld [vmem:[#allocation2 + $0xd0] sm:$0xff] }
 0x171   : > { %v2147_v30 = vadd.f32 %v2115_v22, %v2024_v0  ;;  %1754 = vst.msk [vmem:[#allocation2 + $0x80] sm:$0xff] %vm539_vm4, %v1722_v17  ;;  %v2118_v32 = vld [vmem:[#allocation2 + $0x78] sm:$0xff]  ;;  %v1723_v34 = vadd.f32 %v1691_v26, %v1614_v19  ;;  %v4597_v35 = vpop.f32.mrb[66].mxu0 }
 0x172   : > { %2181 = vst.msk [vmem:[#allocation2 + $0x70] sm:$0xff] %vm539_vm4, %v2149_v15  ;;  %v2150_v20 = vadd.f32 %v4593_v52, %v2118_v32  ;;  %1757 = vst.msk [vmem:[#allocation2 + $0x98] sm:$0xff] %vm539_vm4, %v1725_v23  ;;  %v2116_v4 = vld [vmem:[#allocation2 + $0x68] sm:$0xff]  ;;  %v2043_v3 = vpop.f32.mrb[67].mxu0  ;;  %v1702_v23 = vld [vmem:[#allocation2 + $0xe0] sm:$0xff] }
 0x173   : > { %2179 = vst.msk [vmem:[#allocation2 + $0x60] sm:$0xff] %vm539_vm4, %v2147_v30  ;;  %v2148_v31 = vadd.f32 %v2116_v4, %v2027_v8  ;;  %1755 = vst.msk [vmem:[#allocation2 + $0x88] sm:$0xff] %vm539_vm4, %v1723_v34  ;;  %v1699_v8 = vld [vmem:[#allocation2 + $0xc8] sm:$0xff]  ;;  %v1705_v30 = vld [vmem:[#allocation2 + $0xf8] sm:$0xff] }
 0x174   : > { %2182 = vst.msk [vmem:[#allocation2 + $0x78] sm:$0xff] %vm539_vm4, %v2150_v20 }
 0x175   : > { %2180 = vst.msk [vmem:[#allocation2 + $0x68] sm:$0xff] %vm539_vm4, %v2148_v31  ;;  %v4566_v25 = vpop.f32.mrb[68].mxu1 }
 0x176   : > { %v1728_v53 = vadd.f32 %v4566_v25, %v1696_v36  ;;  %v1627_v63 = vpop.f32.mrb[69].mxu1 }
 0x177   : > { %v2121_v39 = vld [vmem:[#allocation2 + $0x90] sm:$0xff]  ;;  %v1726_v55 = vadd.f32 %v1694_v46, %v1627_v63  ;;  %v4567_v14 = vpop.f32.mrb[70].mxu1  ;;  %v4600_v10 = vpop.f32.mrb[68].mxu0 }
 0x178   : > { %v2153_v49 = vadd.f32 %v4596_v45, %v2121_v39  ;;  %1760 = vst.msk [vmem:[#allocation2 + $0xb0] sm:$0xff] %vm539_vm4, %v1728_v53  ;;  %v2119_v1 = vld [vmem:[#allocation2 + $0x80] sm:$0xff]  ;;  %v1729_v43 = vadd.f32 %v4567_v14, %v1697_v54  ;;  %v1630_v50 = vpop.f32.mrb[71].mxu1  ;;  %v2056_v57 = vpop.f32.mrb[69].mxu0  ;;  %v1704_v45 = vld [vmem:[#allocation2 + $0xf0] sm:$0xff] }
 0x179   : > { %v2151_v38 = vadd.f32 %v2119_v1, %v2040_v27  ;;  %1758 = vst.msk [vmem:[#allocation2 + $0xa0] sm:$0xff] %vm539_vm4, %v1726_v55  ;;  %v2122_v16 = vld [vmem:[#allocation2 + $0x98] sm:$0xff]  ;;  %v1727_v47 = vadd.f32 %v1695_v40, %v1630_v50  ;;  %v4601_v11 = vpop.f32.mrb[70].mxu0 }
 0x17a   : > { %2185 = vst.msk [vmem:[#allocation2 + $0x90] sm:$0xff] %vm539_vm4, %v2153_v49  ;;  %v2154_v48 = vadd.f32 %v4597_v35, %v2122_v16  ;;  %1761 = vst.msk [vmem:[#allocation2 + $0xb8] sm:$0xff] %vm539_vm4, %v1729_v43  ;;  %v2120_v24 = vld [vmem:[#allocation2 + $0x88] sm:$0xff]  ;;  %v2059_v29 = vpop.f32.mrb[71].mxu0  ;;  %v2446_v43 = vld [vmem:[#allocation2] sm:$0xff] }
 0x17b   : > { %2183 = vst.msk [vmem:[#allocation2 + $0x80] sm:$0xff] %vm539_vm4, %v2151_v38  ;;  %v2152_v56 = vadd.f32 %v2120_v24, %v2043_v3  ;;  %1759 = vst.msk [vmem:[#allocation2 + $0xa8] sm:$0xff] %vm539_vm4, %v1727_v47  ;;  %v1703_v3 = vld [vmem:[#allocation2 + $0xe8] sm:$0xff]  ;;  %v2449_v38 = vld [vmem:[#allocation2 + $0x18] sm:$0xff] }
 0x17c   : > { %2186 = vst.msk [vmem:[#allocation2 + $0x98] sm:$0xff] %vm539_vm4, %v2154_v48 }
 0x17d   : > { %2184 = vst.msk [vmem:[#allocation2 + $0x88] sm:$0xff] %vm539_vm4, %v2152_v56  ;;  %v4570_v58 = vpop.f32.mrb[72].mxu1 }
 0x17e   : > { %v1732_v37 = vadd.f32 %v4570_v58, %v1700_v60  ;;  %v1643_v44 = vpop.f32.mrb[73].mxu1 }
 0x17f   : > { %v2125_v2 = vld [vmem:[#allocation2 + $0xb0] sm:$0xff]  ;;  %v1730_v59 = vadd.f32 %v1698_v12, %v1643_v44  ;;  %v4571_v0 = vpop.f32.mrb[74].mxu1  ;;  %v4604_v7 = vpop.f32.mrb[72].mxu0 }
 0x180   : > { %v2157_v9 = vadd.f32 %v4600_v10, %v2125_v2  ;;  %1764 = vst.msk [vmem:[#allocation2 + $0xd0] sm:$0xff] %vm539_vm4, %v1732_v37  ;;  %v2123_v52 = vld [vmem:[#allocation2 + $0xa0] sm:$0xff]  ;;  %v1733_v51 = vadd.f32 %v4571_v0, %v1701_v5  ;;  %v1646_v41 = vpop.f32.mrb[75].mxu1  ;;  %v2072_v28 = vpop.f32.mrb[73].mxu0  ;;  %v2448_v10 = vld [vmem:[#allocation2 + $0x10] sm:$0xff] }
 0x181   : > { %v2155_v13 = vadd.f32 %v2123_v52, %v2056_v57  ;;  %1762 = vst.msk [vmem:[#allocation2 + $0xc0] sm:$0xff] %vm539_vm4, %v1730_v59  ;;  %v2126_v62 = vld [vmem:[#allocation2 + $0xb8] sm:$0xff]  ;;  %v1731_v61 = vadd.f32 %v1699_v8, %v1646_v41  ;;  %v4605_v6 = vpop.f32.mrb[74].mxu0 }
 0x182   : > { %2189 = vst.msk [vmem:[#allocation2 + $0xb0] sm:$0xff] %vm539_vm4, %v2157_v9  ;;  %v2158_v33 = vadd.f32 %v4601_v11, %v2126_v62  ;;  %1765 = vst.msk [vmem:[#allocation2 + $0xd8] sm:$0xff] %vm539_vm4, %v1733_v51  ;;  %v2124_v42 = vld [vmem:[#allocation2 + $0xa8] sm:$0xff]  ;;  %v2075_v17 = vpop.f32.mrb[75].mxu0  ;;  %v2450_v51 = vld [vmem:[#allocation2 + $0x20] sm:$0xff] }
 0x183   : > { %2187 = vst.msk [vmem:[#allocation2 + $0xa0] sm:$0xff] %vm539_vm4, %v2155_v13  ;;  %v2156_v18 = vadd.f32 %v2124_v42, %v2059_v29  ;;  %1763 = vst.msk [vmem:[#allocation2 + $0xc8] sm:$0xff] %vm539_vm4, %v1731_v61  ;;  %v2447_v29 = vld [vmem:[#allocation2 + $0x8] sm:$0xff]  ;;  %v2453_v13 = vld [vmem:[#allocation2 + $0x38] sm:$0xff] }
 0x184   : > { %2190 = vst.msk [vmem:[#allocation2 + $0xb8] sm:$0xff] %vm539_vm4, %v2158_v33 }
 0x185   : > { %2188 = vst.msk [vmem:[#allocation2 + $0xa8] sm:$0xff] %vm539_vm4, %v2156_v18  ;;  %v4574_v21 = vpop.f32.mrb[76].mxu1 }
 0x186   : > { %v1736_v15 = vadd.f32 %v4574_v21, %v1704_v45  ;;  %v1659_v22 = vpop.f32.mrb[77].mxu1 }
 0x187   : > { %v2129_v19 = vld [vmem:[#allocation2 + $0xd0] sm:$0xff]  ;;  %v1734_v26 = vadd.f32 %v1702_v23, %v1659_v22  ;;  %v4575_v27 = vpop.f32.mrb[78].mxu1  ;;  %v4608_v32 = vpop.f32.mrb[76].mxu0 }
 0x188   : > { %v2161_v34 = vadd.f32 %v4604_v7, %v2129_v19  ;;  %1768 = vst.msk [vmem:[#allocation2 + $0xf0] sm:$0xff] %vm539_vm4, %v1736_v15  ;;  %v2127_v35 = vld [vmem:[#allocation2 + $0xc0] sm:$0xff]  ;;  %v1737_v20 = vadd.f32 %v4575_v27, %v1705_v30  ;;  %v1662_v4 = vpop.f32.mrb[79].mxu1  ;;  %v2088_v31 = vpop.f32.mrb[77].mxu0  ;;  %v2452_v7 = vld [vmem:[#allocation2 + $0x30] sm:$0xff] }
 0x189   : > { %v2159_v25 = vadd.f32 %v2127_v35, %v2072_v28  ;;  %1766 = vst.msk [vmem:[#allocation2 + $0xe0] sm:$0xff] %vm539_vm4, %v1734_v26  ;;  %v2130_v36 = vld [vmem:[#allocation2 + $0xd8] sm:$0xff]  ;;  %v1735_v53 = vadd.f32 %v1703_v3, %v1662_v4  ;;  %v4609_v63 = vpop.f32.mrb[78].mxu0 }
 0x18a   : > { %2193 = vst.msk [vmem:[#allocation2 + $0xd0] sm:$0xff] %vm539_vm4, %v2161_v34  ;;  %v2162_v46 = vadd.f32 %v4605_v6, %v2130_v36  ;;  %1769 = vst.msk [vmem:[#allocation2 + $0xf8] sm:$0xff] %vm539_vm4, %v1737_v20  ;;  %v2128_v39 = vld [vmem:[#allocation2 + $0xc8] sm:$0xff]  ;;  %v2091_v55 = vpop.f32.mrb[79].mxu0  ;;  %v2454_v20 = vld [vmem:[#allocation2 + $0x40] sm:$0xff] }
 0x18b   : > { %2191 = vst.msk [vmem:[#allocation2 + $0xc0] sm:$0xff] %vm539_vm4, %v2159_v25  ;;  %v2160_v14 = vadd.f32 %v2128_v39, %v2075_v17  ;;  %1767 = vst.msk [vmem:[#allocation2 + $0xe8] sm:$0xff] %vm539_vm4, %v1735_v53  ;;  %v2451_v17 = vld [vmem:[#allocation2 + $0x28] sm:$0xff]  ;;  %v2457_v25 = vld [vmem:[#allocation2 + $0x58] sm:$0xff] }
 0x18c   : > { %2194 = vst.msk [vmem:[#allocation2 + $0xd8] sm:$0xff] %vm539_vm4, %v2162_v46 }
 0x18d   : > { %2192 = vst.msk [vmem:[#allocation2 + $0xc8] sm:$0xff] %vm539_vm4, %v2160_v14  ;;  %v4614_v54 = vpop.f32.mrb[80].mxu1 }
 0x18e   : > { %v2480_v49 = vadd.f32 %v4614_v54, %v2448_v10  ;;  %v2319_v1 = vpop.f32.mrb[81].mxu1 }
 0x18f   : > { %v2133_v50 = vld [vmem:[#allocation2 + $0xf0] sm:$0xff]  ;;  %v2478_v40 = vadd.f32 %v2446_v43, %v2319_v1  ;;  %v4615_v57 = vpop.f32.mrb[82].mxu1  ;;  %v4648_v16 = vpop.f32.mrb[80].mxu0 }
 0x190   : > { %v2165_v47 = vadd.f32 %v4608_v32, %v2133_v50  ;;  %v2131_v11 = vld [vmem:[#allocation2 + $0xe0] sm:$0xff]  ;;  %2512 = vst.msk [vmem:[#allocation2 + $0x10] sm:$0xff] %vm539_vm4, %v2480_v49  ;;  %v2481_v48 = vadd.f32 %v4615_v57, %v2449_v38  ;;  %v2322_v24 = vpop.f32.mrb[83].mxu1  ;;  %v2743_v56 = vpop.f32.mrb[81].mxu0  ;;  %v2456_v32 = vld [vmem:[#allocation2 + $0x50] sm:$0xff] }
 0x191   : > { %v2163_v58 = vadd.f32 %v2131_v11, %v2088_v31  ;;  %v2134_v60 = vld [vmem:[#allocation2 + $0xf8] sm:$0xff]  ;;  %2510 = vst.msk [vmem:[#allocation2] sm:$0xff] %vm539_vm4, %v2478_v40  ;;  %v2479_v37 = vadd.f32 %v2447_v29, %v2322_v24  ;;  %v4649_v44 = vpop.f32.mrb[82].mxu0 }
 0x192   : > { %2197 = vst.msk [vmem:[#allocation2 + $0xf0] sm:$0xff] %vm539_vm4, %v2165_v47  ;;  %v2166_v12 = vadd.f32 %v4609_v63, %v2134_v60  ;;  %v2132_v2 = vld [vmem:[#allocation2 + $0xe8] sm:$0xff]  ;;  %2513 = vst.msk [vmem:[#allocation2 + $0x18] sm:$0xff] %vm539_vm4, %v2481_v48  ;;  %v2746_v59 = vpop.f32.mrb[83].mxu0  ;;  %v2458_v48 = vld [vmem:[#allocation2 + $0x60] sm:$0xff] }
 0x193   : > { %2195 = vst.msk [vmem:[#allocation2 + $0xe0] sm:$0xff] %vm539_vm4, %v2163_v58  ;;  %v2164_v0 = vadd.f32 %v2132_v2, %v2091_v55  ;;  %2511 = vst.msk [vmem:[#allocation2 + $0x8] sm:$0xff] %vm539_vm4, %v2479_v37  ;;  %v2455_v55 = vld [vmem:[#allocation2 + $0x48] sm:$0xff]  ;;  %v2461_v58 = vld [vmem:[#allocation2 + $0x78] sm:$0xff] }
 0x194   : > { %2198 = vst.msk [vmem:[#allocation2 + $0xf8] sm:$0xff] %vm539_vm4, %v2166_v12 }
 0x195   : > { %2196 = vst.msk [vmem:[#allocation2 + $0xe8] sm:$0xff] %vm539_vm4, %v2164_v0  ;;  %v4618_v5 = vpop.f32.mrb[84].mxu1 }
 0x196   : > { %v2484_v9 = vadd.f32 %v4618_v5, %v2452_v7  ;;  %v2335_v52 = vpop.f32.mrb[85].mxu1 }
 0x197   : > { %v2872_v41 = vld [vmem:[#allocation2 + $0x10] sm:$0xff]  ;;  %v2482_v8 = vadd.f32 %v2450_v51, %v2335_v52  ;;  %v4619_v28 = vpop.f32.mrb[86].mxu1  ;;  %v4652_v62 = vpop.f32.mrb[84].mxu0 }
 0x198   : > { %v2904_v61 = vadd.f32 %v4648_v16, %v2872_v41  ;;  %2516 = vst.msk [vmem:[#allocation2 + $0x30] sm:$0xff] %vm539_vm4, %v2484_v9  ;;  %v2870_v6 = vld [vmem:[#allocation2] sm:$0xff]  ;;  %v2485_v33 = vadd.f32 %v4619_v28, %v2453_v13  ;;  %v2338_v42 = vpop.f32.mrb[87].mxu1  ;;  %v2759_v18 = vpop.f32.mrb[85].mxu0  ;;  %v2460_v16 = vld [vmem:[#allocation2 + $0x70] sm:$0xff] }
 0x199   : > { %v2902_v21 = vadd.f32 %v2870_v6, %v2743_v56  ;;  %2514 = vst.msk [vmem:[#allocation2 + $0x20] sm:$0xff] %vm539_vm4, %v2482_v8  ;;  %v2873_v45 = vld [vmem:[#allocation2 + $0x18] sm:$0xff]  ;;  %v2483_v15 = vadd.f32 %v2451_v17, %v2338_v42  ;;  %v4653_v22 = vpop.f32.mrb[86].mxu0 }
 0x19a   : > { %2936 = vst.msk [vmem:[#allocation2 + $0x10] sm:$0xff] %vm539_vm4, %v2904_v61  ;;  %v2905_v23 = vadd.f32 %v4649_v44, %v2873_v45  ;;  %2517 = vst.msk [vmem:[#allocation2 + $0x38] sm:$0xff] %vm539_vm4, %v2485_v33  ;;  %v2871_v19 = vld [vmem:[#allocation2 + $0x8] sm:$0xff]  ;;  %v2762_v26 = vpop.f32.mrb[87].mxu0  ;;  %v2462_v33 = vld [vmem:[#allocation2 + $0x80] sm:$0xff] }
 0x19b   : > { %2934 = vst.msk [vmem:[#allocation2] sm:$0xff] %vm539_vm4, %v2902_v21  ;;  %v2903_v27 = vadd.f32 %v2871_v19, %v2746_v59  ;;  %2515 = vst.msk [vmem:[#allocation2 + $0x28] sm:$0xff] %vm539_vm4, %v2483_v15  ;;  %v2459_v59 = vld [vmem:[#allocation2 + $0x68] sm:$0xff]  ;;  %v2465_v21 = vld [vmem:[#allocation2 + $0x98] sm:$0xff] }
 0x19c   : > { %2937 = vst.msk [vmem:[#allocation2 + $0x18] sm:$0xff] %vm539_vm4, %v2905_v23 }
 0x19d   : > { %2935 = vst.msk [vmem:[#allocation2 + $0x8] sm:$0xff] %vm539_vm4, %v2903_v27  ;;  %v4622_v30 = vpop.f32.mrb[88].mxu1 }
 0x19e   : > { %v2488_v34 = vadd.f32 %v4622_v30, %v2456_v32  ;;  %v2351_v35 = vpop.f32.mrb[89].mxu1 }
 0x19f   : > { %v2876_v4 = vld [vmem:[#allocation2 + $0x30] sm:$0xff]  ;;  %v2486_v3 = vadd.f32 %v2454_v20, %v2351_v35  ;;  %v4623_v31 = vpop.f32.mrb[90].mxu1  ;;  %v4656_v36 = vpop.f32.mrb[88].mxu0 }
 0x1a0   : > { %v2908_v53 = vadd.f32 %v4652_v62, %v2876_v4  ;;  %2520 = vst.msk [vmem:[#allocation2 + $0x50] sm:$0xff] %vm539_vm4, %v2488_v34  ;;  %v2874_v63 = vld [vmem:[#allocation2 + $0x20] sm:$0xff]  ;;  %v2489_v46 = vadd.f32 %v4623_v31, %v2457_v25  ;;  %v2354_v39 = vpop.f32.mrb[91].mxu1  ;;  %v2775_v14 = vpop.f32.mrb[89].mxu0  ;;  %v2464_v62 = vld [vmem:[#allocation2 + $0x90] sm:$0xff] }
 0x1a1   : > { %v2906_v54 = vadd.f32 %v2874_v63, %v2759_v18  ;;  %2518 = vst.msk [vmem:[#allocation2 + $0x40] sm:$0xff] %vm539_vm4, %v2486_v3  ;;  %v2877_v10 = vld [vmem:[#allocation2 + $0x38] sm:$0xff]  ;;  %v2487_v49 = vadd.f32 %v2455_v55, %v2354_v39  ;;  %v4657_v1 = vpop.f32.mrb[90].mxu0 }
 0x1a2   : > { %2940 = vst.msk [vmem:[#allocation2 + $0x30] sm:$0xff] %vm539_vm4, %v2908_v53  ;;  %v2909_v43 = vadd.f32 %v4653_v22, %v2877_v10  ;;  %2521 = vst.msk [vmem:[#allocation2 + $0x58] sm:$0xff] %vm539_vm4, %v2489_v46  ;;  %v2875_v50 = vld [vmem:[#allocation2 + $0x28] sm:$0xff]  ;;  %v2778_v40 = vpop.f32.mrb[91].mxu0  ;;  %v2466_v46 = vld [vmem:[#allocation2 + $0xa0] sm:$0xff] }
 0x1a3   : > { %2938 = vst.msk [vmem:[#allocation2 + $0x20] sm:$0xff] %vm539_vm4, %v2906_v54  ;;  %v2907_v57 = vadd.f32 %v2875_v50, %v2762_v26  ;;  %2519 = vst.msk [vmem:[#allocation2 + $0x48] sm:$0xff] %vm539_vm4, %v2487_v49  ;;  %v2463_v26 = vld [vmem:[#allocation2 + $0x88] sm:$0xff]  ;;  %v2469_v54 = vld [vmem:[#allocation2 + $0xb8] sm:$0xff] }
 0x1a4   : > { %2941 = vst.msk [vmem:[#allocation2 + $0x38] sm:$0xff] %vm539_vm4, %v2909_v43 }
 0x1a5   : > { %2939 = vst.msk [vmem:[#allocation2 + $0x28] sm:$0xff] %vm539_vm4, %v2907_v57  ;;  %v4626_v38 = vpop.f32.mrb[92].mxu1 }
 0x1a6   : > { %v2492_v47 = vadd.f32 %v4626_v38, %v2460_v16  ;;  %v2367_v11 = vpop.f32.mrb[93].mxu1 }
 0x1a7   : > { %v2880_v24 = vld [vmem:[#allocation2 + $0x50] sm:$0xff]  ;;  %v2490_v29 = vadd.f32 %v2458_v48, %v2367_v11  ;;  %v4627_v56 = vpop.f32.mrb[94].mxu1  ;;  %v4660_v60 = vpop.f32.mrb[92].mxu0 }
 0x1a8   : > { %v2912_v37 = vadd.f32 %v4656_v36, %v2880_v24  ;;  %2524 = vst.msk [vmem:[#allocation2 + $0x70] sm:$0xff] %vm539_vm4, %v2492_v47  ;;  %v2878_v44 = vld [vmem:[#allocation2 + $0x40] sm:$0xff]  ;;  %v2493_v12 = vadd.f32 %v4627_v56, %v2461_v58  ;;  %v2370_v2 = vpop.f32.mrb[95].mxu1  ;;  %v2791_v0 = vpop.f32.mrb[93].mxu0  ;;  %v2468_v36 = vld [vmem:[#allocation2 + $0xb0] sm:$0xff] }
 0x1a9   : > { %v2910_v5 = vadd.f32 %v2878_v44, %v2775_v14  ;;  %2522 = vst.msk [vmem:[#allocation2 + $0x60] sm:$0xff] %vm539_vm4, %v2490_v29  ;;  %v2881_v7 = vld [vmem:[#allocation2 + $0x58] sm:$0xff]  ;;  %v2491_v9 = vadd.f32 %v2459_v59, %v2370_v2  ;;  %v4661_v52 = vpop.f32.mrb[94].mxu0 }
 0x1aa   : > { %2944 = vst.msk [vmem:[#allocation2 + $0x50] sm:$0xff] %vm539_vm4, %v2912_v37  ;;  %v2913_v51 = vadd.f32 %v4657_v1, %v2881_v7  ;;  %2525 = vst.msk [vmem:[#allocation2 + $0x78] sm:$0xff] %vm539_vm4, %v2493_v12  ;;  %v2879_v41 = vld [vmem:[#allocation2 + $0x48] sm:$0xff]  ;;  %v2794_v8 = vpop.f32.mrb[95].mxu0  ;;  %v2470_v12 = vld [vmem:[#allocation2 + $0xc0] sm:$0xff] }
 0x1ab   : > { %2942 = vst.msk [vmem:[#allocation2 + $0x40] sm:$0xff] %vm539_vm4, %v2910_v5  ;;  %v2911_v28 = vadd.f32 %v2879_v41, %v2778_v40  ;;  %2523 = vst.msk [vmem:[#allocation2 + $0x68] sm:$0xff] %vm539_vm4, %v2491_v9  ;;  %v2467_v40 = vld [vmem:[#allocation2 + $0xa8] sm:$0xff]  ;;  %v2473_v5 = vld [vmem:[#allocation2 + $0xd8] sm:$0xff] }
 0x1ac   : > { %2945 = vst.msk [vmem:[#allocation2 + $0x58] sm:$0xff] %vm539_vm4, %v2913_v51 }
 0x1ad   : > { %2943 = vst.msk [vmem:[#allocation2 + $0x48] sm:$0xff] %vm539_vm4, %v2911_v28  ;;  %v4630_v13 = vpop.f32.mrb[96].mxu1 }
 0x1ae   : > { %v2496_v61 = vadd.f32 %v4630_v13, %v2464_v62  ;;  %v2383_v6 = vpop.f32.mrb[97].mxu1 }
 0x1af   : > { %v2884_v42 = vld [vmem:[#allocation2 + $0x70] sm:$0xff]  ;;  %v2494_v17 = vadd.f32 %v2462_v33, %v2383_v6  ;;  %v4631_v18 = vpop.f32.mrb[98].mxu1  ;;  %v4664_v45 = vpop.f32.mrb[96].mxu0 }
 0x1b0   : > { %v2916_v15 = vadd.f32 %v4660_v60, %v2884_v42  ;;  %2528 = vst.msk [vmem:[#allocation2 + $0x90] sm:$0xff] %vm539_vm4, %v2496_v61  ;;  %v2882_v22 = vld [vmem:[#allocation2 + $0x60] sm:$0xff]  ;;  %v2497_v23 = vadd.f32 %v4631_v18, %v2465_v21  ;;  %v2386_v19 = vpop.f32.mrb[99].mxu1  ;;  %v2807_v27 = vpop.f32.mrb[97].mxu0  ;;  %v2472_v60 = vld [vmem:[#allocation2 + $0xd0] sm:$0xff] }
 0x1b1   : > { %v2914_v30 = vadd.f32 %v2882_v22, %v2791_v0  ;;  %2526 = vst.msk [vmem:[#allocation2 + $0x80] sm:$0xff] %vm539_vm4, %v2494_v17  ;;  %v2885_v32 = vld [vmem:[#allocation2 + $0x78] sm:$0xff]  ;;  %v2495_v34 = vadd.f32 %v2463_v26, %v2386_v19  ;;  %v4665_v35 = vpop.f32.mrb[98].mxu0 }
 0x1b2   : > { %2948 = vst.msk [vmem:[#allocation2 + $0x70] sm:$0xff] %vm539_vm4, %v2916_v15  ;;  %v2917_v20 = vadd.f32 %v4661_v52, %v2885_v32  ;;  %2529 = vst.msk [vmem:[#allocation2 + $0x98] sm:$0xff] %vm539_vm4, %v2497_v23  ;;  %v2883_v4 = vld [vmem:[#allocation2 + $0x68] sm:$0xff]  ;;  %v2810_v3 = vpop.f32.mrb[99].mxu0  ;;  %v2474_v23 = vld [vmem:[#allocation2 + $0xe0] sm:$0xff] }
 0x1b3   : > { %2946 = vst.msk [vmem:[#allocation2 + $0x60] sm:$0xff] %vm539_vm4, %v2914_v30  ;;  %v2915_v31 = vadd.f32 %v2883_v4, %v2794_v8  ;;  %2527 = vst.msk [vmem:[#allocation2 + $0x88] sm:$0xff] %vm539_vm4, %v2495_v34  ;;  %v2471_v8 = vld [vmem:[#allocation2 + $0xc8] sm:$0xff]  ;;  %v2477_v30 = vld [vmem:[#allocation2 + $0xf8] sm:$0xff] }
 0x1b4   : > { %2949 = vst.msk [vmem:[#allocation2 + $0x78] sm:$0xff] %vm539_vm4, %v2917_v20 }
 0x1b5   : > { %2947 = vst.msk [vmem:[#allocation2 + $0x68] sm:$0xff] %vm539_vm4, %v2915_v31  ;;  %v4634_v25 = vpop.f32.mrb[100].mxu1 }
 0x1b6   : > { %v2500_v53 = vadd.f32 %v4634_v25, %v2468_v36  ;;  %v2399_v63 = vpop.f32.mrb[101].mxu1 }
 0x1b7   : > { %v2888_v39 = vld [vmem:[#allocation2 + $0x90] sm:$0xff]  ;;  %v2498_v55 = vadd.f32 %v2466_v46, %v2399_v63  ;;  %v4635_v14 = vpop.f32.mrb[102].mxu1  ;;  %v4668_v10 = vpop.f32.mrb[100].mxu0 }
 0x1b8   : > { %v2920_v49 = vadd.f32 %v4664_v45, %v2888_v39  ;;  %2532 = vst.msk [vmem:[#allocation2 + $0xb0] sm:$0xff] %vm539_vm4, %v2500_v53  ;;  %v2886_v1 = vld [vmem:[#allocation2 + $0x80] sm:$0xff]  ;;  %v2501_v43 = vadd.f32 %v4635_v14, %v2469_v54  ;;  %v2402_v50 = vpop.f32.mrb[103].mxu1  ;;  %v2823_v57 = vpop.f32.mrb[101].mxu0  ;;  %v2476_v45 = vld [vmem:[#allocation2 + $0xf0] sm:$0xff] }
 0x1b9   : > { %v2918_v38 = vadd.f32 %v2886_v1, %v2807_v27  ;;  %2530 = vst.msk [vmem:[#allocation2 + $0xa0] sm:$0xff] %vm539_vm4, %v2498_v55  ;;  %v2889_v16 = vld [vmem:[#allocation2 + $0x98] sm:$0xff]  ;;  %v2499_v47 = vadd.f32 %v2467_v40, %v2402_v50  ;;  %v4669_v11 = vpop.f32.mrb[102].mxu0 }
 0x1ba   : > { %2952 = vst.msk [vmem:[#allocation2 + $0x90] sm:$0xff] %vm539_vm4, %v2920_v49  ;;  %v2921_v48 = vadd.f32 %v4665_v35, %v2889_v16  ;;  %2533 = vst.msk [vmem:[#allocation2 + $0xb8] sm:$0xff] %vm539_vm4, %v2501_v43  ;;  %v2887_v24 = vld [vmem:[#allocation2 + $0x88] sm:$0xff]  ;;  %v2826_v29 = vpop.f32.mrb[103].mxu0  ;;  %v3299_v43 = vld [vmem:[#allocation2] sm:$0xff] }
 0x1bb   : > { %2950 = vst.msk [vmem:[#allocation2 + $0x80] sm:$0xff] %vm539_vm4, %v2918_v38  ;;  %v2919_v56 = vadd.f32 %v2887_v24, %v2810_v3  ;;  %2531 = vst.msk [vmem:[#allocation2 + $0xa8] sm:$0xff] %vm539_vm4, %v2499_v47  ;;  %v2475_v3 = vld [vmem:[#allocation2 + $0xe8] sm:$0xff]  ;;  %v3302_v38 = vld [vmem:[#allocation2 + $0x18] sm:$0xff] }
 0x1bc   : > { %2953 = vst.msk [vmem:[#allocation2 + $0x98] sm:$0xff] %vm539_vm4, %v2921_v48 }
 0x1bd   : > { %2951 = vst.msk [vmem:[#allocation2 + $0x88] sm:$0xff] %vm539_vm4, %v2919_v56  ;;  %v4638_v58 = vpop.f32.mrb[104].mxu1 }
 0x1be   : > { %v2504_v37 = vadd.f32 %v4638_v58, %v2472_v60  ;;  %v2415_v44 = vpop.f32.mrb[105].mxu1 }
 0x1bf   : > { %v2892_v2 = vld [vmem:[#allocation2 + $0xb0] sm:$0xff]  ;;  %v2502_v59 = vadd.f32 %v2470_v12, %v2415_v44  ;;  %v4639_v0 = vpop.f32.mrb[106].mxu1  ;;  %v4672_v7 = vpop.f32.mrb[104].mxu0 }
 0x1c0   : > { %v2924_v9 = vadd.f32 %v4668_v10, %v2892_v2  ;;  %2536 = vst.msk [vmem:[#allocation2 + $0xd0] sm:$0xff] %vm539_vm4, %v2504_v37  ;;  %v2890_v52 = vld [vmem:[#allocation2 + $0xa0] sm:$0xff]  ;;  %v2505_v51 = vadd.f32 %v4639_v0, %v2473_v5  ;;  %v2418_v41 = vpop.f32.mrb[107].mxu1  ;;  %v2839_v28 = vpop.f32.mrb[105].mxu0  ;;  %v3301_v10 = vld [vmem:[#allocation2 + $0x10] sm:$0xff] }
 0x1c1   : > { %v2922_v13 = vadd.f32 %v2890_v52, %v2823_v57  ;;  %2534 = vst.msk [vmem:[#allocation2 + $0xc0] sm:$0xff] %vm539_vm4, %v2502_v59  ;;  %v2893_v62 = vld [vmem:[#allocation2 + $0xb8] sm:$0xff]  ;;  %v2503_v61 = vadd.f32 %v2471_v8, %v2418_v41  ;;  %v4673_v6 = vpop.f32.mrb[106].mxu0 }
 0x1c2   : > { %2956 = vst.msk [vmem:[#allocation2 + $0xb0] sm:$0xff] %vm539_vm4, %v2924_v9  ;;  %v2925_v33 = vadd.f32 %v4669_v11, %v2893_v62  ;;  %2537 = vst.msk [vmem:[#allocation2 + $0xd8] sm:$0xff] %vm539_vm4, %v2505_v51  ;;  %v2891_v42 = vld [vmem:[#allocation2 + $0xa8] sm:$0xff]  ;;  %v2842_v17 = vpop.f32.mrb[107].mxu0  ;;  %v3303_v51 = vld [vmem:[#allocation2 + $0x20] sm:$0xff] }
 0x1c3   : > { %2954 = vst.msk [vmem:[#allocation2 + $0xa0] sm:$0xff] %vm539_vm4, %v2922_v13  ;;  %v2923_v18 = vadd.f32 %v2891_v42, %v2826_v29  ;;  %2535 = vst.msk [vmem:[#allocation2 + $0xc8] sm:$0xff] %vm539_vm4, %v2503_v61  ;;  %v3300_v29 = vld [vmem:[#allocation2 + $0x8] sm:$0xff]  ;;  %v3306_v13 = vld [vmem:[#allocation2 + $0x38] sm:$0xff] }
 0x1c4   : > { %2957 = vst.msk [vmem:[#allocation2 + $0xb8] sm:$0xff] %vm539_vm4, %v2925_v33 }
 0x1c5   : > { %2955 = vst.msk [vmem:[#allocation2 + $0xa8] sm:$0xff] %vm539_vm4, %v2923_v18  ;;  %v4642_v21 = vpop.f32.mrb[108].mxu1 }
 0x1c6   : > { %v2508_v15 = vadd.f32 %v4642_v21, %v2476_v45  ;;  %v2431_v22 = vpop.f32.mrb[109].mxu1 }
 0x1c7   : > { %v2896_v19 = vld [vmem:[#allocation2 + $0xd0] sm:$0xff]  ;;  %v2506_v26 = vadd.f32 %v2474_v23, %v2431_v22  ;;  %v4643_v27 = vpop.f32.mrb[110].mxu1  ;;  %v4676_v32 = vpop.f32.mrb[108].mxu0 }
 0x1c8   : > { %v2928_v34 = vadd.f32 %v4672_v7, %v2896_v19  ;;  %2540 = vst.msk [vmem:[#allocation2 + $0xf0] sm:$0xff] %vm539_vm4, %v2508_v15  ;;  %v2894_v35 = vld [vmem:[#allocation2 + $0xc0] sm:$0xff]  ;;  %v2509_v20 = vadd.f32 %v4643_v27, %v2477_v30  ;;  %v2434_v4 = vpop.f32.mrb[111].mxu1  ;;  %v2855_v31 = vpop.f32.mrb[109].mxu0  ;;  %v3305_v7 = vld [vmem:[#allocation2 + $0x30] sm:$0xff] }
 0x1c9   : > { %v2926_v25 = vadd.f32 %v2894_v35, %v2839_v28  ;;  %2538 = vst.msk [vmem:[#allocation2 + $0xe0] sm:$0xff] %vm539_vm4, %v2506_v26  ;;  %v2897_v36 = vld [vmem:[#allocation2 + $0xd8] sm:$0xff]  ;;  %v2507_v53 = vadd.f32 %v2475_v3, %v2434_v4  ;;  %v4677_v63 = vpop.f32.mrb[110].mxu0 }
 0x1ca   : > { %2960 = vst.msk [vmem:[#allocation2 + $0xd0] sm:$0xff] %vm539_vm4, %v2928_v34  ;;  %v2929_v46 = vadd.f32 %v4673_v6, %v2897_v36  ;;  %2541 = vst.msk [vmem:[#allocation2 + $0xf8] sm:$0xff] %vm539_vm4, %v2509_v20  ;;  %v2895_v39 = vld [vmem:[#allocation2 + $0xc8] sm:$0xff]  ;;  %v2858_v55 = vpop.f32.mrb[111].mxu0  ;;  %v3307_v20 = vld [vmem:[#allocation2 + $0x40] sm:$0xff] }
 0x1cb   : > { %2958 = vst.msk [vmem:[#allocation2 + $0xc0] sm:$0xff] %vm539_vm4, %v2926_v25  ;;  %v2927_v14 = vadd.f32 %v2895_v39, %v2842_v17  ;;  %2539 = vst.msk [vmem:[#allocation2 + $0xe8] sm:$0xff] %vm539_vm4, %v2507_v53  ;;  %v3304_v17 = vld [vmem:[#allocation2 + $0x28] sm:$0xff]  ;;  %v3310_v25 = vld [vmem:[#allocation2 + $0x58] sm:$0xff] }
 0x1cc   : > { %2961 = vst.msk [vmem:[#allocation2 + $0xd8] sm:$0xff] %vm539_vm4, %v2929_v46  ;;  %v5882_v53 = vld [vmem:[%s6007_s2] ss:$0 sm:$0xff] }
 0x1cd   : > { %2959 = vst.msk [vmem:[#allocation2 + $0xc8] sm:$0xff] %vm539_vm4, %v2927_v14  ;;  %v4682_v54 = vpop.f32.mrb[112].mxu1  ;;  %v3308_v14 = vld [vmem:[#allocation2 + $0x48] sm:$0xff] }
 0x1ce   : > { %v3333_v49 = vadd.f32 %v4682_v54, %v3301_v10  ;;  %v3172_v1 = vpop.f32.mrb[113].mxu1 }
 0x1cf   : > { %v2900_v50 = vld [vmem:[#allocation2 + $0xf0] sm:$0xff]  ;;  %v3331_v40 = vadd.f32 %v3299_v43, %v3172_v1  ;;  %v4683_v57 = vpop.f32.mrb[114].mxu1  ;;  %v4716_v16 = vpop.f32.mrb[112].mxu0 }
 0x1d0   : > { %v2932_v47 = vadd.f32 %v4676_v32, %v2900_v50  ;;  %v2898_v11 = vld [vmem:[#allocation2 + $0xe0] sm:$0xff]  ;;  %3365 = vst.msk [vmem:[#allocation2 + $0x10] sm:$0xff] %vm539_vm4, %v3333_v49  ;;  %v3334_v48 = vadd.f32 %v4683_v57, %v3302_v38  ;;  %v3175_v24 = vpop.f32.mrb[115].mxu1  ;;  %v3515_v56 = vpop.f32.mrb[113].mxu0  ;;  %v3309_v32 = vld [vmem:[#allocation2 + $0x50] sm:$0xff] }
 0x1d1   : > { %v2930_v58 = vadd.f32 %v2898_v11, %v2855_v31  ;;  %v2901_v60 = vld [vmem:[#allocation2 + $0xf8] sm:$0xff]  ;;  %3363 = vst.msk [vmem:[#allocation2] sm:$0xff] %vm539_vm4, %v3331_v40  ;;  %v3332_v37 = vadd.f32 %v3300_v29, %v3175_v24  ;;  %v4717_v44 = vpop.f32.mrb[114].mxu0 }
 0x1d2   : > { %2964 = vst.msk [vmem:[#allocation2 + $0xf0] sm:$0xff] %vm539_vm4, %v2932_v47  ;;  %v2933_v12 = vadd.f32 %v4677_v63, %v2901_v60  ;;  %v2899_v2 = vld [vmem:[#allocation2 + $0xe8] sm:$0xff]  ;;  %3366 = vst.msk [vmem:[#allocation2 + $0x18] sm:$0xff] %vm539_vm4, %v3334_v48  ;;  %v3518_v59 = vpop.f32.mrb[115].mxu0 }
 0x1d3   : > { %2962 = vst.msk [vmem:[#allocation2 + $0xe0] sm:$0xff] %vm539_vm4, %v2930_v58  ;;  %v2931_v0 = vadd.f32 %v2899_v2, %v2858_v55  ;;  %3364 = vst.msk [vmem:[#allocation2 + $0x8] sm:$0xff] %vm539_vm4, %v3332_v37  ;;  %v3311_v37 = vld [vmem:[#allocation2 + $0x60] sm:$0xff] }
 0x1d4   : > { %2965 = vst.msk [vmem:[#allocation2 + $0xf8] sm:$0xff] %vm539_vm4, %v2933_v12 }
 0x1d5   : > { %2963 = vst.msk [vmem:[#allocation2 + $0xe8] sm:$0xff] %vm539_vm4, %v2931_v0  ;;  %v4686_v5 = vpop.f32.mrb[116].mxu1 }
 0x1d6   : > { %v3337_v9 = vadd.f32 %v4686_v5, %v3305_v7  ;;  %v3188_v52 = vpop.f32.mrb[117].mxu1  ;;  %v3314_v5 = vld [vmem:[#allocation2 + $0x78] sm:$0xff] }
 0x1d7   : > { %v3644_v41 = vld [vmem:[#allocation2 + $0x10] sm:$0xff]  ;;  %v3335_v8 = vadd.f32 %v3303_v51, %v3188_v52  ;;  %v4687_v28 = vpop.f32.mrb[118].mxu1  ;;  %v4720_v62 = vpop.f32.mrb[116].mxu0 }
 0x1d8   : > { %v3676_v61 = vadd.f32 %v4716_v16, %v3644_v41  ;;  %3369 = vst.msk [vmem:[#allocation2 + $0x30] sm:$0xff] %vm539_vm4, %v3337_v9  ;;  %v3642_v6 = vld [vmem:[#allocation2] sm:$0xff]  ;;  %v3338_v33 = vadd.f32 %v4687_v28, %v3306_v13  ;;  %v3191_v42 = vpop.f32.mrb[119].mxu1  ;;  %v3531_v18 = vpop.f32.mrb[117].mxu0 }
 0x1d9   : > { %v3674_v21 = vadd.f32 %v3642_v6, %v3515_v56  ;;  %3367 = vst.msk [vmem:[#allocation2 + $0x20] sm:$0xff] %vm539_vm4, %v3335_v8  ;;  %v3645_v45 = vld [vmem:[#allocation2 + $0x18] sm:$0xff]  ;;  %v3336_v15 = vadd.f32 %v3304_v17, %v3191_v42  ;;  %v4721_v22 = vpop.f32.mrb[118].mxu0  ;;  %v3313_v56 = vld [vmem:[#allocation2 + $0x70] sm:$0xff]  ;;  %v3312_v8 = vld [vmem:[#allocation2 + $0x68] sm:$0xff] }
 0x1da   : > { %3708 = vst.msk [vmem:[#allocation2 + $0x10] sm:$0xff] %vm539_vm4, %v3676_v61  ;;  %v3677_v23 = vadd.f32 %v4717_v44, %v3645_v45  ;;  %3370 = vst.msk [vmem:[#allocation2 + $0x38] sm:$0xff] %vm539_vm4, %v3338_v33  ;;  %v3643_v19 = vld [vmem:[#allocation2 + $0x8] sm:$0xff]  ;;  %v3534_v26 = vpop.f32.mrb[119].mxu0 }
 0x1db   : > { %3706 = vst.msk [vmem:[#allocation2] sm:$0xff] %vm539_vm4, %v3674_v21  ;;  %v3675_v27 = vadd.f32 %v3643_v19, %v3518_v59  ;;  %3368 = vst.msk [vmem:[#allocation2 + $0x28] sm:$0xff] %vm539_vm4, %v3336_v15 }
 0x1dc   : > { %3709 = vst.msk [vmem:[#allocation2 + $0x18] sm:$0xff] %vm539_vm4, %v3677_v23 }
 0x1dd   : > { %3707 = vst.msk [vmem:[#allocation2 + $0x8] sm:$0xff] %vm539_vm4, %v3675_v27  ;;  %v4690_v30 = vpop.f32.mrb[120].mxu1  ;;  %v3317_v27 = vld [vmem:[#allocation2 + $0x90] sm:$0xff] }
 0x1de   : > { %v3341_v34 = vadd.f32 %v4690_v30, %v3309_v32  ;;  %v3204_v35 = vpop.f32.mrb[121].mxu1 }
 0x1df   : > { %v3648_v4 = vld [vmem:[#allocation2 + $0x30] sm:$0xff]  ;;  %v3339_v3 = vadd.f32 %v3307_v20, %v3204_v35  ;;  %v4691_v31 = vpop.f32.mrb[122].mxu1  ;;  %v4724_v36 = vpop.f32.mrb[120].mxu0 }
 0x1e0   : > { %v3680_v63 = vadd.f32 %v4720_v62, %v3648_v4  ;;  %3373 = vst.msk [vmem:[#allocation2 + $0x50] sm:$0xff] %vm539_vm4, %v3341_v34  ;;  %v3646_v46 = vld [vmem:[#allocation2 + $0x20] sm:$0xff]  ;;  %v3342_v39 = vadd.f32 %v4691_v31, %v3310_v25  ;;  %v3207_v55 = vpop.f32.mrb[123].mxu1  ;;  %v3547_v54 = vpop.f32.mrb[121].mxu0  ;;  %v3318_v25 = vld [vmem:[#allocation2 + $0x98] sm:$0xff] }
 0x1e1   : > { %v3678_v10 = vadd.f32 %v3646_v46, %v3531_v18  ;;  %3371 = vst.msk [vmem:[#allocation2 + $0x40] sm:$0xff] %vm539_vm4, %v3339_v3  ;;  %v3649_v49 = vld [vmem:[#allocation2 + $0x38] sm:$0xff]  ;;  %v3340_v1 = vadd.f32 %v3308_v14, %v3207_v55  ;;  %v4725_v43 = vpop.f32.mrb[122].mxu0  ;;  %v3315_v34 = vld [vmem:[#allocation2 + $0x80] sm:$0xff]  ;;  %v3316_v14 = vld [vmem:[#allocation2 + $0x88] sm:$0xff] }
 0x1e2   : > { %v3738_v50 = vld [vmem:[#allocation2] sm:$0xff]  ;;  %3712 = vst.msk [vmem:[#allocation2 + $0x30] sm:$0xff] %vm539_vm4, %v3680_v63  ;;  %v3681_v40 = vadd.f32 %v4721_v22, %v3649_v49  ;;  %3374 = vst.msk [vmem:[#allocation2 + $0x58] sm:$0xff] %vm539_vm4, %v3342_v39  ;;  %v3647_v57 = vld [vmem:[#allocation2 + $0x28] sm:$0xff]  ;;  %v3550_v38 = vpop.f32.mrb[123].mxu0 }
 0x1e3   : > { %v3761_v16 = vadd.f32 %v5882_v53, %v3738_v50  ;;  %3710 = vst.msk [vmem:[#allocation2 + $0x20] sm:$0xff] %vm539_vm4, %v3678_v10  ;;  %v3679_v47 = vadd.f32 %v3647_v57, %v3534_v26  ;;  %3372 = vst.msk [vmem:[#allocation2 + $0x48] sm:$0xff] %vm539_vm4, %v3340_v1 }
 0x1e4   : > { %v3739_v11 = vld [vmem:[#allocation2 + $0x8] sm:$0xff]  ;;  %3713 = vst.msk [vmem:[#allocation2 + $0x38] sm:$0xff] %vm539_vm4, %v3681_v40 }
 0x1e5   : > { %v3777_v48 = vmax.f32 %v3761_v16, 0.0  ;;  %v3762_v24 = vadd.f32 %v5882_v53, %v3739_v11  ;;  %3711 = vst.msk [vmem:[#allocation2 + $0x28] sm:$0xff] %vm539_vm4, %v3679_v47  ;;  %v4694_v29 = vpop.f32.mrb[124].mxu1 }
 0x1e6   : > { %v3345_v58 = vadd.f32 %v4694_v29, %v3313_v56  ;;  %v3220_v60 = vpop.f32.mrb[125].mxu1 }
 0x1e7   : > { %v4271_v44 = vpack.c.bf16 %v3777_v48, %v3777_v48  ;;  %v3778_v12 = vmax.f32 %v3762_v24, 0.0  ;;  %v3652_v2 = vld [vmem:[#allocation2 + $0x50] sm:$0xff]  ;;  %v3343_v59 = vadd.f32 %v3311_v37, %v3220_v60  ;;  %v4695_v0 = vpop.f32.mrb[126].mxu1  ;;  %v4728_v7 = vpop.f32.mrb[124].mxu0 }
 0x1e8   : > { %v3684_v9 = vadd.f32 %v4724_v36, %v3652_v2  ;;  %3377 = vst.msk [vmem:[#allocation2 + $0x70] sm:$0xff] %vm539_vm4, %v3345_v58  ;;  %v3650_v52 = vld [vmem:[#allocation2 + $0x40] sm:$0xff]  ;;  %v3346_v51 = vadd.f32 %v4695_v0, %v3314_v5  ;;  %v3223_v41 = vpop.f32.mrb[127].mxu1  ;;  %v3563_v28 = vpop.f32.mrb[125].mxu0  ;;  %v3321_v58 = vld [vmem:[#allocation2 + $0xb0] sm:$0xff] }
 0x1e9   : > { %3858 = vst.msk [vmem:[%s5898_s6] sm:$0xf] %vm3857_vm5, %v4271_v44  ;;  %v4272_v13 = vpack.c.bf16 %v3778_v12, %v3778_v12  ;;  %v3682_v62 = vadd.f32 %v3650_v52, %v3547_v54  ;;  %v3653_v61 = vld [vmem:[#allocation2 + $0x58] sm:$0xff]  ;;  %v3344_v6 = vadd.f32 %v3312_v8, %v3223_v41  ;;  %v4729_v33 = vpop.f32.mrb[126].mxu0  ;;  %v3319_v44 = vld [vmem:[#allocation2 + $0xa0] sm:$0xff] }
 0x1ea   : > { %3375 = vst.msk [vmem:[#allocation2 + $0x60] sm:$0xff] %vm539_vm4, %v3343_v59  ;;  %v3740_v42 = vld [vmem:[#allocation2 + $0x20] sm:$0xff]  ;;  %3716 = vst.msk [vmem:[#allocation2 + $0x50] sm:$0xff] %vm539_vm4, %v3684_v9  ;;  %v3685_v17 = vadd.f32 %v4725_v43, %v3653_v61  ;;  %v3651_v18 = vld [vmem:[#allocation2 + $0x48] sm:$0xff]  ;;  %v3566_v21 = vpop.f32.mrb[127].mxu0 }
 0x1eb   : > { %3378 = vst.msk [vmem:[#allocation2 + $0x78] sm:$0xff] %vm539_vm4, %v3346_v51  ;;  %v3763_v45 = vadd.f32 %v5882_v53, %v3740_v42  ;;  %3714 = vst.msk [vmem:[#allocation2 + $0x40] sm:$0xff] %vm539_vm4, %v3682_v62  ;;  %v3683_v15 = vadd.f32 %v3651_v18, %v3550_v38 }
 0x1ec   : > { %3859 = vst.msk [vmem:[%s5898_s6 + $0x4] sm:$0xf] %vm3857_vm5, %v4272_v13  ;;  %v3741_v22 = vld [vmem:[#allocation2 + $0x28] sm:$0xff] }
 0x1ed   : > { %3376 = vst.msk [vmem:[#allocation2 + $0x68] sm:$0xff] %vm539_vm4, %v3344_v6  ;;  %3717 = vst.msk [vmem:[#allocation2 + $0x58] sm:$0xff] %vm539_vm4, %v3685_v17  ;;  %v3779_v23 = vmax.f32 %v3763_v45, 0.0  ;;  %v3764_v19 = vadd.f32 %v5882_v53, %v3741_v22  ;;  %v4698_v26 = vpop.f32.mrb[128].mxu1 }
 0x1ee   : > { %3715 = vst.msk [vmem:[#allocation2 + $0x48] sm:$0xff] %vm539_vm4, %v3683_v15  ;;  %v3349_v30 = vadd.f32 %v4698_v26, %v3317_v27  ;;  %v3236_v32 = vpop.f32.mrb[129].mxu1 }
 0x1ef   : > { %v4273_v35 = vpack.c.bf16 %v3779_v23, %v3779_v23  ;;  %v3780_v20 = vmax.f32 %v3764_v19, 0.0  ;;  %v3656_v4 = vld [vmem:[#allocation2 + $0x70] sm:$0xff]  ;;  %v3347_v3 = vadd.f32 %v3315_v34, %v3236_v32  ;;  %v4699_v31 = vpop.f32.mrb[130].mxu1  ;;  %v4732_v36 = vpop.f32.mrb[128].mxu0 }
 0x1f0   : > { %v3688_v63 = vadd.f32 %v4728_v7, %v3656_v4  ;;  %3381 = vst.msk [vmem:[#allocation2 + $0x90] sm:$0xff] %vm539_vm4, %v3349_v30  ;;  %v3350_v39 = vadd.f32 %v4699_v31, %v3318_v25  ;;  %v3239_v55 = vpop.f32.mrb[131].mxu1  ;;  %v3579_v54 = vpop.f32.mrb[129].mxu0  ;;  %v3322_v7 = vld [vmem:[#allocation2 + $0xb8] sm:$0xff]  ;;  %v3325_v30 = vld [vmem:[#allocation2 + $0xd0] sm:$0xff] }
 0x1f1   : > { %v3654_v46 = vld [vmem:[#allocation2 + $0x60] sm:$0xff]  ;;  %3860 = vst.msk [vmem:[%s5898_s6 + $0x8] sm:$0xf] %vm3857_vm5, %v4273_v35  ;;  %v4274_v10 = vpack.c.bf16 %v3780_v20, %v3780_v20  ;;  %v3348_v43 = vadd.f32 %v3316_v14, %v3239_v55  ;;  %v4733_v50 = vpop.f32.mrb[130].mxu0 }
 0x1f2   : > { %v3686_v49 = vadd.f32 %v3654_v46, %v3563_v28  ;;  %3379 = vst.msk [vmem:[#allocation2 + $0x80] sm:$0xff] %vm539_vm4, %v3347_v3  ;;  %v3657_v1 = vld [vmem:[#allocation2 + $0x78] sm:$0xff]  ;;  %v3742_v40 = vld [vmem:[#allocation2 + $0x40] sm:$0xff]  ;;  %3720 = vst.msk [vmem:[#allocation2 + $0x70] sm:$0xff] %vm539_vm4, %v3688_v63  ;;  %v3582_v16 = vpop.f32.mrb[131].mxu0 }
 0x1f3   : > { %v3689_v57 = vadd.f32 %v4729_v33, %v3657_v1  ;;  %3382 = vst.msk [vmem:[#allocation2 + $0x98] sm:$0xff] %vm539_vm4, %v3350_v39  ;;  %v3765_v47 = vadd.f32 %v5882_v53, %v3742_v40  ;;  %3380 = vst.msk [vmem:[#allocation2 + $0x88] sm:$0xff] %vm539_vm4, %v3348_v43  ;;  %v3320_v28 = vld [vmem:[#allocation2 + $0xa8] sm:$0xff]  ;;  %v3323_v35 = vld [vmem:[#allocation2 + $0xc0] sm:$0xff] }
 0x1f4   : > { %v3655_v38 = vld [vmem:[#allocation2 + $0x68] sm:$0xff]  ;;  %3861 = vst.msk [vmem:[%s5898_s6 + $0xc] sm:$0xf] %vm3857_vm5, %v4274_v10 }
 0x1f5   : > { %3718 = vst.msk [vmem:[#allocation2 + $0x60] sm:$0xff] %vm539_vm4, %v3686_v49  ;;  %v3687_v11 = vadd.f32 %v3655_v38, %v3566_v21  ;;  %v3743_v48 = vld [vmem:[#allocation2 + $0x48] sm:$0xff]  ;;  %3721 = vst.msk [vmem:[#allocation2 + $0x78] sm:$0xff] %vm539_vm4, %v3689_v57  ;;  %v3781_v24 = vmax.f32 %v3765_v47, 0.0  ;;  %v4702_v56 = vpop.f32.mrb[132].mxu1 }
 0x1f6   : > { %v3766_v29 = vadd.f32 %v5882_v53, %v3743_v48  ;;  %v3353_v60 = vadd.f32 %v4702_v56, %v3321_v58  ;;  %v3252_v37 = vpop.f32.mrb[133].mxu1 }
 0x1f7   : > { %3719 = vst.msk [vmem:[#allocation2 + $0x68] sm:$0xff] %vm539_vm4, %v3687_v11  ;;  %v4275_v12 = vpack.c.bf16 %v3781_v24, %v3781_v24  ;;  %v3660_v59 = vld [vmem:[#allocation2 + $0x90] sm:$0xff]  ;;  %v3351_v0 = vadd.f32 %v3319_v44, %v3252_v37  ;;  %v4703_v5 = vpop.f32.mrb[134].mxu1  ;;  %v4736_v9 = vpop.f32.mrb[132].mxu0 }
 0x1f8   : > { %v3782_v2 = vmax.f32 %v3766_v29, 0.0  ;;  %v3692_v52 = vadd.f32 %v4732_v36, %v3660_v59  ;;  %3385 = vst.msk [vmem:[#allocation2 + $0xb0] sm:$0xff] %vm539_vm4, %v3353_v60  ;;  %v3354_v41 = vadd.f32 %v4703_v5, %v3322_v7  ;;  %v3255_v8 = vpop.f32.mrb[135].mxu1  ;;  %v3595_v13 = vpop.f32.mrb[133].mxu0  ;;  %v3326_v36 = vld [vmem:[#allocation2 + $0xd8] sm:$0xff]  ;;  %v3329_v60 = vld [vmem:[#allocation2 + $0xf0] sm:$0xff] }
 0x1f9   : > { %v3658_v51 = vld [vmem:[#allocation2 + $0x80] sm:$0xff]  ;;  %3862 = vst.msk [vmem:[%s5898_s6 + $0x10] sm:$0xf] %vm3857_vm5, %v4275_v12  ;;  %v3352_v33 = vadd.f32 %v3320_v28, %v3255_v8  ;;  %v4737_v42 = vpop.f32.mrb[134].mxu0 }
 0x1fa   : > { %v4276_v62 = vpack.c.bf16 %v3782_v2, %v3782_v2  ;;  %v3690_v61 = vadd.f32 %v3658_v51, %v3579_v54  ;;  %3383 = vst.msk [vmem:[#allocation2 + $0xa0] sm:$0xff] %vm539_vm4, %v3351_v0  ;;  %v3661_v6 = vld [vmem:[#allocation2 + $0x98] sm:$0xff]  ;;  %3724 = vst.msk [vmem:[#allocation2 + $0x90] sm:$0xff] %vm539_vm4, %v3692_v52  ;;  %v3659_v21 = vld [vmem:[#allocation2 + $0x88] sm:$0xff]  ;;  %v3598_v45 = vpop.f32.mrb[135].mxu0 }
 0x1fb   : > { %v3693_v18 = vadd.f32 %v4733_v50, %v3661_v6  ;;  %3386 = vst.msk [vmem:[#allocation2 + $0xb8] sm:$0xff] %vm539_vm4, %v3354_v41  ;;  %v3691_v22 = vadd.f32 %v3659_v21, %v3582_v16  ;;  %3384 = vst.msk [vmem:[#allocation2 + $0xa8] sm:$0xff] %vm539_vm4, %v3352_v33  ;;  %v3324_v54 = vld [vmem:[#allocation2 + $0xc8] sm:$0xff]  ;;  %v3327_v12 = vld [vmem:[#allocation2 + $0xe0] sm:$0xff] }
 0x1fc   : > { %v3744_v17 = vld [vmem:[#allocation2 + $0x60] sm:$0xff]  ;;  %3863 = vst.msk [vmem:[%s5898_s6 + $0x14] sm:$0xf] %vm3857_vm5, %v4276_v62 }
 0x1fd   : > { %v3767_v15 = vadd.f32 %v5882_v53, %v3744_v17  ;;  %3722 = vst.msk [vmem:[#allocation2 + $0x80] sm:$0xff] %vm539_vm4, %v3690_v61  ;;  %3725 = vst.msk [vmem:[#allocation2 + $0x98] sm:$0xff] %vm539_vm4, %v3693_v18  ;;  %v4706_v27 = vpop.f32.mrb[136].mxu1 }
 0x1fe   : > { %v3745_v23 = vld [vmem:[#allocation2 + $0x68] sm:$0xff]  ;;  %3723 = vst.msk [vmem:[#allocation2 + $0x88] sm:$0xff] %vm539_vm4, %v3691_v22  ;;  %v3357_v32 = vadd.f32 %v4706_v27, %v3325_v30  ;;  %v3268_v34 = vpop.f32.mrb[137].mxu1 }
 0x1ff   : > { %v3783_v19 = vmax.f32 %v3767_v15, 0.0  ;;  %v3768_v26 = vadd.f32 %v5882_v53, %v3745_v23  ;;  %v3664_v3 = vld [vmem:[#allocation2 + $0xb0] sm:$0xff]  ;;  %v3355_v31 = vadd.f32 %v3323_v35, %v3268_v34  ;;  %v4707_v25 = vpop.f32.mrb[138].mxu1  ;;  %v4740_v63 = vpop.f32.mrb[136].mxu0 }
 0x200   : > { %v3696_v46 = vadd.f32 %v4736_v9, %v3664_v3  ;;  %3389 = vst.msk [vmem:[#allocation2 + $0xd0] sm:$0xff] %vm539_vm4, %v3357_v32  ;;  %v3358_v55 = vadd.f32 %v4707_v25, %v3326_v36  ;;  %v3271_v14 = vpop.f32.mrb[139].mxu1  ;;  %v3611_v10 = vpop.f32.mrb[137].mxu0  ;;  %v3330_v9 = vld [vmem:[#allocation2 + $0xf8] sm:$0xff] }
 0x201   : > { %v4277_v20 = vpack.c.bf16 %v3783_v19, %v3783_v19  ;;  %v3784_v4 = vmax.f32 %v3768_v26, 0.0  ;;  %v3662_v39 = vld [vmem:[#allocation2 + $0xa0] sm:$0xff]  ;;  %3387 = vst.msk [vmem:[#allocation2 + $0xc0] sm:$0xff] %vm539_vm4, %v3355_v31  ;;  %v3356_v50 = vadd.f32 %v3324_v54, %v3271_v14  ;;  %v4741_v40 = vpop.f32.mrb[138].mxu0 }
 0x202   : > { %v3694_v1 = vadd.f32 %v3662_v39, %v3595_v13  ;;  %v3665_v43 = vld [vmem:[#allocation2 + $0xb8] sm:$0xff]  ;;  %3728 = vst.msk [vmem:[#allocation2 + $0xb0] sm:$0xff] %vm539_vm4, %v3696_v46  ;;  %3390 = vst.msk [vmem:[#allocation2 + $0xd8] sm:$0xff] %vm539_vm4, %v3358_v55  ;;  %v3663_v16 = vld [vmem:[#allocation2 + $0xa8] sm:$0xff]  ;;  %v3614_v47 = vpop.f32.mrb[139].mxu0 }
 0x203   : > { %3864 = vst.msk [vmem:[%s5898_s6 + $0x18] sm:$0xf] %vm3857_vm5, %v4277_v20  ;;  %v4278_v49 = vpack.c.bf16 %v3784_v4, %v3784_v4  ;;  %v3697_v38 = vadd.f32 %v4737_v42, %v3665_v43  ;;  %v3695_v48 = vadd.f32 %v3663_v16, %v3598_v45  ;;  %v3328_v13 = vld [vmem:[#allocation2 + $0xe8] sm:$0xff] }
 0x204   : > { %v3746_v57 = vld [vmem:[#allocation2 + $0x80] sm:$0xff]  ;;  %3726 = vst.msk [vmem:[#allocation2 + $0xa0] sm:$0xff] %vm539_vm4, %v3694_v1  ;;  %3388 = vst.msk [vmem:[#allocation2 + $0xc8] sm:$0xff] %vm539_vm4, %v3356_v50 }
 0x205   : > { %3865 = vst.msk [vmem:[%s5898_s6 + $0x1c] sm:$0xf] %vm3857_vm5, %v4278_v49  ;;  %v3769_v11 = vadd.f32 %v5882_v53, %v3746_v57  ;;  %v3747_v24 = vld [vmem:[#allocation2 + $0x88] sm:$0xff]  ;;  %v4710_v58 = vpop.f32.mrb[140].mxu1 }
 0x206   : > { %3729 = vst.msk [vmem:[#allocation2 + $0xb8] sm:$0xff] %vm539_vm4, %v3697_v38  ;;  %v3770_v56 = vadd.f32 %v5882_v53, %v3747_v24  ;;  %3727 = vst.msk [vmem:[#allocation2 + $0xa8] sm:$0xff] %vm539_vm4, %v3695_v48  ;;  %v3361_v37 = vadd.f32 %v4710_v58, %v3329_v60  ;;  %v3284_v44 = vpop.f32.mrb[141].mxu1 }
 0x207   : > { %v3785_v29 = vmax.f32 %v3769_v11, 0.0  ;;  %v3668_v0 = vld [vmem:[#allocation2 + $0xd0] sm:$0xff]  ;;  %v3359_v5 = vadd.f32 %v3327_v12, %v3284_v44  ;;  %v4711_v7 = vpop.f32.mrb[142].mxu1  ;;  %v4744_v52 = vpop.f32.mrb[140].mxu0 }
 0x208   : > { %v3786_v59 = vmax.f32 %v3770_v56, 0.0  ;;  %v3700_v51 = vadd.f32 %v4740_v63, %v3668_v0  ;;  %3393 = vst.msk [vmem:[#allocation2 + $0xf0] sm:$0xff] %vm539_vm4, %v3361_v37  ;;  %v3666_v41 = vld [vmem:[#allocation2 + $0xc0] sm:$0xff]  ;;  %v3362_v8 = vadd.f32 %v4711_v7, %v3330_v9  ;;  %v3287_v28 = vpop.f32.mrb[143].mxu1  ;;  %v3627_v62 = vpop.f32.mrb[141].mxu0 }
 0x209   : > { %v4279_v2 = vpack.c.bf16 %v3785_v29, %v3785_v29  ;;  %v3698_v6 = vadd.f32 %v3666_v41, %v3611_v10  ;;  %3391 = vst.msk [vmem:[#allocation2 + $0xe0] sm:$0xff] %vm539_vm4, %v3359_v5  ;;  %v3669_v33 = vld [vmem:[#allocation2 + $0xd8] sm:$0xff]  ;;  %v3360_v42 = vadd.f32 %v3328_v13, %v3287_v28  ;;  %v4745_v17 = vpop.f32.mrb[142].mxu0 }
 0x20a   : > { %v4280_v61 = vpack.c.bf16 %v3786_v59, %v3786_v59  ;;  %3732 = vst.msk [vmem:[#allocation2 + $0xd0] sm:$0xff] %vm539_vm4, %v3700_v51  ;;  %v3701_v21 = vadd.f32 %v4741_v40, %v3669_v33  ;;  %3394 = vst.msk [vmem:[#allocation2 + $0xf8] sm:$0xff] %vm539_vm4, %v3362_v8  ;;  %v3630_v15 = vpop.f32.mrb[143].mxu0 }
 0x20b   : > { %3866 = vst.msk [vmem:[%s5898_s6 + $0x20] sm:$0xf] %vm3857_vm5, %v4279_v2  ;;  %v3748_v18 = vld [vmem:[#allocation2 + $0xa0] sm:$0xff]  ;;  %v3667_v45 = vld [vmem:[#allocation2 + $0xc8] sm:$0xff] }
 0x20c   : > { %3867 = vst.msk [vmem:[%s5898_s6 + $0x24] sm:$0xf] %vm3857_vm5, %v4280_v61  ;;  %v3771_v22 = vadd.f32 %v5882_v53, %v3748_v18  ;;  %v3699_v23 = vadd.f32 %v3667_v45, %v3614_v47 }
 0x20d   : > { %3730 = vst.msk [vmem:[#allocation2 + $0xc0] sm:$0xff] %vm539_vm4, %v3698_v6  ;;  %3392 = vst.msk [vmem:[#allocation2 + $0xe8] sm:$0xff] %vm539_vm4, %v3360_v42  ;;  %v3749_v19 = vld [vmem:[#allocation2 + $0xa8] sm:$0xff] }
 0x20e   : > { %3733 = vst.msk [vmem:[#allocation2 + $0xd8] sm:$0xff] %vm539_vm4, %v3701_v21  ;;  %v3787_v26 = vmax.f32 %v3771_v22, 0.0  ;;  %v3772_v27 = vadd.f32 %v5882_v53, %v3749_v19  ;;  %3731 = vst.msk [vmem:[#allocation2 + $0xc8] sm:$0xff] %vm539_vm4, %v3699_v23 }
 0x20f   : > { %v3672_v34 = vld [vmem:[#allocation2 + $0xf0] sm:$0xff] }
 0x210   : > { %v4281_v30 = vpack.c.bf16 %v3787_v26, %v3787_v26  ;;  %v3788_v32 = vmax.f32 %v3772_v27, 0.0  ;;  %v3704_v35 = vadd.f32 %v4744_v52, %v3672_v34  ;;  %v3670_v20 = vld [vmem:[#allocation2 + $0xe0] sm:$0xff] }
 0x211   : > { %v3702_v3 = vadd.f32 %v3670_v20, %v3627_v62  ;;  %v3673_v31 = vld [vmem:[#allocation2 + $0xf8] sm:$0xff] }
 0x212   : > { %3868 = vst.msk [vmem:[%s5898_s6 + $0x28] sm:$0xf] %vm3857_vm5, %v4281_v30  ;;  %v4282_v4 = vpack.c.bf16 %v3788_v32, %v3788_v32  ;;  %v3705_v36 = vadd.f32 %v4745_v17, %v3673_v31 }
 0x213   : > { %3736 = vst.msk [vmem:[#allocation2 + $0xf0] sm:$0xff] %vm539_vm4, %v3704_v35  ;;  %3734 = vst.msk [vmem:[#allocation2 + $0xe0] sm:$0xff] %vm539_vm4, %v3702_v3 }
 0x214   : > { %v3750_v25 = vld [vmem:[#allocation2 + $0xc0] sm:$0xff]  ;;  %v3671_v63 = vld [vmem:[#allocation2 + $0xe8] sm:$0xff]  ;;  %3869 = vst.msk [vmem:[%s5898_s6 + $0x2c] sm:$0xf] %vm3857_vm5, %v4282_v4 }
 0x215   : > { %v3773_v46 = vadd.f32 %v5882_v53, %v3750_v25  ;;  %v3703_v39 = vadd.f32 %v3671_v63, %v3630_v15  ;;  %v3751_v55 = vld [vmem:[#allocation2 + $0xc8] sm:$0xff]  ;;  %3737 = vst.msk [vmem:[#allocation2 + $0xf8] sm:$0xff] %vm539_vm4, %v3705_v36 }
 0x216   : > { %v3774_v54 = vadd.f32 %v5882_v53, %v3751_v55 }
 0x217   : > { %v3789_v14 = vmax.f32 %v3773_v46, 0.0  ;;  %3735 = vst.msk [vmem:[#allocation2 + $0xe8] sm:$0xff] %vm539_vm4, %v3703_v39 }
 0x218   : > { %v3790_v49 = vmax.f32 %v3774_v54, 0.0 }
 0x219   : > { %v4283_v10 = vpack.c.bf16 %v3789_v14, %v3789_v14 }
 0x21a   : > { %v4284_v1 = vpack.c.bf16 %v3790_v49, %v3790_v49  ;;  %v3752_v43 = vld [vmem:[#allocation2 + $0xe0] sm:$0xff] }
 0x21b   : > { %3870 = vst.msk [vmem:[%s5898_s6 + $0x30] sm:$0xf] %vm3857_vm5, %v4283_v10  ;;  %v3775_v50 = vadd.f32 %v5882_v53, %v3752_v43 }
 0x21c   : > { %3871 = vst.msk [vmem:[%s5898_s6 + $0x34] sm:$0xf] %vm3857_vm5, %v4284_v1 }
 0x21d   : > { %v3791_v57 = vmax.f32 %v3775_v50, 0.0 }
 0x21e   : > { %v3753_v40 = vld [vmem:[#allocation2 + $0xe8] sm:$0xff] }
 0x21f   : > { %v3776_v38 = vadd.f32 %v5882_v53, %v3753_v40  ;;  %v4285_v16 = vpack.c.bf16 %v3791_v57, %v3791_v57 }
 0x221   : > { %v3792_v47 = vmax.f32 %v3776_v38, 0.0  ;;  %3872 = vst.msk [vmem:[%s5898_s6 + $0x38] sm:$0xf] %vm3857_vm5, %v4285_v16 }
 0x223   : > { %v4286_v11 = vpack.c.bf16 %v3792_v47, %v3792_v47 }
 0x225   : > { %3873 = vst.msk [vmem:[%s5898_s6 + $0x3c] sm:$0xf] %vm3857_vm5, %v4286_v11 }
 0x226 PF: > { %s13_s16 = sadd.s32 1, %s4889_s16   ;;  %s6010_s12 = smov %s4881_s14 }
 0x227   : > { %p10_p8 = scmp.ge.s32.totalorder %s13_s16, 6   ;;  %s6011_s13 = smov %s4885_s15 }
 0x228   : > { %s6012_s14 = smov %s6015_s17  ;;  %s6013_s15 = smov %s6019_s18 }
 0x229   :  { %12 = sbr.rel (!%p10_p8) target bundleno = 3 (0x3), region = 72 }

// kernel: regression_model_forward.6
= control target key start
LH: loop header
LB: loop body
LE: loop exit
PB: predicated region body
PF: predicated region fallthrough
CT: control target
= control target key end

     0   :  { %s5096_s12 = smov 0   ;;  %s5098_s13 = smov 0   ;;  %s6204_s0 = inlined_call_operand.vmem [shape: bf16[2,2,11,32,32], index: 0, kind: input, shape index: {}]   ;;  %s6205_s1 = inlined_call_operand.vmem [shape: bf16[3,3,32,32], index: 1, kind: input, shape index: {}]   ;;  %s6206_s2 = inlined_call_operand.vmem [shape: f32[1,32], index: 2, kind: input, shape index: {}]   ;;  %s6207_s3 = inlined_call_operand.vmem [shape: bf16[2,16,16,32], index: 3, kind: output, shape index: {}]  }
   0x1   :  { %s5100_s14 = smov 0   ;;  %s5102_s15 = smov 0  }
   0x2   :  { %s5104_s16 = smov 0  }
   0x3 LB: > { %s22_s17 = sadd.s32 1, %s5066_s14  ;;  %s25_s18 = sadd.s32 1, %s5070_s15  ;;  %s5074_s16 = sphi %s5104_s16, %s13_s16   ;;  %s5070_s15 = sphi %s5102_s15, %s6212_s15   ;;  %s5066_s14 = sphi %s5100_s14, %s6211_s14   ;;  %s5062_s13 = sphi %s5098_s13, %s6210_s13   ;;  %s5058_s12 = sphi %s5096_s12, %s6209_s12  }
   0x4   : > { %p23_p0 = scmp.ge.s32.totalorder %s22_s17, 2  ;;  %p4083_p1 = scmp.ge.s32.totalorder %s5074_s16, 1 }
   0x5   : > { %p157_p2 = scmp.lt.s32.totalorder %s5074_s16, 5 }
   0x6   : > { %s6214_s17 = smov (%p23_p0, %s22_s17), 0  ;;  %s6216_s18 = smov (!%p23_p0, %s25_s18), %s5070_s15 }
   0x7   : > { %p158_p3 = pnand %p4083_p1, %p157_p2  ;;  %p27_p4 = scmp.ge.s32.totalorder %s6216_s18, 2 }
   0x8   : > { %v4967_v0 = vld [vmem:[%s6205_s1] sm:$0xff] (!%p158_p3)   ;;  %p190_p5 = scmp.lt.s32.totalorder (!%p158_p3), %s5062_s13, 1  ;;  %v4968_v1 = vld [vmem:[%s6205_s1 + $0x8] sm:$0xff] (!%p158_p3)   ;;  %p192_p6 = scmp.lt.s32.totalorder (!%p158_p3), %s5058_s12, 1  ;;  %v4970_v2 = vld [vmem:[%s6205_s1 + $0x10] sm:$0xff] (!%p158_p3)   ;;  %vm340_vm0 = vcmask (!%p158_p3), 261120  }
   0x9   : > { %s6218_s18 = smov (%p27_p4, %s6216_s18), 0  ;;  %161 = sbr.rel (%p158_p3) target bundleno = 550 (0x226), region = 32 }
   0xa   : > { %4921 = vmatprep.subr.bf16.mxu1 (!%p158_p3), %v4967_v0  ;;  %4597 = vmatprep.subr.bf16.mxu0 (!%p158_p3), %v4967_v0  ;;  %v4976_v3 = vld [vmem:[%s6205_s1 + $0x20] sm:$0xff] (!%p158_p3)   ;;  %v4980_v4 = vld [vmem:[%s6205_s1 + $0x18] sm:$0xff] (!%p158_p3)   ;;  %v4986_v7 = vld [vmem:[%s6205_s1 + $0x28] sm:$0xff] (!%p158_p3)   ;;  %vm590_vm1 = vsmask.f32 (!%p158_p3), 7424  ;;  %vm1029_vm2 = vcmask (!%p158_p3), 1046528  }
   0xb   : > { %4923 = vmatpush3.bf16.msra.mxu1 (!%p158_p3), %v4967_v0  ;;  %4598 = vmatpush3.bf16.msra.mxu0 (!%p158_p3), %v4967_v0  ;;  %v5173_v10 = vld [vmem:[%s6205_s1 + $0x30] sm:$0xff] (!%p158_p3)   ;;  %v5184_v12 = vld [vmem:[%s6205_s1 + $0x40] sm:$0xff] (!%p158_p3)   ;;  %v4991_v50 = vld [vmem:[%s6205_s1 + $0x38] sm:$0xff] (!%p158_p3)   ;;  %vm3963_vm3 = vcmask (!%p158_p3), 257024  }
   0xc   : > { %4922 = vmatprep.subr.bf16.mxu1 (!%p158_p3), %v4968_v1  ;;  %4599 = vmatprep.subr.bf16.mxu0 (!%p158_p3), %v4968_v1  ;;  %v4992_v54 = vld [vmem:[%s6205_s1 + $0x48] sm:$0xff] (!%p158_p3)   ;;  %v5278_v58 = vld [vmem:[%s6205_s1 + $0x50] sm:$0xff] (!%p158_p3)   ;;  %v5288_v62 = vld [vmem:[%s6205_s1 + $0x60] sm:$0xff] (!%p158_p3)  }
   0xf   : > { %4924 = vmatpush3.bf16.msra.mxu1 (!%p158_p3), %v4968_v1  ;;  %4600 = vmatpush3.bf16.msra.mxu0 (!%p158_p3), %v4968_v1 }
  0x10   : > { %s6220_s13 = smov (!%p190_p5, %s5062_s13), 1  ;;  %4633 = vmatprep.subr.bf16.mxu1 %v4970_v2  ;;  %4669 = vmatprep.subr.bf16.mxu0 %v4976_v3 }
  0x11   : > { %s193_s23 = scalar_select %p192_p6, %s5058_s12, 1 }
  0x12   : > { %s4926_s26 = smul.u32 88, %s6220_s13  ;;  %s4087_s25 = sshll.u32 %s6220_s13, 5 }
  0x13   : > { %s4925_s29 = smul.u32 44, %s193_s23 }
  0x15   : > { %s196_s30 = sadd.s32 %s4926_s26, %s4925_s29 }
  0x16   : > { %s4084_s4 = sshll.u32 %s196_s30, 2 }
  0x17   : > { %s5148_s7 = scalar_lea.vmem %s6204_s0, %s4084_s4 }
  0x18   : > { %v5154_v5 = vld [vmem:[%s5148_s7 + $0x40] sm:$0xff]   ;;  %v5157_v6 = vld [vmem:[%s5148_s7 + $0x48] sm:$0xff]   ;;  %v5177_v11 = vld [vmem:[%s5148_s7 + $0x50] sm:$0xff]  }
  0x19   : > { %4617 = vmatprep.mubr.msk.bf16.mxu1 %vm340_vm0, %v5154_v5  ;;  %v4972_v8 = vld [vmem:[%s5148_s7] sm:$0xff]   ;;  %v5168_v9 = vld [vmem:[%s5148_s7 + $0x8] sm:$0xff]   ;;  %v5189_v13 = vld [vmem:[%s5148_s7 + $0x10] sm:$0xff]  }
  0x1a   : > { %4618 = vmatmul.mubr.msk.bf16.vlgmr.msra.gmra.mrb[0].mxu1 %vm340_vm0, %v5157_v6  ;;  %4601 = vmatprep.mubr.msk.bf16.mxu0 %vm340_vm0, %v4972_v8  ;;  %v5192_v14 = vld [vmem:[%s5148_s7 + $0x58] sm:$0xff]   ;;  %v5197_v15 = vld [vmem:[%s5148_s7 + $0x60] sm:$0xff]   ;;  %v593_v18 = vshll.u32 %v4972_v8, 16  ;;  %v5216_v19 = vld [vmem:[%s5148_s7 + $0x68] sm:$0xff]   ;;  %v591_v22 = vshrl.u32 %v4972_v8, 16  ;;  %v597_v24 = vshll.u32 %v5168_v9, 16 }
  0x1b   : > { %4634 = vmatpush3.bf16.msra.mxu1 %v4970_v2  ;;  %4602 = vmatmul.mubr.msk.bf16.vlgmr.msra.gmra.mrb[0].mxu0 %vm340_vm0, %v5168_v9  ;;  %v5200_v16 = vld [vmem:[%s5148_s7 + $0x18] sm:$0xff]   ;;  %v5204_v17 = vld [vmem:[%s5148_s7 + $0x20] sm:$0xff]   ;;  %v5219_v20 = vld [vmem:[%s5148_s7 + $0x70] sm:$0xff]   ;;  %v604_v29 = vshll.u32 %v5189_v13, 16  ;;  %v1030_v30 = vrot.slane %v4972_v8, 1  ;;  %v1031_v31 = vrot.slane %v5168_v9, 1 }
  0x1c   : > { %4635 = vmatprep.subr.bf16.mxu1 %v4980_v4  ;;  %4621 = vmatprep.mubr.msk.bf16.mxu1 %vm340_vm0, %v5177_v11  ;;  %v5222_v21 = vld [vmem:[%s5148_s7 + $0x28] sm:$0xff]   ;;  %v595_v23 = vrot.slane %v593_v18, 1  ;;  %v5226_v25 = vld [vmem:[%s5148_s7 + $0x30] sm:$0xff]   ;;  %v599_v27 = vrot.slane %v597_v24, 1  ;;  %v5237_v28 = vld [vmem:[%s5148_s7 + $0x78] sm:$0xff]   ;;  %v601_v32 = vshrl.u32 %v5168_v9, 16 }
  0x1d   : > { %4670 = vmatpush3.bf16.msra.mxu0 %v4976_v3  ;;  %4605 = vmatprep.mubr.msk.bf16.mxu0 %vm340_vm0, %v5189_v13  ;;  %v608_v33 = vshrl.u32 %v5189_v13, 16  ;;  %v5244_v34 = vld [vmem:[%s5148_s7 + $0x38] sm:$0xff]   ;;  %v611_v36 = vshll.u32 %v5200_v16, 16  ;;  %v606_v37 = vrot.slane %v604_v29, 1  ;;  %v1032_v38 = vsel %vm1029_vm2, %v1030_v30, %v1031_v31 }
  0x1e   : > { %4671 = vmatprep.subr.bf16.mxu0 %v4986_v7  ;;  %v596_v26 = vor.u32 %v595_v23, %v591_v22  ;;  %v603_v39 = vor.u32 %v601_v32, %v599_v27  ;;  %v1033_v42 = vrot.slane %v5189_v13, 1  ;;  %v618_v43 = vshll.u32 %v5204_v17, 16 }
  0x1f   : > { %4636 = vmatpush3.bf16.msra.mxu1 %v4980_v4  ;;  %v610_v40 = vor.u32 %v608_v33, %v606_v37  ;;  %v613_v41 = vrot.slane %v611_v36, 1  ;;  %v1035_v44 = vrot.slane %v5200_v16, 1  ;;  %v615_v46 = vshrl.u32 %v5200_v16, 16 }
  0x20   : > { %4705 = vmatprep.subr.bf16.mxu1 %v5173_v10  ;;  %v600_v35 = vsel %vm590_vm1, %v596_v26, %v599_v27  ;;  %v607_v45 = vsel %vm590_vm1, %v603_v39, %v606_v37  ;;  %v622_v48 = vshrl.u32 %v5204_v17, 16  ;;  %v625_v49 = vshll.u32 %v5222_v21, 16  ;;  %v5323_v37 = vld [vmem:[%s5148_s7 + $0x10] sm:$0xff]  }
  0x21   : > { %4672 = vmatpush3.bf16.msra.mxu0 %v4986_v7  ;;  %v614_v47 = vsel %vm590_vm1, %v610_v40, %v613_v41  ;;  %v1034_v51 = vsel %vm1029_vm2, %v1031_v31, %v1033_v42  ;;  %v620_v52 = vrot.slane %v618_v43, 1  ;;  %v1036_v53 = vsel %vm1029_vm2, %v1033_v42, %v1035_v44  ;;  %v5332_v42 = vld [vmem:[%s5148_s7 + $0x20] sm:$0xff]   ;;  %v5336_v43 = vld [vmem:[%s5148_s7 + $0x28] sm:$0xff]  }
  0x22   : > { %4622 = vmatmul.mubr.msk.bf16.gmra.mrb[4].mxu1 %vm340_vm0, %v5192_v14  ;;  %4741 = vmatprep.subr.bf16.mxu0 %v5184_v12  ;;  %v617_v55 = vor.u32 %v615_v46, %v613_v41  ;;  %v627_v57 = vrot.slane %v625_v49, 1  ;;  %v1037_v59 = vrot.slane %v5204_v17, 1  ;;  %v632_v60 = vshll.u32 %v5226_v25, 16  ;;  %v5329_v41 = vld [vmem:[%s5148_s7 + $0x18] sm:$0xff]  }
  0x23   : > { %4625 = vmatprep.mubr.msk.bf16.mxu1 %vm340_vm0, %v5197_v15  ;;  %4606 = vmatmul.mubr.msk.bf16.gmra.mrb[4].mxu0 %vm340_vm0, %v5200_v16  ;;  %v624_v56 = vor.u32 %v622_v48, %v620_v52  ;;  %v1039_v61 = vrot.slane %v5222_v21, 1  ;;  %v629_v0 = vshrl.u32 %v5222_v21, 16  ;;  %v636_v2 = vshrl.u32 %v5226_v25, 16 }
  0x24   : > { %4609 = vmatprep.mubr.msk.bf16.mxu0 %vm340_vm0, %v5204_v17  ;;  %v621_v63 = vsel %vm590_vm1, %v617_v55, %v620_v52  ;;  %v639_v3 = vshll.u32 %v5244_v34, 16  ;;  %v1038_v4 = vsel %vm1029_vm2, %v1035_v44, %v1037_v59  ;;  %v634_v7 = vrot.slane %v632_v60, 1 }
  0x25   : > { %v628_v1 = vsel %vm590_vm1, %v624_v56, %v627_v57  ;;  %v1040_v8 = vsel %vm1029_vm2, %v1037_v59, %v1039_v61  ;;  %v631_v9 = vor.u32 %v629_v0, %v627_v57  ;;  %v1041_v13 = vrot.slane %v5226_v25, 1 }
  0x26   : > { %v646_v16 = vshll.u32 %v5154_v5, 16  ;;  %v1043_v17 = vrot.slane %v5244_v34, 1  ;;  %v650_v23 = vshrl.u32 %v5154_v5, 16  ;;  %v653_v24 = vshll.u32 %v5157_v6, 16 }
  0x27   : > { %v635_v18 = vsel %vm590_vm1, %v631_v9, %v634_v7  ;;  %v1042_v26 = vsel %vm1029_vm2, %v1039_v61, %v1041_v13  ;;  %v1045_v32 = vrot.slane %v5154_v5, 1  ;;  %v660_v33 = vshll.u32 %v5177_v11, 16 }
  0x28   : > { %v1044_v27 = vsel %vm1029_vm2, %v1041_v13, %v1043_v17  ;;  %v655_v31 = vrot.slane %v653_v24, 1  ;;  %v657_v36 = vshrl.u32 %v5157_v6, 16  ;;  %v664_v39 = vshrl.u32 %v5177_v11, 16 }
  0x29   : > { %v667_v40 = vshll.u32 %v5192_v14, 16  ;;  %v1046_v5 = vsel %vm1029_vm2, %v1043_v17, %v1045_v32  ;;  %v2262_v44 = vrot.slane %v5323_v37, 1  ;;  %v2263_v46 = vrot.slane %v5329_v41, 1 }
  0x2a   : > { %4626 = vmatmul.mubr.msk.bf16.gmra.mrb[8].mxu1 %vm340_vm0, %v5216_v19  ;;  %v659_v48 = vor.u32 %v657_v36, %v655_v31  ;;  %v2267_v49 = vrot.slane %v5336_v43, 1  ;;  %v671_v56 = vshrl.u32 %v5192_v14, 16  ;;  %v674_v57 = vshll.u32 %v5197_v15, 16 }
  0x2b   : > { %4629 = vmatprep.mubr.msk.bf16.mxu1 %vm340_vm0, %v5219_v20  ;;  %4610 = vmatmul.mubr.msk.bf16.gmra.mrb[8].mxu0 %vm340_vm0, %v5222_v21  ;;  %v643_v21 = vshrl.u32 %v5244_v34, 16  ;;  %v5347_v52 = vsel %vm1029_vm2, %v2262_v44, %v2263_v46  ;;  %v1051_v59 = vrot.slane %v5192_v14, 1  ;;  %v678_v61 = vshrl.u32 %v5197_v15, 16 }
  0x2c   : > { %4613 = vmatprep.mubr.msk.bf16.mxu0 %vm340_vm0, %v5226_v25  ;;  %v648_v25 = vrot.slane %v646_v16, 1  ;;  %v1055_v9 = vrot.slane %v5216_v19, 1  ;;  %v692_v16 = vshrl.u32 %v5219_v20, 16  ;;  %v695_v17 = vshll.u32 %v5237_v28, 16 }
  0x2d   : > { %v1830_v36 = vshll.u32 %v5329_v41, 16 }
  0x2e   : > { %v652_v30 = vor.u32 %v650_v23, %v648_v25  ;;  %v4993_v23 = vld [vmem:[%s5148_s7 + $0x80] ss:$0 sps:$4 sm:$0xff]   ;;  %v697_v24 = vrot.slane %v695_v17, 1  ;;  %v5461_v17 = vld [vmem:[%s5148_s7 + $0x48] sm:$0xff]  }
  0x32   : > { %4630 = vmatmul.mubr.msk.bf16.gmra.mrb[12].mxu1 %vm340_vm0, %v5237_v28 }
  0x33   : > { %4637 = vmatprep.mubr.msk.bf16.mxu1 %vm340_vm0, %v600_v35  ;;  %4614 = vmatmul.mubr.msk.bf16.gmra.mrb[12].mxu0 %vm340_vm0, %v5244_v34  ;;  %v1047_v34 = vrot.slane %v5157_v6, 1  ;;  %v662_v6 = vrot.slane %v660_v33, 1 }
  0x34   : > { %4673 = vmatprep.mubr.msk.bf16.mxu0 %vm340_vm0, %v1032_v38  ;;  %v656_v38 = vsel %vm590_vm1, %v652_v30, %v655_v31  ;;  %v699_v30 = vshrl.u32 %v5237_v28, 16  ;;  %v703_v31 = vshll.u32 %v4993_v23, 16 }
  0x35   : > { %v663_v60 = vsel %vm590_vm1, %v659_v48, %v662_v6  ;;  %v1837_v48 = vshll.u32 %v5332_v42, 16 }
  0x3a   : > { %4638 = vmatmul.mubr.msk.bf16.vlgmr.msra.gmra.mrb[16].mxu1 %vm340_vm0, %v607_v45  ;;  %v1048_v45 = vsel %vm1029_vm2, %v1045_v32, %v1047_v34 }
  0x3b   : > { %4706 = vmatpush3.bf16.msra.mxu1 %v5173_v10  ;;  %4641 = vmatprep.mubr.msk.bf16.mxu1 %vm340_vm0, %v614_v47  ;;  %v638_v10 = vor.u32 %v636_v2, %v634_v7  ;;  %v2265_v47 = vrot.slane %v5332_v42, 1  ;;  %v1053_v7 = vrot.slane %v5197_v15, 1 }
  0x3c   : > { %4674 = vmatmul.mubr.msk.bf16.vlgmr.msra.gmra.mrb[16].mxu0 %vm340_vm0, %v1034_v51  ;;  %4707 = vmatprep.subr.bf16.mxu1 %v4991_v50  ;;  %v669_v51 = vrot.slane %v667_v40, 1  ;;  %v1061_v40 = vrot.slane %v4993_v23, 1  ;;  %v1872_v23 = vshll.u32 %v5461_v17, 16 }
  0x3d   : > { %4742 = vmatpush3.bf16.msra.mxu0 %v5184_v12  ;;  %4677 = vmatprep.mubr.msk.bf16.mxu0 %vm340_vm0, %v1036_v53  ;;  %v641_v12 = vrot.slane %v639_v3, 1  ;;  %v5350_v53 = vsel %vm1029_vm2, %v2263_v46, %v2265_v47  ;;  %v5357_v55 = vsel %vm1029_vm2, %v2265_v47, %v2267_v49  ;;  %v1056_v15 = vsel %vm1029_vm2, %v1053_v7, %v1055_v9 }
  0x3e   : > { %4743 = vmatprep.subr.bf16.mxu0 %v4992_v54  ;;  %v673_v3 = vor.u32 %v671_v56, %v669_v51 }
  0x3f   : > { %4708 = vmatpush3.bf16.msra.mxu1 %v4991_v50  ;;  %v642_v22 = vsel %vm590_vm1, %v638_v10, %v641_v12  ;;  %v645_v29 = vor.u32 %v643_v21, %v641_v12  ;;  %v666_v50 = vor.u32 %v664_v39, %v662_v6  ;;  %v685_v12 = vshrl.u32 %v5216_v19, 16 }
  0x40   : > { %4777 = vmatprep.subr.bf16.mxu1 %v5278_v58  ;;  %v705_v39 = vrot.slane %v703_v31, 1  ;;  %v1832_v6 = vrot.slane %v1830_v36, 1  ;;  %v5500_v36 = vld [vmem:[%s5148_s7 + $0x60] sm:$0xff]  }
  0x41   : > { %4744 = vmatpush3.bf16.msra.mxu0 %v4992_v54  ;;  %v649_v35 = vsel %vm590_vm1, %v645_v29, %v648_v25  ;;  %v1049_v54 = vrot.slane %v5177_v11, 1  ;;  %v670_v0 = vsel %vm590_vm1, %v666_v50, %v669_v51  ;;  %v1059_v25 = vrot.slane %v5237_v28, 1  ;;  %v5401_v28 = vld [vmem:[%s5148_s7 + $0x88] sm:$0xff]  }
  0x42   : > { %4642 = vmatmul.mubr.msk.bf16.gmra.mrb[20].mxu1 %vm340_vm0, %v621_v63  ;;  %4813 = vmatprep.subr.bf16.mxu0 %v5288_v62  ;;  %v681_v63 = vshll.u32 %v5216_v19, 16  ;;  %v1834_v51 = vshrl.u32 %v5329_v41, 16 }
  0x43   : > { %4645 = vmatprep.mubr.msk.bf16.mxu1 %vm340_vm0, %v628_v1  ;;  %v1050_v11 = vsel %vm1029_vm2, %v1047_v34, %v1049_v54  ;;  %v676_v1 = vrot.slane %v674_v57, 1  ;;  %v1052_v2 = vsel %vm1029_vm2, %v1049_v54, %v1051_v59  ;;  %v1062_v50 = vsel %vm1029_vm2, %v1059_v25, %v1061_v40 }
  0x44   : > { %4678 = vmatmul.mubr.msk.bf16.gmra.mrb[20].mxu0 %vm340_vm0, %v1038_v4  ;;  %v683_v4 = vrot.slane %v681_v63, 1  ;;  %v1841_v57 = vshrl.u32 %v5332_v42, 16  ;;  %v1836_v63 = vor.u32 %v1834_v51, %v1832_v6 }
  0x45   : > { %4681 = vmatprep.mubr.msk.bf16.mxu0 %vm340_vm0, %v1040_v8  ;;  %v680_v14 = vor.u32 %v678_v61, %v676_v1  ;;  %v688_v8 = vshll.u32 %v5219_v20, 16  ;;  %v677_v10 = vsel %vm590_vm1, %v673_v3, %v676_v1  ;;  %v5426_v61 = vld [vmem:[%s5148_s7 + $0x30] sm:$0xff]   ;;  %v5430_v1 = vld [vmem:[%s5148_s7 + $0x38] sm:$0xff]  }
  0x46   : > { %v5005_v3 = vld [vmem:[%s6205_s1 + $0x58] sm:$0xff]  }
  0x47   : > { %v684_v13 = vsel %vm590_vm1, %v680_v14, %v683_v4  ;;  %v690_v21 = vrot.slane %v688_v8, 1  ;;  %v1848_v14 = vshrl.u32 %v5336_v43, 16  ;;  %v1858_v8 = vshll.u32 %v5430_v1, 16 }
  0x49   : > { %v694_v19 = vor.u32 %v692_v16, %v690_v21  ;;  %v1860_v16 = vrot.slane %v1858_v8, 1  ;;  %v5536_v8 = vld [vmem:[%s5148_s7 + $0x80] sm:$0xff]  }
  0x4a   : > { %4646 = vmatmul.mubr.msk.bf16.gmra.mrb[24].mxu1 %vm340_vm0, %v635_v18  ;;  %v1054_v18 = vsel %vm1029_vm2, %v1051_v59, %v1053_v7  ;;  %v1844_v59 = vshll.u32 %v5336_v43, 16  ;;  %v1855_v7 = vshrl.u32 %v5426_v61, 16 }
  0x4b   : > { %4649 = vmatprep.mubr.msk.bf16.mxu1 %vm340_vm0, %v642_v22  ;;  %v687_v22 = vor.u32 %v685_v12, %v683_v4  ;;  %v698_v32 = vsel %vm590_vm1, %v694_v19, %v697_v24  ;;  %v5456_v12 = vld [vmem:[%s6205_s1 + $0x70] sm:$0xff]  }
  0x4c   : > { %4682 = vmatmul.mubr.msk.bf16.gmra.mrb[24].mxu0 %vm340_vm0, %v1042_v26  ;;  %v1057_v26 = vrot.slane %v5219_v20, 1  ;;  %v1824_v20 = vshrl.u32 %v5323_v37, 16 }
  0x4d   : > { %4685 = vmatprep.mubr.msk.bf16.mxu0 %vm340_vm0, %v1044_v27  ;;  %v1826_v27 = vshll.u32 %v5323_v37, 16  ;;  %v691_v29 = vsel %vm590_vm1, %v687_v22, %v690_v21  ;;  %v1862_v21 = vshrl.u32 %v5430_v1, 16 }
  0x4e   : > { %v1058_v33 = vsel %vm1029_vm2, %v1055_v9, %v1057_v26  ;;  %v1060_v34 = vsel %vm1029_vm2, %v1057_v26, %v1059_v25  ;;  %v5009_v9 = vld [vmem:[%s6205_s1 + $0x68] sm:$0xff]  }
  0x4f   : > { %v1864_v26 = vor.u32 %v1862_v21, %v1860_v16  ;;  %v1925_v21 = vshrl.u32 %v5536_v8, 16 }
  0x52   : > { %4650 = vmatmul.mubr.msk.bf16.gmra.mrb[28].mxu1 %vm340_vm0, %v649_v35  ;;  %v1828_v35 = vrot.slane %v1826_v27, 1  ;;  %v1874_v27 = vrot.slane %v1872_v23, 1 }
  0x53   : > { %4653 = vmatprep.mubr.msk.bf16.mxu1 %vm340_vm0, %v656_v38  ;;  %v701_v38 = vor.u32 %v699_v30, %v697_v24  ;;  %v5482_v24 = vld [vmem:[%s5148_s7 + $0x50] sm:$0xff]  }
  0x54   : > { %4686 = vmatmul.mubr.msk.bf16.gmra.mrb[28].mxu0 %vm340_vm0, %v1046_v5  ;;  %v5405_v5 = vld [vmem:[%s5148_s7 + $0x90] ss:$0 sps:$4 sm:$0xff]   ;;  %v1829_v44 = vor.u32 %v1828_v35, %v1824_v20  ;;  %v1879_v30 = vshll.u32 %v5482_v24, 16 }
  0x55   : > { %4689 = vmatprep.mubr.msk.bf16.mxu0 %vm340_vm0, %v1048_v45  ;;  %v2291_v45 = vrot.slane %v5401_v28, 1  ;;  %v706_v46 = vsel %vm590_vm1, %v701_v38, %v705_v39  ;;  %v2293_v47 = vrot.slane %v5405_v5, 1 }
  0x56   : > { %v1833_v56 = vsel %vm590_vm1, %v1829_v44, %v1832_v6  ;;  %v1881_v35 = vrot.slane %v1879_v30, 1  ;;  %v5504_v44 = vld [vmem:[%s5148_s7 + $0x68] sm:$0xff]   ;;  %v1893_v6 = vshll.u32 %v5500_v36, 16  ;;  %v1936_v30 = vshll.u32 %v5405_v5, 16 }
  0x57   : > { %v5416_v54 = vsel %vm1029_vm2, %v2291_v45, %v2293_v47  ;;  %v1900_v51 = vshll.u32 %v5504_v44, 16  ;;  %v5573_v5 = vld [vmem:[%s5148_s7 + $0x28] sm:$0xff]  }
  0x5a   : > { %4654 = vmatmul.mubr.msk.bf16.gmra.mrb[32].mxu1 %vm340_vm0, %v663_v60  ;;  %v1839_v60 = vrot.slane %v1837_v48, 1 }
  0x5b   : > { %4657 = vmatprep.mubr.msk.bf16.mxu1 %vm340_vm0, %v670_v0 }
  0x5c   : > { %4690 = vmatmul.mubr.msk.bf16.gmra.mrb[32].mxu0 %vm340_vm0, %v1050_v11  ;;  %v1843_v0 = vor.u32 %v1841_v57, %v1839_v60  ;;  %v1846_v11 = vrot.slane %v1844_v59, 1  ;;  %v5518_v57 = vld [vmem:[%s5148_s7 + $0x70] sm:$0xff]  }
  0x5d   : > { %4693 = vmatprep.mubr.msk.bf16.mxu0 %vm340_vm0, %v1052_v2  ;;  %v1851_v2 = vshll.u32 %v5426_v61, 16 }
  0x5e   : > { %v1847_v4 = vsel %vm590_vm1, %v1843_v0, %v1846_v11  ;;  %v5522_v0 = vld [vmem:[%s5148_s7 + $0x78] sm:$0xff]  }
  0x62   : > { %4658 = vmatmul.mubr.msk.bf16.gmra.mrb[36].mxu1 %vm340_vm0, %v677_v10  ;;  %v1853_v10 = vrot.slane %v1851_v2, 1 }
  0x63   : > { %4661 = vmatprep.mubr.msk.bf16.mxu1 %vm340_vm0, %v684_v13  ;;  %v1850_v13 = vor.u32 %v1848_v14, %v1846_v11  ;;  %v1907_v11 = vshll.u32 %v5518_v57, 16  ;;  %v1911_v14 = vshrl.u32 %v5518_v57, 16 }
  0x64   : > { %4694 = vmatmul.mubr.msk.bf16.gmra.mrb[36].mxu0 %vm340_vm0, %v1054_v18 }
  0x65   : > { %4697 = vmatprep.mubr.msk.bf16.mxu0 %vm340_vm0, %v1056_v15 }
  0x6a   : > { %4662 = vmatmul.mubr.msk.bf16.gmra.mrb[40].mxu1 %vm340_vm0, %v691_v29  ;;  %v5486_v29 = vld [vmem:[%s5148_s7 + $0x58] sm:$0xff]  }
  0x6b   : > { %4665 = vmatprep.mubr.msk.bf16.mxu1 %vm340_vm0, %v698_v32  ;;  %v1876_v32 = vshrl.u32 %v5461_v17, 16  ;;  %v1886_v20 = vshll.u32 %v5486_v29, 16  ;;  %v1890_v47 = vshrl.u32 %v5486_v29, 16 }
  0x6c   : > { %4698 = vmatmul.mubr.msk.bf16.gmra.mrb[40].mxu0 %vm340_vm0, %v1058_v33 }
  0x6d   : > { %4701 = vmatprep.mubr.msk.bf16.mxu0 %vm340_vm0, %v1060_v34  ;;  %v1883_v34 = vshrl.u32 %v5482_v24, 16  ;;  %v1878_v38 = vor.u32 %v1876_v32, %v1874_v27  ;;  %v1888_v40 = vrot.slane %v1886_v20, 1  ;;  %v5563_v20 = vld [vmem:[%s5148_s7 + $0x20] sm:$0xff]  }
  0x6f   : > { %v1885_v39 = vor.u32 %v1883_v34, %v1881_v35  ;;  %v1892_v59 = vor.u32 %v1890_v47, %v1888_v40 }
  0x71   : > { %v1889_v48 = vsel %vm590_vm1, %v1885_v39, %v1888_v40  ;;  %v2269_v39 = vrot.slane %v5426_v61, 1  ;;  %v2271_v40 = vrot.slane %v5430_v1, 1 }
  0x72   : > { %4666 = vmatmul.mubr.msk.bf16.gmra.mrb[44].mxu1 %vm340_vm0, %v706_v46  ;;  %v1882_v46 = vsel %vm590_vm1, %v1878_v38, %v1881_v35  ;;  %v5025_v35 = vld [vmem:[%s6205_s1 + $0x78] sm:$0xff]   ;;  %v5579_v38 = vld [vmem:[%s5148_s7 + $0x30] sm:$0xff]  }
  0x73   : > { %4709 = vmatprep.mubr.msk.bf16.mxu1 %vm340_vm0, %v5323_v37  ;;  %v1840_v37 = vsel %vm590_vm1, %v1836_v63, %v1839_v60  ;;  %v1902_v63 = vrot.slane %v1900_v51, 1  ;;  %v5636_v51 = vld [vmem:[%s5148_s7 + $0x60] sm:$0xff]  }
  0x74   : > { %4702 = vmatmul.mubr.msk.bf16.gmra.mrb[44].mxu0 %vm340_vm0, %v1062_v50  ;;  %v1897_v50 = vshrl.u32 %v5500_v36, 16 }
  0x75   : > { %4745 = vmatprep.mubr.msk.bf16.mxu0 %vm340_vm0, %v1833_v56  ;;  %v1895_v56 = vrot.slane %v1893_v6, 1  ;;  %v5617_v6 = vld [vmem:[%s5148_s7 + $0x48] sm:$0xff]  }
  0x77   : > { %v1899_v60 = vor.u32 %v1897_v50, %v1895_v56  ;;  %v1896_v2 = vsel %vm590_vm1, %v1892_v59, %v1895_v56  ;;  %v5633_v50 = vld [vmem:[%s5148_s7 + $0x58] sm:$0xff]  }
  0x7a   : > { %4710 = vmatmul.mubr.msk.bf16.vlgmr.msra.gmra.mrb[48].mxu1 %vm340_vm0, %v5329_v41  ;;  %v5451_v41 = vld [vmem:[%s5148_s7 + $0x40] sm:$0xff]  }
  0x7b   : > { %4778 = vmatpush3.bf16.msra.mxu1 %v5278_v58  ;;  %4713 = vmatprep.mubr.msk.bf16.mxu1 %vm340_vm0, %v5332_v42  ;;  %v1857_v58 = vor.u32 %v1855_v7, %v1853_v10  ;;  %v5466_v42 = vld [vmem:[%s6205_s1 + $0x80] sm:$0xff]   ;;  %v1865_v18 = vshll.u32 %v5451_v41, 16  ;;  %v1869_v22 = vshrl.u32 %v5451_v41, 16  ;;  %v1909_v7 = vrot.slane %v1907_v11, 1 }
  0x7c   : > { %4746 = vmatmul.mubr.msk.bf16.vlgmr.msra.gmra.mrb[48].mxu0 %vm340_vm0, %v1840_v37  ;;  %4779 = vmatprep.subr.bf16.mxu1 %v5005_v3  ;;  %v1903_v37 = vsel %vm590_vm1, %v1899_v60, %v1902_v63  ;;  %v5649_v60 = vld [vmem:[%s5148_s7 + $0x68] sm:$0xff]  }
  0x7d   : > { %4814 = vmatpush3.bf16.msra.mxu0 %v5288_v62  ;;  %4749 = vmatprep.mubr.msk.bf16.mxu0 %vm340_vm0, %v1847_v4  ;;  %v1854_v62 = vsel %vm590_vm1, %v1850_v13, %v1853_v10  ;;  %v1861_v15 = vsel %vm590_vm1, %v1857_v58, %v1860_v16  ;;  %v1867_v19 = vrot.slane %v1865_v18, 1  ;;  %v1914_v4 = vshll.u32 %v5522_v0, 16 }
  0x7e   : > { %4815 = vmatprep.subr.bf16.mxu0 %v5009_v9  ;;  %v1913_v10 = vor.u32 %v1911_v14, %v1909_v7  ;;  %v1921_v58 = vshll.u32 %v5536_v8, 16  ;;  %v1918_v18 = vshrl.u32 %v5522_v0, 16 }
  0x7f   : > { %4780 = vmatpush3.bf16.msra.mxu1 %v5005_v3  ;;  %v1871_v25 = vor.u32 %v1869_v22, %v1867_v19  ;;  %v1868_v31 = vsel %vm590_vm1, %v1864_v26, %v1867_v19  ;;  %v1904_v3 = vshrl.u32 %v5504_v44, 16  ;;  %v1916_v13 = vrot.slane %v1914_v4, 1 }
  0x80   : > { %4849 = vmatprep.subr.bf16.mxu1 %v5456_v12  ;;  %v1923_v22 = vrot.slane %v1921_v58, 1 }
  0x81   : > { %4816 = vmatpush3.bf16.msra.mxu0 %v5009_v9  ;;  %v1875_v33 = vsel %vm590_vm1, %v1871_v25, %v1874_v27  ;;  %v1906_v9 = vor.u32 %v1904_v3, %v1902_v63  ;;  %v1920_v23 = vor.u32 %v1918_v18, %v1916_v13  ;;  %v1932_v27 = vshrl.u32 %v5401_v28, 16  ;;  %v5652_v63 = vld [vmem:[%s5148_s7 + $0x70] sm:$0xff]   ;;  %v5665_v3 = vld [vmem:[%s5148_s7 + $0x78] sm:$0xff]  }
  0x82   : > { %4714 = vmatmul.mubr.msk.bf16.gmra.mrb[52].mxu1 %vm340_vm0, %v5336_v43  ;;  %4885 = vmatprep.subr.bf16.mxu0 %v5466_v42  ;;  %v1927_v19 = vor.u32 %v1925_v21, %v1923_v22  ;;  %v2275_v43 = vrot.slane %v5461_v17, 1  ;;  %v3069_v18 = vshll.u32 %v5579_v38, 16  ;;  %v3495_v21 = vrot.slane %v5573_v5, 1 }
  0x83   : > { %4717 = vmatprep.mubr.msk.bf16.mxu1 %vm340_vm0, %v5426_v61  ;;  %v1910_v16 = vsel %vm590_vm1, %v1906_v9, %v1909_v7  ;;  %v1924_v25 = vsel %vm590_vm1, %v1920_v23, %v1923_v22  ;;  %v5601_v61 = vld [vmem:[%s5148_s7 + $0x38] sm:$0xff]   ;;  %v5683_v7 = vld [vmem:[%s5148_s7 + $0x88] sm:$0xff]   ;;  %v3056_v9 = vshrl.u32 %v5563_v20, 16  ;;  %v3066_v23 = vshrl.u32 %v5573_v5, 16 }
  0x84   : > { %4750 = vmatmul.mubr.msk.bf16.gmra.mrb[52].mxu0 %vm340_vm0, %v1854_v62  ;;  %v1917_v62 = vsel %vm590_vm1, %v1913_v10, %v1916_v13  ;;  %v5688_v13 = vld [vmem:[%s5148_s7 + $0x90] sm:$0xff]  }
  0x85   : > { %4753 = vmatprep.mubr.msk.bf16.mxu0 %vm340_vm0, %v1861_v15  ;;  %v1928_v15 = vshll.u32 %v5401_v28, 16 }
  0x87   : > { %v1930_v26 = vrot.slane %v1928_v15, 1 }
  0x89   : > { %v1934_v32 = vor.u32 %v1932_v27, %v1930_v26 }
  0x8a   : > { %4718 = vmatmul.mubr.msk.bf16.gmra.mrb[56].mxu1 %vm340_vm0, %v5430_v1  ;;  %v2273_v1 = vrot.slane %v5451_v41, 1 }
  0x8b   : > { %4721 = vmatprep.mubr.msk.bf16.mxu1 %vm340_vm0, %v5451_v41  ;;  %v2277_v41 = vrot.slane %v5482_v24, 1 }
  0x8c   : > { %4754 = vmatmul.mubr.msk.bf16.gmra.mrb[56].mxu0 %vm340_vm0, %v1868_v31  ;;  %v1931_v31 = vsel %vm590_vm1, %v1927_v19, %v1930_v26 }
  0x8d   : > { %4757 = vmatprep.mubr.msk.bf16.mxu0 %vm340_vm0, %v1875_v33  ;;  %v1938_v33 = vrot.slane %v1936_v30, 1  ;;  %v2278_v47 = vsel %vm1029_vm2, %v2275_v43, %v2277_v41  ;;  %v3073_v30 = vshrl.u32 %v5579_v38, 16 }
  0x8f   : > { %v1939_v34 = vsel %vm590_vm1, %v1934_v32, %v1938_v33 }
  0x92   : > { %4722 = vmatmul.mubr.msk.bf16.gmra.mrb[60].mxu1 %vm340_vm0, %v5461_v17  ;;  %v2279_v17 = vrot.slane %v5486_v29, 1 }
  0x93   : > { %4725 = vmatprep.mubr.msk.bf16.mxu1 %vm340_vm0, %v5482_v24  ;;  %v2281_v24 = vrot.slane %v5500_v36, 1 }
  0x94   : > { %4758 = vmatmul.mubr.msk.bf16.gmra.mrb[60].mxu0 %vm340_vm0, %v1882_v46  ;;  %v5620_v46 = vld [vmem:[%s5148_s7 + $0x50] sm:$0xff]  }
  0x95   : > { %4761 = vmatprep.mubr.msk.bf16.mxu0 %vm340_vm0, %v1889_v48  ;;  %v2280_v48 = vsel %vm1029_vm2, %v2277_v41, %v2279_v17  ;;  %v2282_v56 = vsel %vm1029_vm2, %v2279_v17, %v2281_v24 }
  0x9a   : > { %4726 = vmatmul.mubr.msk.bf16.gmra.mrb[64].mxu1 %vm340_vm0, %v5486_v29  ;;  %v2283_v29 = vrot.slane %v5504_v44, 1 }
  0x9b   : > { %4729 = vmatprep.mubr.msk.bf16.mxu1 %vm340_vm0, %v5500_v36  ;;  %v2285_v36 = vrot.slane %v5518_v57, 1 }
  0x9c   : > { %4762 = vmatmul.mubr.msk.bf16.gmra.mrb[64].mxu0 %vm340_vm0, %v1896_v2  ;;  %v2284_v59 = vsel %vm1029_vm2, %v2281_v24, %v2283_v29 }
  0x9d   : > { %4765 = vmatprep.mubr.msk.bf16.mxu0 %vm340_vm0, %v1903_v37  ;;  %v2286_v11 = vsel %vm1029_vm2, %v2283_v29, %v2285_v36  ;;  %v5668_v37 = vld [vmem:[%s5148_s7 + $0x80] sm:$0xff]  }
  0xa2   : > { %4730 = vmatmul.mubr.msk.bf16.gmra.mrb[68].mxu1 %vm340_vm0, %v5504_v44  ;;  %v2287_v44 = vrot.slane %v5522_v0, 1 }
  0xa3   : > { %4733 = vmatprep.mubr.msk.bf16.mxu1 %vm340_vm0, %v5518_v57  ;;  %v2289_v57 = vrot.slane %v5536_v8, 1 }
  0xa4   : > { %4766 = vmatmul.mubr.msk.bf16.gmra.mrb[68].mxu0 %vm340_vm0, %v1910_v16  ;;  %v2288_v2 = vsel %vm1029_vm2, %v2285_v36, %v2287_v44 }
  0xa5   : > { %4769 = vmatprep.mubr.msk.bf16.mxu0 %vm340_vm0, %v1917_v62  ;;  %v2290_v14 = vsel %vm1029_vm2, %v2287_v44, %v2289_v57  ;;  %v2292_v4 = vsel %vm1029_vm2, %v2289_v57, %v2291_v45  ;;  %v3494_v62 = vrot.slane %v5563_v20, 1 }
  0xaa   : > { %4734 = vmatmul.mubr.msk.bf16.gmra.mrb[72].mxu1 %vm340_vm0, %v5522_v0  ;;  %v3058_v0 = vshll.u32 %v5563_v20, 16 }
  0xab   : > { %4737 = vmatprep.mubr.msk.bf16.mxu1 %vm340_vm0, %v5536_v8  ;;  %v3062_v8 = vshll.u32 %v5573_v5, 16 }
  0xac   : > { %4770 = vmatmul.mubr.msk.bf16.gmra.mrb[72].mxu0 %vm340_vm0, %v1924_v25  ;;  %v3060_v10 = vrot.slane %v3058_v0, 1  ;;  %v5705_v25 = vld [vmem:[%s5148_s7 + $0x98] sm:$0xff]  }
  0xad   : > { %4773 = vmatprep.mubr.msk.bf16.mxu0 %vm340_vm0, %v1931_v31  ;;  %v3076_v31 = vshll.u32 %v5601_v61, 16 }
  0xae   : > { %v3061_v58 = vor.u32 %v3060_v10, %v3056_v9 }
  0xb2   : > { %4738 = vmatmul.mubr.msk.bf16.gmra.mrb[76].mxu1 %vm340_vm0, %v5401_v28  ;;  %v3064_v28 = vrot.slane %v3062_v8, 1 }
  0xb3   : > { %4781 = vmatprep.mubr.msk.bf16.mxu1 %vm340_vm0, %v5347_v52  ;;  %v5028_v52 = vld [vmem:[%s6205_s1 + $0x88] sm:$0xff]  }
  0xb4   : > { %4774 = vmatmul.mubr.msk.bf16.gmra.mrb[76].mxu0 %vm340_vm0, %v1939_v34  ;;  %v3065_v27 = vsel %vm590_vm1, %v3061_v58, %v3064_v28  ;;  %v3071_v34 = vrot.slane %v3069_v18, 1  ;;  %v3094_v58 = vshrl.u32 %v5617_v6, 16  ;;  %v3104_v18 = vshll.u32 %v5633_v50, 16 }
  0xb5   : > { %4817 = vmatprep.mubr.msk.bf16.mxu0 %vm340_vm0, %v5563_v20  ;;  %v3496_v20 = vsel %vm1029_vm2, %v3494_v62, %v3495_v21 }
  0xba   : > { %4782 = vmatmul.mubr.msk.bf16.vlgmr.msra.gmra.mrb[80].mxu1 %vm340_vm0, %v5350_v53  ;;  %v2270_v53 = vsel %vm1029_vm2, %v2267_v49, %v2269_v39  ;;  %v2274_v49 = vsel %vm1029_vm2, %v2271_v40, %v2273_v1 }
  0xbb   : > { %4850 = vmatpush3.bf16.msra.mxu1 %v5456_v12  ;;  %4785 = vmatprep.mubr.msk.bf16.mxu1 %vm340_vm0, %v5357_v55  ;;  %v2272_v55 = vsel %vm1029_vm2, %v2269_v39, %v2271_v40  ;;  %v5604_v12 = vld [vmem:[%s5148_s7 + $0x40] sm:$0xff]  }
  0xbc   : > { %4818 = vmatmul.mubr.msk.bf16.vlgmr.msra.gmra.mrb[80].mxu0 %vm340_vm0, %v5573_v5  ;;  %4851 = vmatprep.subr.bf16.mxu1 %v5025_v35  ;;  %v3068_v5 = vor.u32 %v3066_v23, %v3064_v28  ;;  %v3501_v57 = vrot.slane %v5604_v12, 1 }
  0xbd   : > { %4886 = vmatpush3.bf16.msra.mxu0 %v5466_v42  ;;  %4821 = vmatprep.mubr.msk.bf16.mxu0 %vm340_vm0, %v5579_v38  ;;  %v2276_v42 = vsel %vm1029_vm2, %v2273_v1, %v2275_v43 }
  0xbe   : > { %4887 = vmatprep.subr.bf16.mxu0 %v5028_v52  ;;  %v3072_v43 = vsel %vm590_vm1, %v3068_v5, %v3071_v34 }
  0xbf   : > { %4852 = vmatpush3.bf16.msra.mxu1 %v5025_v35  ;;  %v3075_v35 = vor.u32 %v3073_v30, %v3071_v34  ;;  %v3505_v30 = vrot.slane %v5620_v46, 1 }
  0xc1   : > { %4888 = vmatpush3.bf16.msra.mxu0 %v5028_v52  ;;  %v3078_v52 = vrot.slane %v3076_v31, 1 }
  0xc2   : > { %4786 = vmatmul.mubr.msk.bf16.gmra.mrb[84].mxu1 %vm340_vm0, %v2270_v53  ;;  %v3083_v53 = vshll.u32 %v5604_v12, 16 }
  0xc3   : > { %4789 = vmatprep.mubr.msk.bf16.mxu1 %vm340_vm0, %v2272_v55  ;;  %v3499_v55 = vrot.slane %v5601_v61, 1  ;;  %v3079_v17 = vsel %vm590_vm1, %v3075_v35, %v3078_v52  ;;  %v3108_v35 = vshrl.u32 %v5633_v50, 16 }
  0xc4   : > { %4822 = vmatmul.mubr.msk.bf16.gmra.mrb[84].mxu0 %vm340_vm0, %v5601_v61 }
  0xc5   : > { %4825 = vmatprep.mubr.msk.bf16.mxu0 %vm340_vm0, %v5604_v12 }
  0xca   : > { %4790 = vmatmul.mubr.msk.bf16.gmra.mrb[88].mxu1 %vm340_vm0, %v2274_v49 }
  0xcb   : > { %4793 = vmatprep.mubr.msk.bf16.mxu1 %vm340_vm0, %v2276_v42  ;;  %v3080_v42 = vshrl.u32 %v5601_v61, 16 }
  0xcc   : > { %4826 = vmatmul.mubr.msk.bf16.gmra.mrb[88].mxu0 %vm340_vm0, %v5617_v6 }
  0xcd   : > { %4829 = vmatprep.mubr.msk.bf16.mxu0 %vm340_vm0, %v5620_v46  ;;  %v3082_v36 = vor.u32 %v3080_v42, %v3078_v52 }
  0xd2   : > { %4794 = vmatmul.mubr.msk.bf16.gmra.mrb[92].mxu1 %vm340_vm0, %v2278_v47  ;;  %v3087_v47 = vshrl.u32 %v5604_v12, 16 }
  0xd3   : > { %4797 = vmatprep.mubr.msk.bf16.mxu1 %vm340_vm0, %v2280_v48  ;;  %v3090_v48 = vshll.u32 %v5617_v6, 16 }
  0xd4   : > { %4830 = vmatmul.mubr.msk.bf16.gmra.mrb[92].mxu0 %vm340_vm0, %v5633_v50 }
  0xd5   : > { %4833 = vmatprep.mubr.msk.bf16.mxu0 %vm340_vm0, %v5636_v51 }
  0xda   : > { %4798 = vmatmul.mubr.msk.bf16.gmra.mrb[96].mxu1 %vm340_vm0, %v2282_v56  ;;  %v3085_v56 = vrot.slane %v3083_v53, 1 }
  0xdb   : > { %4801 = vmatprep.mubr.msk.bf16.mxu1 %vm340_vm0, %v2284_v59 }
  0xdc   : > { %4834 = vmatmul.mubr.msk.bf16.gmra.mrb[96].mxu0 %vm340_vm0, %v5649_v60  ;;  %v3089_v44 = vor.u32 %v3087_v47, %v3085_v56  ;;  %v3086_v10 = vsel %vm590_vm1, %v3082_v36, %v3085_v56  ;;  %v3509_v47 = vrot.slane %v5636_v51, 1  ;;  %v3511_v56 = vrot.slane %v5649_v60, 1 }
  0xdd   : > { %4837 = vmatprep.mubr.msk.bf16.mxu0 %vm340_vm0, %v5652_v63 }
  0xe2   : > { %4802 = vmatmul.mubr.msk.bf16.gmra.mrb[100].mxu1 %vm340_vm0, %v2286_v11  ;;  %v3092_v11 = vrot.slane %v3090_v48, 1 }
  0xe3   : > { %4805 = vmatprep.mubr.msk.bf16.mxu1 %vm340_vm0, %v2288_v2 }
  0xe4   : > { %4838 = vmatmul.mubr.msk.bf16.gmra.mrb[100].mxu0 %vm340_vm0, %v5665_v3  ;;  %v3096_v23 = vor.u32 %v3094_v58, %v3092_v11 }
  0xe5   : > { %4841 = vmatprep.mubr.msk.bf16.mxu0 %vm340_vm0, %v5668_v37 }
  0xea   : > { %4806 = vmatmul.mubr.msk.bf16.gmra.mrb[104].mxu1 %vm340_vm0, %v2290_v14  ;;  %v3097_v14 = vshll.u32 %v5620_v46, 16 }
  0xeb   : > { %4809 = vmatprep.mubr.msk.bf16.mxu1 %vm340_vm0, %v2292_v4  ;;  %v3503_v4 = vrot.slane %v5617_v6, 1 }
  0xec   : > { %4842 = vmatmul.mubr.msk.bf16.gmra.mrb[104].mxu0 %vm340_vm0, %v5683_v7 }
  0xed   : > { %v4619_v45 = vpop.f32.mrb[0].mxu1  ;;  %4845 = vmatprep.mubr.msk.bf16.mxu0 %vm340_vm0, %v5688_v13 }
  0xee   : > { %568 = vst.msk [vmem:[#allocation2 + $0x90] sm:$0xff] %vm340_vm0, %v4619_v45  ;;  %v487_v16 = vpop.f32.mrb[1].mxu1  ;;  %v4603_v22 = vpop.f32.mrb[0].mxu0  ;;  %v3093_v45 = vsel %vm590_vm1, %v3089_v44, %v3092_v11 }
  0xef   : > { %566 = vst.msk [vmem:[#allocation2 + $0x80] sm:$0xff] %vm340_vm0, %v487_v16  ;;  %v4620_v15 = vpop.f32.mrb[2].mxu1  ;;  %552 = vst.msk [vmem:[#allocation2 + $0x10] sm:$0xff] %vm340_vm0, %v4603_v22  ;;  %v423_v26 = vpop.f32.mrb[1].mxu0  ;;  %v3101_v16 = vshrl.u32 %v5620_v46, 16  ;;  %v3504_v22 = vsel %vm1029_vm2, %v3501_v57, %v3503_v4 }
  0xf0   : > { %569 = vst.msk [vmem:[#allocation2 + $0x98] sm:$0xff] %vm340_vm0, %v4620_v15  ;;  %v490_v19 = vpop.f32.mrb[3].mxu1  ;;  %550 = vst.msk [vmem:[#allocation2] sm:$0xff] %vm340_vm0, %v423_v26  ;;  %v4604_v32 = vpop.f32.mrb[2].mxu0  ;;  %v3099_v15 = vrot.slane %v3097_v14, 1  ;;  %v3106_v26 = vrot.slane %v3104_v18, 1 }
  0xf1   : > { %567 = vst.msk [vmem:[#allocation2 + $0x88] sm:$0xff] %vm340_vm0, %v490_v19  ;;  %553 = vst.msk [vmem:[#allocation2 + $0x18] sm:$0xff] %vm340_vm0, %v4604_v32  ;;  %v426_v33 = vpop.f32.mrb[3].mxu0  ;;  %v3111_v32 = vshll.u32 %v5636_v51, 16 }
  0xf2   : > { %4810 = vmatmul.mubr.msk.bf16.gmra.mrb[108].mxu1 %vm340_vm0, %v5416_v54  ;;  %551 = vst.msk [vmem:[#allocation2 + $0x8] sm:$0xff] %vm340_vm0, %v426_v33  ;;  %v3497_v54 = vrot.slane %v5579_v38, 1  ;;  %v3103_v19 = vor.u32 %v3101_v16, %v3099_v15  ;;  %v3507_v33 = vrot.slane %v5633_v50, 1  ;;  %v3512_v16 = vsel %vm1029_vm2, %v3509_v47, %v3511_v56 }
  0xf3   : > { %4853 = vmatprep.mubr.msk.bf16.mxu1 %vm340_vm0, %v3065_v27 }
  0xf4   : > { %4846 = vmatmul.mubr.msk.bf16.gmra.mrb[108].mxu0 %vm340_vm0, %v5705_v25  ;;  %v3498_v29 = vsel %vm1029_vm2, %v3495_v21, %v3497_v54  ;;  %v3500_v59 = vsel %vm1029_vm2, %v3497_v54, %v3499_v55  ;;  %v3502_v21 = vsel %vm1029_vm2, %v3499_v55, %v3501_v57  ;;  %v3115_v54 = vshrl.u32 %v5636_v51, 16 }
  0xf5   : > { %v4623_v39 = vpop.f32.mrb[4].mxu1  ;;  %4889 = vmatprep.mubr.msk.bf16.mxu0 %vm340_vm0, %v3496_v20  ;;  %v3100_v20 = vsel %vm590_vm1, %v3096_v23, %v3099_v15  ;;  %v3506_v55 = vsel %vm1029_vm2, %v3503_v4, %v3505_v30  ;;  %v3122_v57 = vshrl.u32 %v5649_v60, 16  ;;  %v3139_v23 = vshll.u32 %v5668_v37, 16 }
  0xf6   : > { %572 = vst.msk [vmem:[#allocation2 + $0xb0] sm:$0xff] %vm340_vm0, %v4623_v39  ;;  %v503_v40 = vpop.f32.mrb[5].mxu1  ;;  %v4607_v49 = vpop.f32.mrb[4].mxu0  ;;  %v3107_v39 = vsel %vm590_vm1, %v3103_v19, %v3106_v26 }
  0xf7   : > { %570 = vst.msk [vmem:[#allocation2 + $0xa0] sm:$0xff] %vm340_vm0, %v503_v40  ;;  %v4624_v1 = vpop.f32.mrb[6].mxu1  ;;  %556 = vst.msk [vmem:[#allocation2 + $0x30] sm:$0xff] %vm340_vm0, %v4607_v49  ;;  %v439_v38 = vpop.f32.mrb[5].mxu0  ;;  %v3118_v40 = vshll.u32 %v5649_v60, 16  ;;  %v3110_v49 = vor.u32 %v3108_v35, %v3106_v26 }
  0xf8   : > { %573 = vst.msk [vmem:[#allocation2 + $0xb8] sm:$0xff] %vm340_vm0, %v4624_v1  ;;  %v506_v41 = vpop.f32.mrb[7].mxu1  ;;  %554 = vst.msk [vmem:[#allocation2 + $0x20] sm:$0xff] %vm340_vm0, %v439_v38  ;;  %v4608_v24 = vpop.f32.mrb[6].mxu0  ;;  %v3113_v1 = vrot.slane %v3111_v32, 1  ;;  %v931_v44 = vld [vmem:[#allocation2 + $0x18] sm:$0xff] }
  0xf9   : > { %571 = vst.msk [vmem:[#allocation2 + $0xa8] sm:$0xff] %vm340_vm0, %v506_v41  ;;  %557 = vst.msk [vmem:[#allocation2 + $0x38] sm:$0xff] %vm340_vm0, %v4608_v24  ;;  %v442_v61 = vpop.f32.mrb[7].mxu0  ;;  %v3120_v41 = vrot.slane %v3118_v40, 1  ;;  %v929_v51 = vld [vmem:[#allocation2 + $0x8] sm:$0xff] }
  0xfa   : > { %4854 = vmatmul.mubr.msk.bf16.vlgmr.msra.gmra.mrb[112].mxu1 %vm340_vm0, %v3072_v43  ;;  %555 = vst.msk [vmem:[#allocation2 + $0x28] sm:$0xff] %vm340_vm0, %v442_v61  ;;  %v3508_v43 = vsel %vm1029_vm2, %v3505_v30, %v3507_v33  ;;  %v3117_v42 = vor.u32 %v3115_v54, %v3113_v1  ;;  %v3125_v61 = vshll.u32 %v5652_v63, 16  ;;  %v3114_v11 = vsel %vm590_vm1, %v3110_v49, %v3113_v1 }
  0xfb   : > { %4857 = vmatprep.mubr.msk.bf16.mxu1 %vm340_vm0, %v3079_v17  ;;  %v930_v17 = vld [vmem:[#allocation2 + $0x10] sm:$0xff]  ;;  %v3124_v18 = vor.u32 %v3122_v57, %v3120_v41  ;;  %v3136_v30 = vshrl.u32 %v5665_v3, 16 }
  0xfc   : > { %4890 = vmatmul.mubr.msk.bf16.vlgmr.msra.gmra.mrb[112].mxu0 %vm340_vm0, %v3498_v29  ;;  %v928_v29 = vld [vmem:[#allocation2] sm:$0xff] }
  0xfd   : > { %v4627_v2 = vpop.f32.mrb[8].mxu1  ;;  %4893 = vmatprep.mubr.msk.bf16.mxu0 %vm340_vm0, %v3500_v59 }
  0xfe   : > { %576 = vst.msk [vmem:[#allocation2 + $0xd0] sm:$0xff] %vm340_vm0, %v4627_v2  ;;  %v519_v0 = vpop.f32.mrb[9].mxu1  ;;  %v4611_v8 = vpop.f32.mrb[8].mxu0  ;;  %v934_v15 = vld [vmem:[#allocation2 + $0x30] sm:$0xff] }
  0xff   : > { %574 = vst.msk [vmem:[#allocation2 + $0xc0] sm:$0xff] %vm340_vm0, %v519_v0  ;;  %v4628_v9 = vpop.f32.mrb[10].mxu1  ;;  %560 = vst.msk [vmem:[#allocation2 + $0x50] sm:$0xff] %vm340_vm0, %v4611_v8  ;;  %v455_v12 = vpop.f32.mrb[9].mxu0  ;;  %v3132_v8 = vshll.u32 %v5665_v3, 16 }
 0x100   : > { %577 = vst.msk [vmem:[#allocation2 + $0xd8] sm:$0xff] %vm340_vm0, %v4628_v9  ;;  %v522_v28 = vpop.f32.mrb[11].mxu1  ;;  %558 = vst.msk [vmem:[#allocation2 + $0x40] sm:$0xff] %vm340_vm0, %v455_v12  ;;  %v4612_v62 = vpop.f32.mrb[10].mxu0  ;;  %v3121_v9 = vsel %vm590_vm1, %v3117_v42, %v3120_v41  ;;  %v3510_v12 = vsel %vm1029_vm2, %v3507_v33, %v3509_v47 }
 0x101   : > { %575 = vst.msk [vmem:[#allocation2 + $0xc8] sm:$0xff] %vm340_vm0, %v522_v28  ;;  %561 = vst.msk [vmem:[#allocation2 + $0x58] sm:$0xff] %vm340_vm0, %v4612_v62  ;;  %v458_v6 = vpop.f32.mrb[11].mxu0 }
 0x102   : > { %4858 = vmatmul.mubr.msk.bf16.gmra.mrb[116].mxu1 %vm340_vm0, %v3086_v10  ;;  %559 = vst.msk [vmem:[#allocation2 + $0x48] sm:$0xff] %vm340_vm0, %v458_v6  ;;  %v3129_v10 = vshrl.u32 %v5652_v63, 16 }
 0x103   : > { %4861 = vmatprep.mubr.msk.bf16.mxu1 %vm340_vm0, %v3093_v45  ;;  %v3127_v45 = vrot.slane %v3125_v61, 1 }
 0x104   : > { %4894 = vmatmul.mubr.msk.bf16.gmra.mrb[116].mxu0 %vm340_vm0, %v3502_v21  ;;  %v3134_v21 = vrot.slane %v3132_v8, 1 }
 0x105   : > { %v4631_v27 = vpop.f32.mrb[12].mxu1  ;;  %4897 = vmatprep.mubr.msk.bf16.mxu0 %vm340_vm0, %v3504_v22  ;;  %v3131_v62 = vor.u32 %v3129_v10, %v3127_v45  ;;  %v3513_v22 = vrot.slane %v5652_v63, 1  ;;  %v3146_v63 = vshll.u32 %v5683_v7, 16 }
 0x106   : > { %580 = vst.msk [vmem:[#allocation2 + $0xf0] sm:$0xff] %vm340_vm0, %v4631_v27  ;;  %v535_v31 = vpop.f32.mrb[13].mxu1  ;;  %v4615_v5 = vpop.f32.mrb[12].mxu0  ;;  %v932_v27 = vld [vmem:[#allocation2 + $0x20] sm:$0xff]  ;;  %v3138_v61 = vor.u32 %v3136_v30, %v3134_v21 }
 0x107   : > { %578 = vst.msk [vmem:[#allocation2 + $0xe0] sm:$0xff] %vm340_vm0, %v535_v31  ;;  %v4632_v34 = vpop.f32.mrb[14].mxu1  ;;  %564 = vst.msk [vmem:[#allocation2 + $0x70] sm:$0xff] %vm340_vm0, %v4615_v5  ;;  %v471_v46 = vpop.f32.mrb[13].mxu0  ;;  %v3515_v31 = vrot.slane %v5665_v3, 1  ;;  %v3128_v5 = vsel %vm590_vm1, %v3124_v18, %v3127_v45  ;;  %v3514_v41 = vsel %vm1029_vm2, %v3511_v56, %v3513_v22 }
 0x108   : > { %581 = vst.msk [vmem:[#allocation2 + $0xf8] sm:$0xff] %vm340_vm0, %v4632_v34  ;;  %v538_v52 = vpop.f32.mrb[15].mxu1  ;;  %562 = vst.msk [vmem:[#allocation2 + $0x60] sm:$0xff] %vm340_vm0, %v471_v46  ;;  %v4616_v53 = vpop.f32.mrb[14].mxu0  ;;  %v939_v8 = vld [vmem:[#allocation2 + $0x58] sm:$0xff] }
 0x109   : > { %579 = vst.msk [vmem:[#allocation2 + $0xe8] sm:$0xff] %vm340_vm0, %v538_v52  ;;  %565 = vst.msk [vmem:[#allocation2 + $0x78] sm:$0xff] %vm340_vm0, %v4616_v53  ;;  %v474_v50 = vpop.f32.mrb[15].mxu0  ;;  %v3143_v52 = vshrl.u32 %v5668_v37, 16  ;;  %v933_v53 = vld [vmem:[#allocation2 + $0x28] sm:$0xff] }
 0x10a   : > { %4862 = vmatmul.mubr.msk.bf16.gmra.mrb[120].mxu1 %vm340_vm0, %v3100_v20  ;;  %563 = vst.msk [vmem:[#allocation2 + $0x68] sm:$0xff] %vm340_vm0, %v474_v50  ;;  %v935_v20 = vld [vmem:[#allocation2 + $0x38] sm:$0xff]  ;;  %v3135_v50 = vsel %vm590_vm1, %v3131_v62, %v3134_v21  ;;  %v937_v62 = vld [vmem:[#allocation2 + $0x48] sm:$0xff] }
 0x10b   : > { %4865 = vmatprep.mubr.msk.bf16.mxu1 %vm340_vm0, %v3107_v39 }
 0x10c   : > { %4898 = vmatmul.mubr.msk.bf16.gmra.mrb[120].mxu0 %vm340_vm0, %v3506_v55 }
 0x10d   : > { %v4639_v38 = vpop.f32.mrb[16].mxu1  ;;  %4901 = vmatprep.mubr.msk.bf16.mxu0 %vm340_vm0, %v3508_v43 }
 0x10e   : > { %v962_v48 = vadd.f32 %v4639_v38, %v930_v17  ;;  %v801_v24 = vpop.f32.mrb[17].mxu1  ;;  %v3141_v38 = vrot.slane %v3139_v23, 1 }
 0x10f   : > { %v960_v59 = vadd.f32 %v928_v29, %v801_v24  ;;  %v4640_v36 = vpop.f32.mrb[18].mxu1  ;;  %v4675_v2 = vpop.f32.mrb[16].mxu0  ;;  %v3516_v24 = vsel %vm1029_vm2, %v3513_v22, %v3515_v31 }
 0x110   : > { %994 = vst.msk [vmem:[#allocation2 + $0x10] sm:$0xff] %vm340_vm0, %v962_v48  ;;  %v963_v0 = vadd.f32 %v4640_v36, %v931_v44  ;;  %v804_v14 = vpop.f32.mrb[19].mxu1  ;;  %v1157_v4 = vpop.f32.mrb[17].mxu0  ;;  %v3145_v56 = vor.u32 %v3143_v52, %v3141_v38  ;;  %v938_v44 = vld [vmem:[#allocation2 + $0x50] sm:$0xff] }
 0x111   : > { %992 = vst.msk [vmem:[#allocation2] sm:$0xff] %vm340_vm0, %v960_v59  ;;  %v961_v58 = vadd.f32 %v929_v51, %v804_v14  ;;  %v4676_v28 = vpop.f32.mrb[18].mxu0  ;;  %v3148_v59 = vrot.slane %v3146_v63, 1  ;;  %v3153_v14 = vshll.u32 %v5688_v13, 16  ;;  %v3519_v51 = vrot.slane %v5683_v7, 1 }
 0x112   : > { %995 = vst.msk [vmem:[#allocation2 + $0x18] sm:$0xff] %vm340_vm0, %v963_v0  ;;  %4866 = vmatmul.mubr.msk.bf16.gmra.mrb[124].mxu1 %vm340_vm0, %v3114_v11  ;;  %v1160_v60 = vpop.f32.mrb[19].mxu0  ;;  %v3517_v11 = vrot.slane %v5668_v37, 1  ;;  %v936_v0 = vld [vmem:[#allocation2 + $0x40] sm:$0xff] }
 0x113   : > { %993 = vst.msk [vmem:[#allocation2 + $0x8] sm:$0xff] %vm340_vm0, %v961_v58  ;;  %4869 = vmatprep.mubr.msk.bf16.mxu1 %vm340_vm0, %v3121_v9  ;;  %v3142_v58 = vsel %vm590_vm1, %v3138_v61, %v3141_v38  ;;  %v3164_v38 = vshrl.u32 %v5705_v25, 16 }
 0x114   : > { %4902 = vmatmul.mubr.msk.bf16.gmra.mrb[124].mxu0 %vm340_vm0, %v3510_v12  ;;  %v3149_v12 = vsel %vm590_vm1, %v3145_v56, %v3148_v59 }
 0x115   : > { %v4643_v6 = vpop.f32.mrb[20].mxu1  ;;  %4905 = vmatprep.mubr.msk.bf16.mxu0 %vm340_vm0, %v3512_v16 }
 0x116   : > { %v966_v19 = vadd.f32 %v4643_v6, %v934_v15  ;;  %v817_v26 = vpop.f32.mrb[21].mxu1  ;;  %v3157_v6 = vshrl.u32 %v5688_v13, 16  ;;  %v3160_v15 = vshll.u32 %v5705_v25, 16 }
 0x117   : > { %v1286_v32 = vld [vmem:[#allocation2 + $0x10] sm:$0xff]  ;;  %v964_v33 = vadd.f32 %v932_v27, %v817_v26  ;;  %v4644_v34 = vpop.f32.mrb[22].mxu1  ;;  %v4679_v35 = vpop.f32.mrb[20].mxu0  ;;  %v3518_v27 = vsel %vm1029_vm2, %v3515_v31, %v3517_v11  ;;  %v5852_v31 = vld [vmem:[%s5148_s7 + $0xa0] ss:$0 sps:$4 sm:$0xff]   ;;  %s4085_s7 = sshll.u32 %s5058_s12, 3 }
 0x118   : > { %v1318_v46 = vadd.f32 %v4675_v2, %v1286_v32  ;;  %998 = vst.msk [vmem:[#allocation2 + $0x30] sm:$0xff] %vm340_vm0, %v966_v19  ;;  %v1284_v39 = vld [vmem:[#allocation2] sm:$0xff]  ;;  %v967_v54 = vadd.f32 %v4644_v34, %v935_v20  ;;  %v820_v40 = vpop.f32.mrb[23].mxu1  ;;  %v1173_v55 = vpop.f32.mrb[21].mxu0  ;;  %v3155_v34 = vrot.slane %v3153_v14, 1  ;;  %v3520_v20 = vsel %vm1029_vm2, %v3517_v11, %v3519_v51  ;;  %p6058_p7 = scmp.lt.s32.totalorder %s4085_s7, 15 }
 0x119   : > { %v1316_v1 = vadd.f32 %v1284_v39, %v1157_v4  ;;  %996 = vst.msk [vmem:[#allocation2 + $0x20] sm:$0xff] %vm340_vm0, %v964_v33  ;;  %v1287_v43 = vld [vmem:[#allocation2 + $0x18] sm:$0xff]  ;;  %v965_v49 = vadd.f32 %v933_v53, %v820_v40  ;;  %v4680_v42 = vpop.f32.mrb[22].mxu0  ;;  %v3162_v52 = vrot.slane %v3160_v15, 1  ;;  %v3521_v39 = vrot.slane %v5688_v13, 1  ;;  %v940_v53 = vld [vmem:[#allocation2 + $0x60] sm:$0xff] }
 0x11a   : > { %1350 = vst.msk [vmem:[#allocation2 + $0x10] sm:$0xff] %vm340_vm0, %v1318_v46  ;;  %v1319_v17 = vadd.f32 %v4676_v28, %v1287_v43  ;;  %999 = vst.msk [vmem:[#allocation2 + $0x38] sm:$0xff] %vm340_vm0, %v967_v54  ;;  %v1285_v47 = vld [vmem:[#allocation2 + $0x8] sm:$0xff]  ;;  %4870 = vmatmul.mubr.msk.bf16.gmra.mrb[128].mxu1 %vm340_vm0, %v3128_v5  ;;  %v1176_v48 = vpop.f32.mrb[23].mxu0  ;;  %v942_v46 = vld [vmem:[#allocation2 + $0x70] sm:$0xff]  ;;  %s6222_s7 = smov (!%p6058_p7, %s4085_s7), 15 }
 0x11b   : > { %1348 = vst.msk [vmem:[#allocation2] sm:$0xff] %vm340_vm0, %v1316_v1  ;;  %v1317_v29 = vadd.f32 %v1285_v47, %v1160_v60  ;;  %997 = vst.msk [vmem:[#allocation2 + $0x28] sm:$0xff] %vm340_vm0, %v965_v49  ;;  %4873 = vmatprep.mubr.msk.bf16.mxu1 %vm340_vm0, %v3135_v50  ;;  %v3150_v60 = vshrl.u32 %v5683_v7, 16  ;;  %v943_v49 = vld [vmem:[#allocation2 + $0x78] sm:$0xff]  ;;  %v3166_v7 = vor.u32 %v3164_v38, %v3162_v52  ;;  %s4086_s12 = sshll.u32 %s6222_s7, 1 }
 0x11c   : > { %1351 = vst.msk [vmem:[#allocation2 + $0x18] sm:$0xff] %vm340_vm0, %v1319_v17  ;;  %4906 = vmatmul.mubr.msk.bf16.gmra.mrb[128].mxu0 %vm340_vm0, %v3514_v41  ;;  %v3168_v17 = vshll.u32 %v5852_v31, 16  ;;  %s6076_s26 = sadd.s32 %s4087_s25, %s4086_s12 }
 0x11d   : > { %1349 = vst.msk [vmem:[#allocation2 + $0x8] sm:$0xff] %vm340_vm0, %v1317_v29  ;;  %v4647_v36 = vpop.f32.mrb[24].mxu1  ;;  %4909 = vmatprep.mubr.msk.bf16.mxu0 %vm340_vm0, %v3516_v24  ;;  %v3152_v3 = vor.u32 %v3150_v60, %v3148_v59  ;;  %v941_v29 = vld [vmem:[#allocation2 + $0x68] sm:$0xff]  ;;  %v944_v60 = vld [vmem:[#allocation2 + $0x80] sm:$0xff]  ;;  %s4088_s13 = sshll.u32 %s6076_s26, 2 }
 0x11e   : > { %v970_v2 = vadd.f32 %v4647_v36, %v938_v44  ;;  %v833_v57 = vpop.f32.mrb[25].mxu1  ;;  %s6097_s4 = scalar_lea.vmem %s6207_s3, %s4088_s13 }
 0x11f   : > { %v1290_v4 = vld [vmem:[#allocation2 + $0x30] sm:$0xff]  ;;  %v968_v9 = vadd.f32 %v936_v0, %v833_v57  ;;  %v4648_v10 = vpop.f32.mrb[26].mxu1  ;;  %v4683_v28 = vpop.f32.mrb[24].mxu0 }
 0x120   : > { %v1322_v45 = vadd.f32 %v4679_v35, %v1290_v4  ;;  %1002 = vst.msk [vmem:[#allocation2 + $0x50] sm:$0xff] %vm340_vm0, %v970_v2  ;;  %v1288_v37 = vld [vmem:[#allocation2 + $0x20] sm:$0xff]  ;;  %v971_v16 = vadd.f32 %v4648_v10, %v939_v8  ;;  %v836_v18 = vpop.f32.mrb[27].mxu1  ;;  %v1189_v21 = vpop.f32.mrb[25].mxu0  ;;  %v3159_v35 = vor.u32 %v3157_v6, %v3155_v34  ;;  %v3522_v2 = vsel %vm1029_vm2, %v3519_v51, %v3521_v39  ;;  %v946_v8 = vld [vmem:[#allocation2 + $0x90] sm:$0xff] }
 0x121   : > { %v1320_v22 = vadd.f32 %v1288_v37, %v1173_v55  ;;  %1000 = vst.msk [vmem:[#allocation2 + $0x40] sm:$0xff] %vm340_vm0, %v968_v9  ;;  %v1291_v23 = vld [vmem:[#allocation2 + $0x38] sm:$0xff]  ;;  %v969_v19 = vadd.f32 %v937_v62, %v836_v18  ;;  %v4684_v26 = vpop.f32.mrb[26].mxu0  ;;  %v3523_v55 = vrot.slane %v5705_v25, 1  ;;  %v3170_v51 = vrot.slane %v3168_v17, 1 }
 0x122   : > { %1354 = vst.msk [vmem:[#allocation2 + $0x30] sm:$0xff] %vm340_vm0, %v1322_v45  ;;  %v1323_v30 = vadd.f32 %v4680_v42, %v1291_v23  ;;  %1003 = vst.msk [vmem:[#allocation2 + $0x58] sm:$0xff] %vm340_vm0, %v971_v16  ;;  %v1289_v32 = vld [vmem:[#allocation2 + $0x28] sm:$0xff]  ;;  %4874 = vmatmul.mubr.msk.bf16.gmra.mrb[132].mxu1 %vm340_vm0, %v3142_v58  ;;  %v1192_v33 = vpop.f32.mrb[27].mxu0  ;;  %v3156_v42 = vsel %vm590_vm1, %v3152_v3, %v3155_v34  ;;  %v3163_v56 = vsel %vm590_vm1, %v3159_v35, %v3162_v52  ;;  %v947_v18 = vld [vmem:[#allocation2 + $0x98] sm:$0xff] }
 0x123   : > { %1352 = vst.msk [vmem:[#allocation2 + $0x20] sm:$0xff] %vm340_vm0, %v1320_v22  ;;  %v1321_v5 = vadd.f32 %v1289_v32, %v1176_v48  ;;  %1001 = vst.msk [vmem:[#allocation2 + $0x48] sm:$0xff] %vm340_vm0, %v969_v19  ;;  %4877 = vmatprep.mubr.msk.bf16.mxu1 %vm340_vm0, %v3149_v12  ;;  %v3524_v4 = vsel %vm1029_vm2, %v3521_v39, %v3523_v55  ;;  %v3525_v58 = vrot.slane %v5852_v31, 1  ;;  %v945_v19 = vld [vmem:[#allocation2 + $0x88] sm:$0xff]  ;;  %v950_v35 = vld [vmem:[#allocation2 + $0xb0] sm:$0xff] }
 0x124   : > { %1355 = vst.msk [vmem:[#allocation2 + $0x38] sm:$0xff] %vm340_vm0, %v1323_v30  ;;  %4910 = vmatmul.mubr.msk.bf16.gmra.mrb[132].mxu0 %vm340_vm0, %v3518_v27  ;;  %v3171_v62 = vsel %vm590_vm1, %v3166_v7, %v3170_v51 }
 0x125   : > { %1353 = vst.msk [vmem:[#allocation2 + $0x28] sm:$0xff] %vm340_vm0, %v1321_v5  ;;  %v4651_v63 = vpop.f32.mrb[28].mxu1  ;;  %4913 = vmatprep.mubr.msk.bf16.mxu0 %vm340_vm0, %v3520_v20  ;;  %v3526_v34 = vsel %vm1029_vm2, %v3523_v55, %v3525_v58 }
 0x126   : > { %v974_v54 = vadd.f32 %v4651_v63, %v942_v46  ;;  %v849_v40 = vpop.f32.mrb[29].mxu1  ;;  %v948_v46 = vld [vmem:[#allocation2 + $0xa0] sm:$0xff] }
 0x127   : > { %v1294_v50 = vld [vmem:[#allocation2 + $0x50] sm:$0xff]  ;;  %v972_v1 = vadd.f32 %v940_v53, %v849_v40  ;;  %v4652_v43 = vpop.f32.mrb[30].mxu1  ;;  %v4687_v41 = vpop.f32.mrb[28].mxu0  ;;  %v951_v53 = vld [vmem:[#allocation2 + $0xb8] sm:$0xff] }
 0x128   : > { %v1326_v47 = vadd.f32 %v4683_v28, %v1294_v50  ;;  %1006 = vst.msk [vmem:[#allocation2 + $0x70] sm:$0xff] %vm340_vm0, %v974_v54  ;;  %v1292_v13 = vld [vmem:[#allocation2 + $0x40] sm:$0xff]  ;;  %v975_v48 = vadd.f32 %v4652_v43, %v943_v49  ;;  %v852_v24 = vpop.f32.mrb[31].mxu1  ;;  %v1205_v61 = vpop.f32.mrb[29].mxu0 }
 0x129   : > { %v1324_v59 = vadd.f32 %v1292_v13, %v1189_v21  ;;  %1004 = vst.msk [vmem:[#allocation2 + $0x60] sm:$0xff] %vm340_vm0, %v972_v1  ;;  %v1295_v36 = vld [vmem:[#allocation2 + $0x58] sm:$0xff]  ;;  %v973_v44 = vadd.f32 %v941_v29, %v852_v24  ;;  %v4688_v11 = vpop.f32.mrb[30].mxu0 }
 0x12a   : > { %1358 = vst.msk [vmem:[#allocation2 + $0x50] sm:$0xff] %vm340_vm0, %v1326_v47  ;;  %v1327_v57 = vadd.f32 %v4684_v26, %v1295_v36  ;;  %1007 = vst.msk [vmem:[#allocation2 + $0x78] sm:$0xff] %vm340_vm0, %v975_v48  ;;  %v1293_v0 = vld [vmem:[#allocation2 + $0x48] sm:$0xff]  ;;  %4878 = vmatmul.mubr.msk.bf16.gmra.mrb[136].mxu1 %vm340_vm0, %v3156_v42  ;;  %v1208_v14 = vpop.f32.mrb[31].mxu0 }
 0x12b   : > { %1356 = vst.msk [vmem:[#allocation2 + $0x40] sm:$0xff] %vm340_vm0, %v1324_v59  ;;  %v1325_v9 = vadd.f32 %v1293_v0, %v1192_v33  ;;  %1005 = vst.msk [vmem:[#allocation2 + $0x68] sm:$0xff] %vm340_vm0, %v973_v44  ;;  %4881 = vmatprep.mubr.msk.bf16.mxu1 %vm340_vm0, %v3163_v56  ;;  %v949_v42 = vld [vmem:[#allocation2 + $0xa8] sm:$0xff]  ;;  %v954_v59 = vld [vmem:[#allocation2 + $0xd0] sm:$0xff] }
 0x12c   : > { %1359 = vst.msk [vmem:[#allocation2 + $0x58] sm:$0xff] %vm340_vm0, %v1327_v57  ;;  %4914 = vmatmul.mubr.msk.bf16.gmra.mrb[136].mxu0 %vm340_vm0, %v3522_v2 }
 0x12d   : > { %1357 = vst.msk [vmem:[#allocation2 + $0x48] sm:$0xff] %vm340_vm0, %v1325_v9  ;;  %v4655_v10 = vpop.f32.mrb[32].mxu1  ;;  %4917 = vmatprep.mubr.msk.bf16.mxu0 %vm340_vm0, %v3524_v4 }
 0x12e   : > { %v978_v28 = vadd.f32 %v4655_v10, %v946_v8  ;;  %v865_v12 = vpop.f32.mrb[33].mxu1  ;;  %v953_v8 = vld [vmem:[#allocation2 + $0xc8] sm:$0xff] }
 0x12f   : > { %v1298_v45 = vld [vmem:[#allocation2 + $0x70] sm:$0xff]  ;;  %v976_v37 = vadd.f32 %v944_v60, %v865_v12  ;;  %v4656_v16 = vpop.f32.mrb[34].mxu1  ;;  %v4691_v21 = vpop.f32.mrb[32].mxu0 }
 0x130   : > { %v1330_v6 = vadd.f32 %v4687_v41, %v1298_v45  ;;  %1010 = vst.msk [vmem:[#allocation2 + $0x90] sm:$0xff] %vm340_vm0, %v978_v28  ;;  %v1296_v15 = vld [vmem:[#allocation2 + $0x60] sm:$0xff]  ;;  %v979_v22 = vadd.f32 %v4656_v16, %v947_v18  ;;  %v868_v23 = vpop.f32.mrb[35].mxu1  ;;  %v1221_v26 = vpop.f32.mrb[33].mxu0 }
 0x131   : > { %v1328_v27 = vadd.f32 %v1296_v15, %v1205_v61  ;;  %1008 = vst.msk [vmem:[#allocation2 + $0x80] sm:$0xff] %vm340_vm0, %v976_v37  ;;  %v1299_v30 = vld [vmem:[#allocation2 + $0x78] sm:$0xff]  ;;  %v977_v32 = vadd.f32 %v945_v19, %v868_v23  ;;  %v4692_v33 = vpop.f32.mrb[34].mxu0  ;;  %v956_v23 = vld [vmem:[#allocation2 + $0xe0] sm:$0xff] }
 0x132   : > { %1362 = vst.msk [vmem:[#allocation2 + $0x70] sm:$0xff] %vm340_vm0, %v1330_v6  ;;  %v1331_v20 = vadd.f32 %v4688_v11, %v1299_v30  ;;  %1011 = vst.msk [vmem:[#allocation2 + $0x98] sm:$0xff] %vm340_vm0, %v979_v22  ;;  %v1297_v5 = vld [vmem:[#allocation2 + $0x68] sm:$0xff]  ;;  %4882 = vmatmul.mubr.msk.bf16.gmra.mrb[140].mxu1 %vm340_vm0, %v3171_v62  ;;  %v1224_v3 = vpop.f32.mrb[35].mxu0  ;;  %v952_v11 = vld [vmem:[#allocation2 + $0xc0] sm:$0xff] }
 0x133   : > { %1360 = vst.msk [vmem:[#allocation2 + $0x60] sm:$0xff] %vm340_vm0, %v1328_v27  ;;  %v1329_v31 = vadd.f32 %v1297_v5, %v1208_v14  ;;  %1009 = vst.msk [vmem:[#allocation2 + $0x88] sm:$0xff] %vm340_vm0, %v977_v32  ;;  %v955_v14 = vld [vmem:[#allocation2 + $0xd8] sm:$0xff]  ;;  %v958_v6 = vld [vmem:[#allocation2 + $0xf0] sm:$0xff] }
 0x134   : > { %1363 = vst.msk [vmem:[#allocation2 + $0x78] sm:$0xff] %vm340_vm0, %v1331_v20  ;;  %4918 = vmatmul.mubr.msk.bf16.gmra.mrb[140].mxu0 %vm340_vm0, %v3526_v34  ;;  %v959_v30 = vld [vmem:[#allocation2 + $0xf8] sm:$0xff] }
 0x135   : > { %1361 = vst.msk [vmem:[#allocation2 + $0x68] sm:$0xff] %vm340_vm0, %v1329_v31  ;;  %v4659_v25 = vpop.f32.mrb[36].mxu1 }
 0x136   : > { %v982_v52 = vadd.f32 %v4659_v25, %v950_v35  ;;  %v881_v63 = vpop.f32.mrb[37].mxu1 }
 0x137   : > { %v1302_v39 = vld [vmem:[#allocation2 + $0x90] sm:$0xff]  ;;  %v980_v54 = vadd.f32 %v948_v46, %v881_v63  ;;  %v4660_v40 = vpop.f32.mrb[38].mxu1  ;;  %v4695_v55 = vpop.f32.mrb[36].mxu0 }
 0x138   : > { %v1334_v50 = vadd.f32 %v4691_v21, %v1302_v39  ;;  %1014 = vst.msk [vmem:[#allocation2 + $0xb0] sm:$0xff] %vm340_vm0, %v982_v52  ;;  %v1300_v1 = vld [vmem:[#allocation2 + $0x80] sm:$0xff]  ;;  %v983_v43 = vadd.f32 %v4660_v40, %v951_v53  ;;  %v884_v49 = vpop.f32.mrb[39].mxu1  ;;  %v1237_v41 = vpop.f32.mrb[37].mxu0 }
 0x139   : > { %v1332_v38 = vadd.f32 %v1300_v1, %v1221_v26  ;;  %1012 = vst.msk [vmem:[#allocation2 + $0xa0] sm:$0xff] %vm340_vm0, %v980_v54  ;;  %v1303_v17 = vld [vmem:[#allocation2 + $0x98] sm:$0xff]  ;;  %v981_v47 = vadd.f32 %v949_v42, %v884_v49  ;;  %v4696_v13 = vpop.f32.mrb[38].mxu0 }
 0x13a   : > { %1366 = vst.msk [vmem:[#allocation2 + $0x90] sm:$0xff] %vm340_vm0, %v1334_v50  ;;  %v1335_v48 = vadd.f32 %v4692_v33, %v1303_v17  ;;  %1015 = vst.msk [vmem:[#allocation2 + $0xb8] sm:$0xff] %vm340_vm0, %v983_v43  ;;  %v1301_v24 = vld [vmem:[#allocation2 + $0x88] sm:$0xff]  ;;  %v1240_v29 = vpop.f32.mrb[39].mxu0  ;;  %v1720_v43 = vld [vmem:[#allocation2] sm:$0xff] }
 0x13b   : > { %1364 = vst.msk [vmem:[#allocation2 + $0x80] sm:$0xff] %vm340_vm0, %v1332_v38  ;;  %v1333_v61 = vadd.f32 %v1301_v24, %v1224_v3  ;;  %1013 = vst.msk [vmem:[#allocation2 + $0xa8] sm:$0xff] %vm340_vm0, %v981_v47  ;;  %v957_v3 = vld [vmem:[#allocation2 + $0xe8] sm:$0xff]  ;;  %v1723_v38 = vld [vmem:[#allocation2 + $0x18] sm:$0xff] }
 0x13c   : > { %1367 = vst.msk [vmem:[#allocation2 + $0x98] sm:$0xff] %vm340_vm0, %v1335_v48 }
 0x13d   : > { %1365 = vst.msk [vmem:[#allocation2 + $0x88] sm:$0xff] %vm340_vm0, %v1333_v61  ;;  %v4663_v56 = vpop.f32.mrb[40].mxu1 }
 0x13e   : > { %v986_v36 = vadd.f32 %v4663_v56, %v954_v59  ;;  %v897_v44 = vpop.f32.mrb[41].mxu1 }
 0x13f   : > { %v1306_v2 = vld [vmem:[#allocation2 + $0xb0] sm:$0xff]  ;;  %v984_v57 = vadd.f32 %v952_v11, %v897_v44  ;;  %v4664_v0 = vpop.f32.mrb[42].mxu1  ;;  %v4699_v4 = vpop.f32.mrb[40].mxu0 }
 0x140   : > { %v1338_v9 = vadd.f32 %v4695_v55, %v1306_v2  ;;  %1018 = vst.msk [vmem:[#allocation2 + $0xd0] sm:$0xff] %vm340_vm0, %v986_v36  ;;  %v1304_v7 = vld [vmem:[#allocation2 + $0xa0] sm:$0xff]  ;;  %v987_v51 = vadd.f32 %v4664_v0, %v955_v14  ;;  %v900_v10 = vpop.f32.mrb[43].mxu1  ;;  %v1253_v58 = vpop.f32.mrb[41].mxu0  ;;  %v1722_v55 = vld [vmem:[#allocation2 + $0x10] sm:$0xff] }
 0x141   : > { %v1336_v28 = vadd.f32 %v1304_v7, %v1237_v41  ;;  %1016 = vst.msk [vmem:[#allocation2 + $0xc0] sm:$0xff] %vm340_vm0, %v984_v57  ;;  %v1307_v12 = vld [vmem:[#allocation2 + $0xb8] sm:$0xff]  ;;  %v985_v60 = vadd.f32 %v953_v8, %v900_v10  ;;  %v4700_v45 = vpop.f32.mrb[42].mxu0 }
 0x142   : > { %1370 = vst.msk [vmem:[#allocation2 + $0xb0] sm:$0xff] %vm340_vm0, %v1338_v9  ;;  %v1339_v37 = vadd.f32 %v4696_v13, %v1307_v12  ;;  %1019 = vst.msk [vmem:[#allocation2 + $0xd8] sm:$0xff] %vm340_vm0, %v987_v51  ;;  %v1305_v16 = vld [vmem:[#allocation2 + $0xa8] sm:$0xff]  ;;  %v1256_v18 = vpop.f32.mrb[43].mxu0  ;;  %v1724_v51 = vld [vmem:[#allocation2 + $0x20] sm:$0xff] }
 0x143   : > { %1368 = vst.msk [vmem:[#allocation2 + $0xa0] sm:$0xff] %vm340_vm0, %v1336_v28  ;;  %v1337_v62 = vadd.f32 %v1305_v16, %v1240_v29  ;;  %1017 = vst.msk [vmem:[#allocation2 + $0xc8] sm:$0xff] %vm340_vm0, %v985_v60  ;;  %v1721_v29 = vld [vmem:[#allocation2 + $0x8] sm:$0xff]  ;;  %v1727_v28 = vld [vmem:[#allocation2 + $0x38] sm:$0xff] }
 0x144   : > { %1371 = vst.msk [vmem:[#allocation2 + $0xb8] sm:$0xff] %vm340_vm0, %v1339_v37 }
 0x145   : > { %1369 = vst.msk [vmem:[#allocation2 + $0xa8] sm:$0xff] %vm340_vm0, %v1337_v62  ;;  %v4667_v21 = vpop.f32.mrb[44].mxu1 }
 0x146   : > { %v990_v15 = vadd.f32 %v4667_v21, %v958_v6  ;;  %v913_v22 = vpop.f32.mrb[45].mxu1 }
 0x147   : > { %v1310_v19 = vld [vmem:[#allocation2 + $0xd0] sm:$0xff]  ;;  %v988_v26 = vadd.f32 %v956_v23, %v913_v22  ;;  %v4668_v27 = vpop.f32.mrb[46].mxu1  ;;  %v4703_v32 = vpop.f32.mrb[44].mxu0 }
 0x148   : > { %v1342_v33 = vadd.f32 %v4699_v4, %v1310_v19  ;;  %1022 = vst.msk [vmem:[#allocation2 + $0xf0] sm:$0xff] %vm340_vm0, %v990_v15  ;;  %v1308_v34 = vld [vmem:[#allocation2 + $0xc0] sm:$0xff]  ;;  %v991_v20 = vadd.f32 %v4668_v27, %v959_v30  ;;  %v916_v5 = vpop.f32.mrb[47].mxu1  ;;  %v1269_v31 = vpop.f32.mrb[45].mxu0  ;;  %v1726_v4 = vld [vmem:[#allocation2 + $0x30] sm:$0xff] }
 0x149   : > { %v1340_v25 = vadd.f32 %v1308_v34, %v1253_v58  ;;  %1020 = vst.msk [vmem:[#allocation2 + $0xe0] sm:$0xff] %vm340_vm0, %v988_v26  ;;  %v1311_v35 = vld [vmem:[#allocation2 + $0xd8] sm:$0xff]  ;;  %v989_v52 = vadd.f32 %v957_v3, %v916_v5  ;;  %v4704_v63 = vpop.f32.mrb[46].mxu0 }
 0x14a   : > { %1374 = vst.msk [vmem:[#allocation2 + $0xd0] sm:$0xff] %vm340_vm0, %v1342_v33  ;;  %v1343_v46 = vadd.f32 %v4700_v45, %v1311_v35  ;;  %1023 = vst.msk [vmem:[#allocation2 + $0xf8] sm:$0xff] %vm340_vm0, %v991_v20  ;;  %v1309_v39 = vld [vmem:[#allocation2 + $0xc8] sm:$0xff]  ;;  %v1272_v54 = vpop.f32.mrb[47].mxu0  ;;  %v1728_v20 = vld [vmem:[#allocation2 + $0x40] sm:$0xff] }
 0x14b   : > { %1372 = vst.msk [vmem:[#allocation2 + $0xc0] sm:$0xff] %vm340_vm0, %v1340_v25  ;;  %v1341_v40 = vadd.f32 %v1309_v39, %v1256_v18  ;;  %1021 = vst.msk [vmem:[#allocation2 + $0xe8] sm:$0xff] %vm340_vm0, %v989_v52  ;;  %v1725_v18 = vld [vmem:[#allocation2 + $0x28] sm:$0xff]  ;;  %v1731_v25 = vld [vmem:[#allocation2 + $0x58] sm:$0xff] }
 0x14c   : > { %1375 = vst.msk [vmem:[#allocation2 + $0xd8] sm:$0xff] %vm340_vm0, %v1343_v46 }
 0x14d   : > { %1373 = vst.msk [vmem:[#allocation2 + $0xc8] sm:$0xff] %vm340_vm0, %v1341_v40  ;;  %v4711_v53 = vpop.f32.mrb[48].mxu1 }
 0x14e   : > { %v1754_v50 = vadd.f32 %v4711_v53, %v1722_v55  ;;  %v1593_v1 = vpop.f32.mrb[49].mxu1 }
 0x14f   : > { %v1314_v49 = vld [vmem:[#allocation2 + $0xf0] sm:$0xff]  ;;  %v1752_v42 = vadd.f32 %v1720_v43, %v1593_v1  ;;  %v4712_v41 = vpop.f32.mrb[50].mxu1  ;;  %v4747_v17 = vpop.f32.mrb[48].mxu0 }
 0x150   : > { %v1346_v47 = vadd.f32 %v4703_v32, %v1314_v49  ;;  %v1312_v13 = vld [vmem:[#allocation2 + $0xe0] sm:$0xff]  ;;  %1786 = vst.msk [vmem:[#allocation2 + $0x10] sm:$0xff] %vm340_vm0, %v1754_v50  ;;  %v1755_v48 = vadd.f32 %v4712_v41, %v1723_v38  ;;  %v1596_v24 = vpop.f32.mrb[51].mxu1  ;;  %v2034_v61 = vpop.f32.mrb[49].mxu0  ;;  %v1730_v32 = vld [vmem:[#allocation2 + $0x50] sm:$0xff] }
 0x151   : > { %v1344_v56 = vadd.f32 %v1312_v13, %v1269_v31  ;;  %v1315_v59 = vld [vmem:[#allocation2 + $0xf8] sm:$0xff]  ;;  %1784 = vst.msk [vmem:[#allocation2] sm:$0xff] %vm340_vm0, %v1752_v42  ;;  %v1753_v36 = vadd.f32 %v1721_v29, %v1596_v24  ;;  %v4748_v44 = vpop.f32.mrb[50].mxu0 }
 0x152   : > { %1378 = vst.msk [vmem:[#allocation2 + $0xf0] sm:$0xff] %vm340_vm0, %v1346_v47  ;;  %v1347_v11 = vadd.f32 %v4704_v63, %v1315_v59  ;;  %v1313_v2 = vld [vmem:[#allocation2 + $0xe8] sm:$0xff]  ;;  %1787 = vst.msk [vmem:[#allocation2 + $0x18] sm:$0xff] %vm340_vm0, %v1755_v48  ;;  %v2037_v57 = vpop.f32.mrb[51].mxu0  ;;  %v1732_v48 = vld [vmem:[#allocation2 + $0x60] sm:$0xff] }
 0x153   : > { %1376 = vst.msk [vmem:[#allocation2 + $0xe0] sm:$0xff] %vm340_vm0, %v1344_v56  ;;  %v1345_v0 = vadd.f32 %v1313_v2, %v1272_v54  ;;  %1785 = vst.msk [vmem:[#allocation2 + $0x8] sm:$0xff] %vm340_vm0, %v1753_v36  ;;  %v1729_v54 = vld [vmem:[#allocation2 + $0x48] sm:$0xff]  ;;  %v1735_v56 = vld [vmem:[#allocation2 + $0x78] sm:$0xff] }
 0x154   : > { %1379 = vst.msk [vmem:[#allocation2 + $0xf8] sm:$0xff] %vm340_vm0, %v1347_v11 }
 0x155   : > { %1377 = vst.msk [vmem:[#allocation2 + $0xe8] sm:$0xff] %vm340_vm0, %v1345_v0  ;;  %v4715_v14 = vpop.f32.mrb[52].mxu1 }
 0x156   : > { %v1758_v9 = vadd.f32 %v4715_v14, %v1726_v4  ;;  %v1609_v7 = vpop.f32.mrb[53].mxu1 }
 0x157   : > { %v2163_v10 = vld [vmem:[#allocation2 + $0x10] sm:$0xff]  ;;  %v1756_v8 = vadd.f32 %v1724_v51, %v1609_v7  ;;  %v4716_v58 = vpop.f32.mrb[54].mxu1  ;;  %v4751_v12 = vpop.f32.mrb[52].mxu0 }
 0x158   : > { %v2195_v60 = vadd.f32 %v4747_v17, %v2163_v10  ;;  %1790 = vst.msk [vmem:[#allocation2 + $0x30] sm:$0xff] %vm340_vm0, %v1758_v9  ;;  %v2161_v45 = vld [vmem:[#allocation2] sm:$0xff]  ;;  %v1759_v37 = vadd.f32 %v4716_v58, %v1727_v28  ;;  %v1612_v16 = vpop.f32.mrb[55].mxu1  ;;  %v2050_v62 = vpop.f32.mrb[53].mxu0  ;;  %v1734_v17 = vld [vmem:[#allocation2 + $0x70] sm:$0xff] }
 0x159   : > { %v2193_v21 = vadd.f32 %v2161_v45, %v2034_v61  ;;  %1788 = vst.msk [vmem:[#allocation2 + $0x20] sm:$0xff] %vm340_vm0, %v1756_v8  ;;  %v2164_v6 = vld [vmem:[#allocation2 + $0x18] sm:$0xff]  ;;  %v1757_v15 = vadd.f32 %v1725_v18, %v1612_v16  ;;  %v4752_v22 = vpop.f32.mrb[54].mxu0 }
 0x15a   : > { %2227 = vst.msk [vmem:[#allocation2 + $0x10] sm:$0xff] %vm340_vm0, %v2195_v60  ;;  %v2196_v23 = vadd.f32 %v4748_v44, %v2164_v6  ;;  %1791 = vst.msk [vmem:[#allocation2 + $0x38] sm:$0xff] %vm340_vm0, %v1759_v37  ;;  %v2162_v19 = vld [vmem:[#allocation2 + $0x8] sm:$0xff]  ;;  %v2053_v26 = vpop.f32.mrb[55].mxu0  ;;  %v1736_v37 = vld [vmem:[#allocation2 + $0x80] sm:$0xff] }
 0x15b   : > { %2225 = vst.msk [vmem:[#allocation2] sm:$0xff] %vm340_vm0, %v2193_v21  ;;  %v2194_v27 = vadd.f32 %v2162_v19, %v2037_v57  ;;  %1789 = vst.msk [vmem:[#allocation2 + $0x28] sm:$0xff] %vm340_vm0, %v1757_v15  ;;  %v1733_v57 = vld [vmem:[#allocation2 + $0x68] sm:$0xff]  ;;  %v1739_v21 = vld [vmem:[#allocation2 + $0x98] sm:$0xff] }
 0x15c   : > { %2228 = vst.msk [vmem:[#allocation2 + $0x18] sm:$0xff] %vm340_vm0, %v2196_v23 }
 0x15d   : > { %2226 = vst.msk [vmem:[#allocation2 + $0x8] sm:$0xff] %vm340_vm0, %v2194_v27  ;;  %v4719_v30 = vpop.f32.mrb[56].mxu1 }
 0x15e   : > { %v1762_v33 = vadd.f32 %v4719_v30, %v1730_v32  ;;  %v1625_v34 = vpop.f32.mrb[57].mxu1 }
 0x15f   : > { %v2167_v5 = vld [vmem:[#allocation2 + $0x30] sm:$0xff]  ;;  %v1760_v3 = vadd.f32 %v1728_v20, %v1625_v34  ;;  %v4720_v31 = vpop.f32.mrb[58].mxu1  ;;  %v4755_v35 = vpop.f32.mrb[56].mxu0 }
 0x160   : > { %v2199_v52 = vadd.f32 %v4751_v12, %v2167_v5  ;;  %1794 = vst.msk [vmem:[#allocation2 + $0x50] sm:$0xff] %vm340_vm0, %v1762_v33  ;;  %v2165_v63 = vld [vmem:[#allocation2 + $0x20] sm:$0xff]  ;;  %v1763_v46 = vadd.f32 %v4720_v31, %v1731_v25  ;;  %v1628_v39 = vpop.f32.mrb[59].mxu1  ;;  %v2066_v40 = vpop.f32.mrb[57].mxu0  ;;  %v1738_v12 = vld [vmem:[#allocation2 + $0x90] sm:$0xff] }
 0x161   : > { %v2197_v53 = vadd.f32 %v2165_v63, %v2050_v62  ;;  %1792 = vst.msk [vmem:[#allocation2 + $0x40] sm:$0xff] %vm340_vm0, %v1760_v3  ;;  %v2168_v55 = vld [vmem:[#allocation2 + $0x38] sm:$0xff]  ;;  %v1761_v50 = vadd.f32 %v1729_v54, %v1628_v39  ;;  %v4756_v1 = vpop.f32.mrb[58].mxu0 }
 0x162   : > { %2231 = vst.msk [vmem:[#allocation2 + $0x30] sm:$0xff] %vm340_vm0, %v2199_v52  ;;  %v2200_v43 = vadd.f32 %v4752_v22, %v2168_v55  ;;  %1795 = vst.msk [vmem:[#allocation2 + $0x58] sm:$0xff] %vm340_vm0, %v1763_v46  ;;  %v2166_v49 = vld [vmem:[#allocation2 + $0x28] sm:$0xff]  ;;  %v2069_v42 = vpop.f32.mrb[59].mxu0  ;;  %v1740_v46 = vld [vmem:[#allocation2 + $0xa0] sm:$0xff] }
 0x163   : > { %2229 = vst.msk [vmem:[#allocation2 + $0x20] sm:$0xff] %vm340_vm0, %v2197_v53  ;;  %v2198_v41 = vadd.f32 %v2166_v49, %v2053_v26  ;;  %1793 = vst.msk [vmem:[#allocation2 + $0x48] sm:$0xff] %vm340_vm0, %v1761_v50  ;;  %v1737_v26 = vld [vmem:[#allocation2 + $0x88] sm:$0xff]  ;;  %v1743_v53 = vld [vmem:[#allocation2 + $0xb8] sm:$0xff] }
 0x164   : > { %2232 = vst.msk [vmem:[#allocation2 + $0x38] sm:$0xff] %vm340_vm0, %v2200_v43 }
 0x165   : > { %2230 = vst.msk [vmem:[#allocation2 + $0x28] sm:$0xff] %vm340_vm0, %v2198_v41  ;;  %v4723_v38 = vpop.f32.mrb[60].mxu1 }
 0x166   : > { %v1766_v47 = vadd.f32 %v4723_v38, %v1734_v17  ;;  %v1641_v13 = vpop.f32.mrb[61].mxu1 }
 0x167   : > { %v2171_v24 = vld [vmem:[#allocation2 + $0x50] sm:$0xff]  ;;  %v1764_v29 = vadd.f32 %v1732_v48, %v1641_v13  ;;  %v4724_v61 = vpop.f32.mrb[62].mxu1  ;;  %v4759_v59 = vpop.f32.mrb[60].mxu0 }
 0x168   : > { %v2203_v36 = vadd.f32 %v4755_v35, %v2171_v24  ;;  %1798 = vst.msk [vmem:[#allocation2 + $0x70] sm:$0xff] %vm340_vm0, %v1766_v47  ;;  %v2169_v44 = vld [vmem:[#allocation2 + $0x40] sm:$0xff]  ;;  %v1767_v11 = vadd.f32 %v4724_v61, %v1735_v56  ;;  %v1644_v2 = vpop.f32.mrb[63].mxu1  ;;  %v2082_v0 = vpop.f32.mrb[61].mxu0  ;;  %v1742_v35 = vld [vmem:[#allocation2 + $0xb0] sm:$0xff] }
 0x169   : > { %v2201_v14 = vadd.f32 %v2169_v44, %v2066_v40  ;;  %1796 = vst.msk [vmem:[#allocation2 + $0x60] sm:$0xff] %vm340_vm0, %v1764_v29  ;;  %v2172_v4 = vld [vmem:[#allocation2 + $0x58] sm:$0xff]  ;;  %v1765_v9 = vadd.f32 %v1733_v57, %v1644_v2  ;;  %v4760_v7 = vpop.f32.mrb[62].mxu0 }
 0x16a   : > { %2235 = vst.msk [vmem:[#allocation2 + $0x50] sm:$0xff] %vm340_vm0, %v2203_v36  ;;  %v2204_v51 = vadd.f32 %v4756_v1, %v2172_v4  ;;  %1799 = vst.msk [vmem:[#allocation2 + $0x78] sm:$0xff] %vm340_vm0, %v1767_v11  ;;  %v2170_v10 = vld [vmem:[#allocation2 + $0x48] sm:$0xff]  ;;  %v2085_v8 = vpop.f32.mrb[63].mxu0  ;;  %v1744_v11 = vld [vmem:[#allocation2 + $0xc0] sm:$0xff] }
 0x16b   : > { %2233 = vst.msk [vmem:[#allocation2 + $0x40] sm:$0xff] %vm340_vm0, %v2201_v14  ;;  %v2202_v58 = vadd.f32 %v2170_v10, %v2069_v42  ;;  %1797 = vst.msk [vmem:[#allocation2 + $0x68] sm:$0xff] %vm340_vm0, %v1765_v9  ;;  %v1741_v42 = vld [vmem:[#allocation2 + $0xa8] sm:$0xff]  ;;  %v1747_v14 = vld [vmem:[#allocation2 + $0xd8] sm:$0xff] }
 0x16c   : > { %2236 = vst.msk [vmem:[#allocation2 + $0x58] sm:$0xff] %vm340_vm0, %v2204_v51 }
 0x16d   : > { %2234 = vst.msk [vmem:[#allocation2 + $0x48] sm:$0xff] %vm340_vm0, %v2202_v58  ;;  %v4727_v28 = vpop.f32.mrb[64].mxu1 }
 0x16e   : > { %v1770_v60 = vadd.f32 %v4727_v28, %v1738_v12  ;;  %v1657_v45 = vpop.f32.mrb[65].mxu1 }
 0x16f   : > { %v2175_v16 = vld [vmem:[#allocation2 + $0x70] sm:$0xff]  ;;  %v1768_v18 = vadd.f32 %v1736_v37, %v1657_v45  ;;  %v4728_v62 = vpop.f32.mrb[66].mxu1  ;;  %v4763_v6 = vpop.f32.mrb[64].mxu0 }
 0x170   : > { %v2207_v15 = vadd.f32 %v4759_v59, %v2175_v16  ;;  %1802 = vst.msk [vmem:[#allocation2 + $0x90] sm:$0xff] %vm340_vm0, %v1770_v60  ;;  %v2173_v22 = vld [vmem:[#allocation2 + $0x60] sm:$0xff]  ;;  %v1771_v23 = vadd.f32 %v4728_v62, %v1739_v21  ;;  %v1660_v19 = vpop.f32.mrb[67].mxu1  ;;  %v2098_v27 = vpop.f32.mrb[65].mxu0  ;;  %v1746_v59 = vld [vmem:[#allocation2 + $0xd0] sm:$0xff] }
 0x171   : > { %v2205_v30 = vadd.f32 %v2173_v22, %v2082_v0  ;;  %1800 = vst.msk [vmem:[#allocation2 + $0x80] sm:$0xff] %vm340_vm0, %v1768_v18  ;;  %v2176_v32 = vld [vmem:[#allocation2 + $0x78] sm:$0xff]  ;;  %v1769_v33 = vadd.f32 %v1737_v26, %v1660_v19  ;;  %v4764_v34 = vpop.f32.mrb[66].mxu0 }
 0x172   : > { %2239 = vst.msk [vmem:[#allocation2 + $0x70] sm:$0xff] %vm340_vm0, %v2207_v15  ;;  %v2208_v20 = vadd.f32 %v4760_v7, %v2176_v32  ;;  %1803 = vst.msk [vmem:[#allocation2 + $0x98] sm:$0xff] %vm340_vm0, %v1771_v23  ;;  %v2174_v5 = vld [vmem:[#allocation2 + $0x68] sm:$0xff]  ;;  %v2101_v3 = vpop.f32.mrb[67].mxu0  ;;  %v1748_v23 = vld [vmem:[#allocation2 + $0xe0] sm:$0xff] }
 0x173   : > { %2237 = vst.msk [vmem:[#allocation2 + $0x60] sm:$0xff] %vm340_vm0, %v2205_v30  ;;  %v2206_v31 = vadd.f32 %v2174_v5, %v2085_v8  ;;  %1801 = vst.msk [vmem:[#allocation2 + $0x88] sm:$0xff] %vm340_vm0, %v1769_v33  ;;  %v1745_v8 = vld [vmem:[#allocation2 + $0xc8] sm:$0xff]  ;;  %v1751_v30 = vld [vmem:[#allocation2 + $0xf8] sm:$0xff] }
 0x174   : > { %2240 = vst.msk [vmem:[#allocation2 + $0x78] sm:$0xff] %vm340_vm0, %v2208_v20 }
 0x175   : > { %2238 = vst.msk [vmem:[#allocation2 + $0x68] sm:$0xff] %vm340_vm0, %v2206_v31  ;;  %v4731_v25 = vpop.f32.mrb[68].mxu1 }
 0x176   : > { %v1774_v52 = vadd.f32 %v4731_v25, %v1742_v35  ;;  %v1673_v63 = vpop.f32.mrb[69].mxu1 }
 0x177   : > { %v2179_v39 = vld [vmem:[#allocation2 + $0x90] sm:$0xff]  ;;  %v1772_v54 = vadd.f32 %v1740_v46, %v1673_v63  ;;  %v4732_v40 = vpop.f32.mrb[70].mxu1  ;;  %v4767_v55 = vpop.f32.mrb[68].mxu0 }
 0x178   : > { %v2211_v50 = vadd.f32 %v4763_v6, %v2179_v39  ;;  %1806 = vst.msk [vmem:[#allocation2 + $0xb0] sm:$0xff] %vm340_vm0, %v1774_v52  ;;  %v2177_v1 = vld [vmem:[#allocation2 + $0x80] sm:$0xff]  ;;  %v1775_v43 = vadd.f32 %v4732_v40, %v1743_v53  ;;  %v1676_v49 = vpop.f32.mrb[71].mxu1  ;;  %v2114_v41 = vpop.f32.mrb[69].mxu0  ;;  %v1750_v6 = vld [vmem:[#allocation2 + $0xf0] sm:$0xff] }
 0x179   : > { %v2209_v38 = vadd.f32 %v2177_v1, %v2098_v27  ;;  %1804 = vst.msk [vmem:[#allocation2 + $0xa0] sm:$0xff] %vm340_vm0, %v1772_v54  ;;  %v2180_v17 = vld [vmem:[#allocation2 + $0x98] sm:$0xff]  ;;  %v1773_v47 = vadd.f32 %v1741_v42, %v1676_v49  ;;  %v4768_v13 = vpop.f32.mrb[70].mxu0 }
 0x17a   : > { %2243 = vst.msk [vmem:[#allocation2 + $0x90] sm:$0xff] %vm340_vm0, %v2211_v50  ;;  %v2212_v48 = vadd.f32 %v4764_v34, %v2180_v17  ;;  %1807 = vst.msk [vmem:[#allocation2 + $0xb8] sm:$0xff] %vm340_vm0, %v1775_v43  ;;  %v2178_v24 = vld [vmem:[#allocation2 + $0x88] sm:$0xff]  ;;  %v2117_v29 = vpop.f32.mrb[71].mxu0  ;;  %v2516_v43 = vld [vmem:[#allocation2] sm:$0xff] }
 0x17b   : > { %2241 = vst.msk [vmem:[#allocation2 + $0x80] sm:$0xff] %vm340_vm0, %v2209_v38  ;;  %v2210_v61 = vadd.f32 %v2178_v24, %v2101_v3  ;;  %1805 = vst.msk [vmem:[#allocation2 + $0xa8] sm:$0xff] %vm340_vm0, %v1773_v47  ;;  %v1749_v3 = vld [vmem:[#allocation2 + $0xe8] sm:$0xff]  ;;  %v2519_v38 = vld [vmem:[#allocation2 + $0x18] sm:$0xff] }
 0x17c   : > { %2244 = vst.msk [vmem:[#allocation2 + $0x98] sm:$0xff] %vm340_vm0, %v2212_v48 }
 0x17d   : > { %2242 = vst.msk [vmem:[#allocation2 + $0x88] sm:$0xff] %vm340_vm0, %v2210_v61  ;;  %v4735_v56 = vpop.f32.mrb[72].mxu1 }
 0x17e   : > { %v1778_v36 = vadd.f32 %v4735_v56, %v1746_v59  ;;  %v1689_v44 = vpop.f32.mrb[73].mxu1 }
 0x17f   : > { %v2183_v2 = vld [vmem:[#allocation2 + $0xb0] sm:$0xff]  ;;  %v1776_v57 = vadd.f32 %v1744_v11, %v1689_v44  ;;  %v4736_v0 = vpop.f32.mrb[74].mxu1  ;;  %v4771_v4 = vpop.f32.mrb[72].mxu0 }
 0x180   : > { %v2215_v9 = vadd.f32 %v4767_v55, %v2183_v2  ;;  %1810 = vst.msk [vmem:[#allocation2 + $0xd0] sm:$0xff] %vm340_vm0, %v1778_v36  ;;  %v2181_v7 = vld [vmem:[#allocation2 + $0xa0] sm:$0xff]  ;;  %v1779_v51 = vadd.f32 %v4736_v0, %v1747_v14  ;;  %v1692_v10 = vpop.f32.mrb[75].mxu1  ;;  %v2130_v58 = vpop.f32.mrb[73].mxu0  ;;  %v2518_v55 = vld [vmem:[#allocation2 + $0x10] sm:$0xff] }
 0x181   : > { %v2213_v28 = vadd.f32 %v2181_v7, %v2114_v41  ;;  %1808 = vst.msk [vmem:[#allocation2 + $0xc0] sm:$0xff] %vm340_vm0, %v1776_v57  ;;  %v2184_v12 = vld [vmem:[#allocation2 + $0xb8] sm:$0xff]  ;;  %v1777_v60 = vadd.f32 %v1745_v8, %v1692_v10  ;;  %v4772_v45 = vpop.f32.mrb[74].mxu0 }
 0x182   : > { %2247 = vst.msk [vmem:[#allocation2 + $0xb0] sm:$0xff] %vm340_vm0, %v2215_v9  ;;  %v2216_v37 = vadd.f32 %v4768_v13, %v2184_v12  ;;  %1811 = vst.msk [vmem:[#allocation2 + $0xd8] sm:$0xff] %vm340_vm0, %v1779_v51  ;;  %v2182_v16 = vld [vmem:[#allocation2 + $0xa8] sm:$0xff]  ;;  %v2133_v18 = vpop.f32.mrb[75].mxu0  ;;  %v2520_v51 = vld [vmem:[#allocation2 + $0x20] sm:$0xff] }
 0x183   : > { %2245 = vst.msk [vmem:[#allocation2 + $0xa0] sm:$0xff] %vm340_vm0, %v2213_v28  ;;  %v2214_v62 = vadd.f32 %v2182_v16, %v2117_v29  ;;  %1809 = vst.msk [vmem:[#allocation2 + $0xc8] sm:$0xff] %vm340_vm0, %v1777_v60  ;;  %v2517_v29 = vld [vmem:[#allocation2 + $0x8] sm:$0xff]  ;;  %v2523_v28 = vld [vmem:[#allocation2 + $0x38] sm:$0xff] }
 0x184   : > { %2248 = vst.msk [vmem:[#allocation2 + $0xb8] sm:$0xff] %vm340_vm0, %v2216_v37 }
 0x185   : > { %2246 = vst.msk [vmem:[#allocation2 + $0xa8] sm:$0xff] %vm340_vm0, %v2214_v62  ;;  %v4739_v21 = vpop.f32.mrb[76].mxu1 }
 0x186   : > { %v1782_v15 = vadd.f32 %v4739_v21, %v1750_v6  ;;  %v1705_v22 = vpop.f32.mrb[77].mxu1 }
 0x187   : > { %v2187_v19 = vld [vmem:[#allocation2 + $0xd0] sm:$0xff]  ;;  %v1780_v26 = vadd.f32 %v1748_v23, %v1705_v22  ;;  %v4740_v27 = vpop.f32.mrb[78].mxu1  ;;  %v4775_v32 = vpop.f32.mrb[76].mxu0 }
 0x188   : > { %v2219_v33 = vadd.f32 %v4771_v4, %v2187_v19  ;;  %1814 = vst.msk [vmem:[#allocation2 + $0xf0] sm:$0xff] %vm340_vm0, %v1782_v15  ;;  %v2185_v34 = vld [vmem:[#allocation2 + $0xc0] sm:$0xff]  ;;  %v1783_v20 = vadd.f32 %v4740_v27, %v1751_v30  ;;  %v1708_v5 = vpop.f32.mrb[79].mxu1  ;;  %v2146_v31 = vpop.f32.mrb[77].mxu0  ;;  %v2522_v4 = vld [vmem:[#allocation2 + $0x30] sm:$0xff] }
 0x189   : > { %v2217_v25 = vadd.f32 %v2185_v34, %v2130_v58  ;;  %1812 = vst.msk [vmem:[#allocation2 + $0xe0] sm:$0xff] %vm340_vm0, %v1780_v26  ;;  %v2188_v35 = vld [vmem:[#allocation2 + $0xd8] sm:$0xff]  ;;  %v1781_v52 = vadd.f32 %v1749_v3, %v1708_v5  ;;  %v4776_v63 = vpop.f32.mrb[78].mxu0 }
 0x18a   : > { %2251 = vst.msk [vmem:[#allocation2 + $0xd0] sm:$0xff] %vm340_vm0, %v2219_v33  ;;  %v2220_v46 = vadd.f32 %v4772_v45, %v2188_v35  ;;  %1815 = vst.msk [vmem:[#allocation2 + $0xf8] sm:$0xff] %vm340_vm0, %v1783_v20  ;;  %v2186_v39 = vld [vmem:[#allocation2 + $0xc8] sm:$0xff]  ;;  %v2149_v54 = vpop.f32.mrb[79].mxu0  ;;  %v2524_v20 = vld [vmem:[#allocation2 + $0x40] sm:$0xff] }
 0x18b   : > { %2249 = vst.msk [vmem:[#allocation2 + $0xc0] sm:$0xff] %vm340_vm0, %v2217_v25  ;;  %v2218_v40 = vadd.f32 %v2186_v39, %v2133_v18  ;;  %1813 = vst.msk [vmem:[#allocation2 + $0xe8] sm:$0xff] %vm340_vm0, %v1781_v52  ;;  %v2521_v18 = vld [vmem:[#allocation2 + $0x28] sm:$0xff]  ;;  %v2527_v25 = vld [vmem:[#allocation2 + $0x58] sm:$0xff] }
 0x18c   : > { %2252 = vst.msk [vmem:[#allocation2 + $0xd8] sm:$0xff] %vm340_vm0, %v2220_v46 }
 0x18d   : > { %2250 = vst.msk [vmem:[#allocation2 + $0xc8] sm:$0xff] %vm340_vm0, %v2218_v40  ;;  %v4783_v53 = vpop.f32.mrb[80].mxu1 }
 0x18e   : > { %v2550_v50 = vadd.f32 %v4783_v53, %v2518_v55  ;;  %v2389_v1 = vpop.f32.mrb[81].mxu1 }
 0x18f   : > { %v2191_v49 = vld [vmem:[#allocation2 + $0xf0] sm:$0xff]  ;;  %v2548_v42 = vadd.f32 %v2516_v43, %v2389_v1  ;;  %v4784_v41 = vpop.f32.mrb[82].mxu1  ;;  %v4819_v17 = vpop.f32.mrb[80].mxu0 }
 0x190   : > { %v2223_v47 = vadd.f32 %v4775_v32, %v2191_v49  ;;  %v2189_v13 = vld [vmem:[#allocation2 + $0xe0] sm:$0xff]  ;;  %2582 = vst.msk [vmem:[#allocation2 + $0x10] sm:$0xff] %vm340_vm0, %v2550_v50  ;;  %v2551_v48 = vadd.f32 %v4784_v41, %v2519_v38  ;;  %v2392_v24 = vpop.f32.mrb[83].mxu1  ;;  %v2825_v61 = vpop.f32.mrb[81].mxu0  ;;  %v2526_v32 = vld [vmem:[#allocation2 + $0x50] sm:$0xff] }
 0x191   : > { %v2221_v56 = vadd.f32 %v2189_v13, %v2146_v31  ;;  %v2192_v59 = vld [vmem:[#allocation2 + $0xf8] sm:$0xff]  ;;  %2580 = vst.msk [vmem:[#allocation2] sm:$0xff] %vm340_vm0, %v2548_v42  ;;  %v2549_v36 = vadd.f32 %v2517_v29, %v2392_v24  ;;  %v4820_v44 = vpop.f32.mrb[82].mxu0 }
 0x192   : > { %2255 = vst.msk [vmem:[#allocation2 + $0xf0] sm:$0xff] %vm340_vm0, %v2223_v47  ;;  %v2224_v11 = vadd.f32 %v4776_v63, %v2192_v59  ;;  %v2190_v2 = vld [vmem:[#allocation2 + $0xe8] sm:$0xff]  ;;  %2583 = vst.msk [vmem:[#allocation2 + $0x18] sm:$0xff] %vm340_vm0, %v2551_v48  ;;  %v2828_v57 = vpop.f32.mrb[83].mxu0  ;;  %v2528_v48 = vld [vmem:[#allocation2 + $0x60] sm:$0xff] }
 0x193   : > { %2253 = vst.msk [vmem:[#allocation2 + $0xe0] sm:$0xff] %vm340_vm0, %v2221_v56  ;;  %v2222_v0 = vadd.f32 %v2190_v2, %v2149_v54  ;;  %2581 = vst.msk [vmem:[#allocation2 + $0x8] sm:$0xff] %vm340_vm0, %v2549_v36  ;;  %v2525_v54 = vld [vmem:[#allocation2 + $0x48] sm:$0xff]  ;;  %v2531_v56 = vld [vmem:[#allocation2 + $0x78] sm:$0xff] }
 0x194   : > { %2256 = vst.msk [vmem:[#allocation2 + $0xf8] sm:$0xff] %vm340_vm0, %v2224_v11 }
 0x195   : > { %2254 = vst.msk [vmem:[#allocation2 + $0xe8] sm:$0xff] %vm340_vm0, %v2222_v0  ;;  %v4787_v14 = vpop.f32.mrb[84].mxu1 }
 0x196   : > { %v2554_v9 = vadd.f32 %v4787_v14, %v2522_v4  ;;  %v2405_v7 = vpop.f32.mrb[85].mxu1 }
 0x197   : > { %v2954_v10 = vld [vmem:[#allocation2 + $0x10] sm:$0xff]  ;;  %v2552_v8 = vadd.f32 %v2520_v51, %v2405_v7  ;;  %v4788_v58 = vpop.f32.mrb[86].mxu1  ;;  %v4823_v12 = vpop.f32.mrb[84].mxu0 }
 0x198   : > { %v2986_v60 = vadd.f32 %v4819_v17, %v2954_v10  ;;  %2586 = vst.msk [vmem:[#allocation2 + $0x30] sm:$0xff] %vm340_vm0, %v2554_v9  ;;  %v2952_v45 = vld [vmem:[#allocation2] sm:$0xff]  ;;  %v2555_v37 = vadd.f32 %v4788_v58, %v2523_v28  ;;  %v2408_v16 = vpop.f32.mrb[87].mxu1  ;;  %v2841_v62 = vpop.f32.mrb[85].mxu0  ;;  %v2530_v17 = vld [vmem:[#allocation2 + $0x70] sm:$0xff] }
 0x199   : > { %v2984_v21 = vadd.f32 %v2952_v45, %v2825_v61  ;;  %2584 = vst.msk [vmem:[#allocation2 + $0x20] sm:$0xff] %vm340_vm0, %v2552_v8  ;;  %v2955_v6 = vld [vmem:[#allocation2 + $0x18] sm:$0xff]  ;;  %v2553_v15 = vadd.f32 %v2521_v18, %v2408_v16  ;;  %v4824_v22 = vpop.f32.mrb[86].mxu0 }
 0x19a   : > { %3018 = vst.msk [vmem:[#allocation2 + $0x10] sm:$0xff] %vm340_vm0, %v2986_v60  ;;  %v2987_v23 = vadd.f32 %v4820_v44, %v2955_v6  ;;  %2587 = vst.msk [vmem:[#allocation2 + $0x38] sm:$0xff] %vm340_vm0, %v2555_v37  ;;  %v2953_v19 = vld [vmem:[#allocation2 + $0x8] sm:$0xff]  ;;  %v2844_v26 = vpop.f32.mrb[87].mxu0  ;;  %v2532_v37 = vld [vmem:[#allocation2 + $0x80] sm:$0xff] }
 0x19b   : > { %3016 = vst.msk [vmem:[#allocation2] sm:$0xff] %vm340_vm0, %v2984_v21  ;;  %v2985_v27 = vadd.f32 %v2953_v19, %v2828_v57  ;;  %2585 = vst.msk [vmem:[#allocation2 + $0x28] sm:$0xff] %vm340_vm0, %v2553_v15  ;;  %v2529_v57 = vld [vmem:[#allocation2 + $0x68] sm:$0xff]  ;;  %v2535_v21 = vld [vmem:[#allocation2 + $0x98] sm:$0xff] }
 0x19c   : > { %3019 = vst.msk [vmem:[#allocation2 + $0x18] sm:$0xff] %vm340_vm0, %v2987_v23 }
 0x19d   : > { %3017 = vst.msk [vmem:[#allocation2 + $0x8] sm:$0xff] %vm340_vm0, %v2985_v27  ;;  %v4791_v30 = vpop.f32.mrb[88].mxu1 }
 0x19e   : > { %v2558_v33 = vadd.f32 %v4791_v30, %v2526_v32  ;;  %v2421_v34 = vpop.f32.mrb[89].mxu1 }
 0x19f   : > { %v2958_v5 = vld [vmem:[#allocation2 + $0x30] sm:$0xff]  ;;  %v2556_v3 = vadd.f32 %v2524_v20, %v2421_v34  ;;  %v4792_v31 = vpop.f32.mrb[90].mxu1  ;;  %v4827_v35 = vpop.f32.mrb[88].mxu0 }
 0x1a0   : > { %v2990_v52 = vadd.f32 %v4823_v12, %v2958_v5  ;;  %2590 = vst.msk [vmem:[#allocation2 + $0x50] sm:$0xff] %vm340_vm0, %v2558_v33  ;;  %v2956_v63 = vld [vmem:[#allocation2 + $0x20] sm:$0xff]  ;;  %v2559_v46 = vadd.f32 %v4792_v31, %v2527_v25  ;;  %v2424_v39 = vpop.f32.mrb[91].mxu1  ;;  %v2857_v40 = vpop.f32.mrb[89].mxu0  ;;  %v2534_v12 = vld [vmem:[#allocation2 + $0x90] sm:$0xff] }
 0x1a1   : > { %v2988_v53 = vadd.f32 %v2956_v63, %v2841_v62  ;;  %2588 = vst.msk [vmem:[#allocation2 + $0x40] sm:$0xff] %vm340_vm0, %v2556_v3  ;;  %v2959_v55 = vld [vmem:[#allocation2 + $0x38] sm:$0xff]  ;;  %v2557_v50 = vadd.f32 %v2525_v54, %v2424_v39  ;;  %v4828_v1 = vpop.f32.mrb[90].mxu0 }
 0x1a2   : > { %3022 = vst.msk [vmem:[#allocation2 + $0x30] sm:$0xff] %vm340_vm0, %v2990_v52  ;;  %v2991_v43 = vadd.f32 %v4824_v22, %v2959_v55  ;;  %2591 = vst.msk [vmem:[#allocation2 + $0x58] sm:$0xff] %vm340_vm0, %v2559_v46  ;;  %v2957_v49 = vld [vmem:[#allocation2 + $0x28] sm:$0xff]  ;;  %v2860_v42 = vpop.f32.mrb[91].mxu0  ;;  %v2536_v46 = vld [vmem:[#allocation2 + $0xa0] sm:$0xff] }
 0x1a3   : > { %3020 = vst.msk [vmem:[#allocation2 + $0x20] sm:$0xff] %vm340_vm0, %v2988_v53  ;;  %v2989_v41 = vadd.f32 %v2957_v49, %v2844_v26  ;;  %2589 = vst.msk [vmem:[#allocation2 + $0x48] sm:$0xff] %vm340_vm0, %v2557_v50  ;;  %v2533_v26 = vld [vmem:[#allocation2 + $0x88] sm:$0xff]  ;;  %v2539_v53 = vld [vmem:[#allocation2 + $0xb8] sm:$0xff] }
 0x1a4   : > { %3023 = vst.msk [vmem:[#allocation2 + $0x38] sm:$0xff] %vm340_vm0, %v2991_v43 }
 0x1a5   : > { %3021 = vst.msk [vmem:[#allocation2 + $0x28] sm:$0xff] %vm340_vm0, %v2989_v41  ;;  %v4795_v38 = vpop.f32.mrb[92].mxu1 }
 0x1a6   : > { %v2562_v47 = vadd.f32 %v4795_v38, %v2530_v17  ;;  %v2437_v13 = vpop.f32.mrb[93].mxu1 }
 0x1a7   : > { %v2962_v24 = vld [vmem:[#allocation2 + $0x50] sm:$0xff]  ;;  %v2560_v29 = vadd.f32 %v2528_v48, %v2437_v13  ;;  %v4796_v61 = vpop.f32.mrb[94].mxu1  ;;  %v4831_v59 = vpop.f32.mrb[92].mxu0 }
 0x1a8   : > { %v2994_v36 = vadd.f32 %v4827_v35, %v2962_v24  ;;  %2594 = vst.msk [vmem:[#allocation2 + $0x70] sm:$0xff] %vm340_vm0, %v2562_v47  ;;  %v2960_v44 = vld [vmem:[#allocation2 + $0x40] sm:$0xff]  ;;  %v2563_v11 = vadd.f32 %v4796_v61, %v2531_v56  ;;  %v2440_v2 = vpop.f32.mrb[95].mxu1  ;;  %v2873_v0 = vpop.f32.mrb[93].mxu0  ;;  %v2538_v35 = vld [vmem:[#allocation2 + $0xb0] sm:$0xff] }
 0x1a9   : > { %v2992_v14 = vadd.f32 %v2960_v44, %v2857_v40  ;;  %2592 = vst.msk [vmem:[#allocation2 + $0x60] sm:$0xff] %vm340_vm0, %v2560_v29  ;;  %v2963_v4 = vld [vmem:[#allocation2 + $0x58] sm:$0xff]  ;;  %v2561_v9 = vadd.f32 %v2529_v57, %v2440_v2  ;;  %v4832_v7 = vpop.f32.mrb[94].mxu0 }
 0x1aa   : > { %3026 = vst.msk [vmem:[#allocation2 + $0x50] sm:$0xff] %vm340_vm0, %v2994_v36  ;;  %v2995_v51 = vadd.f32 %v4828_v1, %v2963_v4  ;;  %2595 = vst.msk [vmem:[#allocation2 + $0x78] sm:$0xff] %vm340_vm0, %v2563_v11  ;;  %v2961_v10 = vld [vmem:[#allocation2 + $0x48] sm:$0xff]  ;;  %v2876_v8 = vpop.f32.mrb[95].mxu0  ;;  %v2540_v11 = vld [vmem:[#allocation2 + $0xc0] sm:$0xff] }
 0x1ab   : > { %3024 = vst.msk [vmem:[#allocation2 + $0x40] sm:$0xff] %vm340_vm0, %v2992_v14  ;;  %v2993_v58 = vadd.f32 %v2961_v10, %v2860_v42  ;;  %2593 = vst.msk [vmem:[#allocation2 + $0x68] sm:$0xff] %vm340_vm0, %v2561_v9  ;;  %v2537_v42 = vld [vmem:[#allocation2 + $0xa8] sm:$0xff]  ;;  %v2543_v14 = vld [vmem:[#allocation2 + $0xd8] sm:$0xff] }
 0x1ac   : > { %3027 = vst.msk [vmem:[#allocation2 + $0x58] sm:$0xff] %vm340_vm0, %v2995_v51 }
 0x1ad   : > { %3025 = vst.msk [vmem:[#allocation2 + $0x48] sm:$0xff] %vm340_vm0, %v2993_v58  ;;  %v4799_v28 = vpop.f32.mrb[96].mxu1 }
 0x1ae   : > { %v2566_v60 = vadd.f32 %v4799_v28, %v2534_v12  ;;  %v2453_v45 = vpop.f32.mrb[97].mxu1 }
 0x1af   : > { %v2966_v16 = vld [vmem:[#allocation2 + $0x70] sm:$0xff]  ;;  %v2564_v18 = vadd.f32 %v2532_v37, %v2453_v45  ;;  %v4800_v62 = vpop.f32.mrb[98].mxu1  ;;  %v4835_v6 = vpop.f32.mrb[96].mxu0 }
 0x1b0   : > { %v2998_v15 = vadd.f32 %v4831_v59, %v2966_v16  ;;  %2598 = vst.msk [vmem:[#allocation2 + $0x90] sm:$0xff] %vm340_vm0, %v2566_v60  ;;  %v2964_v22 = vld [vmem:[#allocation2 + $0x60] sm:$0xff]  ;;  %v2567_v23 = vadd.f32 %v4800_v62, %v2535_v21  ;;  %v2456_v19 = vpop.f32.mrb[99].mxu1  ;;  %v2889_v27 = vpop.f32.mrb[97].mxu0  ;;  %v2542_v59 = vld [vmem:[#allocation2 + $0xd0] sm:$0xff] }
 0x1b1   : > { %v2996_v30 = vadd.f32 %v2964_v22, %v2873_v0  ;;  %2596 = vst.msk [vmem:[#allocation2 + $0x80] sm:$0xff] %vm340_vm0, %v2564_v18  ;;  %v2967_v32 = vld [vmem:[#allocation2 + $0x78] sm:$0xff]  ;;  %v2565_v33 = vadd.f32 %v2533_v26, %v2456_v19  ;;  %v4836_v34 = vpop.f32.mrb[98].mxu0 }
 0x1b2   : > { %3030 = vst.msk [vmem:[#allocation2 + $0x70] sm:$0xff] %vm340_vm0, %v2998_v15  ;;  %v2999_v20 = vadd.f32 %v4832_v7, %v2967_v32  ;;  %2599 = vst.msk [vmem:[#allocation2 + $0x98] sm:$0xff] %vm340_vm0, %v2567_v23  ;;  %v2965_v5 = vld [vmem:[#allocation2 + $0x68] sm:$0xff]  ;;  %v2892_v3 = vpop.f32.mrb[99].mxu0  ;;  %v2544_v23 = vld [vmem:[#allocation2 + $0xe0] sm:$0xff] }
 0x1b3   : > { %3028 = vst.msk [vmem:[#allocation2 + $0x60] sm:$0xff] %vm340_vm0, %v2996_v30  ;;  %v2997_v31 = vadd.f32 %v2965_v5, %v2876_v8  ;;  %2597 = vst.msk [vmem:[#allocation2 + $0x88] sm:$0xff] %vm340_vm0, %v2565_v33  ;;  %v2541_v8 = vld [vmem:[#allocation2 + $0xc8] sm:$0xff]  ;;  %v2547_v30 = vld [vmem:[#allocation2 + $0xf8] sm:$0xff] }
 0x1b4   : > { %3031 = vst.msk [vmem:[#allocation2 + $0x78] sm:$0xff] %vm340_vm0, %v2999_v20 }
 0x1b5   : > { %3029 = vst.msk [vmem:[#allocation2 + $0x68] sm:$0xff] %vm340_vm0, %v2997_v31  ;;  %v4803_v25 = vpop.f32.mrb[100].mxu1 }
 0x1b6   : > { %v2570_v52 = vadd.f32 %v4803_v25, %v2538_v35  ;;  %v2469_v63 = vpop.f32.mrb[101].mxu1 }
 0x1b7   : > { %v2970_v39 = vld [vmem:[#allocation2 + $0x90] sm:$0xff]  ;;  %v2568_v54 = vadd.f32 %v2536_v46, %v2469_v63  ;;  %v4804_v40 = vpop.f32.mrb[102].mxu1  ;;  %v4839_v55 = vpop.f32.mrb[100].mxu0 }
 0x1b8   : > { %v3002_v50 = vadd.f32 %v4835_v6, %v2970_v39  ;;  %2602 = vst.msk [vmem:[#allocation2 + $0xb0] sm:$0xff] %vm340_vm0, %v2570_v52  ;;  %v2968_v1 = vld [vmem:[#allocation2 + $0x80] sm:$0xff]  ;;  %v2571_v43 = vadd.f32 %v4804_v40, %v2539_v53  ;;  %v2472_v49 = vpop.f32.mrb[103].mxu1  ;;  %v2905_v41 = vpop.f32.mrb[101].mxu0  ;;  %v2546_v6 = vld [vmem:[#allocation2 + $0xf0] sm:$0xff] }
 0x1b9   : > { %v3000_v38 = vadd.f32 %v2968_v1, %v2889_v27  ;;  %2600 = vst.msk [vmem:[#allocation2 + $0xa0] sm:$0xff] %vm340_vm0, %v2568_v54  ;;  %v2971_v17 = vld [vmem:[#allocation2 + $0x98] sm:$0xff]  ;;  %v2569_v47 = vadd.f32 %v2537_v42, %v2472_v49  ;;  %v4840_v13 = vpop.f32.mrb[102].mxu0 }
 0x1ba   : > { %3034 = vst.msk [vmem:[#allocation2 + $0x90] sm:$0xff] %vm340_vm0, %v3002_v50  ;;  %v3003_v48 = vadd.f32 %v4836_v34, %v2971_v17  ;;  %2603 = vst.msk [vmem:[#allocation2 + $0xb8] sm:$0xff] %vm340_vm0, %v2571_v43  ;;  %v2969_v24 = vld [vmem:[#allocation2 + $0x88] sm:$0xff]  ;;  %v2908_v29 = vpop.f32.mrb[103].mxu0  ;;  %v3393_v43 = vld [vmem:[#allocation2] sm:$0xff] }
 0x1bb   : > { %3032 = vst.msk [vmem:[#allocation2 + $0x80] sm:$0xff] %vm340_vm0, %v3000_v38  ;;  %v3001_v61 = vadd.f32 %v2969_v24, %v2892_v3  ;;  %2601 = vst.msk [vmem:[#allocation2 + $0xa8] sm:$0xff] %vm340_vm0, %v2569_v47  ;;  %v2545_v3 = vld [vmem:[#allocation2 + $0xe8] sm:$0xff]  ;;  %v3396_v38 = vld [vmem:[#allocation2 + $0x18] sm:$0xff] }
 0x1bc   : > { %3035 = vst.msk [vmem:[#allocation2 + $0x98] sm:$0xff] %vm340_vm0, %v3003_v48 }
 0x1bd   : > { %3033 = vst.msk [vmem:[#allocation2 + $0x88] sm:$0xff] %vm340_vm0, %v3001_v61  ;;  %v4807_v56 = vpop.f32.mrb[104].mxu1 }
 0x1be   : > { %v2574_v36 = vadd.f32 %v4807_v56, %v2542_v59  ;;  %v2485_v44 = vpop.f32.mrb[105].mxu1 }
 0x1bf   : > { %v2974_v2 = vld [vmem:[#allocation2 + $0xb0] sm:$0xff]  ;;  %v2572_v57 = vadd.f32 %v2540_v11, %v2485_v44  ;;  %v4808_v0 = vpop.f32.mrb[106].mxu1  ;;  %v4843_v4 = vpop.f32.mrb[104].mxu0 }
 0x1c0   : > { %v3006_v9 = vadd.f32 %v4839_v55, %v2974_v2  ;;  %2606 = vst.msk [vmem:[#allocation2 + $0xd0] sm:$0xff] %vm340_vm0, %v2574_v36  ;;  %v2972_v7 = vld [vmem:[#allocation2 + $0xa0] sm:$0xff]  ;;  %v2575_v51 = vadd.f32 %v4808_v0, %v2543_v14  ;;  %v2488_v10 = vpop.f32.mrb[107].mxu1  ;;  %v2921_v58 = vpop.f32.mrb[105].mxu0  ;;  %v3395_v55 = vld [vmem:[#allocation2 + $0x10] sm:$0xff] }
 0x1c1   : > { %v3004_v28 = vadd.f32 %v2972_v7, %v2905_v41  ;;  %2604 = vst.msk [vmem:[#allocation2 + $0xc0] sm:$0xff] %vm340_vm0, %v2572_v57  ;;  %v2975_v12 = vld [vmem:[#allocation2 + $0xb8] sm:$0xff]  ;;  %v2573_v60 = vadd.f32 %v2541_v8, %v2488_v10  ;;  %v4844_v45 = vpop.f32.mrb[106].mxu0 }
 0x1c2   : > { %3038 = vst.msk [vmem:[#allocation2 + $0xb0] sm:$0xff] %vm340_vm0, %v3006_v9  ;;  %v3007_v37 = vadd.f32 %v4840_v13, %v2975_v12  ;;  %2607 = vst.msk [vmem:[#allocation2 + $0xd8] sm:$0xff] %vm340_vm0, %v2575_v51  ;;  %v2973_v16 = vld [vmem:[#allocation2 + $0xa8] sm:$0xff]  ;;  %v2924_v18 = vpop.f32.mrb[107].mxu0  ;;  %v3397_v51 = vld [vmem:[#allocation2 + $0x20] sm:$0xff] }
 0x1c3   : > { %3036 = vst.msk [vmem:[#allocation2 + $0xa0] sm:$0xff] %vm340_vm0, %v3004_v28  ;;  %v3005_v62 = vadd.f32 %v2973_v16, %v2908_v29  ;;  %2605 = vst.msk [vmem:[#allocation2 + $0xc8] sm:$0xff] %vm340_vm0, %v2573_v60  ;;  %v3394_v29 = vld [vmem:[#allocation2 + $0x8] sm:$0xff]  ;;  %v3400_v28 = vld [vmem:[#allocation2 + $0x38] sm:$0xff] }
 0x1c4   : > { %3039 = vst.msk [vmem:[#allocation2 + $0xb8] sm:$0xff] %vm340_vm0, %v3007_v37 }
 0x1c5   : > { %3037 = vst.msk [vmem:[#allocation2 + $0xa8] sm:$0xff] %vm340_vm0, %v3005_v62  ;;  %v4811_v21 = vpop.f32.mrb[108].mxu1 }
 0x1c6   : > { %v2578_v15 = vadd.f32 %v4811_v21, %v2546_v6  ;;  %v2501_v22 = vpop.f32.mrb[109].mxu1 }
 0x1c7   : > { %v2978_v19 = vld [vmem:[#allocation2 + $0xd0] sm:$0xff]  ;;  %v2576_v26 = vadd.f32 %v2544_v23, %v2501_v22  ;;  %v4812_v27 = vpop.f32.mrb[110].mxu1  ;;  %v4847_v32 = vpop.f32.mrb[108].mxu0 }
 0x1c8   : > { %v3010_v33 = vadd.f32 %v4843_v4, %v2978_v19  ;;  %2610 = vst.msk [vmem:[#allocation2 + $0xf0] sm:$0xff] %vm340_vm0, %v2578_v15  ;;  %v2976_v34 = vld [vmem:[#allocation2 + $0xc0] sm:$0xff]  ;;  %v2579_v20 = vadd.f32 %v4812_v27, %v2547_v30  ;;  %v2504_v5 = vpop.f32.mrb[111].mxu1  ;;  %v2937_v31 = vpop.f32.mrb[109].mxu0  ;;  %v3399_v4 = vld [vmem:[#allocation2 + $0x30] sm:$0xff] }
 0x1c9   : > { %v3008_v25 = vadd.f32 %v2976_v34, %v2921_v58  ;;  %2608 = vst.msk [vmem:[#allocation2 + $0xe0] sm:$0xff] %vm340_vm0, %v2576_v26  ;;  %v2979_v35 = vld [vmem:[#allocation2 + $0xd8] sm:$0xff]  ;;  %v2577_v52 = vadd.f32 %v2545_v3, %v2504_v5  ;;  %v4848_v63 = vpop.f32.mrb[110].mxu0 }
 0x1ca   : > { %3042 = vst.msk [vmem:[#allocation2 + $0xd0] sm:$0xff] %vm340_vm0, %v3010_v33  ;;  %v3011_v46 = vadd.f32 %v4844_v45, %v2979_v35  ;;  %2611 = vst.msk [vmem:[#allocation2 + $0xf8] sm:$0xff] %vm340_vm0, %v2579_v20  ;;  %v2977_v39 = vld [vmem:[#allocation2 + $0xc8] sm:$0xff]  ;;  %v2940_v54 = vpop.f32.mrb[111].mxu0  ;;  %v3401_v20 = vld [vmem:[#allocation2 + $0x40] sm:$0xff] }
 0x1cb   : > { %3040 = vst.msk [vmem:[#allocation2 + $0xc0] sm:$0xff] %vm340_vm0, %v3008_v25  ;;  %v3009_v40 = vadd.f32 %v2977_v39, %v2924_v18  ;;  %2609 = vst.msk [vmem:[#allocation2 + $0xe8] sm:$0xff] %vm340_vm0, %v2577_v52  ;;  %v3398_v18 = vld [vmem:[#allocation2 + $0x28] sm:$0xff]  ;;  %v3404_v25 = vld [vmem:[#allocation2 + $0x58] sm:$0xff] }
 0x1cc   : > { %3043 = vst.msk [vmem:[#allocation2 + $0xd8] sm:$0xff] %vm340_vm0, %v3011_v46  ;;  %v6081_v52 = vld [vmem:[%s6206_s2] ss:$0 sm:$0xff] }
 0x1cd   : > { %3041 = vst.msk [vmem:[#allocation2 + $0xc8] sm:$0xff] %vm340_vm0, %v3009_v40  ;;  %v4855_v53 = vpop.f32.mrb[112].mxu1  ;;  %v3402_v40 = vld [vmem:[#allocation2 + $0x48] sm:$0xff] }
 0x1ce   : > { %v3427_v50 = vadd.f32 %v4855_v53, %v3395_v55  ;;  %v3266_v1 = vpop.f32.mrb[113].mxu1 }
 0x1cf   : > { %v2982_v49 = vld [vmem:[#allocation2 + $0xf0] sm:$0xff]  ;;  %v3425_v42 = vadd.f32 %v3393_v43, %v3266_v1  ;;  %v4856_v41 = vpop.f32.mrb[114].mxu1  ;;  %v4891_v17 = vpop.f32.mrb[112].mxu0 }
 0x1d0   : > { %v3014_v47 = vadd.f32 %v4847_v32, %v2982_v49  ;;  %v2980_v13 = vld [vmem:[#allocation2 + $0xe0] sm:$0xff]  ;;  %3459 = vst.msk [vmem:[#allocation2 + $0x10] sm:$0xff] %vm340_vm0, %v3427_v50  ;;  %v3428_v48 = vadd.f32 %v4856_v41, %v3396_v38  ;;  %v3269_v24 = vpop.f32.mrb[115].mxu1  ;;  %v3621_v61 = vpop.f32.mrb[113].mxu0  ;;  %v3403_v32 = vld [vmem:[#allocation2 + $0x50] sm:$0xff] }
 0x1d1   : > { %v3012_v56 = vadd.f32 %v2980_v13, %v2937_v31  ;;  %v2983_v59 = vld [vmem:[#allocation2 + $0xf8] sm:$0xff]  ;;  %3457 = vst.msk [vmem:[#allocation2] sm:$0xff] %vm340_vm0, %v3425_v42  ;;  %v3426_v36 = vadd.f32 %v3394_v29, %v3269_v24  ;;  %v4892_v44 = vpop.f32.mrb[114].mxu0 }
 0x1d2   : > { %3046 = vst.msk [vmem:[#allocation2 + $0xf0] sm:$0xff] %vm340_vm0, %v3014_v47  ;;  %v3015_v11 = vadd.f32 %v4848_v63, %v2983_v59  ;;  %v2981_v2 = vld [vmem:[#allocation2 + $0xe8] sm:$0xff]  ;;  %3460 = vst.msk [vmem:[#allocation2 + $0x18] sm:$0xff] %vm340_vm0, %v3428_v48  ;;  %v3624_v57 = vpop.f32.mrb[115].mxu0 }
 0x1d3   : > { %3044 = vst.msk [vmem:[#allocation2 + $0xe0] sm:$0xff] %vm340_vm0, %v3012_v56  ;;  %v3013_v0 = vadd.f32 %v2981_v2, %v2940_v54  ;;  %3458 = vst.msk [vmem:[#allocation2 + $0x8] sm:$0xff] %vm340_vm0, %v3426_v36  ;;  %v3405_v36 = vld [vmem:[#allocation2 + $0x60] sm:$0xff] }
 0x1d4   : > { %3047 = vst.msk [vmem:[#allocation2 + $0xf8] sm:$0xff] %vm340_vm0, %v3015_v11 }
 0x1d5   : > { %3045 = vst.msk [vmem:[#allocation2 + $0xe8] sm:$0xff] %vm340_vm0, %v3013_v0  ;;  %v4859_v14 = vpop.f32.mrb[116].mxu1 }
 0x1d6   : > { %v3431_v9 = vadd.f32 %v4859_v14, %v3399_v4  ;;  %v3282_v7 = vpop.f32.mrb[117].mxu1  ;;  %v3408_v14 = vld [vmem:[#allocation2 + $0x78] sm:$0xff] }
 0x1d7   : > { %v3750_v10 = vld [vmem:[#allocation2 + $0x10] sm:$0xff]  ;;  %v3429_v8 = vadd.f32 %v3397_v51, %v3282_v7  ;;  %v4860_v58 = vpop.f32.mrb[118].mxu1  ;;  %v4895_v12 = vpop.f32.mrb[116].mxu0 }
 0x1d8   : > { %v3782_v60 = vadd.f32 %v4891_v17, %v3750_v10  ;;  %3463 = vst.msk [vmem:[#allocation2 + $0x30] sm:$0xff] %vm340_vm0, %v3431_v9  ;;  %v3748_v45 = vld [vmem:[#allocation2] sm:$0xff]  ;;  %v3432_v37 = vadd.f32 %v4860_v58, %v3400_v28  ;;  %v3285_v16 = vpop.f32.mrb[119].mxu1  ;;  %v3637_v62 = vpop.f32.mrb[117].mxu0 }
 0x1d9   : > { %v3780_v21 = vadd.f32 %v3748_v45, %v3621_v61  ;;  %3461 = vst.msk [vmem:[#allocation2 + $0x20] sm:$0xff] %vm340_vm0, %v3429_v8  ;;  %v3751_v6 = vld [vmem:[#allocation2 + $0x18] sm:$0xff]  ;;  %v3430_v15 = vadd.f32 %v3398_v18, %v3285_v16  ;;  %v4896_v22 = vpop.f32.mrb[118].mxu0  ;;  %v3407_v61 = vld [vmem:[#allocation2 + $0x70] sm:$0xff]  ;;  %v3406_v8 = vld [vmem:[#allocation2 + $0x68] sm:$0xff] }
 0x1da   : > { %3814 = vst.msk [vmem:[#allocation2 + $0x10] sm:$0xff] %vm340_vm0, %v3782_v60  ;;  %v3783_v23 = vadd.f32 %v4892_v44, %v3751_v6  ;;  %3464 = vst.msk [vmem:[#allocation2 + $0x38] sm:$0xff] %vm340_vm0, %v3432_v37  ;;  %v3749_v19 = vld [vmem:[#allocation2 + $0x8] sm:$0xff]  ;;  %v3640_v26 = vpop.f32.mrb[119].mxu0 }
 0x1db   : > { %3812 = vst.msk [vmem:[#allocation2] sm:$0xff] %vm340_vm0, %v3780_v21  ;;  %v3781_v27 = vadd.f32 %v3749_v19, %v3624_v57  ;;  %3462 = vst.msk [vmem:[#allocation2 + $0x28] sm:$0xff] %vm340_vm0, %v3430_v15 }
 0x1dc   : > { %3815 = vst.msk [vmem:[#allocation2 + $0x18] sm:$0xff] %vm340_vm0, %v3783_v23 }
 0x1dd   : > { %3813 = vst.msk [vmem:[#allocation2 + $0x8] sm:$0xff] %vm340_vm0, %v3781_v27  ;;  %v4863_v30 = vpop.f32.mrb[120].mxu1  ;;  %v3411_v27 = vld [vmem:[#allocation2 + $0x90] sm:$0xff] }
 0x1de   : > { %v3435_v33 = vadd.f32 %v4863_v30, %v3403_v32  ;;  %v3298_v34 = vpop.f32.mrb[121].mxu1 }
 0x1df   : > { %v3754_v5 = vld [vmem:[#allocation2 + $0x30] sm:$0xff]  ;;  %v3433_v3 = vadd.f32 %v3401_v20, %v3298_v34  ;;  %v4864_v31 = vpop.f32.mrb[122].mxu1  ;;  %v4899_v35 = vpop.f32.mrb[120].mxu0 }
 0x1e0   : > { %v3786_v63 = vadd.f32 %v4895_v12, %v3754_v5  ;;  %3467 = vst.msk [vmem:[#allocation2 + $0x50] sm:$0xff] %vm340_vm0, %v3435_v33  ;;  %v3752_v46 = vld [vmem:[#allocation2 + $0x20] sm:$0xff]  ;;  %v3436_v39 = vadd.f32 %v4864_v31, %v3404_v25  ;;  %v3301_v54 = vpop.f32.mrb[123].mxu1  ;;  %v3653_v53 = vpop.f32.mrb[121].mxu0  ;;  %v3412_v25 = vld [vmem:[#allocation2 + $0x98] sm:$0xff] }
 0x1e1   : > { %v3784_v55 = vadd.f32 %v3752_v46, %v3637_v62  ;;  %3465 = vst.msk [vmem:[#allocation2 + $0x40] sm:$0xff] %vm340_vm0, %v3433_v3  ;;  %v3755_v50 = vld [vmem:[#allocation2 + $0x38] sm:$0xff]  ;;  %v3434_v1 = vadd.f32 %v3402_v40, %v3301_v54  ;;  %v4900_v43 = vpop.f32.mrb[122].mxu0  ;;  %v3409_v33 = vld [vmem:[#allocation2 + $0x80] sm:$0xff]  ;;  %v3410_v40 = vld [vmem:[#allocation2 + $0x88] sm:$0xff] }
 0x1e2   : > { %v3844_v49 = vld [vmem:[#allocation2] sm:$0xff]  ;;  %3818 = vst.msk [vmem:[#allocation2 + $0x30] sm:$0xff] %vm340_vm0, %v3786_v63  ;;  %v3787_v42 = vadd.f32 %v4896_v22, %v3755_v50  ;;  %3468 = vst.msk [vmem:[#allocation2 + $0x58] sm:$0xff] %vm340_vm0, %v3436_v39  ;;  %v3753_v41 = vld [vmem:[#allocation2 + $0x28] sm:$0xff]  ;;  %v3656_v38 = vpop.f32.mrb[123].mxu0 }
 0x1e3   : > { %v3867_v17 = vadd.f32 %v6081_v52, %v3844_v49  ;;  %3816 = vst.msk [vmem:[#allocation2 + $0x20] sm:$0xff] %vm340_vm0, %v3784_v55  ;;  %v3785_v47 = vadd.f32 %v3753_v41, %v3640_v26  ;;  %3466 = vst.msk [vmem:[#allocation2 + $0x48] sm:$0xff] %vm340_vm0, %v3434_v1 }
 0x1e4   : > { %v3845_v13 = vld [vmem:[#allocation2 + $0x8] sm:$0xff]  ;;  %3819 = vst.msk [vmem:[#allocation2 + $0x38] sm:$0xff] %vm340_vm0, %v3787_v42 }
 0x1e5   : > { %v3883_v48 = vmax.f32 %v3867_v17, 0.0  ;;  %v3868_v24 = vadd.f32 %v6081_v52, %v3845_v13  ;;  %3817 = vst.msk [vmem:[#allocation2 + $0x28] sm:$0xff] %vm340_vm0, %v3785_v47  ;;  %v4867_v29 = vpop.f32.mrb[124].mxu1 }
 0x1e6   : > { %v3439_v56 = vadd.f32 %v4867_v29, %v3407_v61  ;;  %v3314_v59 = vpop.f32.mrb[125].mxu1 }
 0x1e7   : > { %v4419_v44 = vpack.c.bf16 %v3883_v48, %v3883_v48  ;;  %v3884_v11 = vmax.f32 %v3868_v24, 0.0  ;;  %v3758_v2 = vld [vmem:[#allocation2 + $0x50] sm:$0xff]  ;;  %v3437_v57 = vadd.f32 %v3405_v36, %v3314_v59  ;;  %v4868_v0 = vpop.f32.mrb[126].mxu1  ;;  %v4903_v4 = vpop.f32.mrb[124].mxu0 }
 0x1e8   : > { %v3790_v9 = vadd.f32 %v4899_v35, %v3758_v2  ;;  %3471 = vst.msk [vmem:[#allocation2 + $0x70] sm:$0xff] %vm340_vm0, %v3439_v56  ;;  %v3756_v7 = vld [vmem:[#allocation2 + $0x40] sm:$0xff]  ;;  %v3440_v51 = vadd.f32 %v4868_v0, %v3408_v14  ;;  %v3317_v10 = vpop.f32.mrb[127].mxu1  ;;  %v3669_v58 = vpop.f32.mrb[125].mxu0  ;;  %v3415_v56 = vld [vmem:[#allocation2 + $0xb0] sm:$0xff] }
 0x1e9   : > { %3964 = vst.msk [vmem:[%s6097_s4] sm:$0xf] %vm3963_vm3, %v4419_v44  ;;  %v4420_v28 = vpack.c.bf16 %v3884_v11, %v3884_v11  ;;  %v3788_v12 = vadd.f32 %v3756_v7, %v3653_v53  ;;  %v3759_v60 = vld [vmem:[#allocation2 + $0x58] sm:$0xff]  ;;  %v3438_v45 = vadd.f32 %v3406_v8, %v3317_v10  ;;  %v4904_v37 = vpop.f32.mrb[126].mxu0  ;;  %v3413_v44 = vld [vmem:[#allocation2 + $0xa0] sm:$0xff] }
 0x1ea   : > { %3469 = vst.msk [vmem:[#allocation2 + $0x60] sm:$0xff] %vm340_vm0, %v3437_v57  ;;  %v3846_v16 = vld [vmem:[#allocation2 + $0x20] sm:$0xff]  ;;  %3822 = vst.msk [vmem:[#allocation2 + $0x50] sm:$0xff] %vm340_vm0, %v3790_v9  ;;  %v3791_v18 = vadd.f32 %v4900_v43, %v3759_v60  ;;  %v3757_v62 = vld [vmem:[#allocation2 + $0x48] sm:$0xff]  ;;  %v3672_v21 = vpop.f32.mrb[127].mxu0 }
 0x1eb   : > { %3472 = vst.msk [vmem:[#allocation2 + $0x78] sm:$0xff] %vm340_vm0, %v3440_v51  ;;  %v3869_v6 = vadd.f32 %v6081_v52, %v3846_v16  ;;  %3820 = vst.msk [vmem:[#allocation2 + $0x40] sm:$0xff] %vm340_vm0, %v3788_v12  ;;  %v3789_v15 = vadd.f32 %v3757_v62, %v3656_v38 }
 0x1ec   : > { %3965 = vst.msk [vmem:[%s6097_s4 + $0x4] sm:$0xf] %vm3963_vm3, %v4420_v28  ;;  %v3847_v22 = vld [vmem:[#allocation2 + $0x28] sm:$0xff] }
 0x1ed   : > { %3470 = vst.msk [vmem:[#allocation2 + $0x68] sm:$0xff] %vm340_vm0, %v3438_v45  ;;  %3823 = vst.msk [vmem:[#allocation2 + $0x58] sm:$0xff] %vm340_vm0, %v3791_v18  ;;  %v3885_v23 = vmax.f32 %v3869_v6, 0.0  ;;  %v3870_v19 = vadd.f32 %v6081_v52, %v3847_v22  ;;  %v4871_v26 = vpop.f32.mrb[128].mxu1 }
 0x1ee   : > { %3821 = vst.msk [vmem:[#allocation2 + $0x48] sm:$0xff] %vm340_vm0, %v3789_v15  ;;  %v3443_v30 = vadd.f32 %v4871_v26, %v3411_v27  ;;  %v3330_v32 = vpop.f32.mrb[129].mxu1 }
 0x1ef   : > { %v4421_v34 = vpack.c.bf16 %v3885_v23, %v3885_v23  ;;  %v3886_v20 = vmax.f32 %v3870_v19, 0.0  ;;  %v3762_v5 = vld [vmem:[#allocation2 + $0x70] sm:$0xff]  ;;  %v3441_v3 = vadd.f32 %v3409_v33, %v3330_v32  ;;  %v4872_v31 = vpop.f32.mrb[130].mxu1  ;;  %v4907_v35 = vpop.f32.mrb[128].mxu0 }
 0x1f0   : > { %v3794_v63 = vadd.f32 %v4903_v4, %v3762_v5  ;;  %3475 = vst.msk [vmem:[#allocation2 + $0x90] sm:$0xff] %vm340_vm0, %v3443_v30  ;;  %v3444_v39 = vadd.f32 %v4872_v31, %v3412_v25  ;;  %v3333_v54 = vpop.f32.mrb[131].mxu1  ;;  %v3685_v53 = vpop.f32.mrb[129].mxu0  ;;  %v3416_v4 = vld [vmem:[#allocation2 + $0xb8] sm:$0xff]  ;;  %v3419_v30 = vld [vmem:[#allocation2 + $0xd0] sm:$0xff] }
 0x1f1   : > { %v3760_v46 = vld [vmem:[#allocation2 + $0x60] sm:$0xff]  ;;  %3966 = vst.msk [vmem:[%s6097_s4 + $0x8] sm:$0xf] %vm3963_vm3, %v4421_v34  ;;  %v4422_v55 = vpack.c.bf16 %v3886_v20, %v3886_v20  ;;  %v3442_v43 = vadd.f32 %v3410_v40, %v3333_v54  ;;  %v4908_v49 = vpop.f32.mrb[130].mxu0 }
 0x1f2   : > { %v3792_v50 = vadd.f32 %v3760_v46, %v3669_v58  ;;  %3473 = vst.msk [vmem:[#allocation2 + $0x80] sm:$0xff] %vm340_vm0, %v3441_v3  ;;  %v3763_v1 = vld [vmem:[#allocation2 + $0x78] sm:$0xff]  ;;  %v3848_v42 = vld [vmem:[#allocation2 + $0x40] sm:$0xff]  ;;  %3826 = vst.msk [vmem:[#allocation2 + $0x70] sm:$0xff] %vm340_vm0, %v3794_v63  ;;  %v3688_v17 = vpop.f32.mrb[131].mxu0 }
 0x1f3   : > { %v3795_v41 = vadd.f32 %v4904_v37, %v3763_v1  ;;  %3476 = vst.msk [vmem:[#allocation2 + $0x98] sm:$0xff] %vm340_vm0, %v3444_v39  ;;  %v3871_v47 = vadd.f32 %v6081_v52, %v3848_v42  ;;  %3474 = vst.msk [vmem:[#allocation2 + $0x88] sm:$0xff] %vm340_vm0, %v3442_v43  ;;  %v3414_v58 = vld [vmem:[#allocation2 + $0xa8] sm:$0xff]  ;;  %v3417_v34 = vld [vmem:[#allocation2 + $0xc0] sm:$0xff] }
 0x1f4   : > { %v3761_v38 = vld [vmem:[#allocation2 + $0x68] sm:$0xff]  ;;  %3967 = vst.msk [vmem:[%s6097_s4 + $0xc] sm:$0xf] %vm3963_vm3, %v4422_v55 }
 0x1f5   : > { %3824 = vst.msk [vmem:[#allocation2 + $0x60] sm:$0xff] %vm340_vm0, %v3792_v50  ;;  %v3793_v13 = vadd.f32 %v3761_v38, %v3672_v21  ;;  %v3849_v48 = vld [vmem:[#allocation2 + $0x48] sm:$0xff]  ;;  %3827 = vst.msk [vmem:[#allocation2 + $0x78] sm:$0xff] %vm340_vm0, %v3795_v41  ;;  %v3887_v24 = vmax.f32 %v3871_v47, 0.0  ;;  %v4875_v61 = vpop.f32.mrb[132].mxu1 }
 0x1f6   : > { %v3872_v29 = vadd.f32 %v6081_v52, %v3849_v48  ;;  %v3447_v59 = vadd.f32 %v4875_v61, %v3415_v56  ;;  %v3346_v36 = vpop.f32.mrb[133].mxu1 }
 0x1f7   : > { %3825 = vst.msk [vmem:[#allocation2 + $0x68] sm:$0xff] %vm340_vm0, %v3793_v13  ;;  %v4423_v11 = vpack.c.bf16 %v3887_v24, %v3887_v24  ;;  %v3766_v57 = vld [vmem:[#allocation2 + $0x90] sm:$0xff]  ;;  %v3445_v0 = vadd.f32 %v3413_v44, %v3346_v36  ;;  %v4876_v14 = vpop.f32.mrb[134].mxu1  ;;  %v4911_v9 = vpop.f32.mrb[132].mxu0 }
 0x1f8   : > { %v3888_v2 = vmax.f32 %v3872_v29, 0.0  ;;  %v3798_v7 = vadd.f32 %v4907_v35, %v3766_v57  ;;  %3479 = vst.msk [vmem:[#allocation2 + $0xb0] sm:$0xff] %vm340_vm0, %v3447_v59  ;;  %v3448_v10 = vadd.f32 %v4876_v14, %v3416_v4  ;;  %v3349_v8 = vpop.f32.mrb[135].mxu1  ;;  %v3701_v28 = vpop.f32.mrb[133].mxu0  ;;  %v3420_v35 = vld [vmem:[#allocation2 + $0xd8] sm:$0xff]  ;;  %v3423_v59 = vld [vmem:[#allocation2 + $0xf0] sm:$0xff] }
 0x1f9   : > { %v3764_v51 = vld [vmem:[#allocation2 + $0x80] sm:$0xff]  ;;  %3968 = vst.msk [vmem:[%s6097_s4 + $0x10] sm:$0xf] %vm3963_vm3, %v4423_v11  ;;  %v3446_v37 = vadd.f32 %v3414_v58, %v3349_v8  ;;  %v4912_v16 = vpop.f32.mrb[134].mxu0 }
 0x1fa   : > { %v4424_v12 = vpack.c.bf16 %v3888_v2, %v3888_v2  ;;  %v3796_v60 = vadd.f32 %v3764_v51, %v3685_v53  ;;  %3477 = vst.msk [vmem:[#allocation2 + $0xa0] sm:$0xff] %vm340_vm0, %v3445_v0  ;;  %v3767_v45 = vld [vmem:[#allocation2 + $0x98] sm:$0xff]  ;;  %3830 = vst.msk [vmem:[#allocation2 + $0x90] sm:$0xff] %vm340_vm0, %v3798_v7  ;;  %v3765_v21 = vld [vmem:[#allocation2 + $0x88] sm:$0xff]  ;;  %v3704_v6 = vpop.f32.mrb[135].mxu0 }
 0x1fb   : > { %v3799_v62 = vadd.f32 %v4908_v49, %v3767_v45  ;;  %3480 = vst.msk [vmem:[#allocation2 + $0xb8] sm:$0xff] %vm340_vm0, %v3448_v10  ;;  %v3797_v22 = vadd.f32 %v3765_v21, %v3688_v17  ;;  %3478 = vst.msk [vmem:[#allocation2 + $0xa8] sm:$0xff] %vm340_vm0, %v3446_v37  ;;  %v3418_v53 = vld [vmem:[#allocation2 + $0xc8] sm:$0xff]  ;;  %v3421_v11 = vld [vmem:[#allocation2 + $0xe0] sm:$0xff] }
 0x1fc   : > { %v3850_v18 = vld [vmem:[#allocation2 + $0x60] sm:$0xff]  ;;  %3969 = vst.msk [vmem:[%s6097_s4 + $0x14] sm:$0xf] %vm3963_vm3, %v4424_v12 }
 0x1fd   : > { %v3873_v15 = vadd.f32 %v6081_v52, %v3850_v18  ;;  %3828 = vst.msk [vmem:[#allocation2 + $0x80] sm:$0xff] %vm340_vm0, %v3796_v60  ;;  %3831 = vst.msk [vmem:[#allocation2 + $0x98] sm:$0xff] %vm340_vm0, %v3799_v62  ;;  %v4879_v27 = vpop.f32.mrb[136].mxu1 }
 0x1fe   : > { %v3851_v23 = vld [vmem:[#allocation2 + $0x68] sm:$0xff]  ;;  %3829 = vst.msk [vmem:[#allocation2 + $0x88] sm:$0xff] %vm340_vm0, %v3797_v22  ;;  %v3451_v32 = vadd.f32 %v4879_v27, %v3419_v30  ;;  %v3362_v33 = vpop.f32.mrb[137].mxu1 }
 0x1ff   : > { %v3889_v19 = vmax.f32 %v3873_v15, 0.0  ;;  %v3874_v26 = vadd.f32 %v6081_v52, %v3851_v23  ;;  %v3770_v3 = vld [vmem:[#allocation2 + $0xb0] sm:$0xff]  ;;  %v3449_v31 = vadd.f32 %v3417_v34, %v3362_v33  ;;  %v4880_v25 = vpop.f32.mrb[138].mxu1  ;;  %v4915_v63 = vpop.f32.mrb[136].mxu0 }
 0x200   : > { %v3802_v46 = vadd.f32 %v4911_v9, %v3770_v3  ;;  %3483 = vst.msk [vmem:[#allocation2 + $0xd0] sm:$0xff] %vm340_vm0, %v3451_v32  ;;  %v3452_v54 = vadd.f32 %v4880_v25, %v3420_v35  ;;  %v3365_v40 = vpop.f32.mrb[139].mxu1  ;;  %v3717_v55 = vpop.f32.mrb[137].mxu0  ;;  %v3424_v9 = vld [vmem:[#allocation2 + $0xf8] sm:$0xff] }
 0x201   : > { %v4425_v20 = vpack.c.bf16 %v3889_v19, %v3889_v19  ;;  %v3890_v5 = vmax.f32 %v3874_v26, 0.0  ;;  %v3768_v39 = vld [vmem:[#allocation2 + $0xa0] sm:$0xff]  ;;  %3481 = vst.msk [vmem:[#allocation2 + $0xc0] sm:$0xff] %vm340_vm0, %v3449_v31  ;;  %v3450_v49 = vadd.f32 %v3418_v53, %v3365_v40  ;;  %v4916_v42 = vpop.f32.mrb[138].mxu0 }
 0x202   : > { %v3800_v1 = vadd.f32 %v3768_v39, %v3701_v28  ;;  %v3771_v43 = vld [vmem:[#allocation2 + $0xb8] sm:$0xff]  ;;  %3834 = vst.msk [vmem:[#allocation2 + $0xb0] sm:$0xff] %vm340_vm0, %v3802_v46  ;;  %3484 = vst.msk [vmem:[#allocation2 + $0xd8] sm:$0xff] %vm340_vm0, %v3452_v54  ;;  %v3769_v17 = vld [vmem:[#allocation2 + $0xa8] sm:$0xff]  ;;  %v3720_v47 = vpop.f32.mrb[139].mxu0 }
 0x203   : > { %3970 = vst.msk [vmem:[%s6097_s4 + $0x18] sm:$0xf] %vm3963_vm3, %v4425_v20  ;;  %v4426_v50 = vpack.c.bf16 %v3890_v5, %v3890_v5  ;;  %v3803_v38 = vadd.f32 %v4912_v16, %v3771_v43  ;;  %v3801_v48 = vadd.f32 %v3769_v17, %v3704_v6  ;;  %v3422_v28 = vld [vmem:[#allocation2 + $0xe8] sm:$0xff] }
 0x204   : > { %v3852_v41 = vld [vmem:[#allocation2 + $0x80] sm:$0xff]  ;;  %3832 = vst.msk [vmem:[#allocation2 + $0xa0] sm:$0xff] %vm340_vm0, %v3800_v1  ;;  %3482 = vst.msk [vmem:[#allocation2 + $0xc8] sm:$0xff] %vm340_vm0, %v3450_v49 }
 0x205   : > { %3971 = vst.msk [vmem:[%s6097_s4 + $0x1c] sm:$0xf] %vm3963_vm3, %v4426_v50  ;;  %v3875_v13 = vadd.f32 %v6081_v52, %v3852_v41  ;;  %v3853_v24 = vld [vmem:[#allocation2 + $0x88] sm:$0xff]  ;;  %v4883_v56 = vpop.f32.mrb[140].mxu1 }
 0x206   : > { %3835 = vst.msk [vmem:[#allocation2 + $0xb8] sm:$0xff] %vm340_vm0, %v3803_v38  ;;  %v3876_v61 = vadd.f32 %v6081_v52, %v3853_v24  ;;  %3833 = vst.msk [vmem:[#allocation2 + $0xa8] sm:$0xff] %vm340_vm0, %v3801_v48  ;;  %v3455_v36 = vadd.f32 %v4883_v56, %v3423_v59  ;;  %v3378_v44 = vpop.f32.mrb[141].mxu1 }
 0x207   : > { %v3891_v29 = vmax.f32 %v3875_v13, 0.0  ;;  %v3774_v0 = vld [vmem:[#allocation2 + $0xd0] sm:$0xff]  ;;  %v3453_v14 = vadd.f32 %v3421_v11, %v3378_v44  ;;  %v4884_v4 = vpop.f32.mrb[142].mxu1  ;;  %v4919_v7 = vpop.f32.mrb[140].mxu0 }
 0x208   : > { %v3892_v57 = vmax.f32 %v3876_v61, 0.0  ;;  %v3806_v51 = vadd.f32 %v4915_v63, %v3774_v0  ;;  %3487 = vst.msk [vmem:[#allocation2 + $0xf0] sm:$0xff] %vm340_vm0, %v3455_v36  ;;  %v3772_v10 = vld [vmem:[#allocation2 + $0xc0] sm:$0xff]  ;;  %v3456_v8 = vadd.f32 %v4884_v4, %v3424_v9  ;;  %v3381_v58 = vpop.f32.mrb[143].mxu1  ;;  %v3733_v12 = vpop.f32.mrb[141].mxu0 }
 0x209   : > { %v4427_v2 = vpack.c.bf16 %v3891_v29, %v3891_v29  ;;  %v3804_v45 = vadd.f32 %v3772_v10, %v3717_v55  ;;  %3485 = vst.msk [vmem:[#allocation2 + $0xe0] sm:$0xff] %vm340_vm0, %v3453_v14  ;;  %v3775_v37 = vld [vmem:[#allocation2 + $0xd8] sm:$0xff]  ;;  %v3454_v16 = vadd.f32 %v3422_v28, %v3381_v58  ;;  %v4920_v18 = vpop.f32.mrb[142].mxu0 }
 0x20a   : > { %v4428_v60 = vpack.c.bf16 %v3892_v57, %v3892_v57  ;;  %3838 = vst.msk [vmem:[#allocation2 + $0xd0] sm:$0xff] %vm340_vm0, %v3806_v51  ;;  %v3807_v21 = vadd.f32 %v4916_v42, %v3775_v37  ;;  %3488 = vst.msk [vmem:[#allocation2 + $0xf8] sm:$0xff] %vm340_vm0, %v3456_v8  ;;  %v3736_v15 = vpop.f32.mrb[143].mxu0 }
 0x20b   : > { %3972 = vst.msk [vmem:[%s6097_s4 + $0x20] sm:$0xf] %vm3963_vm3, %v4427_v2  ;;  %v3854_v62 = vld [vmem:[#allocation2 + $0xa0] sm:$0xff]  ;;  %v3773_v6 = vld [vmem:[#allocation2 + $0xc8] sm:$0xff] }
 0x20c   : > { %3973 = vst.msk [vmem:[%s6097_s4 + $0x24] sm:$0xf] %vm3963_vm3, %v4428_v60  ;;  %v3877_v22 = vadd.f32 %v6081_v52, %v3854_v62  ;;  %v3805_v23 = vadd.f32 %v3773_v6, %v3720_v47 }
 0x20d   : > { %3836 = vst.msk [vmem:[#allocation2 + $0xc0] sm:$0xff] %vm340_vm0, %v3804_v45  ;;  %3486 = vst.msk [vmem:[#allocation2 + $0xe8] sm:$0xff] %vm340_vm0, %v3454_v16  ;;  %v3855_v19 = vld [vmem:[#allocation2 + $0xa8] sm:$0xff] }
 0x20e   : > { %3839 = vst.msk [vmem:[#allocation2 + $0xd8] sm:$0xff] %vm340_vm0, %v3807_v21  ;;  %v3893_v26 = vmax.f32 %v3877_v22, 0.0  ;;  %v3878_v27 = vadd.f32 %v6081_v52, %v3855_v19  ;;  %3837 = vst.msk [vmem:[#allocation2 + $0xc8] sm:$0xff] %vm340_vm0, %v3805_v23 }
 0x20f   : > { %v3778_v33 = vld [vmem:[#allocation2 + $0xf0] sm:$0xff] }
 0x210   : > { %v4429_v30 = vpack.c.bf16 %v3893_v26, %v3893_v26  ;;  %v3894_v32 = vmax.f32 %v3878_v27, 0.0  ;;  %v3810_v34 = vadd.f32 %v4919_v7, %v3778_v33  ;;  %v3776_v20 = vld [vmem:[#allocation2 + $0xe0] sm:$0xff] }
 0x211   : > { %v3808_v3 = vadd.f32 %v3776_v20, %v3733_v12  ;;  %v3779_v31 = vld [vmem:[#allocation2 + $0xf8] sm:$0xff] }
 0x212   : > { %3974 = vst.msk [vmem:[%s6097_s4 + $0x28] sm:$0xf] %vm3963_vm3, %v4429_v30  ;;  %v4430_v5 = vpack.c.bf16 %v3894_v32, %v3894_v32  ;;  %v3811_v35 = vadd.f32 %v4920_v18, %v3779_v31 }
 0x213   : > { %3842 = vst.msk [vmem:[#allocation2 + $0xf0] sm:$0xff] %vm340_vm0, %v3810_v34  ;;  %3840 = vst.msk [vmem:[#allocation2 + $0xe0] sm:$0xff] %vm340_vm0, %v3808_v3 }
 0x214   : > { %v3856_v25 = vld [vmem:[#allocation2 + $0xc0] sm:$0xff]  ;;  %v3777_v63 = vld [vmem:[#allocation2 + $0xe8] sm:$0xff]  ;;  %3975 = vst.msk [vmem:[%s6097_s4 + $0x2c] sm:$0xf] %vm3963_vm3, %v4430_v5 }
 0x215   : > { %v3879_v46 = vadd.f32 %v6081_v52, %v3856_v25  ;;  %v3809_v39 = vadd.f32 %v3777_v63, %v3736_v15  ;;  %v3857_v54 = vld [vmem:[#allocation2 + $0xc8] sm:$0xff]  ;;  %3843 = vst.msk [vmem:[#allocation2 + $0xf8] sm:$0xff] %vm340_vm0, %v3811_v35 }
 0x216   : > { %v3880_v53 = vadd.f32 %v6081_v52, %v3857_v54 }
 0x217   : > { %v3895_v40 = vmax.f32 %v3879_v46, 0.0  ;;  %3841 = vst.msk [vmem:[#allocation2 + $0xe8] sm:$0xff] %vm340_vm0, %v3809_v39 }
 0x218   : > { %v3896_v50 = vmax.f32 %v3880_v53, 0.0 }
 0x219   : > { %v4431_v55 = vpack.c.bf16 %v3895_v40, %v3895_v40 }
 0x21a   : > { %v4432_v1 = vpack.c.bf16 %v3896_v50, %v3896_v50  ;;  %v3858_v43 = vld [vmem:[#allocation2 + $0xe0] sm:$0xff] }
 0x21b   : > { %3976 = vst.msk [vmem:[%s6097_s4 + $0x30] sm:$0xf] %vm3963_vm3, %v4431_v55  ;;  %v3881_v49 = vadd.f32 %v6081_v52, %v3858_v43 }
 0x21c   : > { %3977 = vst.msk [vmem:[%s6097_s4 + $0x34] sm:$0xf] %vm3963_vm3, %v4432_v1 }
 0x21d   : > { %v3897_v41 = vmax.f32 %v3881_v49, 0.0 }
 0x21e   : > { %v3859_v42 = vld [vmem:[#allocation2 + $0xe8] sm:$0xff] }
 0x21f   : > { %v3882_v38 = vadd.f32 %v6081_v52, %v3859_v42  ;;  %v4433_v17 = vpack.c.bf16 %v3897_v41, %v3897_v41 }
 0x221   : > { %v3898_v47 = vmax.f32 %v3882_v38, 0.0  ;;  %3978 = vst.msk [vmem:[%s6097_s4 + $0x38] sm:$0xf] %vm3963_vm3, %v4433_v17 }
 0x223   : > { %v4434_v13 = vpack.c.bf16 %v3898_v47, %v3898_v47 }
 0x225   : > { %3979 = vst.msk [vmem:[%s6097_s4 + $0x3c] sm:$0xf] %vm3963_vm3, %v4434_v13 }
 0x226 PF: > { %s13_s16 = sadd.s32 1, %s5074_s16   ;;  %s6209_s12 = smov %s5066_s14 }
 0x227   : > { %p10_p8 = scmp.ge.s32.totalorder %s13_s16, 6   ;;  %s6210_s13 = smov %s5070_s15 }
 0x228   : > { %s6211_s14 = smov %s6214_s17  ;;  %s6212_s15 = smov %s6218_s18 }
 0x229   :  { %12 = sbr.rel (!%p10_p8) target bundleno = 3 (0x3), region = 72 }

// kernel: regression_model_forward.9
= control target key start
LH: loop header
LB: loop body
LE: loop exit
PB: predicated region body
PF: predicated region fallthrough
CT: control target
= control target key end

     0   :  { %s4983_s12 = smov 0   ;;  %s4985_s13 = smov 0   ;;  %s5941_s0 = inlined_call_operand.vmem [shape: bf16[2,2,11,32,32], index: 0, kind: input, shape index: {}]   ;;  %s5942_s1 = inlined_call_operand.vmem [shape: bf16[3,3,32,128], index: 1, kind: input, shape index: {}]   ;;  %s5943_s2 = inlined_call_operand.vmem [shape: f32[1,128], index: 2, kind: input, shape index: {}]   ;;  %s5944_s3 = inlined_call_operand.vmem [shape: f32[2,16,16,128], index: 3, kind: output, shape index: {}]  }
   0x1   :  { %s4987_s14 = smov 0   ;;  %s4989_s15 = smov 0  }
   0x2   :  { %s4991_s16 = smov 0  }
   0x3 LB: > { %s22_s17 = sadd.s32 1, %s4953_s14  ;;  %s25_s18 = sadd.s32 1, %s4957_s15  ;;  %s4961_s16 = sphi %s4991_s16, %s13_s16   ;;  %s4957_s15 = sphi %s4989_s15, %s5948_s15   ;;  %s4953_s14 = sphi %s4987_s14, %s5947_s14   ;;  %s4949_s13 = sphi %s4985_s13, %s5946_s13   ;;  %s4945_s12 = sphi %s4983_s12, %s5945_s12  }
   0x4   : > { %p23_p0 = scmp.ge.s32.totalorder %s22_s17, 2  ;;  %p4002_p1 = scmp.ge.s32.totalorder %s4961_s16, 1 }
   0x5   : > { %p157_p2 = scmp.lt.s32.totalorder %s4961_s16, 5 }
   0x6   : > { %s5950_s17 = smov (%p23_p0, %s22_s17), 0  ;;  %s5952_s18 = smov (!%p23_p0, %s25_s18), %s4957_s15 }
   0x7   : > { %p158_p3 = pnand %p4002_p1, %p157_p2  ;;  %p27_p4 = scmp.ge.s32.totalorder %s5952_s18, 2 }
   0x8   : > { %v4854_v0 = vld [vmem:[%s5942_s1] sm:$0xff] (!%p158_p3)   ;;  %p190_p5 = scmp.lt.s32.totalorder (!%p158_p3), %s4949_s13, 1  ;;  %v4855_v1 = vld [vmem:[%s5942_s1 + $0x8] sm:$0xff] (!%p158_p3)   ;;  %p192_p6 = scmp.lt.s32.totalorder (!%p158_p3), %s4945_s12, 1  ;;  %v4858_v2 = vld [vmem:[%s5942_s1 + $0x10] sm:$0xff] (!%p158_p3)   ;;  %vm340_vm0 = vcmask (!%p158_p3), 261120  }
   0x9   : > { %s5954_s18 = smov (%p27_p4, %s5952_s18), 0  ;;  %161 = sbr.rel (%p158_p3) target bundleno = 529 (0x211), region = 32 }
   0xa   : > { %4808 = vmatprep.subr.bf16.mxu1 (!%p158_p3), %v4854_v0  ;;  %4484 = vmatprep.subr.bf16.mxu0 (!%p158_p3), %v4854_v0  ;;  %v4861_v3 = vld [vmem:[%s5942_s1 + $0x20] sm:$0xff] (!%p158_p3)   ;;  %v4868_v6 = vld [vmem:[%s5942_s1 + $0x18] sm:$0xff] (!%p158_p3)   ;;  %v4871_v8 = vld [vmem:[%s5942_s1 + $0x28] sm:$0xff] (!%p158_p3)   ;;  %vm1029_vm1 = vcmask (!%p158_p3), 1046528   ;;  %vm590_vm2 = vsmask.f32 (!%p158_p3), 7424 }
   0xb   : > { %4810 = vmatpush3.bf16.msra.mxu1 (!%p158_p3), %v4854_v0  ;;  %4485 = vmatpush3.bf16.msra.mxu0 (!%p158_p3), %v4854_v0  ;;  %v5069_v12 = vld [vmem:[%s5942_s1 + $0x30] sm:$0xff] (!%p158_p3)   ;;  %v5076_v13 = vld [vmem:[%s5942_s1 + $0x40] sm:$0xff] (!%p158_p3)   ;;  %v4878_v51 = vld [vmem:[%s5942_s1 + $0x38] sm:$0xff] (!%p158_p3)  }
   0xc   : > { %4809 = vmatprep.subr.bf16.mxu1 (!%p158_p3), %v4855_v1  ;;  %4486 = vmatprep.subr.bf16.mxu0 (!%p158_p3), %v4855_v1  ;;  %v4879_v53 = vld [vmem:[%s5942_s1 + $0x48] sm:$0xff] (!%p158_p3)   ;;  %v5168_v58 = vld [vmem:[%s5942_s1 + $0x60] sm:$0xff] (!%p158_p3)   ;;  %v5174_v61 = vld [vmem:[%s5942_s1 + $0x50] sm:$0xff] (!%p158_p3)  }
   0xf   : > { %4811 = vmatpush3.bf16.msra.mxu1 (!%p158_p3), %v4855_v1  ;;  %4487 = vmatpush3.bf16.msra.mxu0 (!%p158_p3), %v4855_v1 }
  0x10   : > { %s5956_s13 = smov (!%p190_p5, %s4949_s13), 1  ;;  %4520 = vmatprep.subr.bf16.mxu1 %v4858_v2  ;;  %4556 = vmatprep.subr.bf16.mxu0 %v4861_v3 }
  0x11   : > { %s193_s23 = scalar_select %p192_p6, %s4945_s12, 1 }
  0x12   : > { %s4813_s26 = smul.u32 88, %s5956_s13  ;;  %s4006_s24 = sshll.u32 %s5956_s13, 5 }
  0x13   : > { %s4812_s29 = smul.u32 44, %s193_s23 }
  0x15   : > { %s196_s30 = sadd.s32 %s4813_s26, %s4812_s29 }
  0x16   : > { %s4003_s4 = sshll.u32 %s196_s30, 2 }
  0x17   : > { %s5035_s7 = scalar_lea.vmem %s5941_s0, %s4003_s4 }
  0x18   : > { %v4856_v4 = vld [vmem:[%s5035_s7] sm:$0xff]   ;;  %v5046_v7 = vld [vmem:[%s5035_s7 + $0x8] sm:$0xff]   ;;  %v5059_v10 = vld [vmem:[%s5035_s7 + $0x10] sm:$0xff]  }
  0x19   : > { %v5039_v5 = vld [vmem:[%s5035_s7 + $0x40] sm:$0xff]   ;;  %4488 = vmatprep.mubr.msk.bf16.mxu0 %vm340_vm0, %v4856_v4  ;;  %v5054_v9 = vld [vmem:[%s5035_s7 + $0x48] sm:$0xff]   ;;  %v5064_v11 = vld [vmem:[%s5035_s7 + $0x50] sm:$0xff]   ;;  %v593_v18 = vshll.u32 %v4856_v4, 16  ;;  %v591_v23 = vshrl.u32 %v4856_v4, 16  ;;  %v597_v25 = vshll.u32 %v5046_v7, 16 }
  0x1a   : > { %4504 = vmatprep.mubr.msk.bf16.mxu1 %vm340_vm0, %v5039_v5  ;;  %4489 = vmatmul.mubr.msk.bf16.vlgmr.msra.gmra.mrb[0].mxu0 %vm340_vm0, %v5046_v7  ;;  %v5081_v14 = vld [vmem:[%s5035_s7 + $0x18] sm:$0xff]   ;;  %v5087_v16 = vld [vmem:[%s5035_s7 + $0x20] sm:$0xff]   ;;  %v5103_v19 = vld [vmem:[%s5035_s7 + $0x28] sm:$0xff]   ;;  %v1030_v26 = vrot.slane %v4856_v4, 1  ;;  %v1031_v27 = vrot.slane %v5046_v7, 1  ;;  %v604_v32 = vshll.u32 %v5059_v10, 16 }
  0x1b   : > { %4505 = vmatmul.mubr.msk.bf16.vlgmr.msra.gmra.mrb[0].mxu1 %vm340_vm0, %v5054_v9  ;;  %4557 = vmatpush3.bf16.msra.mxu0 %v4861_v3  ;;  %v5084_v15 = vld [vmem:[%s5035_s7 + $0x58] sm:$0xff]   ;;  %v5090_v17 = vld [vmem:[%s5035_s7 + $0x60] sm:$0xff]   ;;  %v5106_v20 = vld [vmem:[%s5035_s7 + $0x68] sm:$0xff]   ;;  %v595_v24 = vrot.slane %v593_v18, 1  ;;  %v599_v29 = vrot.slane %v597_v25, 1  ;;  %v601_v33 = vshrl.u32 %v5046_v7, 16 }
  0x1c   : > { %4521 = vmatpush3.bf16.msra.mxu1 %v4858_v2  ;;  %4492 = vmatprep.mubr.msk.bf16.mxu0 %vm340_vm0, %v5059_v10  ;;  %v5109_v21 = vld [vmem:[%s5035_s7 + $0x30] sm:$0xff]   ;;  %v5125_v30 = vld [vmem:[%s5035_s7 + $0x38] sm:$0xff]   ;;  %v1032_v34 = vsel %vm1029_vm1, %v1030_v26, %v1031_v27  ;;  %v608_v36 = vshrl.u32 %v5059_v10, 16  ;;  %v611_v37 = vshll.u32 %v5081_v14, 16  ;;  %v606_v38 = vrot.slane %v604_v32, 1 }
  0x1d   : > { %4508 = vmatprep.mubr.msk.bf16.mxu1 %vm340_vm0, %v5064_v11  ;;  %4522 = vmatprep.subr.bf16.mxu1 %v4868_v6  ;;  %v5112_v22 = vld [vmem:[%s5035_s7 + $0x70] sm:$0xff]   ;;  %v596_v28 = vor.u32 %v595_v24, %v591_v23  ;;  %v5128_v31 = vld [vmem:[%s5035_s7 + $0x78] sm:$0xff]   ;;  %v1033_v39 = vrot.slane %v5059_v10, 1  ;;  %v603_v40 = vor.u32 %v601_v33, %v599_v29  ;;  %v1035_v43 = vrot.slane %v5081_v14, 1 }
  0x1e   : > { %4558 = vmatprep.subr.bf16.mxu0 %v4871_v8  ;;  %v610_v41 = vor.u32 %v608_v36, %v606_v38  ;;  %v613_v42 = vrot.slane %v611_v37, 1  ;;  %v618_v45 = vshll.u32 %v5087_v16, 16  ;;  %v615_v47 = vshrl.u32 %v5081_v14, 16  ;;  %v5213_v36 = vld [vmem:[%s5035_s7 + $0x20] sm:$0xff]  }
  0x1f   : > { %4559 = vmatpush3.bf16.msra.mxu0 %v4871_v8  ;;  %v600_v35 = vsel %vm590_vm2, %v596_v28, %v599_v29  ;;  %v1034_v44 = vsel %vm1029_vm1, %v1031_v27, %v1033_v39  ;;  %v607_v46 = vsel %vm590_vm2, %v603_v40, %v606_v38  ;;  %v622_v49 = vshrl.u32 %v5087_v16, 16 }
  0x20   : > { %4523 = vmatpush3.bf16.msra.mxu1 %v4868_v6  ;;  %4628 = vmatprep.subr.bf16.mxu0 %v5076_v13  ;;  %v614_v48 = vsel %vm590_vm2, %v610_v41, %v613_v42  ;;  %v625_v50 = vshll.u32 %v5103_v19, 16  ;;  %v1036_v52 = vsel %vm1029_vm1, %v1033_v39, %v1035_v43  ;;  %v620_v54 = vrot.slane %v618_v45, 1 }
  0x21   : > { %4592 = vmatprep.subr.bf16.mxu1 %v5069_v12  ;;  %v1037_v55 = vrot.slane %v5087_v16, 1  ;;  %v617_v56 = vor.u32 %v615_v47, %v613_v42  ;;  %v1039_v57 = vrot.slane %v5103_v19, 1  ;;  %v632_v63 = vshll.u32 %v5109_v21, 16 }
  0x22   : > { %4493 = vmatmul.mubr.msk.bf16.gmra.mrb[4].mxu0 %vm340_vm0, %v5081_v14  ;;  %v624_v59 = vor.u32 %v622_v49, %v620_v54  ;;  %v627_v60 = vrot.slane %v625_v50, 1  ;;  %v629_v2 = vshrl.u32 %v5103_v19, 16  ;;  %v636_v4 = vshrl.u32 %v5109_v21, 16 }
  0x23   : > { %4509 = vmatmul.mubr.msk.bf16.gmra.mrb[4].mxu1 %vm340_vm0, %v5084_v15  ;;  %4496 = vmatprep.mubr.msk.bf16.mxu0 %vm340_vm0, %v5087_v16  ;;  %v1038_v62 = vsel %vm1029_vm1, %v1035_v43, %v1037_v55  ;;  %v621_v0 = vsel %vm590_vm2, %v617_v56, %v620_v54  ;;  %v1040_v1 = vsel %vm1029_vm1, %v1037_v55, %v1039_v57  ;;  %v639_v6 = vshll.u32 %v5125_v30, 16 }
  0x24   : > { %4512 = vmatprep.mubr.msk.bf16.mxu1 %vm340_vm0, %v5090_v17  ;;  %v628_v3 = vsel %vm590_vm2, %v624_v59, %v627_v60  ;;  %v634_v7 = vrot.slane %v632_v63, 1  ;;  %v1041_v8 = vrot.slane %v5109_v21, 1  ;;  %v631_v10 = vor.u32 %v629_v2, %v627_v60 }
  0x25   : > { %v641_v14 = vrot.slane %v639_v6, 1  ;;  %v646_v18 = vshll.u32 %v5039_v5, 16  ;;  %v643_v24 = vshrl.u32 %v5125_v30, 16  ;;  %v650_v25 = vshrl.u32 %v5039_v5, 16 }
  0x26   : > { %v1042_v16 = vsel %vm1029_vm1, %v1039_v57, %v1041_v8  ;;  %v653_v26 = vshll.u32 %v5054_v9, 16  ;;  %v1045_v28 = vrot.slane %v5039_v5, 1  ;;  %v657_v38 = vshrl.u32 %v5054_v9, 16 }
  0x27   : > { %v648_v27 = vrot.slane %v646_v18, 1  ;;  %v645_v29 = vor.u32 %v643_v24, %v641_v14  ;;  %v660_v39 = vshll.u32 %v5064_v11, 16  ;;  %v664_v41 = vshrl.u32 %v5064_v11, 16  ;;  %v4880_v18 = vld [vmem:[%s5035_s7 + $0x80] ss:$0 sps:$4 sm:$0xff]  }
  0x28   : > { %v655_v33 = vrot.slane %v653_v26, 1  ;;  %v1049_v47 = vrot.slane %v5064_v11, 1  ;;  %v671_v54 = vshrl.u32 %v5084_v15, 16  ;;  %v674_v55 = vshll.u32 %v5090_v17, 16 }
  0x29   : > { %v652_v32 = vor.u32 %v650_v25, %v648_v27  ;;  %v649_v5 = vsel %vm590_vm2, %v645_v29, %v648_v27  ;;  %v678_v60 = vshrl.u32 %v5090_v17, 16  ;;  %v1053_v63 = vrot.slane %v5090_v17, 1 }
  0x2a   : > { %4497 = vmatmul.mubr.msk.bf16.gmra.mrb[8].mxu0 %vm340_vm0, %v5103_v19  ;;  %v635_v19 = vsel %vm590_vm2, %v631_v10, %v634_v7  ;;  %v659_v50 = vor.u32 %v657_v38, %v655_v33  ;;  %v685_v6 = vshrl.u32 %v5106_v20, 16  ;;  %v699_v27 = vshrl.u32 %v5128_v31, 16 }
  0x2b   : > { %4513 = vmatmul.mubr.msk.bf16.gmra.mrb[8].mxu1 %vm340_vm0, %v5106_v20  ;;  %4500 = vmatprep.mubr.msk.bf16.mxu0 %vm340_vm0, %v5109_v21  ;;  %v656_v43 = vsel %vm590_vm2, %v652_v32, %v655_v33 }
  0x2c   : > { %4516 = vmatprep.mubr.msk.bf16.mxu1 %vm340_vm0, %v5112_v22 }
  0x32   : > { %4501 = vmatmul.mubr.msk.bf16.gmra.mrb[12].mxu0 %vm340_vm0, %v5125_v30 }
  0x33   : > { %4517 = vmatmul.mubr.msk.bf16.gmra.mrb[12].mxu1 %vm340_vm0, %v5128_v31  ;;  %4560 = vmatprep.mubr.msk.bf16.mxu0 %vm340_vm0, %v1032_v34  ;;  %v5207_v34 = vld [vmem:[%s5035_s7 + $0x10] sm:$0xff]  }
  0x34   : > { %4524 = vmatprep.mubr.msk.bf16.mxu1 %vm340_vm0, %v600_v35  ;;  %v5210_v35 = vld [vmem:[%s5035_s7 + $0x18] sm:$0xff]   ;;  %v2262_v42 = vrot.slane %v5207_v34, 1 }
  0x35   : > { %v2263_v45 = vrot.slane %v5210_v35, 1  ;;  %v1830_v32 = vshll.u32 %v5210_v35, 16 }
  0x3a   : > { %4561 = vmatmul.mubr.msk.bf16.vlgmr.msra.gmra.mrb[16].mxu0 %vm340_vm0, %v1034_v44  ;;  %v667_v44 = vshll.u32 %v5084_v15, 16 }
  0x3b   : > { %4525 = vmatmul.mubr.msk.bf16.vlgmr.msra.gmra.mrb[16].mxu1 %vm340_vm0, %v607_v46  ;;  %4629 = vmatpush3.bf16.msra.mxu0 %v5076_v13  ;;  %v638_v13 = vor.u32 %v636_v4, %v634_v7  ;;  %v2265_v46 = vrot.slane %v5213_v36, 1  ;;  %v688_v7 = vshll.u32 %v5112_v22, 16 }
  0x3c   : > { %4593 = vmatpush3.bf16.msra.mxu1 %v5069_v12  ;;  %4528 = vmatprep.mubr.msk.bf16.mxu1 %vm340_vm0, %v614_v48  ;;  %v1043_v12 = vrot.slane %v5125_v30, 1  ;;  %v1047_v30 = vrot.slane %v5054_v9, 1  ;;  %v662_v9 = vrot.slane %v660_v39, 1  ;;  %v5231_v48 = vsel %vm1029_vm1, %v2262_v42, %v2263_v45 }
  0x3d   : > { %4564 = vmatprep.mubr.msk.bf16.mxu0 %vm340_vm0, %v1036_v52  ;;  %4594 = vmatprep.subr.bf16.mxu1 %v4878_v51  ;;  %v642_v21 = vsel %vm590_vm2, %v638_v13, %v641_v14  ;;  %v5236_v49 = vsel %vm1029_vm1, %v2263_v45, %v2265_v46  ;;  %v695_v13 = vshll.u32 %v5128_v31, 16  ;;  %v1834_v42 = vshrl.u32 %v5210_v35, 16 }
  0x3e   : > { %4630 = vmatprep.subr.bf16.mxu0 %v4879_v53  ;;  %v1044_v23 = vsel %vm1029_vm1, %v1041_v8, %v1043_v12  ;;  %v1046_v37 = vsel %vm1029_vm1, %v1043_v12, %v1045_v28  ;;  %v1048_v40 = vsel %vm1029_vm1, %v1045_v28, %v1047_v30  ;;  %v666_v52 = vor.u32 %v664_v41, %v662_v9 }
  0x3f   : > { %4631 = vmatpush3.bf16.msra.mxu0 %v4879_v53  ;;  %v669_v53 = vrot.slane %v667_v44, 1  ;;  %v1050_v11 = vsel %vm1029_vm1, %v1047_v30, %v1049_v47  ;;  %v663_v56 = vsel %vm590_vm2, %v659_v50, %v662_v9  ;;  %v692_v12 = vshrl.u32 %v5112_v22, 16  ;;  %v5293_v50 = vld [vmem:[%s5035_s7 + $0x30] sm:$0xff]  }
  0x40   : > { %4595 = vmatpush3.bf16.msra.mxu1 %v4878_v51  ;;  %4700 = vmatprep.subr.bf16.mxu0 %v5168_v58  ;;  %v1051_v51 = vrot.slane %v5084_v15, 1  ;;  %v676_v15 = vrot.slane %v674_v55, 1  ;;  %v703_v28 = vshll.u32 %v4880_v18, 16  ;;  %v1841_v9 = vshrl.u32 %v5213_v36, 16 }
  0x41   : > { %4664 = vmatprep.subr.bf16.mxu1 %v5174_v61  ;;  %v670_v59 = vsel %vm590_vm2, %v666_v52, %v669_v53 }
  0x42   : > { %4565 = vmatmul.mubr.msk.bf16.gmra.mrb[20].mxu0 %vm340_vm0, %v1038_v62  ;;  %v1052_v57 = vsel %vm1029_vm1, %v1049_v47, %v1051_v51  ;;  %v681_v62 = vshll.u32 %v5106_v20, 16  ;;  %v680_v2 = vor.u32 %v678_v60, %v676_v15  ;;  %v1054_v4 = vsel %vm1029_vm1, %v1051_v51, %v1053_v63 }
  0x43   : > { %4529 = vmatmul.mubr.msk.bf16.gmra.mrb[20].mxu1 %vm340_vm0, %v621_v0  ;;  %4568 = vmatprep.mubr.msk.bf16.mxu0 %vm340_vm0, %v1040_v1  ;;  %v673_v0 = vor.u32 %v671_v54, %v669_v53  ;;  %v1055_v1 = vrot.slane %v5106_v20, 1  ;;  %v690_v20 = vrot.slane %v688_v7, 1  ;;  %v705_v38 = vrot.slane %v703_v28, 1  ;;  %v5300_v53 = vld [vmem:[%s5035_s7 + $0x38] sm:$0xff]   ;;  %v5366_v28 = vld [vmem:[%s5035_s7 + $0x60] sm:$0xff]  }
  0x44   : > { %4532 = vmatprep.mubr.msk.bf16.mxu1 %vm340_vm0, %v628_v3  ;;  %v683_v3 = vrot.slane %v681_v62, 1  ;;  %v1858_v60 = vshll.u32 %v5300_v53, 16  ;;  %v4893_v62 = vld [vmem:[%s5942_s1 + $0x58] sm:$0xff]   ;;  %v1862_v7 = vshrl.u32 %v5300_v53, 16 }
  0x45   : > { %v677_v8 = vsel %vm590_vm2, %v673_v0, %v676_v15  ;;  %v1056_v10 = vsel %vm1029_vm1, %v1053_v63, %v1055_v1  ;;  %v694_v24 = vor.u32 %v692_v12, %v690_v20  ;;  %v5313_v63 = vld [vmem:[%s5035_s7 + $0x40] sm:$0xff]   ;;  %v4895_v0 = vld [vmem:[%s5942_s1 + $0x68] sm:$0xff]  }
  0x46   : > { %v684_v17 = vsel %vm590_vm2, %v680_v2, %v683_v3  ;;  %v687_v14 = vor.u32 %v685_v6, %v683_v3  ;;  %v1860_v3 = vrot.slane %v1858_v60, 1  ;;  %v5330_v6 = vld [vmem:[%s5942_s1 + $0x80] sm:$0xff]  }
  0x48   : > { %v691_v25 = vsel %vm590_vm2, %v687_v14, %v690_v20  ;;  %v1864_v14 = vor.u32 %v1862_v7, %v1860_v3 }
  0x4a   : > { %4569 = vmatmul.mubr.msk.bf16.gmra.mrb[24].mxu0 %vm340_vm0, %v1042_v16  ;;  %v1057_v16 = vrot.slane %v5112_v22, 1  ;;  %v1824_v22 = vshrl.u32 %v5207_v34, 16 }
  0x4b   : > { %4533 = vmatmul.mubr.msk.bf16.gmra.mrb[24].mxu1 %vm340_vm0, %v635_v19  ;;  %4572 = vmatprep.mubr.msk.bf16.mxu0 %vm340_vm0, %v1044_v23  ;;  %v1059_v19 = vrot.slane %v5128_v31, 1  ;;  %v1826_v23 = vshll.u32 %v5207_v34, 16 }
  0x4c   : > { %4536 = vmatprep.mubr.msk.bf16.mxu1 %vm340_vm0, %v642_v21  ;;  %v697_v21 = vrot.slane %v695_v13, 1  ;;  %v1058_v26 = vsel %vm1029_vm1, %v1055_v1, %v1057_v16  ;;  %v5348_v13 = vld [vmem:[%s5035_s7 + $0x50] sm:$0xff]  }
  0x4d   : > { %v1060_v29 = vsel %vm1029_vm1, %v1057_v16, %v1059_v19  ;;  %v1828_v30 = vrot.slane %v1826_v23, 1 }
  0x4e   : > { %v698_v33 = vsel %vm590_vm2, %v694_v24, %v697_v21  ;;  %v701_v31 = vor.u32 %v699_v27, %v697_v21 }
  0x4f   : > { %v1829_v39 = vor.u32 %v1828_v30, %v1824_v22 }
  0x50   : > { %v706_v44 = vsel %vm590_vm2, %v701_v31, %v705_v38 }
  0x52   : > { %4573 = vmatmul.mubr.msk.bf16.gmra.mrb[28].mxu0 %vm340_vm0, %v1046_v37  ;;  %v1061_v37 = vrot.slane %v4880_v18, 1  ;;  %v5356_v18 = vld [vmem:[%s5035_s7 + $0x58] sm:$0xff]  }
  0x53   : > { %4537 = vmatmul.mubr.msk.bf16.gmra.mrb[28].mxu1 %vm340_vm0, %v649_v5  ;;  %4576 = vmatprep.mubr.msk.bf16.mxu0 %vm340_vm0, %v1048_v40  ;;  %v1832_v5 = vrot.slane %v1830_v32, 1  ;;  %v5282_v40 = vld [vmem:[%s5035_s7 + $0x28] sm:$0xff]   ;;  %v1890_v31 = vshrl.u32 %v5356_v18, 16 }
  0x54   : > { %4540 = vmatprep.mubr.msk.bf16.mxu1 %vm340_vm0, %v656_v43  ;;  %v1062_v41 = vsel %vm1029_vm1, %v1059_v19, %v1061_v37  ;;  %v1837_v43 = vshll.u32 %v5213_v36, 16  ;;  %v1844_v47 = vshll.u32 %v5282_v40, 16  ;;  %v1879_v19 = vshll.u32 %v5348_v13, 16  ;;  %v5374_v32 = vld [vmem:[%s5035_s7 + $0x68] sm:$0xff]  }
  0x55   : > { %v1833_v45 = vsel %vm590_vm2, %v1829_v39, %v1832_v5  ;;  %v1836_v51 = vor.u32 %v1834_v42, %v1832_v5  ;;  %v1897_v39 = vshrl.u32 %v5366_v28, 16  ;;  %v1900_v5 = vshll.u32 %v5374_v32, 16  ;;  %v5384_v42 = vld [vmem:[%s5035_s7 + $0x70] sm:$0xff]  }
  0x56   : > { %v1839_v52 = vrot.slane %v1837_v43, 1  ;;  %v1846_v55 = vrot.slane %v1844_v47, 1  ;;  %v1881_v27 = vrot.slane %v1879_v19, 1  ;;  %v1907_v47 = vshll.u32 %v5384_v42, 16 }
  0x58   : > { %v1843_v54 = vor.u32 %v1841_v9, %v1839_v52  ;;  %v5392_v9 = vld [vmem:[%s5035_s7 + $0x78] sm:$0xff]  }
  0x5a   : > { %4577 = vmatmul.mubr.msk.bf16.gmra.mrb[32].mxu0 %vm340_vm0, %v1050_v11  ;;  %v1851_v11 = vshll.u32 %v5293_v50, 16 }
  0x5b   : > { %4541 = vmatmul.mubr.msk.bf16.gmra.mrb[32].mxu1 %vm340_vm0, %v663_v56  ;;  %4580 = vmatprep.mubr.msk.bf16.mxu0 %vm340_vm0, %v1052_v57  ;;  %v1840_v56 = vsel %vm590_vm2, %v1836_v51, %v1839_v52  ;;  %v1848_v57 = vshrl.u32 %v5282_v40, 16  ;;  %v1904_v52 = vshrl.u32 %v5374_v32, 16 }
  0x5c   : > { %4544 = vmatprep.mubr.msk.bf16.mxu1 %vm340_vm0, %v670_v59  ;;  %v1855_v59 = vshrl.u32 %v5293_v50, 16  ;;  %v1853_v15 = vrot.slane %v1851_v11, 1  ;;  %v1914_v11 = vshll.u32 %v5392_v9, 16 }
  0x5d   : > { %v1850_v1 = vor.u32 %v1848_v57, %v1846_v55  ;;  %v5402_v57 = vld [vmem:[%s5035_s7 + $0x80] sm:$0xff]  }
  0x5e   : > { %v1857_v2 = vor.u32 %v1855_v59, %v1853_v15 }
  0x62   : > { %4581 = vmatmul.mubr.msk.bf16.gmra.mrb[36].mxu0 %vm340_vm0, %v1054_v4  ;;  %v5325_v4 = vld [vmem:[%s5035_s7 + $0x48] sm:$0xff]  }
  0x63   : > { %4545 = vmatmul.mubr.msk.bf16.gmra.mrb[36].mxu1 %vm340_vm0, %v677_v8  ;;  %4584 = vmatprep.mubr.msk.bf16.mxu0 %vm340_vm0, %v1056_v10  ;;  %v1861_v8 = vsel %vm590_vm2, %v1857_v2, %v1860_v3  ;;  %v1869_v10 = vshrl.u32 %v5313_v63, 16  ;;  %v1876_v24 = vshrl.u32 %v5325_v4, 16  ;;  %v1925_v3 = vshrl.u32 %v5402_v57, 16 }
  0x64   : > { %4548 = vmatprep.mubr.msk.bf16.mxu1 %vm340_vm0, %v684_v17  ;;  %v1872_v17 = vshll.u32 %v5325_v4, 16 }
  0x66   : > { %v1874_v16 = vrot.slane %v1872_v17, 1 }
  0x6a   : > { %4585 = vmatmul.mubr.msk.bf16.gmra.mrb[40].mxu0 %vm340_vm0, %v1058_v26  ;;  %v1886_v26 = vshll.u32 %v5356_v18, 16 }
  0x6b   : > { %4549 = vmatmul.mubr.msk.bf16.gmra.mrb[40].mxu1 %vm340_vm0, %v691_v25  ;;  %4588 = vmatprep.mubr.msk.bf16.mxu0 %vm340_vm0, %v1060_v29  ;;  %v1883_v25 = vshrl.u32 %v5348_v13, 16  ;;  %v1878_v29 = vor.u32 %v1876_v24, %v1874_v16 }
  0x6c   : > { %4552 = vmatprep.mubr.msk.bf16.mxu1 %vm340_vm0, %v698_v33  ;;  %v1888_v30 = vrot.slane %v1886_v26, 1  ;;  %v1893_v33 = vshll.u32 %v5366_v28, 16  ;;  %v5450_v26 = vld [vmem:[%s5035_s7 + $0x28] sm:$0xff]  }
  0x6d   : > { %v1885_v22 = vor.u32 %v1883_v25, %v1881_v27  ;;  %v1882_v37 = vsel %vm590_vm2, %v1878_v29, %v1881_v27  ;;  %v2267_v25 = vrot.slane %v5282_v40, 1  ;;  %v5456_v29 = vld [vmem:[%s5035_s7 + $0x30] sm:$0xff]  }
  0x6e   : > { %v1892_v43 = vor.u32 %v1890_v31, %v1888_v30 }
  0x6f   : > { %v1889_v38 = vsel %vm590_vm2, %v1885_v22, %v1888_v30  ;;  %v2268_v27 = vsel %vm1029_vm1, %v2265_v46, %v2267_v25  ;;  %v4913_v22 = vld [vmem:[%s5942_s1 + $0x78] sm:$0xff]   ;;  %v2271_v46 = vrot.slane %v5300_v53, 1  ;;  %v5492_v30 = vld [vmem:[%s5035_s7 + $0x48] sm:$0xff]  }
  0x72   : > { %4589 = vmatmul.mubr.msk.bf16.gmra.mrb[44].mxu0 %vm340_vm0, %v1062_v41  ;;  %v1895_v41 = vrot.slane %v1893_v33, 1  ;;  %v5495_v33 = vld [vmem:[%s5035_s7 + $0x50] sm:$0xff]  }
  0x73   : > { %4553 = vmatmul.mubr.msk.bf16.gmra.mrb[44].mxu1 %vm340_vm0, %v706_v44  ;;  %4632 = vmatprep.mubr.msk.bf16.mxu0 %vm340_vm0, %v1833_v45  ;;  %v1902_v45 = vrot.slane %v1900_v5, 1 }
  0x74   : > { %4596 = vmatprep.mubr.msk.bf16.mxu1 %vm340_vm0, %v5207_v34  ;;  %v1847_v34 = vsel %vm590_vm2, %v1843_v54, %v1846_v55  ;;  %v1899_v44 = vor.u32 %v1897_v39, %v1895_v41  ;;  %v1896_v51 = vsel %vm590_vm2, %v1892_v43, %v1895_v41  ;;  %v1911_v55 = vshrl.u32 %v5384_v42, 16  ;;  %v5511_v39 = vld [vmem:[%s5035_s7 + $0x60] sm:$0xff]   ;;  %v5524_v43 = vld [vmem:[%s5035_s7 + $0x68] sm:$0xff]  }
  0x75   : > { %v1906_v59 = vor.u32 %v1904_v52, %v1902_v45  ;;  %v5543_v52 = vld [vmem:[%s5035_s7 + $0x80] sm:$0xff]  }
  0x76   : > { %v1903_v54 = vsel %vm590_vm2, %v1899_v44, %v1902_v45  ;;  %v5527_v44 = vld [vmem:[%s5035_s7 + $0x70] sm:$0xff]  }
  0x7a   : > { %4633 = vmatmul.mubr.msk.bf16.vlgmr.msra.gmra.mrb[48].mxu0 %vm340_vm0, %v1840_v56  ;;  %v1909_v56 = vrot.slane %v1907_v47, 1 }
  0x7b   : > { %4597 = vmatmul.mubr.msk.bf16.vlgmr.msra.gmra.mrb[48].mxu1 %vm340_vm0, %v5210_v35  ;;  %4701 = vmatpush3.bf16.msra.mxu0 %v5168_v58  ;;  %v5336_v58 = vld [vmem:[%s5942_s1 + $0x70] sm:$0xff]   ;;  %v1854_v35 = vsel %vm590_vm2, %v1850_v1, %v1853_v15  ;;  %v1921_v15 = vshll.u32 %v5402_v57, 16  ;;  %v1918_v1 = vshrl.u32 %v5392_v9, 16 }
  0x7c   : > { %4665 = vmatpush3.bf16.msra.mxu1 %v5174_v61  ;;  %4600 = vmatprep.mubr.msk.bf16.mxu1 %vm340_vm0, %v5213_v36  ;;  %v1865_v61 = vshll.u32 %v5313_v63, 16  ;;  %v1913_v60 = vor.u32 %v1911_v55, %v1909_v56  ;;  %v2269_v36 = vrot.slane %v5293_v50, 1 }
  0x7d   : > { %4636 = vmatprep.mubr.msk.bf16.mxu0 %vm340_vm0, %v1847_v34  ;;  %4666 = vmatprep.subr.bf16.mxu1 %v4893_v62  ;;  %v5410_v34 = vld [vmem:[%s5035_s7 + $0x88] sm:$0xff]  }
  0x7e   : > { %4702 = vmatprep.subr.bf16.mxu0 %v4895_v0  ;;  %v1867_v12 = vrot.slane %v1865_v61, 1  ;;  %v1928_v61 = vshll.u32 %v5410_v34, 16 }
  0x7f   : > { %4703 = vmatpush3.bf16.msra.mxu0 %v4895_v0  ;;  %v1910_v0 = vsel %vm590_vm2, %v1906_v59, %v1909_v56  ;;  %v5557_v56 = vld [vmem:[%s5035_s7 + $0x88] sm:$0xff]   ;;  %v5560_v59 = vld [vmem:[%s5035_s7 + $0x90] sm:$0xff]  }
  0x80   : > { %4667 = vmatpush3.bf16.msra.mxu1 %v4893_v62  ;;  %4772 = vmatprep.subr.bf16.mxu0 %v5330_v6  ;;  %v1871_v20 = vor.u32 %v1869_v10, %v1867_v12  ;;  %v1868_v23 = vsel %vm590_vm2, %v1864_v14, %v1867_v12  ;;  %v1916_v62 = vrot.slane %v1914_v11, 1  ;;  %v1930_v17 = vrot.slane %v1928_v61, 1 }
  0x81   : > { %4736 = vmatprep.subr.bf16.mxu1 %v5336_v58  ;;  %v1932_v14 = vshrl.u32 %v5410_v34, 16 }
  0x82   : > { %4637 = vmatmul.mubr.msk.bf16.gmra.mrb[52].mxu0 %vm340_vm0, %v1854_v35  ;;  %v1875_v21 = vsel %vm590_vm2, %v1871_v20, %v1874_v16  ;;  %v1917_v2 = vsel %vm590_vm2, %v1913_v60, %v1916_v62  ;;  %v1923_v35 = vrot.slane %v1921_v15, 1  ;;  %v1920_v7 = vor.u32 %v1918_v1, %v1916_v62 }
  0x83   : > { %4601 = vmatmul.mubr.msk.bf16.gmra.mrb[52].mxu1 %vm340_vm0, %v5282_v40  ;;  %4640 = vmatprep.mubr.msk.bf16.mxu0 %vm340_vm0, %v1861_v8  ;;  %v5423_v8 = vld [vmem:[%s5035_s7 + $0x90] ss:$0 sps:$4 sm:$0xff]   ;;  %v1934_v19 = vor.u32 %v1932_v14, %v1930_v17  ;;  %v5476_v40 = vld [vmem:[%s5035_s7 + $0x38] sm:$0xff]   ;;  %v3062_v1 = vshll.u32 %v5450_v26, 16 }
  0x84   : > { %4604 = vmatprep.mubr.msk.bf16.mxu1 %vm340_vm0, %v5293_v50  ;;  %v1927_v10 = vor.u32 %v1925_v3, %v1923_v35  ;;  %v1924_v12 = vsel %vm590_vm2, %v1920_v7, %v1923_v35  ;;  %v1936_v20 = vshll.u32 %v5423_v8, 16  ;;  %v2273_v50 = vrot.slane %v5313_v63, 1 }
  0x85   : > { %v3064_v35 = vrot.slane %v3062_v1, 1 }
  0x86   : > { %v1931_v16 = vsel %vm590_vm2, %v1927_v10, %v1930_v17  ;;  %v5578_v17 = vld [vmem:[%s5035_s7 + $0x98] sm:$0xff]  }
  0x8a   : > { %4641 = vmatmul.mubr.msk.bf16.gmra.mrb[56].mxu0 %vm340_vm0, %v1868_v23  ;;  %v1938_v23 = vrot.slane %v1936_v20, 1  ;;  %v3069_v20 = vshll.u32 %v5456_v29, 16 }
  0x8b   : > { %4605 = vmatmul.mubr.msk.bf16.gmra.mrb[56].mxu1 %vm340_vm0, %v5300_v53  ;;  %4644 = vmatprep.mubr.msk.bf16.mxu0 %vm340_vm0, %v1875_v21  ;;  %v5439_v21 = vld [vmem:[%s5035_s7 + $0x20] sm:$0xff]   ;;  %v2275_v53 = vrot.slane %v5325_v4, 1 }
  0x8c   : > { %4608 = vmatprep.mubr.msk.bf16.mxu1 %vm340_vm0, %v5313_v63  ;;  %v1939_v24 = vsel %vm590_vm2, %v1934_v19, %v1938_v23  ;;  %v2277_v63 = vrot.slane %v5348_v13, 1  ;;  %v3058_v11 = vshll.u32 %v5439_v21, 16  ;;  %v3056_v15 = vshrl.u32 %v5439_v21, 16 }
  0x8d   : > { %v2276_v31 = vsel %vm1029_vm1, %v2273_v50, %v2275_v53  ;;  %v3066_v23 = vshrl.u32 %v5450_v26, 16 }
  0x8e   : > { %v2278_v5 = vsel %vm1029_vm1, %v2275_v53, %v2277_v63 }
  0x92   : > { %4645 = vmatmul.mubr.msk.bf16.gmra.mrb[60].mxu0 %vm340_vm0, %v1882_v37  ;;  %v2274_v37 = vsel %vm1029_vm1, %v2271_v46, %v2273_v50 }
  0x93   : > { %4609 = vmatmul.mubr.msk.bf16.gmra.mrb[60].mxu1 %vm340_vm0, %v5325_v4  ;;  %4648 = vmatprep.mubr.msk.bf16.mxu0 %vm340_vm0, %v1889_v38  ;;  %v2279_v4 = vrot.slane %v5356_v18, 1  ;;  %v5508_v38 = vld [vmem:[%s5035_s7 + $0x58] sm:$0xff]  }
  0x94   : > { %4612 = vmatprep.mubr.msk.bf16.mxu1 %vm340_vm0, %v5348_v13  ;;  %v2281_v13 = vrot.slane %v5366_v28, 1 }
  0x95   : > { %v2280_v41 = vsel %vm1029_vm1, %v2277_v63, %v2279_v4 }
  0x96   : > { %v2282_v45 = vsel %vm1029_vm1, %v2279_v4, %v2281_v13 }
  0x9a   : > { %4649 = vmatmul.mubr.msk.bf16.gmra.mrb[64].mxu0 %vm340_vm0, %v1896_v51  ;;  %v5540_v51 = vld [vmem:[%s5035_s7 + $0x78] sm:$0xff]  }
  0x9b   : > { %4613 = vmatmul.mubr.msk.bf16.gmra.mrb[64].mxu1 %vm340_vm0, %v5356_v18  ;;  %4652 = vmatprep.mubr.msk.bf16.mxu0 %vm340_vm0, %v1903_v54  ;;  %v2283_v18 = vrot.slane %v5374_v32, 1 }
  0x9c   : > { %4616 = vmatprep.mubr.msk.bf16.mxu1 %vm340_vm0, %v5366_v28  ;;  %v2285_v28 = vrot.slane %v5384_v42, 1 }
  0x9d   : > { %v2284_v47 = vsel %vm1029_vm1, %v2281_v13, %v2283_v18 }
  0x9e   : > { %v2286_v54 = vsel %vm1029_vm1, %v2283_v18, %v2285_v28 }
  0xa2   : > { %4653 = vmatmul.mubr.msk.bf16.gmra.mrb[68].mxu0 %vm340_vm0, %v1910_v0  ;;  %v3060_v0 = vrot.slane %v3058_v11, 1 }
  0xa3   : > { %4617 = vmatmul.mubr.msk.bf16.gmra.mrb[68].mxu1 %vm340_vm0, %v5374_v32  ;;  %4656 = vmatprep.mubr.msk.bf16.mxu0 %vm340_vm0, %v1917_v2  ;;  %v2287_v32 = vrot.slane %v5392_v9, 1  ;;  %v3495_v2 = vrot.slane %v5450_v26, 1 }
  0xa4   : > { %4620 = vmatprep.mubr.msk.bf16.mxu1 %vm340_vm0, %v5384_v42  ;;  %v2289_v42 = vrot.slane %v5402_v57, 1  ;;  %v3061_v61 = vor.u32 %v3060_v0, %v3056_v15 }
  0xa5   : > { %v2288_v55 = vsel %vm1029_vm1, %v2285_v28, %v2287_v32 }
  0xa6   : > { %v2290_v60 = vsel %vm1029_vm1, %v2287_v32, %v2289_v42 }
  0xaa   : > { %4657 = vmatmul.mubr.msk.bf16.gmra.mrb[72].mxu0 %vm340_vm0, %v1924_v12 }
  0xab   : > { %4621 = vmatmul.mubr.msk.bf16.gmra.mrb[72].mxu1 %vm340_vm0, %v5392_v9  ;;  %4660 = vmatprep.mubr.msk.bf16.mxu0 %vm340_vm0, %v1931_v16  ;;  %v2291_v9 = vrot.slane %v5410_v34, 1 }
  0xac   : > { %4624 = vmatprep.mubr.msk.bf16.mxu1 %vm340_vm0, %v5402_v57  ;;  %v2293_v57 = vrot.slane %v5423_v8, 1 }
  0xad   : > { %v2292_v62 = vsel %vm1029_vm1, %v2289_v42, %v2291_v9 }
  0xae   : > { %v2294_v8 = vsel %vm1029_vm1, %v2291_v9, %v2293_v57  ;;  %v3503_v9 = vrot.slane %v5492_v30, 1 }
  0xb2   : > { %4661 = vmatmul.mubr.msk.bf16.gmra.mrb[76].mxu0 %vm340_vm0, %v1939_v24 }
  0xb3   : > { %4625 = vmatmul.mubr.msk.bf16.gmra.mrb[76].mxu1 %vm340_vm0, %v5410_v34  ;;  %4704 = vmatprep.mubr.msk.bf16.mxu0 %vm340_vm0, %v5439_v21  ;;  %v3494_v34 = vrot.slane %v5439_v21, 1 }
  0xb4   : > { %4668 = vmatprep.mubr.msk.bf16.mxu1 %vm340_vm0, %v5231_v48  ;;  %v4915_v48 = vld [vmem:[%s5942_s1 + $0x88] sm:$0xff]  }
  0xb5   : > { %v3496_v24 = vsel %vm1029_vm1, %v3494_v34, %v3495_v2 }
  0xba   : > { %4705 = vmatmul.mubr.msk.bf16.vlgmr.msra.gmra.mrb[80].mxu0 %vm340_vm0, %v5450_v26  ;;  %v3497_v26 = vrot.slane %v5456_v29, 1 }
  0xbb   : > { %4669 = vmatmul.mubr.msk.bf16.vlgmr.msra.gmra.mrb[80].mxu1 %vm340_vm0, %v5236_v49  ;;  %4773 = vmatpush3.bf16.msra.mxu0 %v5330_v6  ;;  %v5479_v49 = vld [vmem:[%s5035_s7 + $0x40] sm:$0xff]   ;;  %v2270_v6 = vsel %vm1029_vm1, %v2267_v25, %v2269_v36  ;;  %v3065_v25 = vsel %vm590_vm2, %v3061_v61, %v3064_v35 }
  0xbc   : > { %4737 = vmatpush3.bf16.msra.mxu1 %v5336_v58  ;;  %4672 = vmatprep.mubr.msk.bf16.mxu1 %vm340_vm0, %v2268_v27  ;;  %v2272_v58 = vsel %vm1029_vm1, %v2269_v36, %v2271_v46  ;;  %v3073_v27 = vshrl.u32 %v5456_v29, 16  ;;  %v3068_v36 = vor.u32 %v3066_v23, %v3064_v35  ;;  %v3499_v46 = vrot.slane %v5476_v40, 1 }
  0xbd   : > { %4708 = vmatprep.mubr.msk.bf16.mxu0 %vm340_vm0, %v5456_v29  ;;  %4738 = vmatprep.subr.bf16.mxu1 %v4913_v22  ;;  %v3498_v4 = vsel %vm1029_vm1, %v3495_v2, %v3497_v26  ;;  %v3087_v32 = vshrl.u32 %v5479_v49, 16  ;;  %v3501_v42 = vrot.slane %v5479_v49, 1  ;;  %v3097_v2 = vshll.u32 %v5495_v33, 16 }
  0xbe   : > { %4774 = vmatprep.subr.bf16.mxu0 %v4915_v48  ;;  %v3500_v18 = vsel %vm1029_vm1, %v3497_v26, %v3499_v46 }
  0xbf   : > { %4775 = vmatpush3.bf16.msra.mxu0 %v4915_v48  ;;  %v3071_v48 = vrot.slane %v3069_v20, 1  ;;  %v3502_v34 = vsel %vm1029_vm1, %v3499_v46, %v3501_v42  ;;  %v3504_v35 = vsel %vm1029_vm1, %v3501_v42, %v3503_v9  ;;  %v3099_v23 = vrot.slane %v3097_v2, 1 }
  0xc0   : > { %4739 = vmatpush3.bf16.msra.mxu1 %v4913_v22  ;;  %v3076_v22 = vshll.u32 %v5476_v40, 16 }
  0xc1   : > { %v3072_v13 = vsel %vm590_vm2, %v3068_v36, %v3071_v48 }
  0xc2   : > { %4709 = vmatmul.mubr.msk.bf16.gmra.mrb[84].mxu0 %vm340_vm0, %v5476_v40  ;;  %v3078_v50 = vrot.slane %v3076_v22, 1 }
  0xc3   : > { %4673 = vmatmul.mubr.msk.bf16.gmra.mrb[84].mxu1 %vm340_vm0, %v2270_v6  ;;  %4712 = vmatprep.mubr.msk.bf16.mxu0 %vm340_vm0, %v5479_v49 }
  0xc4   : > { %4676 = vmatprep.mubr.msk.bf16.mxu1 %vm340_vm0, %v2272_v58  ;;  %v3075_v58 = vor.u32 %v3073_v27, %v3071_v48 }
  0xc6   : > { %v3079_v28 = vsel %vm590_vm2, %v3075_v58, %v3078_v50 }
  0xca   : > { %4713 = vmatmul.mubr.msk.bf16.gmra.mrb[88].mxu0 %vm340_vm0, %v5492_v30 }
  0xcb   : > { %4677 = vmatmul.mubr.msk.bf16.gmra.mrb[88].mxu1 %vm340_vm0, %v2274_v37  ;;  %4716 = vmatprep.mubr.msk.bf16.mxu0 %vm340_vm0, %v5495_v33 }
  0xcc   : > { %4680 = vmatprep.mubr.msk.bf16.mxu1 %vm340_vm0, %v2276_v31 }
  0xd2   : > { %4717 = vmatmul.mubr.msk.bf16.gmra.mrb[92].mxu0 %vm340_vm0, %v5508_v38 }
  0xd3   : > { %4681 = vmatmul.mubr.msk.bf16.gmra.mrb[92].mxu1 %vm340_vm0, %v2278_v5  ;;  %4720 = vmatprep.mubr.msk.bf16.mxu0 %vm340_vm0, %v5511_v39  ;;  %v3083_v5 = vshll.u32 %v5479_v49, 16 }
  0xd4   : > { %4684 = vmatprep.mubr.msk.bf16.mxu1 %vm340_vm0, %v2280_v41 }
  0xda   : > { %4721 = vmatmul.mubr.msk.bf16.gmra.mrb[96].mxu0 %vm340_vm0, %v5524_v43 }
  0xdb   : > { %4685 = vmatmul.mubr.msk.bf16.gmra.mrb[96].mxu1 %vm340_vm0, %v2282_v45  ;;  %4724 = vmatprep.mubr.msk.bf16.mxu0 %vm340_vm0, %v5527_v44  ;;  %v3080_v45 = vshrl.u32 %v5476_v40, 16 }
  0xdc   : > { %4688 = vmatprep.mubr.msk.bf16.mxu1 %vm340_vm0, %v2284_v47 }
  0xdd   : > { %v3082_v40 = vor.u32 %v3080_v45, %v3078_v50  ;;  %v3111_v50 = vshll.u32 %v5511_v39, 16  ;;  %v3118_v45 = vshll.u32 %v5524_v43, 16 }
  0xe2   : > { %4725 = vmatmul.mubr.msk.bf16.gmra.mrb[100].mxu0 %vm340_vm0, %v5540_v51 }
  0xe3   : > { %4689 = vmatmul.mubr.msk.bf16.gmra.mrb[100].mxu1 %vm340_vm0, %v2286_v54  ;;  %4728 = vmatprep.mubr.msk.bf16.mxu0 %vm340_vm0, %v5543_v52  ;;  %v3090_v54 = vshll.u32 %v5492_v30, 16 }
  0xe4   : > { %4692 = vmatprep.mubr.msk.bf16.mxu1 %vm340_vm0, %v2288_v55  ;;  %v3085_v55 = vrot.slane %v3083_v5, 1  ;;  %v3108_v5 = vshrl.u32 %v5508_v38, 16 }
  0xe6   : > { %v3086_v61 = vsel %vm590_vm2, %v3082_v40, %v3085_v55  ;;  %v3120_v40 = vrot.slane %v3118_v45, 1  ;;  %v3136_v45 = vshrl.u32 %v5540_v51, 16 }
  0xea   : > { %4729 = vmatmul.mubr.msk.bf16.gmra.mrb[104].mxu0 %vm340_vm0, %v5557_v56 }
  0xeb   : > { %4693 = vmatmul.mubr.msk.bf16.gmra.mrb[104].mxu1 %vm340_vm0, %v2290_v60  ;;  %4732 = vmatprep.mubr.msk.bf16.mxu0 %vm340_vm0, %v5560_v59  ;;  %v3089_v60 = vor.u32 %v3087_v32, %v3085_v55  ;;  %v3509_v32 = vrot.slane %v5511_v39, 1 }
  0xec   : > { %4696 = vmatprep.mubr.msk.bf16.mxu1 %vm340_vm0, %v2292_v62  ;;  %v3092_v62 = vrot.slane %v3090_v54, 1  ;;  %v3511_v54 = vrot.slane %v5524_v43, 1 }
  0xed   : > { %v4490_v3 = vpop.f32.mrb[0].mxu0 }
  0xee   : > { %v4506_v7 = vpop.f32.mrb[0].mxu1  ;;  %v5575_v10 = vpop.f32.mrb[1].mxu0  ;;  %v3093_v20 = vsel %vm590_vm2, %v3089_v60, %v3092_v62 }
  0xef   : > { %v5580_v12 = vpop.f32.mrb[1].mxu1  ;;  %v4491_v14 = vpop.f32.mrb[2].mxu0  ;;  %v3094_v7 = vshrl.u32 %v5492_v30, 16 }
  0xf0   : > { %v4507_v16 = vpop.f32.mrb[2].mxu1  ;;  %v5583_v19 = vpop.f32.mrb[3].mxu0 }
  0xf1   : > { %v5588_v21 = vpop.f32.mrb[3].mxu1  ;;  %v3101_v16 = vshrl.u32 %v5495_v33, 16  ;;  %v3096_v30 = vor.u32 %v3094_v7, %v3092_v62 }
  0xf2   : > { %4733 = vmatmul.mubr.msk.bf16.gmra.mrb[108].mxu0 %vm340_vm0, %v5578_v17 }
  0xf3   : > { %4697 = vmatmul.mubr.msk.bf16.gmra.mrb[108].mxu1 %vm340_vm0, %v2294_v8  ;;  %4776 = vmatprep.mubr.msk.bf16.mxu0 %vm340_vm0, %v3496_v24  ;;  %v3104_v8 = vshll.u32 %v5508_v38, 16  ;;  %v3505_v24 = vrot.slane %v5495_v33, 1  ;;  %v3103_v22 = vor.u32 %v3101_v16, %v3099_v23  ;;  %v3129_v16 = vshrl.u32 %v5527_v44, 16 }
  0xf4   : > { %4740 = vmatprep.mubr.msk.bf16.mxu1 %vm340_vm0, %v3065_v25  ;;  %v3507_v25 = vrot.slane %v5508_v38, 1 }
  0xf5   : > { %v4494_v6 = vpop.f32.mrb[4].mxu0  ;;  %v3106_v48 = vrot.slane %v3104_v8, 1  ;;  %v3506_v58 = vsel %vm1029_vm1, %v3503_v9, %v3505_v24  ;;  %v3132_v8 = vshll.u32 %v5540_v51, 16 }
  0xf6   : > { %v4510_v53 = vpop.f32.mrb[4].mxu1  ;;  %v5600_v37 = vpop.f32.mrb[5].mxu0 }
  0xf7   : > { %v5602_v31 = vpop.f32.mrb[5].mxu1  ;;  %v4495_v63 = vpop.f32.mrb[6].mxu0  ;;  %v3110_v38 = vor.u32 %v3108_v5, %v3106_v48 }
  0xf8   : > { %v4511_v41 = vpop.f32.mrb[6].mxu1  ;;  %v5606_v29 = vpop.f32.mrb[7].mxu0  ;;  %v3100_v63 = vsel %vm590_vm2, %v3096_v30, %v3099_v23 }
  0xf9   : > { %v5611_v47 = vpop.f32.mrb[7].mxu1 }
  0xfa   : > { %4777 = vmatmul.mubr.msk.bf16.vlgmr.msra.gmra.mrb[112].mxu0 %vm340_vm0, %v3498_v4  ;;  %v3508_v4 = vsel %vm1029_vm1, %v3505_v24, %v3507_v25 }
  0xfb   : > { %4741 = vmatmul.mubr.msk.bf16.vlgmr.msra.gmra.mrb[112].mxu1 %vm340_vm0, %v3072_v13  ;;  %4780 = vmatprep.mubr.msk.bf16.mxu0 %vm340_vm0, %v3500_v18  ;;  %v3107_v13 = vsel %vm590_vm2, %v3103_v22, %v3106_v48  ;;  %v3115_v18 = vshrl.u32 %v5511_v39, 16 }
  0xfc   : > { %4744 = vmatprep.mubr.msk.bf16.mxu1 %vm340_vm0, %v3079_v28  ;;  %v3113_v28 = vrot.slane %v3111_v50, 1 }
  0xfd   : > { %v4498_v11 = vpop.f32.mrb[8].mxu0 }
  0xfe   : > { %v4514_v15 = vpop.f32.mrb[8].mxu1  ;;  %v5622_v0 = vpop.f32.mrb[9].mxu0  ;;  %v3117_v42 = vor.u32 %v3115_v18, %v3113_v28 }
  0xff   : > { %v5624_v1 = vpop.f32.mrb[9].mxu1  ;;  %v4499_v57 = vpop.f32.mrb[10].mxu0  ;;  %v3510_v15 = vsel %vm1029_vm1, %v3507_v25, %v3509_v32 }
 0x100   : > { %v4515_v3 = vpop.f32.mrb[10].mxu1  ;;  %v5628_v49 = vpop.f32.mrb[11].mxu0  ;;  %v3125_v57 = vshll.u32 %v5527_v44, 16 }
 0x101   : > { %v5633_v14 = vpop.f32.mrb[11].mxu1  ;;  %v3114_v3 = vsel %vm590_vm2, %v3110_v38, %v3113_v28  ;;  %v3143_v38 = vshrl.u32 %v5543_v52, 16 }
 0x102   : > { %4781 = vmatmul.mubr.msk.bf16.gmra.mrb[116].mxu0 %vm340_vm0, %v3502_v34 }
 0x103   : > { %4745 = vmatmul.mubr.msk.bf16.gmra.mrb[116].mxu1 %vm340_vm0, %v3086_v61  ;;  %4784 = vmatprep.mubr.msk.bf16.mxu0 %vm340_vm0, %v3504_v35  ;;  %v3512_v61 = vsel %vm1029_vm1, %v3509_v32, %v3511_v54  ;;  %v3122_v35 = vshrl.u32 %v5524_v43, 16  ;;  %v3513_v43 = vrot.slane %v5527_v44, 1 }
 0x104   : > { %4748 = vmatprep.mubr.msk.bf16.mxu1 %vm340_vm0, %v3093_v20  ;;  %v3121_v20 = vsel %vm590_vm2, %v3117_v42, %v3120_v40 }
 0x105   : > { %v4502_v27 = vpop.f32.mrb[12].mxu0  ;;  %v3124_v25 = vor.u32 %v3122_v35, %v3120_v40 }
 0x106   : > { %v4518_v26 = vpop.f32.mrb[12].mxu1  ;;  %v5644_v36 = vpop.f32.mrb[13].mxu0  ;;  %v3515_v27 = vrot.slane %v5540_v51, 1  ;;  %v3517_v51 = vrot.slane %v5543_v52, 1 }
 0x107   : > { %v5646_v46 = vpop.f32.mrb[13].mxu1  ;;  %v4503_v6 = vpop.f32.mrb[14].mxu0  ;;  %v3134_v26 = vrot.slane %v3132_v8, 1 }
 0x108   : > { %v4519_v53 = vpop.f32.mrb[14].mxu1  ;;  %v5650_v33 = vpop.f32.mrb[15].mxu0  ;;  %v3516_v18 = vsel %vm1029_vm1, %v3513_v43, %v3515_v27 }
 0x109   : > { %v5655_v41 = vpop.f32.mrb[15].mxu1  ;;  %v3514_v53 = vsel %vm1029_vm1, %v3511_v54, %v3513_v43  ;;  %v3160_v43 = vshll.u32 %v5578_v17, 16 }
 0x10a   : > { %4785 = vmatmul.mubr.msk.bf16.gmra.mrb[120].mxu0 %vm340_vm0, %v3506_v58 }
 0x10b   : > { %4749 = vmatmul.mubr.msk.bf16.gmra.mrb[120].mxu1 %vm340_vm0, %v3100_v63  ;;  %4788 = vmatprep.mubr.msk.bf16.mxu0 %vm340_vm0, %v3508_v4  ;;  %v3139_v63 = vshll.u32 %v5543_v52, 16  ;;  %v3153_v52 = vshll.u32 %v5560_v59, 16 }
 0x10c   : > { %4752 = vmatprep.mubr.msk.bf16.mxu1 %vm340_vm0, %v3107_v13 }
 0x10d   : > { %v4562_v55 = vpop.f32.mrb[16].mxu0 }
 0x10e   : > { %v4526_v9 = vpop.f32.mrb[16].mxu1  ;;  %v1157_v11 = vpop.f32.mrb[17].mxu0  ;;  %v3146_v55 = vshll.u32 %v5557_v56, 16 }
 0x10f   : > { %v801_v60 = vpop.f32.mrb[17].mxu1  ;;  %v4563_v62 = vpop.f32.mrb[18].mxu0  ;;  %v3138_v9 = vor.u32 %v3136_v45, %v3134_v26 }
 0x110   : > { %v960_v34 = vadd.f32 %v801_v60, %v5575_v10  ;;  %v4527_v2 = vpop.f32.mrb[18].mxu1  ;;  %v1160_v39 = vpop.f32.mrb[19].mxu0  ;;  %v3127_v10 = vrot.slane %v3125_v57, 1 }
 0x111   : > { %v804_v7 = vpop.f32.mrb[19].mxu1 }
 0x112   : > { %v5675_v23 = vadd.f32 %v1157_v11, %v960_v34  ;;  %v961_v24 = vadd.f32 %v804_v7, %v5583_v19  ;;  %4789 = vmatmul.mubr.msk.bf16.gmra.mrb[124].mxu0 %vm340_vm0, %v3510_v15  ;;  %v3131_v48 = vor.u32 %v3129_v16, %v3127_v10  ;;  %v3128_v13 = vsel %vm590_vm2, %v3124_v25, %v3127_v10 }
 0x113   : > { %4753 = vmatmul.mubr.msk.bf16.gmra.mrb[124].mxu1 %vm340_vm0, %v3114_v3  ;;  %4792 = vmatprep.mubr.msk.bf16.mxu0 %vm340_vm0, %v3512_v61  ;;  %v3519_v11 = vrot.slane %v5557_v56, 1  ;;  %v3148_v15 = vrot.slane %v3146_v55, 1  ;;  %v3150_v3 = vshrl.u32 %v5557_v56, 16  ;;  %v3157_v10 = vshrl.u32 %v5560_v59, 16 }
 0x114   : > { %v5682_v30 = vadd.f32 %v1160_v39, %v961_v24  ;;  %4756 = vmatprep.mubr.msk.bf16.mxu1 %vm340_vm0, %v3121_v20  ;;  %v3135_v32 = vsel %vm590_vm2, %v3131_v48, %v3134_v26  ;;  %v3518_v39 = vsel %vm1029_vm1, %v3515_v27, %v3517_v51  ;;  %v3155_v27 = vrot.slane %v3153_v52, 1 }
 0x115   : > { %v4566_v22 = vpop.f32.mrb[20].mxu0  ;;  %v3520_v16 = vsel %vm1029_vm1, %v3517_v51, %v3519_v11  ;;  %v3523_v26 = vrot.slane %v5578_v17, 1 }
 0x116   : > { %v4530_v19 = vpop.f32.mrb[20].mxu1  ;;  %v1173_v6 = vpop.f32.mrb[21].mxu0  ;;  %v3521_v22 = vrot.slane %v5560_v59, 1 }
 0x117   : > { %v817_v58 = vpop.f32.mrb[21].mxu1  ;;  %v4567_v50 = vpop.f32.mrb[22].mxu0  ;;  %v4922_v19 = vld [vmem:[%s5035_s7 + $0xa0] ss:$0 sps:$4 sm:$0xff]   ;;  %s4004_s7 = sshll.u32 %s4945_s12, 3 }
 0x118   : > { %v964_v44 = vadd.f32 %v817_v58, %v5600_v37  ;;  %v4531_v4 = vpop.f32.mrb[22].mxu1  ;;  %v1176_v5 = vpop.f32.mrb[23].mxu0  ;;  %v3141_v37 = vrot.slane %v3139_v63, 1  ;;  %v3159_v58 = vor.u32 %v3157_v10, %v3155_v27  ;;  %v3524_v45 = vsel %vm1029_vm1, %v3521_v22, %v3523_v26  ;;  %p202_p7 = scmp.lt.s32.totalorder %s4004_s7, 15 }
 0x119   : > { %v820_v28 = vpop.f32.mrb[23].mxu1 }
 0x11a   : > { %v5695_v54 = vadd.f32 %v1173_v6, %v964_v44  ;;  %v965_v42 = vadd.f32 %v820_v28, %v5606_v29  ;;  %4793 = vmatmul.mubr.msk.bf16.gmra.mrb[128].mxu0 %vm340_vm0, %v3514_v53  ;;  %v3145_v62 = vor.u32 %v3143_v38, %v3141_v37  ;;  %v3142_v20 = vsel %vm590_vm2, %v3138_v9, %v3141_v37  ;;  %s5958_s7 = smov (!%p202_p7, %s4004_s7), 15 }
 0x11b   : > { %4757 = vmatmul.mubr.msk.bf16.gmra.mrb[128].mxu1 %vm340_vm0, %v3128_v13  ;;  %4796 = vmatprep.mubr.msk.bf16.mxu0 %vm340_vm0, %v3516_v18  ;;  %v3164_v28 = vshrl.u32 %v5578_v17, 16  ;;  %s4005_s12 = sshll.u32 %s5958_s7, 1 }
 0x11c   : > { %v5702_v40 = vadd.f32 %v1176_v5, %v965_v42  ;;  %4760 = vmatprep.mubr.msk.bf16.mxu1 %vm340_vm0, %v3135_v32  ;;  %v3149_v24 = vsel %vm590_vm2, %v3145_v62, %v3148_v15  ;;  %v3522_v5 = vsel %vm1029_vm1, %v3519_v11, %v3521_v22  ;;  %v3168_v32 = vshll.u32 %v4922_v19, 16  ;;  %s206_s25 = sadd.s32 %s4006_s24, %s4005_s12 }
 0x11d   : > { %v4570_v60 = vpop.f32.mrb[24].mxu0  ;;  %s4007_s26 = sshll.u32 %s206_s25, 3 }
 0x11e   : > { %v4534_v29 = vpop.f32.mrb[24].mxu1  ;;  %v1189_v57 = vpop.f32.mrb[25].mxu0  ;;  %v3170_v9 = vrot.slane %v3168_v32, 1  ;;  %s5878_s30 = scalar_lea.vmem %s5944_s3, %s4007_s26 }
 0x11f   : > { %v833_v34 = vpop.f32.mrb[25].mxu1  ;;  %v4571_v2 = vpop.f32.mrb[26].mxu0 }
 0x120   : > { %v968_v61 = vadd.f32 %v833_v34, %v5622_v0  ;;  %v4535_v35 = vpop.f32.mrb[26].mxu1  ;;  %v1192_v7 = vpop.f32.mrb[27].mxu0  ;;  %v3152_v0 = vor.u32 %v3150_v3, %v3148_v15 }
 0x121   : > { %v836_v8 = vpop.f32.mrb[27].mxu1 }
 0x122   : > { %v5715_v25 = vadd.f32 %v1189_v57, %v968_v61  ;;  %v969_v56 = vadd.f32 %v836_v8, %v5628_v49  ;;  %4797 = vmatmul.mubr.msk.bf16.gmra.mrb[132].mxu0 %vm340_vm0, %v3518_v39  ;;  %v3162_v49 = vrot.slane %v3160_v43, 1  ;;  %v3156_v4 = vsel %vm590_vm2, %v3152_v0, %v3155_v27 }
 0x123   : > { %4761 = vmatmul.mubr.msk.bf16.gmra.mrb[132].mxu1 %vm340_vm0, %v3142_v20  ;;  %4800 = vmatprep.mubr.msk.bf16.mxu0 %vm340_vm0, %v3520_v16 }
 0x124   : > { %v5722_v48 = vadd.f32 %v1192_v7, %v969_v56  ;;  %4764 = vmatprep.mubr.msk.bf16.mxu1 %vm340_vm0, %v3149_v24  ;;  %v3163_v55 = vsel %vm590_vm2, %v3159_v58, %v3162_v49  ;;  %v3166_v17 = vor.u32 %v3164_v28, %v3162_v49 }
 0x125   : > { %v4574_v6 = vpop.f32.mrb[28].mxu0 }
 0x126   : > { %v4538_v50 = vpop.f32.mrb[28].mxu1  ;;  %v1205_v53 = vpop.f32.mrb[29].mxu0  ;;  %v3171_v39 = vsel %vm590_vm2, %v3166_v17, %v3170_v9 }
 0x127   : > { %v849_v63 = vpop.f32.mrb[29].mxu1  ;;  %v4575_v44 = vpop.f32.mrb[30].mxu0 }
 0x128   : > { %v972_v59 = vadd.f32 %v849_v63, %v5644_v36  ;;  %v4539_v13 = vpop.f32.mrb[30].mxu1  ;;  %v1208_v18 = vpop.f32.mrb[31].mxu0  ;;  %v3525_v36 = vrot.slane %v4922_v19, 1 }
 0x129   : > { %v852_v38 = vpop.f32.mrb[31].mxu1 }
 0x12a   : > { %v5733_v42 = vadd.f32 %v1205_v53, %v972_v59  ;;  %v973_v37 = vadd.f32 %v852_v38, %v5650_v33  ;;  %4801 = vmatmul.mubr.msk.bf16.gmra.mrb[136].mxu0 %vm340_vm0, %v3522_v5  ;;  %v3526_v33 = vsel %vm1029_vm1, %v3523_v26, %v3525_v36 }
 0x12b   : > { %4765 = vmatmul.mubr.msk.bf16.gmra.mrb[136].mxu1 %vm340_vm0, %v3156_v4  ;;  %4804 = vmatprep.mubr.msk.bf16.mxu0 %vm340_vm0, %v3524_v45 }
 0x12c   : > { %v5739_v51 = vadd.f32 %v1208_v18, %v973_v37  ;;  %4768 = vmatprep.mubr.msk.bf16.mxu1 %vm340_vm0, %v3163_v55 }
 0x12d   : > { %v4578_v11 = vpop.f32.mrb[32].mxu0 }
 0x12e   : > { %v4542_v60 = vpop.f32.mrb[32].mxu1  ;;  %v1221_v62 = vpop.f32.mrb[33].mxu0 }
 0x12f   : > { %v865_v15 = vpop.f32.mrb[33].mxu1  ;;  %v4579_v29 = vpop.f32.mrb[34].mxu0 }
 0x130   : > { %v976_v57 = vadd.f32 %v865_v15, %v5580_v12  ;;  %v4543_v34 = vpop.f32.mrb[34].mxu1  ;;  %v1224_v2 = vpop.f32.mrb[35].mxu0 }
 0x131   : > { %v868_v3 = vpop.f32.mrb[35].mxu1 }
 0x132   : > { %v5745_v52 = vadd.f32 %v1221_v62, %v976_v57  ;;  %v977_v61 = vadd.f32 %v868_v3, %v5588_v21  ;;  %4805 = vmatmul.mubr.msk.bf16.gmra.mrb[140].mxu0 %vm340_vm0, %v3526_v33 }
 0x133   : > { %4769 = vmatmul.mubr.msk.bf16.gmra.mrb[140].mxu1 %vm340_vm0, %v3171_v39 }
 0x134   : > { %v5750_v35 = vadd.f32 %v1224_v2, %v977_v61 }
 0x135   : > { %v4582_v7 = vpop.f32.mrb[36].mxu0 }
 0x136   : > { %v4546_v20 = vpop.f32.mrb[36].mxu1  ;;  %v1237_v16 = vpop.f32.mrb[37].mxu0 }
 0x137   : > { %v881_v8 = vpop.f32.mrb[37].mxu1  ;;  %v4583_v12 = vpop.f32.mrb[38].mxu0 }
 0x138   : > { %v980_v24 = vadd.f32 %v881_v8, %v5602_v31  ;;  %v4547_v10 = vpop.f32.mrb[38].mxu1  ;;  %v1240_v43 = vpop.f32.mrb[39].mxu0 }
 0x139   : > { %v884_v56 = vpop.f32.mrb[39].mxu1 }
 0x13a   : > { %v5753_v0 = vadd.f32 %v1237_v16, %v980_v24  ;;  %v981_v21 = vadd.f32 %v884_v56, %v5611_v47 }
 0x13c   : > { %v5756_v27 = vadd.f32 %v1240_v43, %v981_v21 }
 0x13d   : > { %v4586_v22 = vpop.f32.mrb[40].mxu0 }
 0x13e   : > { %v4550_v26 = vpop.f32.mrb[40].mxu1  ;;  %v1253_v19 = vpop.f32.mrb[41].mxu0 }
 0x13f   : > { %v897_v6 = vpop.f32.mrb[41].mxu1  ;;  %v4587_v58 = vpop.f32.mrb[42].mxu0 }
 0x140   : > { %v984_v49 = vadd.f32 %v897_v6, %v5624_v1  ;;  %v4551_v50 = vpop.f32.mrb[42].mxu1  ;;  %v1256_v53 = vpop.f32.mrb[43].mxu0 }
 0x141   : > { %v900_v63 = vpop.f32.mrb[43].mxu1 }
 0x142   : > { %v5759_v31 = vadd.f32 %v1253_v19, %v984_v49  ;;  %v985_v44 = vadd.f32 %v900_v63, %v5633_v14 }
 0x144   : > { %v5762_v4 = vadd.f32 %v1256_v53, %v985_v44 }
 0x145   : > { %v4590_v5 = vpop.f32.mrb[44].mxu0 }
 0x146   : > { %v4554_v47 = vpop.f32.mrb[44].mxu1  ;;  %v1269_v59 = vpop.f32.mrb[45].mxu0 }
 0x147   : > { %v913_v13 = vpop.f32.mrb[45].mxu1  ;;  %v4591_v18 = vpop.f32.mrb[46].mxu0 }
 0x148   : > { %v988_v45 = vadd.f32 %v913_v13, %v5646_v46  ;;  %v4555_v28 = vpop.f32.mrb[46].mxu1  ;;  %v1272_v32 = vpop.f32.mrb[47].mxu0 }
 0x149   : > { %v916_v38 = vpop.f32.mrb[47].mxu1 }
 0x14a   : > { %v5765_v1 = vadd.f32 %v1269_v59, %v988_v45  ;;  %v989_v55 = vadd.f32 %v916_v38, %v5655_v41 }
 0x14c   : > { %v5768_v37 = vadd.f32 %v1272_v32, %v989_v55 }
 0x14d   : > { %v4634_v36 = vpop.f32.mrb[48].mxu0 }
 0x14e   : > { %v4598_v14 = vpop.f32.mrb[48].mxu1  ;;  %v2034_v17 = vpop.f32.mrb[49].mxu0 }
 0x14f   : > { %v1593_v9 = vpop.f32.mrb[49].mxu1  ;;  %v4635_v11 = vpop.f32.mrb[50].mxu0 }
 0x150   : > { %v1752_v60 = vadd.f32 %v1593_v9, %v5675_v23  ;;  %v4599_v62 = vpop.f32.mrb[50].mxu1  ;;  %v2037_v15 = vpop.f32.mrb[51].mxu0 }
 0x151   : > { %v1596_v29 = vpop.f32.mrb[51].mxu1 }
 0x152   : > { %v5771_v46 = vadd.f32 %v2034_v17, %v1752_v60  ;;  %v1753_v33 = vadd.f32 %v1596_v29, %v5682_v30 }
 0x154   : > { %v5774_v57 = vadd.f32 %v2037_v15, %v1753_v33 }
 0x155   : > { %v4638_v34 = vpop.f32.mrb[52].mxu0 }
 0x156   : > { %v4602_v41 = vpop.f32.mrb[52].mxu1  ;;  %v2050_v2 = vpop.f32.mrb[53].mxu0 }
 0x157   : > { %v1609_v39 = vpop.f32.mrb[53].mxu1  ;;  %v4639_v3 = vpop.f32.mrb[54].mxu0 }
 0x158   : > { %v1756_v61 = vadd.f32 %v1609_v39, %v5695_v54  ;;  %v4603_v7 = vpop.f32.mrb[54].mxu1  ;;  %v2053_v20 = vpop.f32.mrb[55].mxu0 }
 0x159   : > { %v1612_v16 = vpop.f32.mrb[55].mxu1 }
 0x15a   : > { %v5777_v23 = vadd.f32 %v2050_v2, %v1756_v61  ;;  %v1757_v8 = vadd.f32 %v1612_v16, %v5702_v40 }
 0x15c   : > { %v5780_v12 = vadd.f32 %v2053_v20, %v1757_v8 }
 0x15d   : > { %v4642_v24 = vpop.f32.mrb[56].mxu0 }
 0x15e   : > { %v4606_v30 = vpop.f32.mrb[56].mxu1  ;;  %v2066_v10 = vpop.f32.mrb[57].mxu0 }
 0x15f   : > { %v1625_v43 = vpop.f32.mrb[57].mxu1  ;;  %v4643_v56 = vpop.f32.mrb[58].mxu0 }
 0x160   : > { %v1760_v21 = vadd.f32 %v1625_v43, %v5715_v25  ;;  %v4607_v22 = vpop.f32.mrb[58].mxu1  ;;  %v2069_v26 = vpop.f32.mrb[59].mxu0 }
 0x161   : > { %v1628_v19 = vpop.f32.mrb[59].mxu1 }
 0x162   : > { %v5783_v54 = vadd.f32 %v2066_v10, %v1760_v21  ;;  %v1761_v6 = vadd.f32 %v1628_v19, %v5722_v48 }
 0x164   : > { %v5786_v58 = vadd.f32 %v2069_v26, %v1761_v6 }
 0x165   : > { %v4646_v49 = vpop.f32.mrb[60].mxu0 }
 0x166   : > { %v4610_v40 = vpop.f32.mrb[60].mxu1  ;;  %v2082_v50 = vpop.f32.mrb[61].mxu0 }
 0x167   : > { %v1641_v53 = vpop.f32.mrb[61].mxu1  ;;  %v4647_v63 = vpop.f32.mrb[62].mxu0 }
 0x168   : > { %v1764_v44 = vadd.f32 %v1641_v53, %v5733_v42  ;;  %v4611_v5 = vpop.f32.mrb[62].mxu1  ;;  %v2085_v47 = vpop.f32.mrb[63].mxu0 }
 0x169   : > { %v1644_v59 = vpop.f32.mrb[63].mxu1 }
 0x16a   : > { %v5789_v25 = vadd.f32 %v2082_v50, %v1764_v44  ;;  %v1765_v13 = vadd.f32 %v1644_v59, %v5739_v51 }
 0x16c   : > { %v5792_v18 = vadd.f32 %v2085_v47, %v1765_v13 }
 0x16d   : > { %v4650_v45 = vpop.f32.mrb[64].mxu0 }
 0x16e   : > { %v4614_v48 = vpop.f32.mrb[64].mxu1  ;;  %v2098_v28 = vpop.f32.mrb[65].mxu0 }
 0x16f   : > { %v1657_v32 = vpop.f32.mrb[65].mxu1  ;;  %v4651_v38 = vpop.f32.mrb[66].mxu0 }
 0x170   : > { %v1768_v55 = vadd.f32 %v1657_v32, %v5745_v52  ;;  %v4615_v36 = vpop.f32.mrb[66].mxu1  ;;  %v2101_v14 = vpop.f32.mrb[67].mxu0 }
 0x171   : > { %v1660_v17 = vpop.f32.mrb[67].mxu1 }
 0x172   : > { %v5795_v42 = vadd.f32 %v2098_v28, %v1768_v55  ;;  %v1769_v9 = vadd.f32 %v1660_v17, %v5750_v35 }
 0x174   : > { %v5798_v11 = vadd.f32 %v2101_v14, %v1769_v9 }
 0x175   : > { %v4654_v60 = vpop.f32.mrb[68].mxu0 }
 0x176   : > { %v4618_v51 = vpop.f32.mrb[68].mxu1  ;;  %v2114_v62 = vpop.f32.mrb[69].mxu0 }
 0x177   : > { %v1673_v15 = vpop.f32.mrb[69].mxu1  ;;  %v4655_v29 = vpop.f32.mrb[70].mxu0 }
 0x178   : > { %v1772_v33 = vadd.f32 %v1673_v15, %v5753_v0  ;;  %v4619_v34 = vpop.f32.mrb[70].mxu1  ;;  %v2117_v41 = vpop.f32.mrb[71].mxu0 }
 0x179   : > { %v1676_v2 = vpop.f32.mrb[71].mxu1 }
 0x17a   : > { %v5801_v52 = vadd.f32 %v2114_v62, %v1772_v33  ;;  %v1773_v39 = vadd.f32 %v1676_v2, %v5756_v27 }
 0x17c   : > { %v5804_v3 = vadd.f32 %v2117_v41, %v1773_v39 }
 0x17d   : > { %v4658_v61 = vpop.f32.mrb[72].mxu0 }
 0x17e   : > { %v4622_v35 = vpop.f32.mrb[72].mxu1  ;;  %v2130_v7 = vpop.f32.mrb[73].mxu0 }
 0x17f   : > { %v1689_v20 = vpop.f32.mrb[73].mxu1  ;;  %v4659_v16 = vpop.f32.mrb[74].mxu0 }
 0x180   : > { %v1776_v8 = vadd.f32 %v1689_v20, %v5759_v31  ;;  %v4623_v24 = vpop.f32.mrb[74].mxu1  ;;  %v2133_v30 = vpop.f32.mrb[75].mxu0 }
 0x181   : > { %v1692_v10 = vpop.f32.mrb[75].mxu1 }
 0x182   : > { %v5807_v0 = vadd.f32 %v2130_v7, %v1776_v8  ;;  %v1777_v43 = vadd.f32 %v1692_v10, %v5762_v4 }
 0x184   : > { %v5810_v56 = vadd.f32 %v2133_v30, %v1777_v43 }
 0x185   : > { %v4662_v21 = vpop.f32.mrb[76].mxu0 }
 0x186   : > { %v4626_v27 = vpop.f32.mrb[76].mxu1  ;;  %v2146_v22 = vpop.f32.mrb[77].mxu0 }
 0x187   : > { %v1705_v26 = vpop.f32.mrb[77].mxu1  ;;  %v4663_v19 = vpop.f32.mrb[78].mxu0 }
 0x188   : > { %v1780_v6 = vadd.f32 %v1705_v26, %v5765_v1  ;;  %v4627_v49 = vpop.f32.mrb[78].mxu1  ;;  %v2149_v40 = vpop.f32.mrb[79].mxu0 }
 0x189   : > { %v1708_v50 = vpop.f32.mrb[79].mxu1 }
 0x18a   : > { %v5813_v31 = vadd.f32 %v2146_v22, %v1780_v6  ;;  %v1781_v53 = vadd.f32 %v1708_v50, %v5768_v37 }
 0x18c   : > { %v5816_v63 = vadd.f32 %v2149_v40, %v1781_v53 }
 0x18d   : > { %v4706_v44 = vpop.f32.mrb[80].mxu0 }
 0x18e   : > { %v4670_v4 = vpop.f32.mrb[80].mxu1  ;;  %v2825_v5 = vpop.f32.mrb[81].mxu0 }
 0x18f   : > { %v2389_v47 = vpop.f32.mrb[81].mxu1  ;;  %v4707_v59 = vpop.f32.mrb[82].mxu0 }
 0x190   : > { %v2548_v13 = vadd.f32 %v2389_v47, %v5771_v46  ;;  %v4671_v45 = vpop.f32.mrb[82].mxu1  ;;  %v2828_v48 = vpop.f32.mrb[83].mxu0 }
 0x191   : > { %v2392_v28 = vpop.f32.mrb[83].mxu1 }
 0x192   : > { %v5819_v1 = vadd.f32 %v2825_v5, %v2548_v13  ;;  %v2549_v32 = vadd.f32 %v2392_v28, %v5774_v57 }
 0x194   : > { %v5822_v38 = vadd.f32 %v2828_v48, %v2549_v32 }
 0x195   : > { %v4710_v55 = vpop.f32.mrb[84].mxu0 }
 0x196   : > { %v4674_v37 = vpop.f32.mrb[84].mxu1  ;;  %v2841_v36 = vpop.f32.mrb[85].mxu0 }
 0x197   : > { %v2405_v14 = vpop.f32.mrb[85].mxu1  ;;  %v4711_v17 = vpop.f32.mrb[86].mxu0 }
 0x198   : > { %v2552_v9 = vadd.f32 %v2405_v14, %v5777_v23  ;;  %v4675_v60 = vpop.f32.mrb[86].mxu1  ;;  %v2844_v51 = vpop.f32.mrb[87].mxu0 }
 0x199   : > { %v2408_v62 = vpop.f32.mrb[87].mxu1 }
 0x19a   : > { %v5825_v46 = vadd.f32 %v2841_v36, %v2552_v9  ;;  %v2553_v15 = vadd.f32 %v2408_v62, %v5780_v12 }
 0x19c   : > { %v5828_v29 = vadd.f32 %v2844_v51, %v2553_v15 }
 0x19d   : > { %v4714_v33 = vpop.f32.mrb[88].mxu0 }
 0x19e   : > { %v4678_v57 = vpop.f32.mrb[88].mxu1  ;;  %v2857_v34 = vpop.f32.mrb[89].mxu0 }
 0x19f   : > { %v2421_v41 = vpop.f32.mrb[89].mxu1  ;;  %v4715_v2 = vpop.f32.mrb[90].mxu0 }
 0x1a0   : > { %v2556_v39 = vadd.f32 %v2421_v41, %v5783_v54  ;;  %v4679_v61 = vpop.f32.mrb[90].mxu1  ;;  %v2860_v35 = vpop.f32.mrb[91].mxu0 }
 0x1a1   : > { %v2424_v7 = vpop.f32.mrb[91].mxu1 }
 0x1a2   : > { %v5831_v23 = vadd.f32 %v2857_v34, %v2556_v39  ;;  %v2557_v20 = vadd.f32 %v2424_v7, %v5786_v58 }
 0x1a4   : > { %v5834_v16 = vadd.f32 %v2860_v35, %v2557_v20 }
 0x1a5   : > { %v4718_v8 = vpop.f32.mrb[92].mxu0 }
 0x1a6   : > { %v4682_v12 = vpop.f32.mrb[92].mxu1  ;;  %v2873_v24 = vpop.f32.mrb[93].mxu0 }
 0x1a7   : > { %v2437_v30 = vpop.f32.mrb[93].mxu1  ;;  %v4719_v10 = vpop.f32.mrb[94].mxu0 }
 0x1a8   : > { %v2560_v43 = vadd.f32 %v2437_v30, %v5789_v25  ;;  %v4683_v21 = vpop.f32.mrb[94].mxu1  ;;  %v2876_v27 = vpop.f32.mrb[95].mxu0 }
 0x1a9   : > { %v2440_v22 = vpop.f32.mrb[95].mxu1 }
 0x1aa   : > { %v5837_v54 = vadd.f32 %v2873_v24, %v2560_v43  ;;  %v2561_v26 = vadd.f32 %v2440_v22, %v5792_v18 }
 0x1ac   : > { %v5840_v19 = vadd.f32 %v2876_v27, %v2561_v26 }
 0x1ad   : > { %v4722_v6 = vpop.f32.mrb[96].mxu0 }
 0x1ae   : > { %v4686_v58 = vpop.f32.mrb[96].mxu1  ;;  %v2889_v49 = vpop.f32.mrb[97].mxu0 }
 0x1af   : > { %v2453_v40 = vpop.f32.mrb[97].mxu1  ;;  %v4723_v50 = vpop.f32.mrb[98].mxu0  ;;  %v5872_v58 = vld [vmem:[%s5943_s2] ss:$0 sm:$0xff] }
 0x1b0   : > { %v2564_v53 = vadd.f32 %v2453_v40, %v5795_v42  ;;  %v4687_v44 = vpop.f32.mrb[98].mxu1  ;;  %v2892_v4 = vpop.f32.mrb[99].mxu0 }
 0x1b1   : > { %v2456_v5 = vpop.f32.mrb[99].mxu1 }
 0x1b2   : > { %v5843_v25 = vadd.f32 %v2889_v49, %v2564_v53  ;;  %v2565_v47 = vadd.f32 %v2456_v5, %v5798_v11 }
 0x1b4   : > { %v5846_v59 = vadd.f32 %v2892_v4, %v2565_v47 }
 0x1b5   : > { %v4726_v13 = vpop.f32.mrb[100].mxu0 }
 0x1b6   : > { %v4690_v18 = vpop.f32.mrb[100].mxu1  ;;  %v2905_v45 = vpop.f32.mrb[101].mxu0 }
 0x1b7   : > { %v2469_v48 = vpop.f32.mrb[101].mxu1  ;;  %v4727_v28 = vpop.f32.mrb[102].mxu0 }
 0x1b8   : > { %v2568_v32 = vadd.f32 %v2469_v48, %v5801_v52  ;;  %v4691_v55 = vpop.f32.mrb[102].mxu1  ;;  %v2908_v37 = vpop.f32.mrb[103].mxu0 }
 0x1b9   : > { %v2472_v42 = vpop.f32.mrb[103].mxu1 }
 0x1ba   : > { %v5849_v36 = vadd.f32 %v2905_v45, %v2568_v32  ;;  %v2569_v14 = vadd.f32 %v2472_v42, %v5804_v3 }
 0x1bc   : > { %v5852_v17 = vadd.f32 %v2908_v37, %v2569_v14 }
 0x1bd   : > { %v4730_v11 = vpop.f32.mrb[104].mxu0 }
 0x1be   : > { %v4694_v9 = vpop.f32.mrb[104].mxu1  ;;  %v2921_v60 = vpop.f32.mrb[105].mxu0 }
 0x1bf   : > { %v2485_v51 = vpop.f32.mrb[105].mxu1  ;;  %v4731_v62 = vpop.f32.mrb[106].mxu0 }
 0x1c0   : > { %v2572_v15 = vadd.f32 %v2485_v51, %v5807_v0  ;;  %v4695_v33 = vpop.f32.mrb[106].mxu1  ;;  %v2924_v57 = vpop.f32.mrb[107].mxu0 }
 0x1c1   : > { %v2488_v52 = vpop.f32.mrb[107].mxu1 }
 0x1c2   : > { %v5856_v34 = vadd.f32 %v2921_v60, %v2572_v15  ;;  %v2573_v41 = vadd.f32 %v2488_v52, %v5810_v56 }
 0x1c4   : > { %v5859_v3 = vadd.f32 %v2924_v57, %v2573_v41 }
 0x1c5   : > { %v4734_v2 = vpop.f32.mrb[108].mxu0 }
 0x1c6   : > { %v4698_v39 = vpop.f32.mrb[108].mxu1  ;;  %v2937_v61 = vpop.f32.mrb[109].mxu0 }
 0x1c7   : > { %v2501_v35 = vpop.f32.mrb[109].mxu1  ;;  %v4735_v7 = vpop.f32.mrb[110].mxu0 }
 0x1c8   : > { %v2576_v20 = vadd.f32 %v2501_v35, %v5813_v31  ;;  %v4699_v0 = vpop.f32.mrb[110].mxu1  ;;  %v2940_v8 = vpop.f32.mrb[111].mxu0 }
 0x1c9   : > { %v2504_v12 = vpop.f32.mrb[111].mxu1 }
 0x1ca   : > { %v5862_v24 = vadd.f32 %v2937_v61, %v2576_v20  ;;  %v2577_v30 = vadd.f32 %v2504_v12, %v5816_v63 }
 0x1cc   : > { %v5866_v56 = vadd.f32 %v2940_v8, %v2577_v30 }
 0x1cd   : > { %v4778_v10 = vpop.f32.mrb[112].mxu0 }
 0x1ce   : > { %v4742_v43 = vpop.f32.mrb[112].mxu1  ;;  %v3621_v21 = vpop.f32.mrb[113].mxu0 }
 0x1cf   : > { %v3266_v27 = vpop.f32.mrb[113].mxu1  ;;  %v4779_v22 = vpop.f32.mrb[114].mxu0 }
 0x1d0   : > { %v3425_v26 = vadd.f32 %v3266_v27, %v5819_v1  ;;  %v4743_v31 = vpop.f32.mrb[114].mxu1  ;;  %v3624_v6 = vpop.f32.mrb[115].mxu0 }
 0x1d1   : > { %v3269_v63 = vpop.f32.mrb[115].mxu1 }
 0x1d2   : > { %v3780_v49 = vadd.f32 %v3621_v21, %v3425_v26  ;;  %v3426_v40 = vadd.f32 %v3269_v63, %v5822_v38 }
 0x1d4   : > { %v3867_v1 = vadd.f32 %v5872_v58, %v3780_v49  ;;  %v3781_v50 = vadd.f32 %v3624_v6, %v3426_v40 }
 0x1d5   : > { %v4782_v53 = vpop.f32.mrb[116].mxu0 }
 0x1d6   : > { %3883 = vst [vmem:[%s5878_s30] sm:$0xff] %v3867_v1  ;;  %v3868_v44 = vadd.f32 %v5872_v58, %v3781_v50  ;;  %v4746_v4 = vpop.f32.mrb[116].mxu1  ;;  %v3637_v5 = vpop.f32.mrb[117].mxu0 }
 0x1d7   : > { %v3282_v47 = vpop.f32.mrb[117].mxu1  ;;  %v4783_v13 = vpop.f32.mrb[118].mxu0 }
 0x1d8   : > { %3884 = vst [vmem:[%s5878_s30 + $0x8] sm:$0xff] %v3868_v44  ;;  %v3429_v38 = vadd.f32 %v3282_v47, %v5825_v46  ;;  %v4747_v18 = vpop.f32.mrb[118].mxu1  ;;  %v3640_v45 = vpop.f32.mrb[119].mxu0 }
 0x1d9   : > { %v3285_v48 = vpop.f32.mrb[119].mxu1 }
 0x1da   : > { %v3784_v28 = vadd.f32 %v3637_v5, %v3429_v38  ;;  %v3430_v32 = vadd.f32 %v3285_v48, %v5828_v29 }
 0x1dc   : > { %v3869_v55 = vadd.f32 %v5872_v58, %v3784_v28  ;;  %v3785_v37 = vadd.f32 %v3640_v45, %v3430_v32 }
 0x1dd   : > { %v4786_v42 = vpop.f32.mrb[120].mxu0 }
 0x1de   : > { %3885 = vst [vmem:[%s5878_s30 + $0x10] sm:$0xff] %v3869_v55  ;;  %v3870_v14 = vadd.f32 %v5872_v58, %v3785_v37  ;;  %v4750_v11 = vpop.f32.mrb[120].mxu1  ;;  %v3653_v9 = vpop.f32.mrb[121].mxu0 }
 0x1df   : > { %v3298_v60 = vpop.f32.mrb[121].mxu1  ;;  %v4787_v51 = vpop.f32.mrb[122].mxu0 }
 0x1e0   : > { %3886 = vst [vmem:[%s5878_s30 + $0x18] sm:$0xff] %v3870_v14  ;;  %v3433_v46 = vadd.f32 %v3298_v60, %v5831_v23  ;;  %v4751_v62 = vpop.f32.mrb[122].mxu1  ;;  %v3656_v15 = vpop.f32.mrb[123].mxu0 }
 0x1e1   : > { %v3301_v33 = vpop.f32.mrb[123].mxu1 }
 0x1e2   : > { %v3788_v29 = vadd.f32 %v3653_v9, %v3433_v46  ;;  %v3434_v57 = vadd.f32 %v3301_v33, %v5834_v16 }
 0x1e4   : > { %v3871_v52 = vadd.f32 %v5872_v58, %v3788_v29  ;;  %v3789_v41 = vadd.f32 %v3656_v15, %v3434_v57 }
 0x1e5   : > { %v4790_v2 = vpop.f32.mrb[124].mxu0 }
 0x1e6   : > { %3887 = vst [vmem:[%s5878_s30 + $0x20] sm:$0xff] %v3871_v52  ;;  %v3872_v39 = vadd.f32 %v5872_v58, %v3789_v41  ;;  %v4754_v61 = vpop.f32.mrb[124].mxu1  ;;  %v3669_v35 = vpop.f32.mrb[125].mxu0 }
 0x1e7   : > { %v3314_v7 = vpop.f32.mrb[125].mxu1  ;;  %v4791_v20 = vpop.f32.mrb[126].mxu0 }
 0x1e8   : > { %3888 = vst [vmem:[%s5878_s30 + $0x28] sm:$0xff] %v3872_v39  ;;  %v3437_v23 = vadd.f32 %v3314_v7, %v5837_v54  ;;  %v4755_v0 = vpop.f32.mrb[126].mxu1  ;;  %v3672_v8 = vpop.f32.mrb[127].mxu0 }
 0x1e9   : > { %v3317_v12 = vpop.f32.mrb[127].mxu1 }
 0x1ea   : > { %v3792_v16 = vadd.f32 %v3669_v35, %v3437_v23  ;;  %v3438_v30 = vadd.f32 %v3317_v12, %v5840_v19 }
 0x1ec   : > { %v3873_v10 = vadd.f32 %v5872_v58, %v3792_v16  ;;  %v3793_v43 = vadd.f32 %v3672_v8, %v3438_v30 }
 0x1ed   : > { %v4794_v21 = vpop.f32.mrb[128].mxu0 }
 0x1ee   : > { %3889 = vst [vmem:[%s5878_s30 + $0x30] sm:$0xff] %v3873_v10  ;;  %v3874_v27 = vadd.f32 %v5872_v58, %v3793_v43  ;;  %v4758_v22 = vpop.f32.mrb[128].mxu1  ;;  %v3685_v26 = vpop.f32.mrb[129].mxu0 }
 0x1ef   : > { %v3330_v31 = vpop.f32.mrb[129].mxu1  ;;  %v4795_v6 = vpop.f32.mrb[130].mxu0 }
 0x1f0   : > { %3890 = vst [vmem:[%s5878_s30 + $0x38] sm:$0xff] %v3874_v27  ;;  %v3441_v54 = vadd.f32 %v3330_v31, %v5843_v25  ;;  %v4759_v63 = vpop.f32.mrb[130].mxu1  ;;  %v3688_v49 = vpop.f32.mrb[131].mxu0 }
 0x1f1   : > { %v3333_v40 = vpop.f32.mrb[131].mxu1 }
 0x1f2   : > { %v3796_v19 = vadd.f32 %v3685_v26, %v3441_v54  ;;  %v3442_v1 = vadd.f32 %v3333_v40, %v5846_v59 }
 0x1f4   : > { %v3875_v50 = vadd.f32 %v5872_v58, %v3796_v19  ;;  %v3797_v53 = vadd.f32 %v3688_v49, %v3442_v1 }
 0x1f5   : > { %v4798_v44 = vpop.f32.mrb[132].mxu0 }
 0x1f6   : > { %3891 = vst [vmem:[%s5878_s30 + $0x40] sm:$0xff] %v3875_v50  ;;  %v3876_v4 = vadd.f32 %v5872_v58, %v3797_v53  ;;  %v4762_v5 = vpop.f32.mrb[132].mxu1  ;;  %v3701_v47 = vpop.f32.mrb[133].mxu0 }
 0x1f7   : > { %v3346_v13 = vpop.f32.mrb[133].mxu1  ;;  %v4799_v38 = vpop.f32.mrb[134].mxu0 }
 0x1f8   : > { %3892 = vst [vmem:[%s5878_s30 + $0x48] sm:$0xff] %v3876_v4  ;;  %v3445_v25 = vadd.f32 %v3346_v13, %v5849_v36  ;;  %v4763_v18 = vpop.f32.mrb[134].mxu1  ;;  %v3704_v45 = vpop.f32.mrb[135].mxu0 }
 0x1f9   : > { %v3349_v48 = vpop.f32.mrb[135].mxu1 }
 0x1fa   : > { %v3800_v59 = vadd.f32 %v3701_v47, %v3445_v25  ;;  %v3446_v28 = vadd.f32 %v3349_v48, %v5852_v17 }
 0x1fc   : > { %v3877_v32 = vadd.f32 %v5872_v58, %v3800_v59  ;;  %v3801_v55 = vadd.f32 %v3704_v45, %v3446_v28 }
 0x1fd   : > { %v4802_v37 = vpop.f32.mrb[136].mxu0 }
 0x1fe   : > { %3893 = vst [vmem:[%s5878_s30 + $0x50] sm:$0xff] %v3877_v32  ;;  %v3878_v42 = vadd.f32 %v5872_v58, %v3801_v55  ;;  %v4766_v14 = vpop.f32.mrb[136].mxu1  ;;  %v3717_v11 = vpop.f32.mrb[137].mxu0 }
 0x1ff   : > { %v3362_v9 = vpop.f32.mrb[137].mxu1  ;;  %v4803_v60 = vpop.f32.mrb[138].mxu0 }
 0x200   : > { %3894 = vst [vmem:[%s5878_s30 + $0x58] sm:$0xff] %v3878_v42  ;;  %v3449_v36 = vadd.f32 %v3362_v9, %v5856_v34  ;;  %v4767_v51 = vpop.f32.mrb[138].mxu1  ;;  %v3720_v46 = vpop.f32.mrb[139].mxu0 }
 0x201   : > { %v3365_v62 = vpop.f32.mrb[139].mxu1 }
 0x202   : > { %v3804_v17 = vadd.f32 %v3717_v11, %v3449_v36  ;;  %v3450_v15 = vadd.f32 %v3365_v62, %v5859_v3 }
 0x204   : > { %v3879_v33 = vadd.f32 %v5872_v58, %v3804_v17  ;;  %v3805_v29 = vadd.f32 %v3720_v46, %v3450_v15 }
 0x205   : > { %v4806_v57 = vpop.f32.mrb[140].mxu0 }
 0x206   : > { %3895 = vst [vmem:[%s5878_s30 + $0x60] sm:$0xff] %v3879_v33  ;;  %v3880_v52 = vadd.f32 %v5872_v58, %v3805_v29  ;;  %v4770_v41 = vpop.f32.mrb[140].mxu1  ;;  %v3733_v2 = vpop.f32.mrb[141].mxu0 }
 0x207   : > { %v3378_v39 = vpop.f32.mrb[141].mxu1  ;;  %v4807_v61 = vpop.f32.mrb[142].mxu0 }
 0x208   : > { %3896 = vst [vmem:[%s5878_s30 + $0x68] sm:$0xff] %v3880_v52  ;;  %v3453_v34 = vadd.f32 %v3378_v39, %v5862_v24  ;;  %v4771_v35 = vpop.f32.mrb[142].mxu1  ;;  %v3736_v7 = vpop.f32.mrb[143].mxu0 }
 0x209   : > { %v3381_v20 = vpop.f32.mrb[143].mxu1 }
 0x20a   : > { %v3808_v3 = vadd.f32 %v3733_v2, %v3453_v34  ;;  %v3454_v23 = vadd.f32 %v3381_v20, %v5866_v56 }
 0x20c   : > { %v3881_v0 = vadd.f32 %v5872_v58, %v3808_v3  ;;  %v3809_v8 = vadd.f32 %v3736_v7, %v3454_v23 }
 0x20e   : > { %3897 = vst [vmem:[%s5878_s30 + $0x70] sm:$0xff] %v3881_v0  ;;  %v3882_v12 = vadd.f32 %v5872_v58, %v3809_v8 }
 0x210   : > { %3898 = vst [vmem:[%s5878_s30 + $0x78] sm:$0xff] %v3882_v12 }
 0x211 PF: > { %s13_s16 = sadd.s32 1, %s4961_s16   ;;  %s5945_s12 = smov %s4953_s14 }
 0x212   : > { %p10_p8 = scmp.ge.s32.totalorder %s13_s16, 6   ;;  %s5946_s13 = smov %s4957_s15 }
 0x213   : > { %s5947_s14 = smov %s5950_s17  ;;  %s5948_s15 = smov %s5954_s18 }
 0x214   :  { %12 = sbr.rel (!%p10_p8) target bundleno = 3 (0x3), region = 72 }

</bundles_post_ra>
